<compile_context>
chip_gen: v6e
topology: v6e:2x2x1
jax: 0.10.0
libtpu: 0.0.40
codegen_flags: <defaults>
</compile_context>

<pallas_src>
import functools

import jax
import jax.numpy as jnp
from jax.experimental import pallas as pl
from jax.experimental.pallas import tpu as pltpu

# Accurate f32 matmuls/convs everywhere (kernel dots + pure-JAX reference).
jax.config.update("jax_default_matmul_precision", "highest")

EPS = 1e-5
VMEM_LIMIT = 48 * 1024 * 1024   # fits v7x (64 MiB physical), generous on v5e/v6e

# Parity taps for ConvTranspose2d(k=4, s=2, p=1): output row 2i+r uses (di, kh):
_ROW_TAPS = (((0, 1), (-1, 3)),   # r = 0 (even output rows / cols)
             ((0, 2), (1, 0)))    # r = 1 (odd  output rows / cols)


def _round_up(x, m):
    return (x + m - 1) // m * m


def _vmem():
    return pl.BlockSpec(memory_space=pltpu.MemorySpace.VMEM)


# --------------------------------------------------------------------------
# Layer 1: ConvTranspose2d(noise, k=4, s=1, p=0) on 1x1 input
#   == one matmul (B, Cin) @ (Cin, 16*Co), fused BatchNorm (batch stats) + ReLU.
# --------------------------------------------------------------------------
def l1_kernel(x_ref, w_ref, g_ref, b_ref, o_ref, *, co):
    # x: (B, Cin); w: (Cin, 16*Co) columns ordered (kh, kw, co); g/b: (1, Co)
    y = jnp.dot(x_ref[...], w_ref[...], preferred_element_type=jnp.float32)
    nb = y.shape[0]
    parts = [y[:, k * co:(k + 1) * co] for k in range(16)]   # 16 x (B, Co)

    def tree_sum(vals):                                       # pairwise tree reduce
        while len(vals) > 1:
            nxt = [vals[i] + vals[i + 1] for i in range(0, len(vals) - 1, 2)]
            if len(vals) % 2:
                nxt.append(vals[-1])
            vals = nxt
        return vals[0]

    n = 16.0 * nb
    mean = jnp.sum(tree_sum(parts), axis=0, keepdims=True) / n               # (1, Co)
    msq = jnp.sum(tree_sum([p * p for p in parts]), axis=0, keepdims=True) / n
    var = jnp.maximum(msq - mean * mean, 0.0)
    inv = jax.lax.rsqrt(var + EPS)
    scale = g_ref[...] * inv
    shift = b_ref[...] - mean * scale
    scale_t = jnp.concatenate([scale] * 16, axis=1)           # (1, 16*Co)
    shift_t = jnp.concatenate([shift] * 16, axis=1)
    o_ref[...] = jnp.maximum(y * scale_t + shift_t, 0.0)      # one dense store


def _layer1(x2, w1, gamma, beta):
    b, cin = x2.shape
    co = w1.shape[1]
    # columns ordered (kh, kw, co)
    w1r = jnp.transpose(w1, (0, 2, 3, 1)).reshape(cin, 16 * co)
    o = pl.pallas_call(
        functools.partial(l1_kernel, co=co),
        out_shape=jax.ShapeDtypeStruct((b, 16 * co), jnp.float32),
        in_specs=[_vmem(), _vmem(), _vmem(), _vmem()],
        out_specs=_vmem(),
    )(x2, w1r, gamma.reshape(1, co), beta.reshape(1, co))
    # (B, 16*Co) -> (B, Co, 4, 4) channel-major (oh = kh, ow = kw)
    return o.reshape(b, 4, 4, co).transpose(0, 3, 1, 2)


# --------------------------------------------------------------------------
# ConvTranspose2d(k=4, s=2, p=1) kernels (parity decomposition, fused taps).
# --------------------------------------------------------------------------
def _parity_matmul(x_ref, w_ref, p, offsets, margin, npix):
    # x_ref block: (1, Cin, Mpp) padded flat image; w_ref[p]: (Co, 4*Cin)
    slabs = [x_ref[0, :, margin + off: margin + off + npix] for off in offsets[p]]
    xp = jnp.concatenate(slabs, axis=0)                       # (4*Cin, Npix)
    return jnp.dot(w_ref[p], xp, preferred_element_type=jnp.float32)  # (Co, Npix)


def deconv_pass1_kernel(x_ref, w_ref, mask_ref, y_ref, st_ref, *,
                        margin, offsets, npix):
    # Conv for one image; also emit per-image BN partial sums (masked to valid pixels).
    mask = mask_ref[...]                                      # (1, Npix) 0/1
    parts, sums, sqs = [], [], []
    for p in range(4):
        yp = _parity_matmul(x_ref, w_ref, p, offsets, margin, npix)
        parts.append(yp)
        ym = yp * mask
        sums.append(jnp.sum(ym, axis=1, keepdims=True))       # (Co, 1)
        sqs.append(jnp.sum(ym * yp, axis=1, keepdims=True))   # mask * yp^2
    y_ref[0] = jnp.concatenate(parts, axis=0)                 # (4*Co, Npix) dense store
    s = (sums[0] + sums[1]) + (sums[2] + sums[3])
    q = (sqs[0] + sqs[1]) + (sqs[2] + sqs[3])
    st_ref[0] = jnp.concatenate([s, q], axis=1)               # (Co, 2)


def deconv_tanh_kernel(x_ref, w_ref, o_ref, *, margin, offsets, npix):
    parts = [_parity_matmul(x_ref, w_ref, p, offsets, margin, npix) for p in range(4)]
    o_ref[0] = jnp.tanh(jnp.concatenate(parts, axis=0))


def bn_relu_kernel(y_ref, st_ref, g_ref, b_ref, o_ref, *, n):
    # Finish the cross-batch stats reduction (tiny), then fused normalize + ReLU.
    st = st_ref[0]
    for i in range(1, st_ref.shape[0]):
        st = st + st_ref[i]                                   # (Co, 2)
    mean = st[:, 0:1] / n
    var = jnp.maximum(st[:, 1:2] / n - mean * mean, 0.0)      # clamp: cancellation guard
    inv = jax.lax.rsqrt(var + EPS)
    scale = g_ref[...] * inv                                  # (Co, 1)
    shift = b_ref[...] - mean * scale
    scale4 = jnp.concatenate([scale] * 4, axis=0)             # (4*Co, 1), parity-tiled
    shift4 = jnp.concatenate([shift] * 4, axis=0)
    o_ref[0] = jnp.maximum(y_ref[0] * scale4 + shift4, 0.0)   # (4*Co, Npix) dense store


# --------------------------------------------------------------------------
# Host-side glue (pure JAX): packing, padding, parity unpacking.
# --------------------------------------------------------------------------
def _pack_deconv_weights(wt, w_img):
    # wt: (Cin, Co, 4, 4) -> (4, Co, 4*Cin) per-parity packed weights + tap offsets.
    blocks, offs = [], []
    for r in range(2):
        for c in range(2):
            wb, ob = [], []
            for di, kh in _ROW_TAPS[r]:
                for dj, kw in _ROW_TAPS[c]:
                    wb.append(wt[:, :, kh, kw].T)             # (Co, Cin)
                    ob.append(di * (w_img + 2) + dj)
            blocks.append(jnp.concatenate(wb, axis=1))        # (Co, 4*Cin)
            offs.append(tuple(ob))
    return jnp.stack(blocks, axis=0), tuple(offs)


def _prep_input(x_cm):
    # (B, Cin, H, W) -> (B, Cin, Mpp): spatially zero-padded, flattened per image,
    # with a zero margin on the flat axis so all tap shifts are in-bounds slices.
    b, cin, h, w = x_cm.shape
    pp = (h + 2) * (w + 2)
    npix = _round_up(pp, 128)
    margin = w + 3
    mpp = _round_up(2 * margin + npix, 128)
    xf = jnp.pad(x_cm, ((0, 0), (0, 0), (1, 1), (1, 1))).reshape(b, cin, pp)
    xf = jnp.pad(xf, ((0, 0), (0, 0), (margin, mpp - pp - margin)))
    return xf, (h, w, pp, npix, margin, mpp)


def _valid_mask(h, w, npix):
    # 1.0 at padded-grid centers that correspond to real input pixels, else 0.0.
    q = jnp.arange(npix)
    pi = q // (w + 2)
    pj = q % (w + 2)
    valid = (q < (h + 2) * (w + 2)) & (pi >= 1) & (pi <= h) & (pj >= 1) & (pj <= w)
    return valid.astype(jnp.float32).reshape(1, npix)


def _unpack_parity(y, co, h, w, pp):
    # (B, 4*Co, Npix) parity-major -> (B, Co, 2H, 2W)  (already NCHW / channel-major)
    b = y.shape[0]
    y = y[:, :, :pp].reshape(b, 2, 2, co, h + 2, w + 2)[:, :, :, :, 1:h + 1, 1:w + 1]
    return y.transpose(0, 3, 4, 1, 5, 2).reshape(b, co, 2 * h, 2 * w)


def _deconv_pass1(x_cm, wt):
    b, cin, h, w = x_cm.shape
    co = wt.shape[1]
    xf, (h, w, pp, npix, margin, mpp) = _prep_input(x_cm)
    wp, offs = _pack_deconv_weights(wt, w)
    mask = _valid_mask(h, w, npix)
    kern = functools.partial(deconv_pass1_kernel, margin=margin, offsets=offs, npix=npix)
    y, st = pl.pallas_call(
        kern,
        grid=(b,),
        in_specs=[
            pl.BlockSpec((1, cin, mpp), lambda i: (i, 0, 0)),
            pl.BlockSpec((4, co, 4 * cin), lambda i: (0, 0, 0)),
            pl.BlockSpec((1, npix), lambda i: (0, 0)),
        ],
        out_specs=(
            pl.BlockSpec((1, 4 * co, npix), lambda i: (i, 0, 0)),
            pl.BlockSpec((1, co, 2), lambda i: (i, 0, 0)),
        ),
        out_shape=(
            jax.ShapeDtypeStruct((b, 4 * co, npix), jnp.float32),
            jax.ShapeDtypeStruct((b, co, 2), jnp.float32),
        ),
        compiler_params=pltpu.CompilerParams(
            dimension_semantics=("parallel",),
            vmem_limit_bytes=VMEM_LIMIT),
    )(xf, wp, mask)
    return y, st, (h, w, pp, npix)


def _deconv_bn_relu(x_cm, wt, gamma, beta):
    b = x_cm.shape[0]
    co = wt.shape[1]
    y, st, (h, w, pp, npix) = _deconv_pass1(x_cm, wt)
    n = float(b * 4 * h * w)   # number of valid output pixels per channel
    o = pl.pallas_call(
        functools.partial(bn_relu_kernel, n=n),
        grid=(b,),
        in_specs=[
            pl.BlockSpec((1, 4 * co, npix), lambda i: (i, 0, 0)),
            pl.BlockSpec((b, co, 2), lambda i: (0, 0, 0)),
            pl.BlockSpec((co, 1), lambda i: (0, 0)),
            pl.BlockSpec((co, 1), lambda i: (0, 0)),
        ],
        out_specs=pl.BlockSpec((1, 4 * co, npix), lambda i: (i, 0, 0)),
        out_shape=jax.ShapeDtypeStruct((b, 4 * co, npix), jnp.float32),
        compiler_params=pltpu.CompilerParams(
            dimension_semantics=("parallel",),
            vmem_limit_bytes=VMEM_LIMIT),
    )(y, st, gamma.reshape(co, 1), beta.reshape(co, 1))
    return _unpack_parity(o, co, h, w, pp)


def _deconv_tanh(x_cm, wt):
    b, cin, h, w = x_cm.shape
    co = wt.shape[1]
    xf, (h, w, pp, npix, margin, mpp) = _prep_input(x_cm)
    wp, offs = _pack_deconv_weights(wt, w)
    kern = functools.partial(deconv_tanh_kernel, margin=margin, offsets=offs, npix=npix)
    o = pl.pallas_call(
        kern,
        grid=(b,),
        in_specs=[
            pl.BlockSpec((1, cin, mpp), lambda i: (i, 0, 0)),
            pl.BlockSpec((4, co, 4 * cin), lambda i: (0, 0, 0)),
        ],
        out_specs=pl.BlockSpec((1, 4 * co, npix), lambda i: (i, 0, 0)),
        out_shape=jax.ShapeDtypeStruct((b, 4 * co, npix), jnp.float32),
        compiler_params=pltpu.CompilerParams(
            dimension_semantics=("parallel",),
            vmem_limit_bytes=VMEM_LIMIT),
    )(xf, wp)
    return _unpack_parity(o, co, h, w, pp)


def dcgan_forward(x_nchw, params):
    (w1, g1, b1), (w2, g2, b2), (w3, g3, b3), (w4, g4, b4), w5 = params
    b = x_nchw.shape[0]
    h = _layer1(x_nchw.reshape(b, -1), w1, g1, b1)   # (B, F,   4,  4)
    h = _deconv_bn_relu(h, w2, g2, b2)               # (B, F/2, 8,  8)
    h = _deconv_bn_relu(h, w3, g3, b3)               # (B, F/4, 16, 16)
    h = _deconv_bn_relu(h, w4, g4, b4)               # (B, F/8, 32, 32)
    return _deconv_tanh(h, w5)                       # (B, 3,   64, 64)  (NCHW)


# --------------------------------------------------------------------------
# Pure-JAX reference (same math, via dilated conv) for validation.
# --------------------------------------------------------------------------
def _ref_convT(x, wt, stride, pad):
    k = wt.shape[2]
    w_eq = jnp.flip(jnp.transpose(wt, (1, 0, 2, 3)), axis=(2, 3))
    return jax.lax.conv_general_dilated(
        x, w_eq, window_strides=(1, 1),
        padding=[(k - 1 - pad, k - 1 - pad)] * 2,
        lhs_dilation=(stride, stride),
        dimension_numbers=('NCHW', 'OIHW', 'NCHW'),
        precision=jax.lax.Precision.HIGHEST)


def _ref_bn_relu(x, gamma, beta):
    mean = x.mean(axis=(0, 2, 3), keepdims=True)
    var = ((x - mean) ** 2).mean(axis=(0, 2, 3), keepdims=True)
    y = (x - mean) / jnp.sqrt(var + EPS)
    y = y * gamma.reshape(1, -1, 1, 1) + beta.reshape(1, -1, 1, 1)
    return jnp.maximum(y, 0.0)


def reference_forward(x, params):
    (w1, g1, b1), (w2, g2, b2), (w3, g3, b3), (w4, g4, b4), w5 = params
    h = _ref_bn_relu(_ref_convT(x, w1, 1, 0), g1, b1)
    h = _ref_bn_relu(_ref_convT(h, w2, 2, 1), g2, b2)
    h = _ref_bn_relu(_ref_convT(h, w3, 2, 1), g3, b3)
    h = _ref_bn_relu(_ref_convT(h, w4, 2, 1), g4, b4)
    return jnp.tanh(_ref_convT(h, w5, 2, 1))


# --------------------------------------------------------------------------
def init_params(key, noise_dim, fd):
    ks = jax.random.split(key, 9)

    def conv_w(k, cin, co):
        return 0.02 * jax.random.normal(k, (cin, co, 4, 4), jnp.float32)

    def bn(k, c):
        return (1.0 + 0.02 * jax.random.normal(k, (c,), jnp.float32),
                jnp.zeros((c,), jnp.float32))

    w1 = conv_w(ks[0], noise_dim, fd);      g1, b1 = bn(ks[1], fd)
    w2 = conv_w(ks[2], fd, fd // 2);        g2, b2 = bn(ks[3], fd // 2)
    w3 = conv_w(ks[4], fd // 2, fd // 4);   g3, b3 = bn(ks[5], fd // 4)
    w4 = conv_w(ks[6], fd // 4, fd // 8);   g4, b4 = bn(ks[7], fd // 8)
    w5 = conv_w(ks[8], fd // 8, 3)
    return ((w1, g1, b1), (w2, g2, b2), (w3, g3, b3), (w4, g4, b4), w5)


if __name__ == "__main__":
    key = jax.random.PRNGKey(0)
    kp, kx = jax.random.split(key)
    B, NOISE_DIM, FILTER_DIM = 2, 16, 32   # small, consistent with the module
    params = init_params(kp, NOISE_DIM, FILTER_DIM)
    x = jax.random.normal(kx, (B, NOISE_DIM, 1, 1), jnp.float32)   # NCHW noise

    out = jax.jit(dcgan_forward)(x, params)
    out = jax.block_until_ready(out)

    assert out.shape == (B, 3, 64, 64), out.shape
    assert bool(jnp.all(jnp.isfinite(out)))

    ref = reference_forward(x, params)
    max_err = float(jnp.max(jnp.abs(out - ref)))
    assert max_err < 2e-3, f"mismatch vs reference: max abs err {max_err}"

    print("KERNEL_OK")
</pallas_src>

<mosaic_0001>
module attributes {stable_mosaic.version = 11 : i64} {
  func.func @l1_kernel(%arg0: memref<2x16xf32, #tpu.memory_space<vmem>>, %arg1: memref<16x512xf32, #tpu.memory_space<vmem>>, %arg2: memref<1x32xf32, #tpu.memory_space<vmem>>, %arg3: memref<1x32xf32, #tpu.memory_space<vmem>>, %arg4: memref<2x512xf32, #tpu.memory_space<vmem>>) attributes {dimension_semantics = [], scalar_prefetch = 0 : i64, scratch_operands = 0 : i64, tpu.core_type = #tpu.core_type<tc>} {
    %c0 = arith.constant 0 : index
    %c0_0 = arith.constant 0 : index
    %0 = vector.load %arg0[%c0, %c0_0] : memref<2x16xf32, #tpu.memory_space<vmem>>, vector<2x16xf32>
    %c0_1 = arith.constant 0 : index
    %c0_2 = arith.constant 0 : index
    %1 = vector.load %arg1[%c0_1, %c0_2] : memref<16x512xf32, #tpu.memory_space<vmem>>, vector<16x512xf32>
    %cst = arith.constant dense<0.000000e+00> : vector<2x512xf32>
    %2 = tpu.matmul %0, %1, %cst {dimension_numbers = #tpu.dot_dimension_numbers<[1], [0], [0], [1], [0, 0, 1, 1], [], []>, precision = #tpu.contract_precision<fp32>} : vector<2x16xf32>, vector<16x512xf32>, vector<2x512xf32> -> vector<2x512xf32>
    %3 = vector.extract_strided_slice %2 {offsets = [0, 0], sizes = [2, 32], strides = [1, 1]} : vector<2x512xf32> to vector<2x32xf32>
    %4 = vector.extract_strided_slice %2 {offsets = [0, 32], sizes = [2, 32], strides = [1, 1]} : vector<2x512xf32> to vector<2x32xf32>
    %5 = vector.extract_strided_slice %2 {offsets = [0, 64], sizes = [2, 32], strides = [1, 1]} : vector<2x512xf32> to vector<2x32xf32>
    %6 = vector.extract_strided_slice %2 {offsets = [0, 96], sizes = [2, 32], strides = [1, 1]} : vector<2x512xf32> to vector<2x32xf32>
    %7 = vector.extract_strided_slice %2 {offsets = [0, 128], sizes = [2, 32], strides = [1, 1]} : vector<2x512xf32> to vector<2x32xf32>
    %8 = vector.extract_strided_slice %2 {offsets = [0, 160], sizes = [2, 32], strides = [1, 1]} : vector<2x512xf32> to vector<2x32xf32>
    %9 = vector.extract_strided_slice %2 {offsets = [0, 192], sizes = [2, 32], strides = [1, 1]} : vector<2x512xf32> to vector<2x32xf32>
    %10 = vector.extract_strided_slice %2 {offsets = [0, 224], sizes = [2, 32], strides = [1, 1]} : vector<2x512xf32> to vector<2x32xf32>
    %11 = vector.extract_strided_slice %2 {offsets = [0, 256], sizes = [2, 32], strides = [1, 1]} : vector<2x512xf32> to vector<2x32xf32>
    %12 = vector.extract_strided_slice %2 {offsets = [0, 288], sizes = [2, 32], strides = [1, 1]} : vector<2x512xf32> to vector<2x32xf32>
    %13 = vector.extract_strided_slice %2 {offsets = [0, 320], sizes = [2, 32], strides = [1, 1]} : vector<2x512xf32> to vector<2x32xf32>
    %14 = vector.extract_strided_slice %2 {offsets = [0, 352], sizes = [2, 32], strides = [1, 1]} : vector<2x512xf32> to vector<2x32xf32>
    %15 = vector.extract_strided_slice %2 {offsets = [0, 384], sizes = [2, 32], strides = [1, 1]} : vector<2x512xf32> to vector<2x32xf32>
    %16 = vector.extract_strided_slice %2 {offsets = [0, 416], sizes = [2, 32], strides = [1, 1]} : vector<2x512xf32> to vector<2x32xf32>
    %17 = vector.extract_strided_slice %2 {offsets = [0, 448], sizes = [2, 32], strides = [1, 1]} : vector<2x512xf32> to vector<2x32xf32>
    %18 = vector.extract_strided_slice %2 {offsets = [0, 480], sizes = [2, 32], strides = [1, 1]} : vector<2x512xf32> to vector<2x32xf32>
    %19 = arith.addf %3, %4 : vector<2x32xf32>
    %20 = arith.addf %5, %6 : vector<2x32xf32>
    %21 = arith.addf %7, %8 : vector<2x32xf32>
    %22 = arith.addf %9, %10 : vector<2x32xf32>
    %23 = arith.addf %11, %12 : vector<2x32xf32>
    %24 = arith.addf %13, %14 : vector<2x32xf32>
    %25 = arith.addf %15, %16 : vector<2x32xf32>
    %26 = arith.addf %17, %18 : vector<2x32xf32>
    %27 = arith.addf %19, %20 : vector<2x32xf32>
    %28 = arith.addf %21, %22 : vector<2x32xf32>
    %29 = arith.addf %23, %24 : vector<2x32xf32>
    %30 = arith.addf %25, %26 : vector<2x32xf32>
    %31 = arith.addf %27, %28 : vector<2x32xf32>
    %32 = arith.addf %29, %30 : vector<2x32xf32>
    %33 = arith.addf %31, %32 : vector<2x32xf32>
    %cst_3 = arith.constant dense<0.000000e+00> : vector<32xf32>
    %34 = vector.multi_reduction <add>, %33, %cst_3 [0] : vector<2x32xf32> to vector<32xf32>
    %35 = vector.shape_cast %34 : vector<32xf32> to vector<1x32xf32>
    %cst_4 = arith.constant 3.200000e+01 : f32
    %36 = vector.broadcast %cst_4 : f32 to vector<1x32xf32>
    %37 = arith.divf %35, %36 : vector<1x32xf32>
    %38 = arith.mulf %3, %3 : vector<2x32xf32>
    %39 = arith.mulf %4, %4 : vector<2x32xf32>
    %40 = arith.mulf %5, %5 : vector<2x32xf32>
    %41 = arith.mulf %6, %6 : vector<2x32xf32>
    %42 = arith.mulf %7, %7 : vector<2x32xf32>
    %43 = arith.mulf %8, %8 : vector<2x32xf32>
    %44 = arith.mulf %9, %9 : vector<2x32xf32>
    %45 = arith.mulf %10, %10 : vector<2x32xf32>
    %46 = arith.mulf %11, %11 : vector<2x32xf32>
    %47 = arith.mulf %12, %12 : vector<2x32xf32>
    %48 = arith.mulf %13, %13 : vector<2x32xf32>
    %49 = arith.mulf %14, %14 : vector<2x32xf32>
    %50 = arith.mulf %15, %15 : vector<2x32xf32>
    %51 = arith.mulf %16, %16 : vector<2x32xf32>
    %52 = arith.mulf %17, %17 : vector<2x32xf32>
    %53 = arith.mulf %18, %18 : vector<2x32xf32>
    %54 = arith.addf %38, %39 : vector<2x32xf32>
    %55 = arith.addf %40, %41 : vector<2x32xf32>
    %56 = arith.addf %42, %43 : vector<2x32xf32>
    %57 = arith.addf %44, %45 : vector<2x32xf32>
    %58 = arith.addf %46, %47 : vector<2x32xf32>
    %59 = arith.addf %48, %49 : vector<2x32xf32>
    %60 = arith.addf %50, %51 : vector<2x32xf32>
    %61 = arith.addf %52, %53 : vector<2x32xf32>
    %62 = arith.addf %54, %55 : vector<2x32xf32>
    %63 = arith.addf %56, %57 : vector<2x32xf32>
    %64 = arith.addf %58, %59 : vector<2x32xf32>
    %65 = arith.addf %60, %61 : vector<2x32xf32>
    %66 = arith.addf %62, %63 : vector<2x32xf32>
    %67 = arith.addf %64, %65 : vector<2x32xf32>
    %68 = arith.addf %66, %67 : vector<2x32xf32>
    %cst_5 = arith.constant dense<0.000000e+00> : vector<32xf32>
    %69 = vector.multi_reduction <add>, %68, %cst_5 [0] : vector<2x32xf32> to vector<32xf32>
    %70 = vector.shape_cast %69 : vector<32xf32> to vector<1x32xf32>
    %cst_6 = arith.constant 3.200000e+01 : f32
    %71 = vector.broadcast %cst_6 : f32 to vector<1x32xf32>
    %72 = arith.divf %70, %71 : vector<1x32xf32>
    %73 = arith.mulf %37, %37 : vector<1x32xf32>
    %74 = arith.subf %72, %73 : vector<1x32xf32>
    %cst_7 = arith.constant 0.000000e+00 : f32
    %75 = vector.broadcast %cst_7 : f32 to vector<1x32xf32>
    %76 = arith.maximumf %74, %75 : vector<1x32xf32>
    %cst_8 = arith.constant 9.99999974E-6 : f32
    %77 = vector.broadcast %cst_8 : f32 to vector<1x32xf32>
    %78 = arith.addf %76, %77 : vector<1x32xf32>
    %79 = math.rsqrt %78 : vector<1x32xf32>
    %c0_9 = arith.constant 0 : index
    %c0_10 = arith.constant 0 : index
    %80 = vector.load %arg2[%c0_9, %c0_10] : memref<1x32xf32, #tpu.memory_space<vmem>>, vector<1x32xf32>
    %81 = arith.mulf %80, %79 : vector<1x32xf32>
    %c0_11 = arith.constant 0 : index
    %c0_12 = arith.constant 0 : index
    %82 = vector.load %arg3[%c0_11, %c0_12] : memref<1x32xf32, #tpu.memory_space<vmem>>, vector<1x32xf32>
    %83 = arith.mulf %37, %81 : vector<1x32xf32>
    %84 = arith.subf %82, %83 : vector<1x32xf32>
    %85 = tpu.concatenate %81, %81, %81, %81, %81, %81, %81, %81, %81, %81, %81, %81, %81, %81, %81, %81 in 1 : vector<1x32xf32>, vector<1x32xf32>, vector<1x32xf32>, vector<1x32xf32>, vector<1x32xf32>, vector<1x32xf32>, vector<1x32xf32>, vector<1x32xf32>, vector<1x32xf32>, vector<1x32xf32>, vector<1x32xf32>, vector<1x32xf32>, vector<1x32xf32>, vector<1x32xf32>, vector<1x32xf32>, vector<1x32xf32> -> vector<1x512xf32>
    %86 = tpu.concatenate %84, %84, %84, %84, %84, %84, %84, %84, %84, %84, %84, %84, %84, %84, %84, %84 in 1 : vector<1x32xf32>, vector<1x32xf32>, vector<1x32xf32>, vector<1x32xf32>, vector<1x32xf32>, vector<1x32xf32>, vector<1x32xf32>, vector<1x32xf32>, vector<1x32xf32>, vector<1x32xf32>, vector<1x32xf32>, vector<1x32xf32>, vector<1x32xf32>, vector<1x32xf32>, vector<1x32xf32>, vector<1x32xf32> -> vector<1x512xf32>
    %87 = vector.broadcast %85 : vector<1x512xf32> to vector<2x512xf32>
    %88 = arith.mulf %2, %87 : vector<2x512xf32>
    %89 = vector.broadcast %86 : vector<1x512xf32> to vector<2x512xf32>
    %90 = arith.addf %88, %89 : vector<2x512xf32>
    %cst_13 = arith.constant 0.000000e+00 : f32
    %91 = vector.broadcast %cst_13 : f32 to vector<2x512xf32>
    %92 = arith.maximumf %90, %91 : vector<2x512xf32>
    %c0_14 = arith.constant 0 : index
    %c0_15 = arith.constant 0 : index
    %93 = vector.load %arg4[%c0_14, %c0_15] : memref<2x512xf32, #tpu.memory_space<vmem>>, vector<2x512xf32>
    tpu.vector_store %arg4[%c0_14, %c0_15], %92 {strides = array<i32>} : memref<2x512xf32, #tpu.memory_space<vmem>>, vector<2x512xf32>,
    return
  }
}

module attributes {stable_mosaic.version = 11 : i64} {
  func.func @deconv_pass1_kernel(%arg0: i32, %arg1: memref<1x32x256xf32, #tpu.memory_space<vmem>>, %arg2: memref<4x16x128xf32, #tpu.memory_space<vmem>>, %arg3: memref<1x128xf32, #tpu.memory_space<vmem>>, %arg4: memref<1x64x128xf32, #tpu.memory_space<vmem>>, %arg5: memref<1x16x2xf32, #tpu.memory_space<vmem>>) attributes {dimension_semantics = [#tpu.dimension_semantics<parallel>], iteration_bounds = array<i64: 2>, scalar_prefetch = 0 : i64, scratch_operands = 0 : i64, tpu.core_type = #tpu.core_type<tc>, window_params = [{transform_indices = @transform_0, window_bounds = array<i64: 1, 32, 256>}, {pipeline_mode = #tpu.pipeline_mode<synchronous>, transform_indices = @transform_1, window_bounds = array<i64: 4, 16, 128>}, {pipeline_mode = #tpu.pipeline_mode<synchronous>, transform_indices = @transform_2, window_bounds = array<i64: 1, 128>}, {transform_indices = @transform_3, window_bounds = array<i64: 1, 64, 128>}, {transform_indices = @transform_4, window_bounds = array<i64: 1, 16, 2>}]} {
    %c0 = arith.constant 0 : index
    %c0_0 = arith.constant 0 : index
    %0 = vector.load %arg3[%c0, %c0_0] : memref<1x128xf32, #tpu.memory_space<vmem>>, vector<1x128xf32>
    %c0_1 = arith.constant 0 : index
    %c0_2 = arith.constant 0 : index
    %c7 = arith.constant 7 : index
    %1 = vector.load %arg1[%c0_1, %c0_2, %c7] : memref<1x32x256xf32, #tpu.memory_space<vmem>>, vector<1x32x128xf32>
    %2 = vector.shape_cast %1 : vector<1x32x128xf32> to vector<32x128xf32>
    %c0_3 = arith.constant 0 : index
    %c0_4 = arith.constant 0 : index
    %c6 = arith.constant 6 : index
    %3 = vector.load %arg1[%c0_3, %c0_4, %c6] : memref<1x32x256xf32, #tpu.memory_space<vmem>>, vector<1x32x128xf32>
    %4 = vector.shape_cast %3 : vector<1x32x128xf32> to vector<32x128xf32>
    %c0_5 = arith.constant 0 : index
    %c0_6 = arith.constant 0 : index
    %c1 = arith.constant 1 : index
    %5 = vector.load %arg1[%c0_5, %c0_6, %c1] : memref<1x32x256xf32, #tpu.memory_space<vmem>>, vector<1x32x128xf32>
    %6 = vector.shape_cast %5 : vector<1x32x128xf32> to vector<32x128xf32>
    %c0_7 = arith.constant 0 : index
    %c0_8 = arith.constant 0 : index
    %c0_9 = arith.constant 0 : index
    %7 = vector.load %arg1[%c0_7, %c0_8, %c0_9] : memref<1x32x256xf32, #tpu.memory_space<vmem>>, vector<1x32x128xf32>
    %8 = vector.shape_cast %7 : vector<1x32x128xf32> to vector<32x128xf32>
    %9 = tpu.concatenate %2, %4, %6, %8 in 0 : vector<32x128xf32>, vector<32x128xf32>, vector<32x128xf32>, vector<32x128xf32> -> vector<128x128xf32>
    %c0_10 = arith.constant 0 : index
    %c0_11 = arith.constant 0 : index
    %c0_12 = arith.constant 0 : index
    %10 = vector.load %arg2[%c0_10, %c0_11, %c0_12] : memref<4x16x128xf32, #tpu.memory_space<vmem>>, vector<1x16x128xf32>
    %11 = vector.shape_cast %10 : vector<1x16x128xf32> to vector<16x128xf32>
    %cst = arith.constant dense<0.000000e+00> : vector<16x128xf32>
    %12 = tpu.matmul %11, %9, %cst {dimension_numbers = #tpu.dot_dimension_numbers<[1], [0], [0], [1], [0, 0, 1, 1], [], []>, precision = #tpu.contract_precision<fp32>} : vector<16x128xf32>, vector<128x128xf32>, vector<16x128xf32> -> vector<16x128xf32>
    %13 = vector.broadcast %0 : vector<1x128xf32> to vector<16x128xf32>
    %14 = arith.mulf %12, %13 : vector<16x128xf32>
    %cst_13 = arith.constant dense<0.000000e+00> : vector<16xf32>
    %15 = vector.multi_reduction <add>, %14, %cst_13 [1] : vector<16x128xf32> to vector<16xf32>
    %16 = vector.shape_cast %15 : vector<16xf32> to vector<16x1xf32>
    %17 = arith.mulf %14, %12 : vector<16x128xf32>
    %cst_14 = arith.constant dense<0.000000e+00> : vector<16xf32>
    %18 = vector.multi_reduction <add>, %17, %cst_14 [1] : vector<16x128xf32> to vector<16xf32>
    %19 = vector.shape_cast %18 : vector<16xf32> to vector<16x1xf32>
    %c0_15 = arith.constant 0 : index
    %c0_16 = arith.constant 0 : index
    %c7_17 = arith.constant 7 : index
    %20 = vector.load %arg1[%c0_15, %c0_16, %c7_17] : memref<1x32x256xf32, #tpu.memory_space<vmem>>, vector<1x32x128xf32>
    %21 = vector.shape_cast %20 : vector<1x32x128xf32> to vector<32x128xf32>
    %c0_18 = arith.constant 0 : index
    %c0_19 = arith.constant 0 : index
    %c8 = arith.constant 8 : index
    %22 = vector.load %arg1[%c0_18, %c0_19, %c8] : memref<1x32x256xf32, #tpu.memory_space<vmem>>, vector<1x32x128xf32>
    %23 = vector.shape_cast %22 : vector<1x32x128xf32> to vector<32x128xf32>
    %c0_20 = arith.constant 0 : index
    %c0_21 = arith.constant 0 : index
    %c1_22 = arith.constant 1 : index
    %24 = vector.load %arg1[%c0_20, %c0_21, %c1_22] : memref<1x32x256xf32, #tpu.memory_space<vmem>>, vector<1x32x128xf32>
    %25 = vector.shape_cast %24 : vector<1x32x128xf32> to vector<32x128xf32>
    %c0_23 = arith.constant 0 : index
    %c0_24 = arith.constant 0 : index
    %c2 = arith.constant 2 : index
    %26 = vector.load %arg1[%c0_23, %c0_24, %c2] : memref<1x32x256xf32, #tpu.memory_space<vmem>>, vector<1x32x128xf32>
    %27 = vector.shape_cast %26 : vector<1x32x128xf32> to vector<32x128xf32>
    %28 = tpu.concatenate %21, %23, %25, %27 in 0 : vector<32x128xf32>, vector<32x128xf32>, vector<32x128xf32>, vector<32x128xf32> -> vector<128x128xf32>
    %c1_25 = arith.constant 1 : index
    %c0_26 = arith.constant 0 : index
    %c0_27 = arith.constant 0 : index
    %29 = vector.load %arg2[%c1_25, %c0_26, %c0_27] : memref<4x16x128xf32, #tpu.memory_space<vmem>>, vector<1x16x128xf32>
    %30 = vector.shape_cast %29 : vector<1x16x128xf32> to vector<16x128xf32>
    %cst_28 = arith.constant dense<0.000000e+00> : vector<16x128xf32>
    %31 = tpu.matmul %30, %28, %cst_28 {dimension_numbers = #tpu.dot_dimension_numbers<[1], [0], [0], [1], [0, 0, 1, 1], [], []>, precision = #tpu.contract_precision<fp32>} : vector<16x128xf32>, vector<128x128xf32>, vector<16x128xf32> -> vector<16x128xf32>
    %32 = vector.broadcast %0 : vector<1x128xf32> to vector<16x128xf32>
    %33 = arith.mulf %31, %32 : vector<16x128xf32>
    %cst_29 = arith.constant dense<0.000000e+00> : vector<16xf32>
    %34 = vector.multi_reduction <add>, %33, %cst_29 [1] : vector<16x128xf32> to vector<16xf32>
    %35 = vector.shape_cast %34 : vector<16xf32> to vector<16x1xf32>
    %36 = arith.mulf %33, %31 : vector<16x128xf32>
    %cst_30 = arith.constant dense<0.000000e+00> : vector<16xf32>
    %37 = vector.multi_reduction <add>, %36, %cst_30 [1] : vector<16x128xf32> to vector<16xf32>
    %38 = vector.shape_cast %37 : vector<16xf32> to vector<16x1xf32>
    %c0_31 = arith.constant 0 : index
    %c0_32 = arith.constant 0 : index
    %c7_33 = arith.constant 7 : index
    %39 = vector.load %arg1[%c0_31, %c0_32, %c7_33] : memref<1x32x256xf32, #tpu.memory_space<vmem>>, vector<1x32x128xf32>
    %40 = vector.shape_cast %39 : vector<1x32x128xf32> to vector<32x128xf32>
    %c0_34 = arith.constant 0 : index
    %c0_35 = arith.constant 0 : index
    %c6_36 = arith.constant 6 : index
    %41 = vector.load %arg1[%c0_34, %c0_35, %c6_36] : memref<1x32x256xf32, #tpu.memory_space<vmem>>, vector<1x32x128xf32>
    %42 = vector.shape_cast %41 : vector<1x32x128xf32> to vector<32x128xf32>
    %c0_37 = arith.constant 0 : index
    %c0_38 = arith.constant 0 : index
    %c13 = arith.constant 13 : index
    %43 = vector.load %arg1[%c0_37, %c0_38, %c13] : memref<1x32x256xf32, #tpu.memory_space<vmem>>, vector<1x32x128xf32>
    %44 = vector.shape_cast %43 : vector<1x32x128xf32> to vector<32x128xf32>
    %c0_39 = arith.constant 0 : index
    %c0_40 = arith.constant 0 : index
    %c12 = arith.constant 12 : index
    %45 = vector.load %arg1[%c0_39, %c0_40, %c12] : memref<1x32x256xf32, #tpu.memory_space<vmem>>, vector<1x32x128xf32>
    %46 = vector.shape_cast %45 : vector<1x32x128xf32> to vector<32x128xf32>
    %47 = tpu.concatenate %40, %42, %44, %46 in 0 : vector<32x128xf32>, vector<32x128xf32>, vector<32x128xf32>, vector<32x128xf32> -> vector<128x128xf32>
    %c2_41 = arith.constant 2 : index
    %c0_42 = arith.constant 0 : index
    %c0_43 = arith.constant 0 : index
    %48 = vector.load %arg2[%c2_41, %c0_42, %c0_43] : memref<4x16x128xf32, #tpu.memory_space<vmem>>, vector<1x16x128xf32>
    %49 = vector.shape_cast %48 : vector<1x16x128xf32> to vector<16x128xf32>
    %cst_44 = arith.constant dense<0.000000e+00> : vector<16x128xf32>
    %50 = tpu.matmul %49, %47, %cst_44 {dimension_numbers = #tpu.dot_dimension_numbers<[1], [0], [0], [1], [0, 0, 1, 1], [], []>, precision = #tpu.contract_precision<fp32>} : vector<16x128xf32>, vector<128x128xf32>, vector<16x128xf32> -> vector<16x128xf32>
    %51 = vector.broadcast %0 : vector<1x128xf32> to vector<16x128xf32>
    %52 = arith.mulf %50, %51 : vector<16x128xf32>
    %cst_45 = arith.constant dense<0.000000e+00> : vector<16xf32>
    %53 = vector.multi_reduction <add>, %52, %cst_45 [1] : vector<16x128xf32> to vector<16xf32>
    %54 = vector.shape_cast %53 : vector<16xf32> to vector<16x1xf32>
    %55 = arith.mulf %52, %50 : vector<16x128xf32>
    %cst_46 = arith.constant dense<0.000000e+00> : vector<16xf32>
    %56 = vector.multi_reduction <add>, %55, %cst_46 [1] : vector<16x128xf32> to vector<16xf32>
    %57 = vector.shape_cast %56 : vector<16xf32> to vector<16x1xf32>
    %c0_47 = arith.constant 0 : index
    %c0_48 = arith.constant 0 : index
    %c7_49 = arith.constant 7 : index
    %58 = vector.load %arg1[%c0_47, %c0_48, %c7_49] : memref<1x32x256xf32, #tpu.memory_space<vmem>>, vector<1x32x128xf32>
    %59 = vector.shape_cast %58 : vector<1x32x128xf32> to vector<32x128xf32>
    %c0_50 = arith.constant 0 : index
    %c0_51 = arith.constant 0 : index
    %c8_52 = arith.constant 8 : index
    %60 = vector.load %arg1[%c0_50, %c0_51, %c8_52] : memref<1x32x256xf32, #tpu.memory_space<vmem>>, vector<1x32x128xf32>
    %61 = vector.shape_cast %60 : vector<1x32x128xf32> to vector<32x128xf32>
    %c0_53 = arith.constant 0 : index
    %c0_54 = arith.constant 0 : index
    %c13_55 = arith.constant 13 : index
    %62 = vector.load %arg1[%c0_53, %c0_54, %c13_55] : memref<1x32x256xf32, #tpu.memory_space<vmem>>, vector<1x32x128xf32>
    %63 = vector.shape_cast %62 : vector<1x32x128xf32> to vector<32x128xf32>
    %c0_56 = arith.constant 0 : index
    %c0_57 = arith.constant 0 : index
    %c14 = arith.constant 14 : index
    %64 = vector.load %arg1[%c0_56, %c0_57, %c14] : memref<1x32x256xf32, #tpu.memory_space<vmem>>, vector<1x32x128xf32>
    %65 = vector.shape_cast %64 : vector<1x32x128xf32> to vector<32x128xf32>
    %66 = tpu.concatenate %59, %61, %63, %65 in 0 : vector<32x128xf32>, vector<32x128xf32>, vector<32x128xf32>, vector<32x128xf32> -> vector<128x128xf32>
    %c3 = arith.constant 3 : index
    %c0_58 = arith.constant 0 : index
    %c0_59 = arith.constant 0 : index
    %67 = vector.load %arg2[%c3, %c0_58, %c0_59] : memref<4x16x128xf32, #tpu.memory_space<vmem>>, vector<1x16x128xf32>
    %68 = vector.shape_cast %67 : vector<1x16x128xf32> to vector<16x128xf32>
    %cst_60 = arith.constant dense<0.000000e+00> : vector<16x128xf32>
    %69 = tpu.matmul %68, %66, %cst_60 {dimension_numbers = #tpu.dot_dimension_numbers<[1], [0], [0], [1], [0, 0, 1, 1], [], []>, precision = #tpu.contract_precision<fp32>} : vector<16x128xf32>, vector<128x128xf32>, vector<16x128xf32> -> vector<16x128xf32>
    %70 = vector.broadcast %0 : vector<1x128xf32> to vector<16x128xf32>
    %71 = arith.mulf %69, %70 : vector<16x128xf32>
    %cst_61 = arith.constant dense<0.000000e+00> : vector<16xf32>
    %72 = vector.multi_reduction <add>, %71, %cst_61 [1] : vector<16x128xf32> to vector<16xf32>
    %73 = vector.shape_cast %72 : vector<16xf32> to vector<16x1xf32>
    %74 = arith.mulf %71, %69 : vector<16x128xf32>
    %cst_62 = arith.constant dense<0.000000e+00> : vector<16xf32>
    %75 = vector.multi_reduction <add>, %74, %cst_62 [1] : vector<16x128xf32> to vector<16xf32>
    %76 = vector.shape_cast %75 : vector<16xf32> to vector<16x1xf32>
    %77 = tpu.concatenate %12, %31, %50, %69 in 0 : vector<16x128xf32>, vector<16x128xf32>, vector<16x128xf32>, vector<16x128xf32> -> vector<64x128xf32>
    %c0_63 = arith.constant 0 : index
    %c0_64 = arith.constant 0 : index
    %c0_65 = arith.constant 0 : index
    %78 = vector.load %arg4[%c0_63, %c0_64, %c0_65] : memref<1x64x128xf32, #tpu.memory_space<vmem>>, vector<1x64x128xf32>
    %79 = vector.shape_cast %78 : vector<1x64x128xf32> to vector<64x128xf32>
    %80 = vector.shape_cast %77 : vector<64x128xf32> to vector<1x64x128xf32>
    tpu.vector_store %arg4[%c0_63, %c0_64, %c0_65], %80 {strides = array<i32>} : memref<1x64x128xf32, #tpu.memory_space<vmem>>, vector<1x64x128xf32>,
    %81 = arith.addf %16, %35 : vector<16x1xf32>
    %82 = arith.addf %54, %73 : vector<16x1xf32>
    %83 = arith.addf %81, %82 : vector<16x1xf32>
    %84 = arith.addf %19, %38 : vector<16x1xf32>
    %85 = arith.addf %57, %76 : vector<16x1xf32>
    %86 = arith.addf %84, %85 : vector<16x1xf32>
    %87 = tpu.concatenate %83, %86 in 1 : vector<16x1xf32>, vector<16x1xf32> -> vector<16x2xf32>
    %c0_66 = arith.constant 0 : index
    %c0_67 = arith.constant 0 : index
    %c0_68 = arith.constant 0 : index
    %88 = vector.load %arg5[%c0_66, %c0_67, %c0_68] : memref<1x16x2xf32, #tpu.memory_space<vmem>>, vector<1x16x2xf32>
    %89 = vector.shape_cast %88 : vector<1x16x2xf32> to vector<16x2xf32>
    %90 = vector.shape_cast %87 : vector<16x2xf32> to vector<1x16x2xf32>
    tpu.vector_store %arg5[%c0_66, %c0_67, %c0_68], %90 {strides = array<i32>} : memref<1x16x2xf32, #tpu.memory_space<vmem>>, vector<1x16x2xf32>,
    return
  }
  func.func @transform_0(%arg0: i32) -> (i32, i32, i32) {
    %c0_i32 = arith.constant 0 : i32
    %c0_i32_0 = arith.constant 0 : i32
    %c0_i32_1 = arith.constant 0 : i32
    return %arg0, %c0_i32, %c0_i32_0 : i32, i32, i32
  }
  func.func @transform_1(%arg0: i32) -> (i32, i32, i32) {
    %c0_i32 = arith.constant 0 : i32
    %c0_i32_0 = arith.constant 0 : i32
    %c0_i32_1 = arith.constant 0 : i32
    %c0_i32_2 = arith.constant 0 : i32
    return %c0_i32, %c0_i32_0, %c0_i32_1 : i32, i32, i32
  }
  func.func @transform_2(%arg0: i32) -> (i32, i32) {
    %c0_i32 = arith.constant 0 : i32
    %c0_i32_0 = arith.constant 0 : i32
    %c0_i32_1 = arith.constant 0 : i32
    return %c0_i32, %c0_i32_0 : i32, i32
  }
  func.func @transform_3(%arg0: i32) -> (i32, i32, i32) {
    %c0_i32 = arith.constant 0 : i32
    %c0_i32_0 = arith.constant 0 : i32
    %c0_i32_1 = arith.constant 0 : i32
    return %arg0, %c0_i32, %c0_i32_0 : i32, i32, i32
  }
  func.func @transform_4(%arg0: i32) -> (i32, i32, i32) {
    %c0_i32 = arith.constant 0 : i32
    %c0_i32_0 = arith.constant 0 : i32
    %c0_i32_1 = arith.constant 0 : i32
    return %arg0, %c0_i32, %c0_i32_0 : i32, i32, i32
  }
}

module attributes {stable_mosaic.version = 11 : i64} {
  func.func @bn_relu_kernel(%arg0: i32, %arg1: memref<1x64x128xf32, #tpu.memory_space<vmem>>, %arg2: memref<2x16x2xf32, #tpu.memory_space<vmem>>, %arg3: memref<16x1xf32, #tpu.memory_space<vmem>>, %arg4: memref<16x1xf32, #tpu.memory_space<vmem>>, %arg5: memref<1x64x128xf32, #tpu.memory_space<vmem>>) attributes {dimension_semantics = [#tpu.dimension_semantics<parallel>], iteration_bounds = array<i64: 2>, scalar_prefetch = 0 : i64, scratch_operands = 0 : i64, tpu.core_type = #tpu.core_type<tc>, window_params = [{transform_indices = @transform_0, window_bounds = array<i64: 1, 64, 128>}, {pipeline_mode = #tpu.pipeline_mode<synchronous>, transform_indices = @transform_1, window_bounds = array<i64: 2, 16, 2>}, {pipeline_mode = #tpu.pipeline_mode<synchronous>, transform_indices = @transform_2, window_bounds = array<i64: 16, 1>}, {pipeline_mode = #tpu.pipeline_mode<synchronous>, transform_indices = @transform_3, window_bounds = array<i64: 16, 1>}, {transform_indices = @transform_4, window_bounds = array<i64: 1, 64, 128>}]} {
    %c0 = arith.constant 0 : index
    %c0_0 = arith.constant 0 : index
    %c0_1 = arith.constant 0 : index
    %0 = vector.load %arg2[%c0, %c0_0, %c0_1] : memref<2x16x2xf32, #tpu.memory_space<vmem>>, vector<1x16x2xf32>
    %1 = vector.shape_cast %0 : vector<1x16x2xf32> to vector<16x2xf32>
    %c1 = arith.constant 1 : index
    %c0_2 = arith.constant 0 : index
    %c0_3 = arith.constant 0 : index
    %2 = vector.load %arg2[%c1, %c0_2, %c0_3] : memref<2x16x2xf32, #tpu.memory_space<vmem>>, vector<1x16x2xf32>
    %3 = vector.shape_cast %2 : vector<1x16x2xf32> to vector<16x2xf32>
    %4 = arith.addf %1, %3 : vector<16x2xf32>
    %5 = vector.extract_strided_slice %4 {offsets = [0, 0], sizes = [16, 1], strides = [1, 1]} : vector<16x2xf32> to vector<16x1xf32>
    %cst = arith.constant 1.280000e+02 : f32
    %6 = vector.broadcast %cst : f32 to vector<16x1xf32>
    %7 = arith.divf %5, %6 : vector<16x1xf32>
    %8 = vector.extract_strided_slice %4 {offsets = [0, 1], sizes = [16, 1], strides = [1, 1]} : vector<16x2xf32> to vector<16x1xf32>
    %cst_4 = arith.constant 1.280000e+02 : f32
    %9 = vector.broadcast %cst_4 : f32 to vector<16x1xf32>
    %10 = arith.divf %8, %9 : vector<16x1xf32>
    %11 = arith.mulf %7, %7 : vector<16x1xf32>
    %12 = arith.subf %10, %11 : vector<16x1xf32>
    %cst_5 = arith.constant 0.000000e+00 : f32
    %13 = vector.broadcast %cst_5 : f32 to vector<16x1xf32>
    %14 = arith.maximumf %12, %13 : vector<16x1xf32>
    %cst_6 = arith.constant 9.99999974E-6 : f32
    %15 = vector.broadcast %cst_6 : f32 to vector<16x1xf32>
    %16 = arith.addf %14, %15 : vector<16x1xf32>
    %17 = math.rsqrt %16 : vector<16x1xf32>
    %c0_7 = arith.constant 0 : index
    %c0_8 = arith.constant 0 : index
    %18 = vector.load %arg3[%c0_7, %c0_8] : memref<16x1xf32, #tpu.memory_space<vmem>>, vector<16x1xf32>
    %19 = arith.mulf %18, %17 : vector<16x1xf32>
    %c0_9 = arith.constant 0 : index
    %c0_10 = arith.constant 0 : index
    %20 = vector.load %arg4[%c0_9, %c0_10] : memref<16x1xf32, #tpu.memory_space<vmem>>, vector<16x1xf32>
    %21 = arith.mulf %7, %19 : vector<16x1xf32>
    %22 = arith.subf %20, %21 : vector<16x1xf32>
    %23 = tpu.concatenate %19, %19, %19, %19 in 0 : vector<16x1xf32>, vector<16x1xf32>, vector<16x1xf32>, vector<16x1xf32> -> vector<64x1xf32>
    %24 = tpu.concatenate %22, %22, %22, %22 in 0 : vector<16x1xf32>, vector<16x1xf32>, vector<16x1xf32>, vector<16x1xf32> -> vector<64x1xf32>
    %c0_11 = arith.constant 0 : index
    %c0_12 = arith.constant 0 : index
    %c0_13 = arith.constant 0 : index
    %25 = vector.load %arg1[%c0_11, %c0_12, %c0_13] : memref<1x64x128xf32, #tpu.memory_space<vmem>>, vector<1x64x128xf32>
    %26 = vector.shape_cast %25 : vector<1x64x128xf32> to vector<64x128xf32>
    %27 = vector.broadcast %23 : vector<64x1xf32> to vector<64x128xf32>
    %28 = arith.mulf %26, %27 : vector<64x128xf32>
    %29 = vector.broadcast %24 : vector<64x1xf32> to vector<64x128xf32>
    %30 = arith.addf %28, %29 : vector<64x128xf32>
    %cst_14 = arith.constant 0.000000e+00 : f32
    %31 = vector.broadcast %cst_14 : f32 to vector<64x128xf32>
    %32 = arith.maximumf %30, %31 : vector<64x128xf32>
    %c0_15 = arith.constant 0 : index
    %c0_16 = arith.constant 0 : index
    %c0_17 = arith.constant 0 : index
    %33 = vector.load %arg5[%c0_15, %c0_16, %c0_17] : memref<1x64x128xf32, #tpu.memory_space<vmem>>, vector<1x64x128xf32>
    %34 = vector.shape_cast %33 : vector<1x64x128xf32> to vector<64x128xf32>
    %35 = vector.shape_cast %32 : vector<64x128xf32> to vector<1x64x128xf32>
    tpu.vector_store %arg5[%c0_15, %c0_16, %c0_17], %35 {strides = array<i32>} : memref<1x64x128xf32, #tpu.memory_space<vmem>>, vector<1x64x128xf32>,
    return
  }
  func.func @transform_0(%arg0: i32) -> (i32, i32, i32) {
    %c0_i32 = arith.constant 0 : i32
    %c0_i32_0 = arith.constant 0 : i32
    %c0_i32_1 = arith.constant 0 : i32
    return %arg0, %c0_i32, %c0_i32_0 : i32, i32, i32
  }
  func.func @transform_1(%arg0: i32) -> (i32, i32, i32) {
    %c0_i32 = arith.constant 0 : i32
    %c0_i32_0 = arith.constant 0 : i32
    %c0_i32_1 = arith.constant 0 : i32
    %c0_i32_2 = arith.constant 0 : i32
    return %c0_i32, %c0_i32_0, %c0_i32_1 : i32, i32, i32
  }
  func.func @transform_2(%arg0: i32) -> (i32, i32) {
    %c0_i32 = arith.constant 0 : i32
    %c0_i32_0 = arith.constant 0 : i32
    %c0_i32_1 = arith.constant 0 : i32
    return %c0_i32, %c0_i32_0 : i32, i32
  }
  func.func @transform_3(%arg0: i32) -> (i32, i32) {
    %c0_i32 = arith.constant 0 : i32
    %c0_i32_0 = arith.constant 0 : i32
    %c0_i32_1 = arith.constant 0 : i32
    return %c0_i32, %c0_i32_0 : i32, i32
  }
  func.func @transform_4(%arg0: i32) -> (i32, i32, i32) {
    %c0_i32 = arith.constant 0 : i32
    %c0_i32_0 = arith.constant 0 : i32
    %c0_i32_1 = arith.constant 0 : i32
    return %arg0, %c0_i32, %c0_i32_0 : i32, i32, i32
  }
}

module attributes {stable_mosaic.version = 11 : i64} {
  func.func @deconv_pass1_kernel(%arg0: i32, %arg1: memref<1x16x256xf32, #tpu.memory_space<vmem>>, %arg2: memref<4x8x64xf32, #tpu.memory_space<vmem>>, %arg3: memref<1x128xf32, #tpu.memory_space<vmem>>, %arg4: memref<1x32x128xf32, #tpu.memory_space<vmem>>, %arg5: memref<1x8x2xf32, #tpu.memory_space<vmem>>) attributes {dimension_semantics = [#tpu.dimension_semantics<parallel>], iteration_bounds = array<i64: 2>, scalar_prefetch = 0 : i64, scratch_operands = 0 : i64, tpu.core_type = #tpu.core_type<tc>, window_params = [{transform_indices = @transform_0, window_bounds = array<i64: 1, 16, 256>}, {pipeline_mode = #tpu.pipeline_mode<synchronous>, transform_indices = @transform_1, window_bounds = array<i64: 4, 8, 64>}, {pipeline_mode = #tpu.pipeline_mode<synchronous>, transform_indices = @transform_2, window_bounds = array<i64: 1, 128>}, {transform_indices = @transform_3, window_bounds = array<i64: 1, 32, 128>}, {transform_indices = @transform_4, window_bounds = array<i64: 1, 8, 2>}]} {
    %c0 = arith.constant 0 : index
    %c0_0 = arith.constant 0 : index
    %0 = vector.load %arg3[%c0, %c0_0] : memref<1x128xf32, #tpu.memory_space<vmem>>, vector<1x128xf32>
    %c0_1 = arith.constant 0 : index
    %c0_2 = arith.constant 0 : index
    %c11 = arith.constant 11 : index
    %1 = vector.load %arg1[%c0_1, %c0_2, %c11] : memref<1x16x256xf32, #tpu.memory_space<vmem>>, vector<1x16x128xf32>
    %2 = vector.shape_cast %1 : vector<1x16x128xf32> to vector<16x128xf32>
    %c0_3 = arith.constant 0 : index
    %c0_4 = arith.constant 0 : index
    %c10 = arith.constant 10 : index
    %3 = vector.load %arg1[%c0_3, %c0_4, %c10] : memref<1x16x256xf32, #tpu.memory_space<vmem>>, vector<1x16x128xf32>
    %4 = vector.shape_cast %3 : vector<1x16x128xf32> to vector<16x128xf32>
    %c0_5 = arith.constant 0 : index
    %c0_6 = arith.constant 0 : index
    %c1 = arith.constant 1 : index
    %5 = vector.load %arg1[%c0_5, %c0_6, %c1] : memref<1x16x256xf32, #tpu.memory_space<vmem>>, vector<1x16x128xf32>
    %6 = vector.shape_cast %5 : vector<1x16x128xf32> to vector<16x128xf32>
    %c0_7 = arith.constant 0 : index
    %c0_8 = arith.constant 0 : index
    %c0_9 = arith.constant 0 : index
    %7 = vector.load %arg1[%c0_7, %c0_8, %c0_9] : memref<1x16x256xf32, #tpu.memory_space<vmem>>, vector<1x16x128xf32>
    %8 = vector.shape_cast %7 : vector<1x16x128xf32> to vector<16x128xf32>
    %9 = tpu.concatenate %2, %4, %6, %8 in 0 : vector<16x128xf32>, vector<16x128xf32>, vector<16x128xf32>, vector<16x128xf32> -> vector<64x128xf32>
    %c0_10 = arith.constant 0 : index
    %c0_11 = arith.constant 0 : index
    %c0_12 = arith.constant 0 : index
    %10 = vector.load %arg2[%c0_10, %c0_11, %c0_12] : memref<4x8x64xf32, #tpu.memory_space<vmem>>, vector<1x8x64xf32>
    %11 = vector.shape_cast %10 : vector<1x8x64xf32> to vector<8x64xf32>
    %cst = arith.constant dense<0.000000e+00> : vector<8x128xf32>
    %12 = tpu.matmul %11, %9, %cst {dimension_numbers = #tpu.dot_dimension_numbers<[1], [0], [0], [1], [0, 0, 1, 1], [], []>, precision = #tpu.contract_precision<fp32>} : vector<8x64xf32>, vector<64x128xf32>, vector<8x128xf32> -> vector<8x128xf32>
    %13 = vector.broadcast %0 : vector<1x128xf32> to vector<8x128xf32>
    %14 = arith.mulf %12, %13 : vector<8x128xf32>
    %cst_13 = arith.constant dense<0.000000e+00> : vector<8xf32>
    %15 = vector.multi_reduction <add>, %14, %cst_13 [1] : vector<8x128xf32> to vector<8xf32>
    %16 = vector.shape_cast %15 : vector<8xf32> to vector<8x1xf32>
    %17 = arith.mulf %14, %12 : vector<8x128xf32>
    %cst_14 = arith.constant dense<0.000000e+00> : vector<8xf32>
    %18 = vector.multi_reduction <add>, %17, %cst_14 [1] : vector<8x128xf32> to vector<8xf32>
    %19 = vector.shape_cast %18 : vector<8xf32> to vector<8x1xf32>
    %c0_15 = arith.constant 0 : index
    %c0_16 = arith.constant 0 : index
    %c11_17 = arith.constant 11 : index
    %20 = vector.load %arg1[%c0_15, %c0_16, %c11_17] : memref<1x16x256xf32, #tpu.memory_space<vmem>>, vector<1x16x128xf32>
    %21 = vector.shape_cast %20 : vector<1x16x128xf32> to vector<16x128xf32>
    %c0_18 = arith.constant 0 : index
    %c0_19 = arith.constant 0 : index
    %c12 = arith.constant 12 : index
    %22 = vector.load %arg1[%c0_18, %c0_19, %c12] : memref<1x16x256xf32, #tpu.memory_space<vmem>>, vector<1x16x128xf32>
    %23 = vector.shape_cast %22 : vector<1x16x128xf32> to vector<16x128xf32>
    %c0_20 = arith.constant 0 : index
    %c0_21 = arith.constant 0 : index
    %c1_22 = arith.constant 1 : index
    %24 = vector.load %arg1[%c0_20, %c0_21, %c1_22] : memref<1x16x256xf32, #tpu.memory_space<vmem>>, vector<1x16x128xf32>
    %25 = vector.shape_cast %24 : vector<1x16x128xf32> to vector<16x128xf32>
    %c0_23 = arith.constant 0 : index
    %c0_24 = arith.constant 0 : index
    %c2 = arith.constant 2 : index
    %26 = vector.load %arg1[%c0_23, %c0_24, %c2] : memref<1x16x256xf32, #tpu.memory_space<vmem>>, vector<1x16x128xf32>
    %27 = vector.shape_cast %26 : vector<1x16x128xf32> to vector<16x128xf32>
    %28 = tpu.concatenate %21, %23, %25, %27 in 0 : vector<16x128xf32>, vector<16x128xf32>, vector<16x128xf32>, vector<16x128xf32> -> vector<64x128xf32>
    %c1_25 = arith.constant 1 : index
    %c0_26 = arith.constant 0 : index
    %c0_27 = arith.constant 0 : index
    %29 = vector.load %arg2[%c1_25, %c0_26, %c0_27] : memref<4x8x64xf32, #tpu.memory_space<vmem>>, vector<1x8x64xf32>
    %30 = vector.shape_cast %29 : vector<1x8x64xf32> to vector<8x64xf32>
    %cst_28 = arith.constant dense<0.000000e+00> : vector<8x128xf32>
    %31 = tpu.matmul %30, %28, %cst_28 {dimension_numbers = #tpu.dot_dimension_numbers<[1], [0], [0], [1], [0, 0, 1, 1], [], []>, precision = #tpu.contract_precision<fp32>} : vector<8x64xf32>, vector<64x128xf32>, vector<8x128xf32> -> vector<8x128xf32>
    %32 = vector.broadcast %0 : vector<1x128xf32> to vector<8x128xf32>
    %33 = arith.mulf %31, %32 : vector<8x128xf32>
    %cst_29 = arith.constant dense<0.000000e+00> : vector<8xf32>
    %34 = vector.multi_reduction <add>, %33, %cst_29 [1] : vector<8x128xf32> to vector<8xf32>
    %35 = vector.shape_cast %34 : vector<8xf32> to vector<8x1xf32>
    %36 = arith.mulf %33, %31 : vector<8x128xf32>
    %cst_30 = arith.constant dense<0.000000e+00> : vector<8xf32>
    %37 = vector.multi_reduction <add>, %36, %cst_30 [1] : vector<8x128xf32> to vector<8xf32>
    %38 = vector.shape_cast %37 : vector<8xf32> to vector<8x1xf32>
    %c0_31 = arith.constant 0 : index
    %c0_32 = arith.constant 0 : index
    %c11_33 = arith.constant 11 : index
    %39 = vector.load %arg1[%c0_31, %c0_32, %c11_33] : memref<1x16x256xf32, #tpu.memory_space<vmem>>, vector<1x16x128xf32>
    %40 = vector.shape_cast %39 : vector<1x16x128xf32> to vector<16x128xf32>
    %c0_34 = arith.constant 0 : index
    %c0_35 = arith.constant 0 : index
    %c10_36 = arith.constant 10 : index
    %41 = vector.load %arg1[%c0_34, %c0_35, %c10_36] : memref<1x16x256xf32, #tpu.memory_space<vmem>>, vector<1x16x128xf32>
    %42 = vector.shape_cast %41 : vector<1x16x128xf32> to vector<16x128xf32>
    %c0_37 = arith.constant 0 : index
    %c0_38 = arith.constant 0 : index
    %c21 = arith.constant 21 : index
    %43 = vector.load %arg1[%c0_37, %c0_38, %c21] : memref<1x16x256xf32, #tpu.memory_space<vmem>>, vector<1x16x128xf32>
    %44 = vector.shape_cast %43 : vector<1x16x128xf32> to vector<16x128xf32>
    %c0_39 = arith.constant 0 : index
    %c0_40 = arith.constant 0 : index
    %c20 = arith.constant 20 : index
    %45 = vector.load %arg1[%c0_39, %c0_40, %c20] : memref<1x16x256xf32, #tpu.memory_space<vmem>>, vector<1x16x128xf32>
    %46 = vector.shape_cast %45 : vector<1x16x128xf32> to vector<16x128xf32>
    %47 = tpu.concatenate %40, %42, %44, %46 in 0 : vector<16x128xf32>, vector<16x128xf32>, vector<16x128xf32>, vector<16x128xf32> -> vector<64x128xf32>
    %c2_41 = arith.constant 2 : index
    %c0_42 = arith.constant 0 : index
    %c0_43 = arith.constant 0 : index
    %48 = vector.load %arg2[%c2_41, %c0_42, %c0_43] : memref<4x8x64xf32, #tpu.memory_space<vmem>>, vector<1x8x64xf32>
    %49 = vector.shape_cast %48 : vector<1x8x64xf32> to vector<8x64xf32>
    %cst_44 = arith.constant dense<0.000000e+00> : vector<8x128xf32>
    %50 = tpu.matmul %49, %47, %cst_44 {dimension_numbers = #tpu.dot_dimension_numbers<[1], [0], [0], [1], [0, 0, 1, 1], [], []>, precision = #tpu.contract_precision<fp32>} : vector<8x64xf32>, vector<64x128xf32>, vector<8x128xf32> -> vector<8x128xf32>
    %51 = vector.broadcast %0 : vector<1x128xf32> to vector<8x128xf32>
    %52 = arith.mulf %50, %51 : vector<8x128xf32>
    %cst_45 = arith.constant dense<0.000000e+00> : vector<8xf32>
    %53 = vector.multi_reduction <add>, %52, %cst_45 [1] : vector<8x128xf32> to vector<8xf32>
    %54 = vector.shape_cast %53 : vector<8xf32> to vector<8x1xf32>
    %55 = arith.mulf %52, %50 : vector<8x128xf32>
    %cst_46 = arith.constant dense<0.000000e+00> : vector<8xf32>
    %56 = vector.multi_reduction <add>, %55, %cst_46 [1] : vector<8x128xf32> to vector<8xf32>
    %57 = vector.shape_cast %56 : vector<8xf32> to vector<8x1xf32>
    %c0_47 = arith.constant 0 : index
    %c0_48 = arith.constant 0 : index
    %c11_49 = arith.constant 11 : index
    %58 = vector.load %arg1[%c0_47, %c0_48, %c11_49] : memref<1x16x256xf32, #tpu.memory_space<vmem>>, vector<1x16x128xf32>
    %59 = vector.shape_cast %58 : vector<1x16x128xf32> to vector<16x128xf32>
    %c0_50 = arith.constant 0 : index
    %c0_51 = arith.constant 0 : index
    %c12_52 = arith.constant 12 : index
    %60 = vector.load %arg1[%c0_50, %c0_51, %c12_52] : memref<1x16x256xf32, #tpu.memory_space<vmem>>, vector<1x16x128xf32>
    %61 = vector.shape_cast %60 : vector<1x16x128xf32> to vector<16x128xf32>
    %c0_53 = arith.constant 0 : index
    %c0_54 = arith.constant 0 : index
    %c21_55 = arith.constant 21 : index
    %62 = vector.load %arg1[%c0_53, %c0_54, %c21_55] : memref<1x16x256xf32, #tpu.memory_space<vmem>>, vector<1x16x128xf32>
    %63 = vector.shape_cast %62 : vector<1x16x128xf32> to vector<16x128xf32>
    %c0_56 = arith.constant 0 : index
    %c0_57 = arith.constant 0 : index
    %c22 = arith.constant 22 : index
    %64 = vector.load %arg1[%c0_56, %c0_57, %c22] : memref<1x16x256xf32, #tpu.memory_space<vmem>>, vector<1x16x128xf32>
    %65 = vector.shape_cast %64 : vector<1x16x128xf32> to vector<16x128xf32>
    %66 = tpu.concatenate %59, %61, %63, %65 in 0 : vector<16x128xf32>, vector<16x128xf32>, vector<16x128xf32>, vector<16x128xf32> -> vector<64x128xf32>
    %c3 = arith.constant 3 : index
    %c0_58 = arith.constant 0 : index
    %c0_59 = arith.constant 0 : index
    %67 = vector.load %arg2[%c3, %c0_58, %c0_59] : memref<4x8x64xf32, #tpu.memory_space<vmem>>, vector<1x8x64xf32>
    %68 = vector.shape_cast %67 : vector<1x8x64xf32> to vector<8x64xf32>
    %cst_60 = arith.constant dense<0.000000e+00> : vector<8x128xf32>
    %69 = tpu.matmul %68, %66, %cst_60 {dimension_numbers = #tpu.dot_dimension_numbers<[1], [0], [0], [1], [0, 0, 1, 1], [], []>, precision = #tpu.contract_precision<fp32>} : vector<8x64xf32>, vector<64x128xf32>, vector<8x128xf32> -> vector<8x128xf32>
    %70 = vector.broadcast %0 : vector<1x128xf32> to vector<8x128xf32>
    %71 = arith.mulf %69, %70 : vector<8x128xf32>
    %cst_61 = arith.constant dense<0.000000e+00> : vector<8xf32>
    %72 = vector.multi_reduction <add>, %71, %cst_61 [1] : vector<8x128xf32> to vector<8xf32>
    %73 = vector.shape_cast %72 : vector<8xf32> to vector<8x1xf32>
    %74 = arith.mulf %71, %69 : vector<8x128xf32>
    %cst_62 = arith.constant dense<0.000000e+00> : vector<8xf32>
    %75 = vector.multi_reduction <add>, %74, %cst_62 [1] : vector<8x128xf32> to vector<8xf32>
    %76 = vector.shape_cast %75 : vector<8xf32> to vector<8x1xf32>
    %77 = tpu.concatenate %12, %31, %50, %69 in 0 : vector<8x128xf32>, vector<8x128xf32>, vector<8x128xf32>, vector<8x128xf32> -> vector<32x128xf32>
    %c0_63 = arith.constant 0 : index
    %c0_64 = arith.constant 0 : index
    %c0_65 = arith.constant 0 : index
    %78 = vector.load %arg4[%c0_63, %c0_64, %c0_65] : memref<1x32x128xf32, #tpu.memory_space<vmem>>, vector<1x32x128xf32>
    %79 = vector.shape_cast %78 : vector<1x32x128xf32> to vector<32x128xf32>
    %80 = vector.shape_cast %77 : vector<32x128xf32> to vector<1x32x128xf32>
    tpu.vector_store %arg4[%c0_63, %c0_64, %c0_65], %80 {strides = array<i32>} : memref<1x32x128xf32, #tpu.memory_space<vmem>>, vector<1x32x128xf32>,
    %81 = arith.addf %16, %35 : vector<8x1xf32>
    %82 = arith.addf %54, %73 : vector<8x1xf32>
    %83 = arith.addf %81, %82 : vector<8x1xf32>
    %84 = arith.addf %19, %38 : vector<8x1xf32>
    %85 = arith.addf %57, %76 : vector<8x1xf32>
    %86 = arith.addf %84, %85 : vector<8x1xf32>
    %87 = tpu.concatenate %83, %86 in 1 : vector<8x1xf32>, vector<8x1xf32> -> vector<8x2xf32>
    %c0_66 = arith.constant 0 : index
    %c0_67 = arith.constant 0 : index
    %c0_68 = arith.constant 0 : index
    %88 = vector.load %arg5[%c0_66, %c0_67, %c0_68] : memref<1x8x2xf32, #tpu.memory_space<vmem>>, vector<1x8x2xf32>
    %89 = vector.shape_cast %88 : vector<1x8x2xf32> to vector<8x2xf32>
    %90 = vector.shape_cast %87 : vector<8x2xf32> to vector<1x8x2xf32>
    tpu.vector_store %arg5[%c0_66, %c0_67, %c0_68], %90 {strides = array<i32>} : memref<1x8x2xf32, #tpu.memory_space<vmem>>, vector<1x8x2xf32>,
    return
  }
  func.func @transform_0(%arg0: i32) -> (i32, i32, i32) {
    %c0_i32 = arith.constant 0 : i32
    %c0_i32_0 = arith.constant 0 : i32
    %c0_i32_1 = arith.constant 0 : i32
    return %arg0, %c0_i32, %c0_i32_0 : i32, i32, i32
  }
  func.func @transform_1(%arg0: i32) -> (i32, i32, i32) {
    %c0_i32 = arith.constant 0 : i32
    %c0_i32_0 = arith.constant 0 : i32
    %c0_i32_1 = arith.constant 0 : i32
    %c0_i32_2 = arith.constant 0 : i32
    return %c0_i32, %c0_i32_0, %c0_i32_1 : i32, i32, i32
  }
  func.func @transform_2(%arg0: i32) -> (i32, i32) {
    %c0_i32 = arith.constant 0 : i32
    %c0_i32_0 = arith.constant 0 : i32
    %c0_i32_1 = arith.constant 0 : i32
    return %c0_i32, %c0_i32_0 : i32, i32
  }
  func.func @transform_3(%arg0: i32) -> (i32, i32, i32) {
    %c0_i32 = arith.constant 0 : i32
    %c0_i32_0 = arith.constant 0 : i32
    %c0_i32_1 = arith.constant 0 : i32
    return %arg0, %c0_i32, %c0_i32_0 : i32, i32, i32
  }
  func.func @transform_4(%arg0: i32) -> (i32, i32, i32) {
    %c0_i32 = arith.constant 0 : i32
    %c0_i32_0 = arith.constant 0 : i32
    %c0_i32_1 = arith.constant 0 : i32
    return %arg0, %c0_i32, %c0_i32_0 : i32, i32, i32
  }
}

module attributes {stable_mosaic.version = 11 : i64} {
  func.func @bn_relu_kernel(%arg0: i32, %arg1: memref<1x32x128xf32, #tpu.memory_space<vmem>>, %arg2: memref<2x8x2xf32, #tpu.memory_space<vmem>>, %arg3: memref<8x1xf32, #tpu.memory_space<vmem>>, %arg4: memref<8x1xf32, #tpu.memory_space<vmem>>, %arg5: memref<1x32x128xf32, #tpu.memory_space<vmem>>) attributes {dimension_semantics = [#tpu.dimension_semantics<parallel>], iteration_bounds = array<i64: 2>, scalar_prefetch = 0 : i64, scratch_operands = 0 : i64, tpu.core_type = #tpu.core_type<tc>, window_params = [{transform_indices = @transform_0, window_bounds = array<i64: 1, 32, 128>}, {pipeline_mode = #tpu.pipeline_mode<synchronous>, transform_indices = @transform_1, window_bounds = array<i64: 2, 8, 2>}, {pipeline_mode = #tpu.pipeline_mode<synchronous>, transform_indices = @transform_2, window_bounds = array<i64: 8, 1>}, {pipeline_mode = #tpu.pipeline_mode<synchronous>, transform_indices = @transform_3, window_bounds = array<i64: 8, 1>}, {transform_indices = @transform_4, window_bounds = array<i64: 1, 32, 128>}]} {
    %c0 = arith.constant 0 : index
    %c0_0 = arith.constant 0 : index
    %c0_1 = arith.constant 0 : index
    %0 = vector.load %arg2[%c0, %c0_0, %c0_1] : memref<2x8x2xf32, #tpu.memory_space<vmem>>, vector<1x8x2xf32>
    %1 = vector.shape_cast %0 : vector<1x8x2xf32> to vector<8x2xf32>
    %c1 = arith.constant 1 : index
    %c0_2 = arith.constant 0 : index
    %c0_3 = arith.constant 0 : index
    %2 = vector.load %arg2[%c1, %c0_2, %c0_3] : memref<2x8x2xf32, #tpu.memory_space<vmem>>, vector<1x8x2xf32>
    %3 = vector.shape_cast %2 : vector<1x8x2xf32> to vector<8x2xf32>
    %4 = arith.addf %1, %3 : vector<8x2xf32>
    %5 = vector.extract_strided_slice %4 {offsets = [0, 0], sizes = [8, 1], strides = [1, 1]} : vector<8x2xf32> to vector<8x1xf32>
    %cst = arith.constant 5.120000e+02 : f32
    %6 = vector.broadcast %cst : f32 to vector<8x1xf32>
    %7 = arith.divf %5, %6 : vector<8x1xf32>
    %8 = vector.extract_strided_slice %4 {offsets = [0, 1], sizes = [8, 1], strides = [1, 1]} : vector<8x2xf32> to vector<8x1xf32>
    %cst_4 = arith.constant 5.120000e+02 : f32
    %9 = vector.broadcast %cst_4 : f32 to vector<8x1xf32>
    %10 = arith.divf %8, %9 : vector<8x1xf32>
    %11 = arith.mulf %7, %7 : vector<8x1xf32>
    %12 = arith.subf %10, %11 : vector<8x1xf32>
    %cst_5 = arith.constant 0.000000e+00 : f32
    %13 = vector.broadcast %cst_5 : f32 to vector<8x1xf32>
    %14 = arith.maximumf %12, %13 : vector<8x1xf32>
    %cst_6 = arith.constant 9.99999974E-6 : f32
    %15 = vector.broadcast %cst_6 : f32 to vector<8x1xf32>
    %16 = arith.addf %14, %15 : vector<8x1xf32>
    %17 = math.rsqrt %16 : vector<8x1xf32>
    %c0_7 = arith.constant 0 : index
    %c0_8 = arith.constant 0 : index
    %18 = vector.load %arg3[%c0_7, %c0_8] : memref<8x1xf32, #tpu.memory_space<vmem>>, vector<8x1xf32>
    %19 = arith.mulf %18, %17 : vector<8x1xf32>
    %c0_9 = arith.constant 0 : index
    %c0_10 = arith.constant 0 : index
    %20 = vector.load %arg4[%c0_9, %c0_10] : memref<8x1xf32, #tpu.memory_space<vmem>>, vector<8x1xf32>
    %21 = arith.mulf %7, %19 : vector<8x1xf32>
    %22 = arith.subf %20, %21 : vector<8x1xf32>
    %23 = tpu.concatenate %19, %19, %19, %19 in 0 : vector<8x1xf32>, vector<8x1xf32>, vector<8x1xf32>, vector<8x1xf32> -> vector<32x1xf32>
    %24 = tpu.concatenate %22, %22, %22, %22 in 0 : vector<8x1xf32>, vector<8x1xf32>, vector<8x1xf32>, vector<8x1xf32> -> vector<32x1xf32>
    %c0_11 = arith.constant 0 : index
    %c0_12 = arith.constant 0 : index
    %c0_13 = arith.constant 0 : index
    %25 = vector.load %arg1[%c0_11, %c0_12, %c0_13] : memref<1x32x128xf32, #tpu.memory_space<vmem>>, vector<1x32x128xf32>
    %26 = vector.shape_cast %25 : vector<1x32x128xf32> to vector<32x128xf32>
    %27 = vector.broadcast %23 : vector<32x1xf32> to vector<32x128xf32>
    %28 = arith.mulf %26, %27 : vector<32x128xf32>
    %29 = vector.broadcast %24 : vector<32x1xf32> to vector<32x128xf32>
    %30 = arith.addf %28, %29 : vector<32x128xf32>
    %cst_14 = arith.constant 0.000000e+00 : f32
    %31 = vector.broadcast %cst_14 : f32 to vector<32x128xf32>
    %32 = arith.maximumf %30, %31 : vector<32x128xf32>
    %c0_15 = arith.constant 0 : index
    %c0_16 = arith.constant 0 : index
    %c0_17 = arith.constant 0 : index
    %33 = vector.load %arg5[%c0_15, %c0_16, %c0_17] : memref<1x32x128xf32, #tpu.memory_space<vmem>>, vector<1x32x128xf32>
    %34 = vector.shape_cast %33 : vector<1x32x128xf32> to vector<32x128xf32>
    %35 = vector.shape_cast %32 : vector<32x128xf32> to vector<1x32x128xf32>
    tpu.vector_store %arg5[%c0_15, %c0_16, %c0_17], %35 {strides = array<i32>} : memref<1x32x128xf32, #tpu.memory_space<vmem>>, vector<1x32x128xf32>,
    return
  }
  func.func @transform_0(%arg0: i32) -> (i32, i32, i32) {
    %c0_i32 = arith.constant 0 : i32
    %c0_i32_0 = arith.constant 0 : i32
    %c0_i32_1 = arith.constant 0 : i32
    return %arg0, %c0_i32, %c0_i32_0 : i32, i32, i32
  }
  func.func @transform_1(%arg0: i32) -> (i32, i32, i32) {
    %c0_i32 = arith.constant 0 : i32
    %c0_i32_0 = arith.constant 0 : i32
    %c0_i32_1 = arith.constant 0 : i32
    %c0_i32_2 = arith.constant 0 : i32
    return %c0_i32, %c0_i32_0, %c0_i32_1 : i32, i32, i32
  }
  func.func @transform_2(%arg0: i32) -> (i32, i32) {
    %c0_i32 = arith.constant 0 : i32
    %c0_i32_0 = arith.constant 0 : i32
    %c0_i32_1 = arith.constant 0 : i32
    return %c0_i32, %c0_i32_0 : i32, i32
  }
  func.func @transform_3(%arg0: i32) -> (i32, i32) {
    %c0_i32 = arith.constant 0 : i32
    %c0_i32_0 = arith.constant 0 : i32
    %c0_i32_1 = arith.constant 0 : i32
    return %c0_i32, %c0_i32_0 : i32, i32
  }
  func.func @transform_4(%arg0: i32) -> (i32, i32, i32) {
    %c0_i32 = arith.constant 0 : i32
    %c0_i32_0 = arith.constant 0 : i32
    %c0_i32_1 = arith.constant 0 : i32
    return %arg0, %c0_i32, %c0_i32_0 : i32, i32, i32
  }
}

module attributes {stable_mosaic.version = 11 : i64} {
  func.func @bn_relu_kernel(%arg0: i32, %arg1: memref<1x16x384xf32, #tpu.memory_space<vmem>>, %arg2: memref<2x4x2xf32, #tpu.memory_space<vmem>>, %arg3: memref<4x1xf32, #tpu.memory_space<vmem>>, %arg4: memref<4x1xf32, #tpu.memory_space<vmem>>, %arg5: memref<1x16x384xf32, #tpu.memory_space<vmem>>) attributes {dimension_semantics = [#tpu.dimension_semantics<parallel>], iteration_bounds = array<i64: 2>, scalar_prefetch = 0 : i64, scratch_operands = 0 : i64, tpu.core_type = #tpu.core_type<tc>, window_params = [{transform_indices = @transform_0, window_bounds = array<i64: 1, 16, 384>}, {pipeline_mode = #tpu.pipeline_mode<synchronous>, transform_indices = @transform_1, window_bounds = array<i64: 2, 4, 2>}, {pipeline_mode = #tpu.pipeline_mode<synchronous>, transform_indices = @transform_2, window_bounds = array<i64: 4, 1>}, {pipeline_mode = #tpu.pipeline_mode<synchronous>, transform_indices = @transform_3, window_bounds = array<i64: 4, 1>}, {transform_indices = @transform_4, window_bounds = array<i64: 1, 16, 384>}]} {
    %c0 = arith.constant 0 : index
    %c0_0 = arith.constant 0 : index
    %c0_1 = arith.constant 0 : index
    %0 = vector.load %arg2[%c0, %c0_0, %c0_1] : memref<2x4x2xf32, #tpu.memory_space<vmem>>, vector<1x4x2xf32>
    %1 = vector.shape_cast %0 : vector<1x4x2xf32> to vector<4x2xf32>
    %c1 = arith.constant 1 : index
    %c0_2 = arith.constant 0 : index
    %c0_3 = arith.constant 0 : index
    %2 = vector.load %arg2[%c1, %c0_2, %c0_3] : memref<2x4x2xf32, #tpu.memory_space<vmem>>, vector<1x4x2xf32>
    %3 = vector.shape_cast %2 : vector<1x4x2xf32> to vector<4x2xf32>
    %4 = arith.addf %1, %3 : vector<4x2xf32>
    %5 = vector.extract_strided_slice %4 {offsets = [0, 0], sizes = [4, 1], strides = [1, 1]} : vector<4x2xf32> to vector<4x1xf32>
    %cst = arith.constant 2.048000e+03 : f32
    %6 = vector.broadcast %cst : f32 to vector<4x1xf32>
    %7 = arith.divf %5, %6 : vector<4x1xf32>
    %8 = vector.extract_strided_slice %4 {offsets = [0, 1], sizes = [4, 1], strides = [1, 1]} : vector<4x2xf32> to vector<4x1xf32>
    %cst_4 = arith.constant 2.048000e+03 : f32
    %9 = vector.broadcast %cst_4 : f32 to vector<4x1xf32>
    %10 = arith.divf %8, %9 : vector<4x1xf32>
    %11 = arith.mulf %7, %7 : vector<4x1xf32>
    %12 = arith.subf %10, %11 : vector<4x1xf32>
    %cst_5 = arith.constant 0.000000e+00 : f32
    %13 = vector.broadcast %cst_5 : f32 to vector<4x1xf32>
    %14 = arith.maximumf %12, %13 : vector<4x1xf32>
    %cst_6 = arith.constant 9.99999974E-6 : f32
    %15 = vector.broadcast %cst_6 : f32 to vector<4x1xf32>
    %16 = arith.addf %14, %15 : vector<4x1xf32>
    %17 = math.rsqrt %16 : vector<4x1xf32>
    %c0_7 = arith.constant 0 : index
    %c0_8 = arith.constant 0 : index
    %18 = vector.load %arg3[%c0_7, %c0_8] : memref<4x1xf32, #tpu.memory_space<vmem>>, vector<4x1xf32>
    %19 = arith.mulf %18, %17 : vector<4x1xf32>
    %c0_9 = arith.constant 0 : index
    %c0_10 = arith.constant 0 : index
    %20 = vector.load %arg4[%c0_9, %c0_10] : memref<4x1xf32, #tpu.memory_space<vmem>>, vector<4x1xf32>
    %21 = arith.mulf %7, %19 : vector<4x1xf32>
    %22 = arith.subf %20, %21 : vector<4x1xf32>
    %23 = tpu.concatenate %19, %19, %19, %19 in 0 : vector<4x1xf32>, vector<4x1xf32>, vector<4x1xf32>, vector<4x1xf32> -> vector<16x1xf32>
    %24 = tpu.concatenate %22, %22, %22, %22 in 0 : vector<4x1xf32>, vector<4x1xf32>, vector<4x1xf32>, vector<4x1xf32> -> vector<16x1xf32>
    %c0_11 = arith.constant 0 : index
    %c0_12 = arith.constant 0 : index
    %c0_13 = arith.constant 0 : index
    %25 = vector.load %arg1[%c0_11, %c0_12, %c0_13] : memref<1x16x384xf32, #tpu.memory_space<vmem>>, vector<1x16x384xf32>
    %26 = vector.shape_cast %25 : vector<1x16x384xf32> to vector<16x384xf32>
    %27 = vector.broadcast %23 : vector<16x1xf32> to vector<16x384xf32>
    %28 = arith.mulf %26, %27 : vector<16x384xf32>
    %29 = vector.broadcast %24 : vector<16x1xf32> to vector<16x384xf32>
    %30 = arith.addf %28, %29 : vector<16x384xf32>
    %cst_14 = arith.constant 0.000000e+00 : f32
    %31 = vector.broadcast %cst_14 : f32 to vector<16x384xf32>
    %32 = arith.maximumf %30, %31 : vector<16x384xf32>
    %c0_15 = arith.constant 0 : index
    %c0_16 = arith.constant 0 : index
    %c0_17 = arith.constant 0 : index
    %33 = vector.load %arg5[%c0_15, %c0_16, %c0_17] : memref<1x16x384xf32, #tpu.memory_space<vmem>>, vector<1x16x384xf32>
    %34 = vector.shape_cast %33 : vector<1x16x384xf32> to vector<16x384xf32>
    %35 = vector.shape_cast %32 : vector<16x384xf32> to vector<1x16x384xf32>
    tpu.vector_store %arg5[%c0_15, %c0_16, %c0_17], %35 {strides = array<i32>} : memref<1x16x384xf32, #tpu.memory_space<vmem>>, vector<1x16x384xf32>,
    return
  }
  func.func @transform_0(%arg0: i32) -> (i32, i32, i32) {
    %c0_i32 = arith.constant 0 : i32
    %c0_i32_0 = arith.constant 0 : i32
    %c0_i32_1 = arith.constant 0 : i32
    return %arg0, %c0_i32, %c0_i32_0 : i32, i32, i32
  }
  func.func @transform_1(%arg0: i32) -> (i32, i32, i32) {
    %c0_i32 = arith.constant 0 : i32
    %c0_i32_0 = arith.constant 0 : i32
    %c0_i32_1 = arith.constant 0 : i32
    %c0_i32_2 = arith.constant 0 : i32
    return %c0_i32, %c0_i32_0, %c0_i32_1 : i32, i32, i32
  }
  func.func @transform_2(%arg0: i32) -> (i32, i32) {
    %c0_i32 = arith.constant 0 : i32
    %c0_i32_0 = arith.constant 0 : i32
    %c0_i32_1 = arith.constant 0 : i32
    return %c0_i32, %c0_i32_0 : i32, i32
  }
  func.func @transform_3(%arg0: i32) -> (i32, i32) {
    %c0_i32 = arith.constant 0 : i32
    %c0_i32_0 = arith.constant 0 : i32
    %c0_i32_1 = arith.constant 0 : i32
    return %c0_i32, %c0_i32_0 : i32, i32
  }
  func.func @transform_4(%arg0: i32) -> (i32, i32, i32) {
    %c0_i32 = arith.constant 0 : i32
    %c0_i32_0 = arith.constant 0 : i32
    %c0_i32_1 = arith.constant 0 : i32
    return %arg0, %c0_i32, %c0_i32_0 : i32, i32, i32
  }
}

module attributes {stable_mosaic.version = 11 : i64} {
  func.func @deconv_pass1_kernel(%arg0: i32, %arg1: memref<1x8x512xf32, #tpu.memory_space<vmem>>, %arg2: memref<4x4x32xf32, #tpu.memory_space<vmem>>, %arg3: memref<1x384xf32, #tpu.memory_space<vmem>>, %arg4: memref<1x16x384xf32, #tpu.memory_space<vmem>>, %arg5: memref<1x4x2xf32, #tpu.memory_space<vmem>>) attributes {dimension_semantics = [#tpu.dimension_semantics<parallel>], iteration_bounds = array<i64: 2>, scalar_prefetch = 0 : i64, scratch_operands = 0 : i64, tpu.core_type = #tpu.core_type<tc>, window_params = [{transform_indices = @transform_0, window_bounds = array<i64: 1, 8, 512>}, {pipeline_mode = #tpu.pipeline_mode<synchronous>, transform_indices = @transform_1, window_bounds = array<i64: 4, 4, 32>}, {pipeline_mode = #tpu.pipeline_mode<synchronous>, transform_indices = @transform_2, window_bounds = array<i64: 1, 384>}, {transform_indices = @transform_3, window_bounds = array<i64: 1, 16, 384>}, {transform_indices = @transform_4, window_bounds = array<i64: 1, 4, 2>}]} {
    %c0 = arith.constant 0 : index
    %c0_0 = arith.constant 0 : index
    %0 = vector.load %arg3[%c0, %c0_0] : memref<1x384xf32, #tpu.memory_space<vmem>>, vector<1x384xf32>
    %c0_1 = arith.constant 0 : index
    %c0_2 = arith.constant 0 : index
    %c19 = arith.constant 19 : index
    %1 = vector.load %arg1[%c0_1, %c0_2, %c19] : memref<1x8x512xf32, #tpu.memory_space<vmem>>, vector<1x8x384xf32>
    %2 = vector.shape_cast %1 : vector<1x8x384xf32> to vector<8x384xf32>
    %c0_3 = arith.constant 0 : index
    %c0_4 = arith.constant 0 : index
    %c18 = arith.constant 18 : index
    %3 = vector.load %arg1[%c0_3, %c0_4, %c18] : memref<1x8x512xf32, #tpu.memory_space<vmem>>, vector<1x8x384xf32>
    %4 = vector.shape_cast %3 : vector<1x8x384xf32> to vector<8x384xf32>
    %c0_5 = arith.constant 0 : index
    %c0_6 = arith.constant 0 : index
    %c1 = arith.constant 1 : index
    %5 = vector.load %arg1[%c0_5, %c0_6, %c1] : memref<1x8x512xf32, #tpu.memory_space<vmem>>, vector<1x8x384xf32>
    %6 = vector.shape_cast %5 : vector<1x8x384xf32> to vector<8x384xf32>
    %c0_7 = arith.constant 0 : index
    %c0_8 = arith.constant 0 : index
    %c0_9 = arith.constant 0 : index
    %7 = vector.load %arg1[%c0_7, %c0_8, %c0_9] : memref<1x8x512xf32, #tpu.memory_space<vmem>>, vector<1x8x384xf32>
    %8 = vector.shape_cast %7 : vector<1x8x384xf32> to vector<8x384xf32>
    %9 = tpu.concatenate %2, %4, %6, %8 in 0 : vector<8x384xf32>, vector<8x384xf32>, vector<8x384xf32>, vector<8x384xf32> -> vector<32x384xf32>
    %c0_10 = arith.constant 0 : index
    %c0_11 = arith.constant 0 : index
    %c0_12 = arith.constant 0 : index
    %10 = vector.load %arg2[%c0_10, %c0_11, %c0_12] : memref<4x4x32xf32, #tpu.memory_space<vmem>>, vector<1x4x32xf32>
    %11 = vector.shape_cast %10 : vector<1x4x32xf32> to vector<4x32xf32>
    %cst = arith.constant dense<0.000000e+00> : vector<4x384xf32>
    %12 = tpu.matmul %11, %9, %cst {dimension_numbers = #tpu.dot_dimension_numbers<[1], [0], [0], [1], [0, 0, 1, 1], [], []>, precision = #tpu.contract_precision<fp32>} : vector<4x32xf32>, vector<32x384xf32>, vector<4x384xf32> -> vector<4x384xf32>
    %13 = vector.broadcast %0 : vector<1x384xf32> to vector<4x384xf32>
    %14 = arith.mulf %12, %13 : vector<4x384xf32>
    %cst_13 = arith.constant dense<0.000000e+00> : vector<4xf32>
    %15 = vector.multi_reduction <add>, %14, %cst_13 [1] : vector<4x384xf32> to vector<4xf32>
    %16 = vector.shape_cast %15 : vector<4xf32> to vector<4x1xf32>
    %17 = arith.mulf %14, %12 : vector<4x384xf32>
    %cst_14 = arith.constant dense<0.000000e+00> : vector<4xf32>
    %18 = vector.multi_reduction <add>, %17, %cst_14 [1] : vector<4x384xf32> to vector<4xf32>
    %19 = vector.shape_cast %18 : vector<4xf32> to vector<4x1xf32>
    %c0_15 = arith.constant 0 : index
    %c0_16 = arith.constant 0 : index
    %c19_17 = arith.constant 19 : index
    %20 = vector.load %arg1[%c0_15, %c0_16, %c19_17] : memref<1x8x512xf32, #tpu.memory_space<vmem>>, vector<1x8x384xf32>
    %21 = vector.shape_cast %20 : vector<1x8x384xf32> to vector<8x384xf32>
    %c0_18 = arith.constant 0 : index
    %c0_19 = arith.constant 0 : index
    %c20 = arith.constant 20 : index
    %22 = vector.load %arg1[%c0_18, %c0_19, %c20] : memref<1x8x512xf32, #tpu.memory_space<vmem>>, vector<1x8x384xf32>
    %23 = vector.shape_cast %22 : vector<1x8x384xf32> to vector<8x384xf32>
    %c0_20 = arith.constant 0 : index
    %c0_21 = arith.constant 0 : index
    %c1_22 = arith.constant 1 : index
    %24 = vector.load %arg1[%c0_20, %c0_21, %c1_22] : memref<1x8x512xf32, #tpu.memory_space<vmem>>, vector<1x8x384xf32>
    %25 = vector.shape_cast %24 : vector<1x8x384xf32> to vector<8x384xf32>
    %c0_23 = arith.constant 0 : index
    %c0_24 = arith.constant 0 : index
    %c2 = arith.constant 2 : index
    %26 = vector.load %arg1[%c0_23, %c0_24, %c2] : memref<1x8x512xf32, #tpu.memory_space<vmem>>, vector<1x8x384xf32>
    %27 = vector.shape_cast %26 : vector<1x8x384xf32> to vector<8x384xf32>
    %28 = tpu.concatenate %21, %23, %25, %27 in 0 : vector<8x384xf32>, vector<8x384xf32>, vector<8x384xf32>, vector<8x384xf32> -> vector<32x384xf32>
    %c1_25 = arith.constant 1 : index
    %c0_26 = arith.constant 0 : index
    %c0_27 = arith.constant 0 : index
    %29 = vector.load %arg2[%c1_25, %c0_26, %c0_27] : memref<4x4x32xf32, #tpu.memory_space<vmem>>, vector<1x4x32xf32>
    %30 = vector.shape_cast %29 : vector<1x4x32xf32> to vector<4x32xf32>
    %cst_28 = arith.constant dense<0.000000e+00> : vector<4x384xf32>
    %31 = tpu.matmul %30, %28, %cst_28 {dimension_numbers = #tpu.dot_dimension_numbers<[1], [0], [0], [1], [0, 0, 1, 1], [], []>, precision = #tpu.contract_precision<fp32>} : vector<4x32xf32>, vector<32x384xf32>, vector<4x384xf32> -> vector<4x384xf32>
    %32 = vector.broadcast %0 : vector<1x384xf32> to vector<4x384xf32>
    %33 = arith.mulf %31, %32 : vector<4x384xf32>
    %cst_29 = arith.constant dense<0.000000e+00> : vector<4xf32>
    %34 = vector.multi_reduction <add>, %33, %cst_29 [1] : vector<4x384xf32> to vector<4xf32>
    %35 = vector.shape_cast %34 : vector<4xf32> to vector<4x1xf32>
    %36 = arith.mulf %33, %31 : vector<4x384xf32>
    %cst_30 = arith.constant dense<0.000000e+00> : vector<4xf32>
    %37 = vector.multi_reduction <add>, %36, %cst_30 [1] : vector<4x384xf32> to vector<4xf32>
    %38 = vector.shape_cast %37 : vector<4xf32> to vector<4x1xf32>
    %c0_31 = arith.constant 0 : index
    %c0_32 = arith.constant 0 : index
    %c19_33 = arith.constant 19 : index
    %39 = vector.load %arg1[%c0_31, %c0_32, %c19_33] : memref<1x8x512xf32, #tpu.memory_space<vmem>>, vector<1x8x384xf32>
    %40 = vector.shape_cast %39 : vector<1x8x384xf32> to vector<8x384xf32>
    %c0_34 = arith.constant 0 : index
    %c0_35 = arith.constant 0 : index
    %c18_36 = arith.constant 18 : index
    %41 = vector.load %arg1[%c0_34, %c0_35, %c18_36] : memref<1x8x512xf32, #tpu.memory_space<vmem>>, vector<1x8x384xf32>
    %42 = vector.shape_cast %41 : vector<1x8x384xf32> to vector<8x384xf32>
    %c0_37 = arith.constant 0 : index
    %c0_38 = arith.constant 0 : index
    %c37 = arith.constant 37 : index
    %43 = vector.load %arg1[%c0_37, %c0_38, %c37] : memref<1x8x512xf32, #tpu.memory_space<vmem>>, vector<1x8x384xf32>
    %44 = vector.shape_cast %43 : vector<1x8x384xf32> to vector<8x384xf32>
    %c0_39 = arith.constant 0 : index
    %c0_40 = arith.constant 0 : index
    %c36 = arith.constant 36 : index
    %45 = vector.load %arg1[%c0_39, %c0_40, %c36] : memref<1x8x512xf32, #tpu.memory_space<vmem>>, vector<1x8x384xf32>
    %46 = vector.shape_cast %45 : vector<1x8x384xf32> to vector<8x384xf32>
    %47 = tpu.concatenate %40, %42, %44, %46 in 0 : vector<8x384xf32>, vector<8x384xf32>, vector<8x384xf32>, vector<8x384xf32> -> vector<32x384xf32>
    %c2_41 = arith.constant 2 : index
    %c0_42 = arith.constant 0 : index
    %c0_43 = arith.constant 0 : index
    %48 = vector.load %arg2[%c2_41, %c0_42, %c0_43] : memref<4x4x32xf32, #tpu.memory_space<vmem>>, vector<1x4x32xf32>
    %49 = vector.shape_cast %48 : vector<1x4x32xf32> to vector<4x32xf32>
    %cst_44 = arith.constant dense<0.000000e+00> : vector<4x384xf32>
    %50 = tpu.matmul %49, %47, %cst_44 {dimension_numbers = #tpu.dot_dimension_numbers<[1], [0], [0], [1], [0, 0, 1, 1], [], []>, precision = #tpu.contract_precision<fp32>} : vector<4x32xf32>, vector<32x384xf32>, vector<4x384xf32> -> vector<4x384xf32>
    %51 = vector.broadcast %0 : vector<1x384xf32> to vector<4x384xf32>
    %52 = arith.mulf %50, %51 : vector<4x384xf32>
    %cst_45 = arith.constant dense<0.000000e+00> : vector<4xf32>
    %53 = vector.multi_reduction <add>, %52, %cst_45 [1] : vector<4x384xf32> to vector<4xf32>
    %54 = vector.shape_cast %53 : vector<4xf32> to vector<4x1xf32>
    %55 = arith.mulf %52, %50 : vector<4x384xf32>
    %cst_46 = arith.constant dense<0.000000e+00> : vector<4xf32>
    %56 = vector.multi_reduction <add>, %55, %cst_46 [1] : vector<4x384xf32> to vector<4xf32>
    %57 = vector.shape_cast %56 : vector<4xf32> to vector<4x1xf32>
    %c0_47 = arith.constant 0 : index
    %c0_48 = arith.constant 0 : index
    %c19_49 = arith.constant 19 : index
    %58 = vector.load %arg1[%c0_47, %c0_48, %c19_49] : memref<1x8x512xf32, #tpu.memory_space<vmem>>, vector<1x8x384xf32>
    %59 = vector.shape_cast %58 : vector<1x8x384xf32> to vector<8x384xf32>
    %c0_50 = arith.constant 0 : index
    %c0_51 = arith.constant 0 : index
    %c20_52 = arith.constant 20 : index
    %60 = vector.load %arg1[%c0_50, %c0_51, %c20_52] : memref<1x8x512xf32, #tpu.memory_space<vmem>>, vector<1x8x384xf32>
    %61 = vector.shape_cast %60 : vector<1x8x384xf32> to vector<8x384xf32>
    %c0_53 = arith.constant 0 : index
    %c0_54 = arith.constant 0 : index
    %c37_55 = arith.constant 37 : index
    %62 = vector.load %arg1[%c0_53, %c0_54, %c37_55] : memref<1x8x512xf32, #tpu.memory_space<vmem>>, vector<1x8x384xf32>
    %63 = vector.shape_cast %62 : vector<1x8x384xf32> to vector<8x384xf32>
    %c0_56 = arith.constant 0 : index
    %c0_57 = arith.constant 0 : index
    %c38 = arith.constant 38 : index
    %64 = vector.load %arg1[%c0_56, %c0_57, %c38] : memref<1x8x512xf32, #tpu.memory_space<vmem>>, vector<1x8x384xf32>
    %65 = vector.shape_cast %64 : vector<1x8x384xf32> to vector<8x384xf32>
    %66 = tpu.concatenate %59, %61, %63, %65 in 0 : vector<8x384xf32>, vector<8x384xf32>, vector<8x384xf32>, vector<8x384xf32> -> vector<32x384xf32>
    %c3 = arith.constant 3 : index
    %c0_58 = arith.constant 0 : index
    %c0_59 = arith.constant 0 : index
    %67 = vector.load %arg2[%c3, %c0_58, %c0_59] : memref<4x4x32xf32, #tpu.memory_space<vmem>>, vector<1x4x32xf32>
    %68 = vector.shape_cast %67 : vector<1x4x32xf32> to vector<4x32xf32>
    %cst_60 = arith.constant dense<0.000000e+00> : vector<4x384xf32>
    %69 = tpu.matmul %68, %66, %cst_60 {dimension_numbers = #tpu.dot_dimension_numbers<[1], [0], [0], [1], [0, 0, 1, 1], [], []>, precision = #tpu.contract_precision<fp32>} : vector<4x32xf32>, vector<32x384xf32>, vector<4x384xf32> -> vector<4x384xf32>
    %70 = vector.broadcast %0 : vector<1x384xf32> to vector<4x384xf32>
    %71 = arith.mulf %69, %70 : vector<4x384xf32>
    %cst_61 = arith.constant dense<0.000000e+00> : vector<4xf32>
    %72 = vector.multi_reduction <add>, %71, %cst_61 [1] : vector<4x384xf32> to vector<4xf32>
    %73 = vector.shape_cast %72 : vector<4xf32> to vector<4x1xf32>
    %74 = arith.mulf %71, %69 : vector<4x384xf32>
    %cst_62 = arith.constant dense<0.000000e+00> : vector<4xf32>
    %75 = vector.multi_reduction <add>, %74, %cst_62 [1] : vector<4x384xf32> to vector<4xf32>
    %76 = vector.shape_cast %75 : vector<4xf32> to vector<4x1xf32>
    %77 = tpu.concatenate %12, %31, %50, %69 in 0 : vector<4x384xf32>, vector<4x384xf32>, vector<4x384xf32>, vector<4x384xf32> -> vector<16x384xf32>
    %c0_63 = arith.constant 0 : index
    %c0_64 = arith.constant 0 : index
    %c0_65 = arith.constant 0 : index
    %78 = vector.load %arg4[%c0_63, %c0_64, %c0_65] : memref<1x16x384xf32, #tpu.memory_space<vmem>>, vector<1x16x384xf32>
    %79 = vector.shape_cast %78 : vector<1x16x384xf32> to vector<16x384xf32>
    %80 = vector.shape_cast %77 : vector<16x384xf32> to vector<1x16x384xf32>
    tpu.vector_store %arg4[%c0_63, %c0_64, %c0_65], %80 {strides = array<i32>} : memref<1x16x384xf32, #tpu.memory_space<vmem>>, vector<1x16x384xf32>,
    %81 = arith.addf %16, %35 : vector<4x1xf32>
    %82 = arith.addf %54, %73 : vector<4x1xf32>
    %83 = arith.addf %81, %82 : vector<4x1xf32>
    %84 = arith.addf %19, %38 : vector<4x1xf32>
    %85 = arith.addf %57, %76 : vector<4x1xf32>
    %86 = arith.addf %84, %85 : vector<4x1xf32>
    %87 = tpu.concatenate %83, %86 in 1 : vector<4x1xf32>, vector<4x1xf32> -> vector<4x2xf32>
    %c0_66 = arith.constant 0 : index
    %c0_67 = arith.constant 0 : index
    %c0_68 = arith.constant 0 : index
    %88 = vector.load %arg5[%c0_66, %c0_67, %c0_68] : memref<1x4x2xf32, #tpu.memory_space<vmem>>, vector<1x4x2xf32>
    %89 = vector.shape_cast %88 : vector<1x4x2xf32> to vector<4x2xf32>
    %90 = vector.shape_cast %87 : vector<4x2xf32> to vector<1x4x2xf32>
    tpu.vector_store %arg5[%c0_66, %c0_67, %c0_68], %90 {strides = array<i32>} : memref<1x4x2xf32, #tpu.memory_space<vmem>>, vector<1x4x2xf32>,
    return
  }
  func.func @transform_0(%arg0: i32) -> (i32, i32, i32) {
    %c0_i32 = arith.constant 0 : i32
    %c0_i32_0 = arith.constant 0 : i32
    %c0_i32_1 = arith.constant 0 : i32
    return %arg0, %c0_i32, %c0_i32_0 : i32, i32, i32
  }
  func.func @transform_1(%arg0: i32) -> (i32, i32, i32) {
    %c0_i32 = arith.constant 0 : i32
    %c0_i32_0 = arith.constant 0 : i32
    %c0_i32_1 = arith.constant 0 : i32
    %c0_i32_2 = arith.constant 0 : i32
    return %c0_i32, %c0_i32_0, %c0_i32_1 : i32, i32, i32
  }
  func.func @transform_2(%arg0: i32) -> (i32, i32) {
    %c0_i32 = arith.constant 0 : i32
    %c0_i32_0 = arith.constant 0 : i32
    %c0_i32_1 = arith.constant 0 : i32
    return %c0_i32, %c0_i32_0 : i32, i32
  }
  func.func @transform_3(%arg0: i32) -> (i32, i32, i32) {
    %c0_i32 = arith.constant 0 : i32
    %c0_i32_0 = arith.constant 0 : i32
    %c0_i32_1 = arith.constant 0 : i32
    return %arg0, %c0_i32, %c0_i32_0 : i32, i32, i32
  }
  func.func @transform_4(%arg0: i32) -> (i32, i32, i32) {
    %c0_i32 = arith.constant 0 : i32
    %c0_i32_0 = arith.constant 0 : i32
    %c0_i32_1 = arith.constant 0 : i32
    return %arg0, %c0_i32, %c0_i32_0 : i32, i32, i32
  }
}

module attributes {stable_mosaic.version = 11 : i64} {
  func.func @deconv_tanh_kernel(%arg0: i32, %arg1: memref<1x4x1408xf32, #tpu.memory_space<vmem>>, %arg2: memref<4x3x16xf32, #tpu.memory_space<vmem>>, %arg3: memref<1x12x1280xf32, #tpu.memory_space<vmem>>) attributes {dimension_semantics = [#tpu.dimension_semantics<parallel>], iteration_bounds = array<i64: 2>, scalar_prefetch = 0 : i64, scratch_operands = 0 : i64, tpu.core_type = #tpu.core_type<tc>, window_params = [{transform_indices = @transform_0, window_bounds = array<i64: 1, 4, 1408>}, {pipeline_mode = #tpu.pipeline_mode<synchronous>, transform_indices = @transform_1, window_bounds = array<i64: 4, 3, 16>}, {transform_indices = @transform_2, window_bounds = array<i64: 1, 12, 1280>}]} {
    %c0 = arith.constant 0 : index
    %c0_0 = arith.constant 0 : index
    %c35 = arith.constant 35 : index
    %0 = vector.load %arg1[%c0, %c0_0, %c35] : memref<1x4x1408xf32, #tpu.memory_space<vmem>>, vector<1x4x1280xf32>
    %1 = vector.shape_cast %0 : vector<1x4x1280xf32> to vector<4x1280xf32>
    %c0_1 = arith.constant 0 : index
    %c0_2 = arith.constant 0 : index
    %c34 = arith.constant 34 : index
    %2 = vector.load %arg1[%c0_1, %c0_2, %c34] : memref<1x4x1408xf32, #tpu.memory_space<vmem>>, vector<1x4x1280xf32>
    %3 = vector.shape_cast %2 : vector<1x4x1280xf32> to vector<4x1280xf32>
    %c0_3 = arith.constant 0 : index
    %c0_4 = arith.constant 0 : index
    %c1 = arith.constant 1 : index
    %4 = vector.load %arg1[%c0_3, %c0_4, %c1] : memref<1x4x1408xf32, #tpu.memory_space<vmem>>, vector<1x4x1280xf32>
    %5 = vector.shape_cast %4 : vector<1x4x1280xf32> to vector<4x1280xf32>
    %c0_5 = arith.constant 0 : index
    %c0_6 = arith.constant 0 : index
    %c0_7 = arith.constant 0 : index
    %6 = vector.load %arg1[%c0_5, %c0_6, %c0_7] : memref<1x4x1408xf32, #tpu.memory_space<vmem>>, vector<1x4x1280xf32>
    %7 = vector.shape_cast %6 : vector<1x4x1280xf32> to vector<4x1280xf32>
    %8 = tpu.concatenate %1, %3, %5, %7 in 0 : vector<4x1280xf32>, vector<4x1280xf32>, vector<4x1280xf32>, vector<4x1280xf32> -> vector<16x1280xf32>
    %c0_8 = arith.constant 0 : index
    %c0_9 = arith.constant 0 : index
    %c0_10 = arith.constant 0 : index
    %9 = vector.load %arg2[%c0_8, %c0_9, %c0_10] : memref<4x3x16xf32, #tpu.memory_space<vmem>>, vector<1x3x16xf32>
    %10 = vector.shape_cast %9 : vector<1x3x16xf32> to vector<3x16xf32>
    %cst = arith.constant dense<0.000000e+00> : vector<3x1280xf32>
    %11 = tpu.matmul %10, %8, %cst {dimension_numbers = #tpu.dot_dimension_numbers<[1], [0], [0], [1], [0, 0, 1, 1], [], []>, precision = #tpu.contract_precision<fp32>} : vector<3x16xf32>, vector<16x1280xf32>, vector<3x1280xf32> -> vector<3x1280xf32>
    %c0_11 = arith.constant 0 : index
    %c0_12 = arith.constant 0 : index
    %c35_13 = arith.constant 35 : index
    %12 = vector.load %arg1[%c0_11, %c0_12, %c35_13] : memref<1x4x1408xf32, #tpu.memory_space<vmem>>, vector<1x4x1280xf32>
    %13 = vector.shape_cast %12 : vector<1x4x1280xf32> to vector<4x1280xf32>
    %c0_14 = arith.constant 0 : index
    %c0_15 = arith.constant 0 : index
    %c36 = arith.constant 36 : index
    %14 = vector.load %arg1[%c0_14, %c0_15, %c36] : memref<1x4x1408xf32, #tpu.memory_space<vmem>>, vector<1x4x1280xf32>
    %15 = vector.shape_cast %14 : vector<1x4x1280xf32> to vector<4x1280xf32>
    %c0_16 = arith.constant 0 : index
    %c0_17 = arith.constant 0 : index
    %c1_18 = arith.constant 1 : index
    %16 = vector.load %arg1[%c0_16, %c0_17, %c1_18] : memref<1x4x1408xf32, #tpu.memory_space<vmem>>, vector<1x4x1280xf32>
    %17 = vector.shape_cast %16 : vector<1x4x1280xf32> to vector<4x1280xf32>
    %c0_19 = arith.constant 0 : index
    %c0_20 = arith.constant 0 : index
    %c2 = arith.constant 2 : index
    %18 = vector.load %arg1[%c0_19, %c0_20, %c2] : memref<1x4x1408xf32, #tpu.memory_space<vmem>>, vector<1x4x1280xf32>
    %19 = vector.shape_cast %18 : vector<1x4x1280xf32> to vector<4x1280xf32>
    %20 = tpu.concatenate %13, %15, %17, %19 in 0 : vector<4x1280xf32>, vector<4x1280xf32>, vector<4x1280xf32>, vector<4x1280xf32> -> vector<16x1280xf32>
    %c1_21 = arith.constant 1 : index
    %c0_22 = arith.constant 0 : index
    %c0_23 = arith.constant 0 : index
    %21 = vector.load %arg2[%c1_21, %c0_22, %c0_23] : memref<4x3x16xf32, #tpu.memory_space<vmem>>, vector<1x3x16xf32>
    %22 = vector.shape_cast %21 : vector<1x3x16xf32> to vector<3x16xf32>
    %cst_24 = arith.constant dense<0.000000e+00> : vector<3x1280xf32>
    %23 = tpu.matmul %22, %20, %cst_24 {dimension_numbers = #tpu.dot_dimension_numbers<[1], [0], [0], [1], [0, 0, 1, 1], [], []>, precision = #tpu.contract_precision<fp32>} : vector<3x16xf32>, vector<16x1280xf32>, vector<3x1280xf32> -> vector<3x1280xf32>
    %c0_25 = arith.constant 0 : index
    %c0_26 = arith.constant 0 : index
    %c35_27 = arith.constant 35 : index
    %24 = vector.load %arg1[%c0_25, %c0_26, %c35_27] : memref<1x4x1408xf32, #tpu.memory_space<vmem>>, vector<1x4x1280xf32>
    %25 = vector.shape_cast %24 : vector<1x4x1280xf32> to vector<4x1280xf32>
    %c0_28 = arith.constant 0 : index
    %c0_29 = arith.constant 0 : index
    %c34_30 = arith.constant 34 : index
    %26 = vector.load %arg1[%c0_28, %c0_29, %c34_30] : memref<1x4x1408xf32, #tpu.memory_space<vmem>>, vector<1x4x1280xf32>
    %27 = vector.shape_cast %26 : vector<1x4x1280xf32> to vector<4x1280xf32>
    %c0_31 = arith.constant 0 : index
    %c0_32 = arith.constant 0 : index
    %c69 = arith.constant 69 : index
    %28 = vector.load %arg1[%c0_31, %c0_32, %c69] : memref<1x4x1408xf32, #tpu.memory_space<vmem>>, vector<1x4x1280xf32>
    %29 = vector.shape_cast %28 : vector<1x4x1280xf32> to vector<4x1280xf32>
    %c0_33 = arith.constant 0 : index
    %c0_34 = arith.constant 0 : index
    %c68 = arith.constant 68 : index
    %30 = vector.load %arg1[%c0_33, %c0_34, %c68] : memref<1x4x1408xf32, #tpu.memory_space<vmem>>, vector<1x4x1280xf32>
    %31 = vector.shape_cast %30 : vector<1x4x1280xf32> to vector<4x1280xf32>
    %32 = tpu.concatenate %25, %27, %29, %31 in 0 : vector<4x1280xf32>, vector<4x1280xf32>, vector<4x1280xf32>, vector<4x1280xf32> -> vector<16x1280xf32>
    %c2_35 = arith.constant 2 : index
    %c0_36 = arith.constant 0 : index
    %c0_37 = arith.constant 0 : index
    %33 = vector.load %arg2[%c2_35, %c0_36, %c0_37] : memref<4x3x16xf32, #tpu.memory_space<vmem>>, vector<1x3x16xf32>
    %34 = vector.shape_cast %33 : vector<1x3x16xf32> to vector<3x16xf32>
    %cst_38 = arith.constant dense<0.000000e+00> : vector<3x1280xf32>
    %35 = tpu.matmul %34, %32, %cst_38 {dimension_numbers = #tpu.dot_dimension_numbers<[1], [0], [0], [1], [0, 0, 1, 1], [], []>, precision = #tpu.contract_precision<fp32>} : vector<3x16xf32>, vector<16x1280xf32>, vector<3x1280xf32> -> vector<3x1280xf32>
    %c0_39 = arith.constant 0 : index
    %c0_40 = arith.constant 0 : index
    %c35_41 = arith.constant 35 : index
    %36 = vector.load %arg1[%c0_39, %c0_40, %c35_41] : memref<1x4x1408xf32, #tpu.memory_space<vmem>>, vector<1x4x1280xf32>
    %37 = vector.shape_cast %36 : vector<1x4x1280xf32> to vector<4x1280xf32>
    %c0_42 = arith.constant 0 : index
    %c0_43 = arith.constant 0 : index
    %c36_44 = arith.constant 36 : index
    %38 = vector.load %arg1[%c0_42, %c0_43, %c36_44] : memref<1x4x1408xf32, #tpu.memory_space<vmem>>, vector<1x4x1280xf32>
    %39 = vector.shape_cast %38 : vector<1x4x1280xf32> to vector<4x1280xf32>
    %c0_45 = arith.constant 0 : index
    %c0_46 = arith.constant 0 : index
    %c69_47 = arith.constant 69 : index
    %40 = vector.load %arg1[%c0_45, %c0_46, %c69_47] : memref<1x4x1408xf32, #tpu.memory_space<vmem>>, vector<1x4x1280xf32>
    %41 = vector.shape_cast %40 : vector<1x4x1280xf32> to vector<4x1280xf32>
    %c0_48 = arith.constant 0 : index
    %c0_49 = arith.constant 0 : index
    %c70 = arith.constant 70 : index
    %42 = vector.load %arg1[%c0_48, %c0_49, %c70] : memref<1x4x1408xf32, #tpu.memory_space<vmem>>, vector<1x4x1280xf32>
    %43 = vector.shape_cast %42 : vector<1x4x1280xf32> to vector<4x1280xf32>
    %44 = tpu.concatenate %37, %39, %41, %43 in 0 : vector<4x1280xf32>, vector<4x1280xf32>, vector<4x1280xf32>, vector<4x1280xf32> -> vector<16x1280xf32>
    %c3 = arith.constant 3 : index
    %c0_50 = arith.constant 0 : index
    %c0_51 = arith.constant 0 : index
    %45 = vector.load %arg2[%c3, %c0_50, %c0_51] : memref<4x3x16xf32, #tpu.memory_space<vmem>>, vector<1x3x16xf32>
    %46 = vector.shape_cast %45 : vector<1x3x16xf32> to vector<3x16xf32>
    %cst_52 = arith.constant dense<0.000000e+00> : vector<3x1280xf32>
    %47 = tpu.matmul %46, %44, %cst_52 {dimension_numbers = #tpu.dot_dimension_numbers<[1], [0], [0], [1], [0, 0, 1, 1], [], []>, precision = #tpu.contract_precision<fp32>} : vector<3x16xf32>, vector<16x1280xf32>, vector<3x1280xf32> -> vector<3x1280xf32>
    %48 = tpu.concatenate %11, %23, %35, %47 in 0 : vector<3x1280xf32>, vector<3x1280xf32>, vector<3x1280xf32>, vector<3x1280xf32> -> vector<12x1280xf32>
    %49 = math.tanh %48 : vector<12x1280xf32>
    %c0_53 = arith.constant 0 : index
    %c0_54 = arith.constant 0 : index
    %c0_55 = arith.constant 0 : index
    %50 = vector.load %arg3[%c0_53, %c0_54, %c0_55] : memref<1x12x1280xf32, #tpu.memory_space<vmem>>, vector<1x12x1280xf32>
    %51 = vector.shape_cast %50 : vector<1x12x1280xf32> to vector<12x1280xf32>
    %52 = vector.shape_cast %49 : vector<12x1280xf32> to vector<1x12x1280xf32>
    tpu.vector_store %arg3[%c0_53, %c0_54, %c0_55], %52 {strides = array<i32>} : memref<1x12x1280xf32, #tpu.memory_space<vmem>>, vector<1x12x1280xf32>,
    return
  }
  func.func @transform_0(%arg0: i32) -> (i32, i32, i32) {
    %c0_i32 = arith.constant 0 : i32
    %c0_i32_0 = arith.constant 0 : i32
    %c0_i32_1 = arith.constant 0 : i32
    return %arg0, %c0_i32, %c0_i32_0 : i32, i32, i32
  }
  func.func @transform_1(%arg0: i32) -> (i32, i32, i32) {
    %c0_i32 = arith.constant 0 : i32
    %c0_i32_0 = arith.constant 0 : i32
    %c0_i32_1 = arith.constant 0 : i32
    %c0_i32_2 = arith.constant 0 : i32
    return %c0_i32, %c0_i32_0, %c0_i32_1 : i32, i32, i32
  }
  func.func @transform_2(%arg0: i32) -> (i32, i32, i32) {
    %c0_i32 = arith.constant 0 : i32
    %c0_i32_0 = arith.constant 0 : i32
    %c0_i32_1 = arith.constant 0 : i32
    return %arg0, %c0_i32, %c0_i32_0 : i32, i32, i32
  }
}

</mosaic_0001>

<bundles_post_ra>
// kernel: dcgan_forward.8
= control target key start
LH: loop header
LB: loop body
LE: loop exit
PB: predicated region body
PF: predicated region fallthrough
CT: control target
= control target key end

     0   :  { %9 = vsyncpa [#allocation3], 0  ;;  %s1522_s0 = inlined_call_operand.hbm [shape: f32[2,16], index: 0, kind: input, shape index: {}]   ;;  %s1523_s1 = inlined_call_operand.vmem [shape: f32[16,512], index: 1, kind: input, shape index: {}]   ;;  %s1524_s2 = inlined_call_operand.hbm [shape: f32[1,32], index: 2, kind: input, shape index: {}]   ;;  %s1525_s3 = inlined_call_operand.hbm [shape: f32[1,32], index: 3, kind: input, shape index: {}]   ;;  %s1526_s4 = inlined_call_operand.vmem [shape: f32[2,512], index: 4, kind: output, shape index: {}]  }
   0x1   :  { %10 = vsyncpa [#allocation5], 0  ;;  %s1325_s15 = smov [#allocation4]   ;;  %s1326_s17 = smov [#allocation2]  }
   0x2   :  { %s29_s16 = sshll.u32 %s1325_s15, 4  ;;  %s17_s18 = sshll.u32 %s1326_s17, 4  ;;  %s30_s16 = int_to_ptr.vmem [resolvable:$true] %s29_s16  ;;  %s18_s18 = int_to_ptr.vmem [resolvable:$true] %s17_s18 }
   0x3   :  { %s1269_s19 = scalar_lea.vmem %s30_s16, 16  ;;  %s1273_s20 = scalar_lea.vmem %s30_s16, 32 }
   0x4   :  { %p1270_p0 = scmp.ne.s32.totalorder %s30_s16, %s1269_s19  ;;  %p1274_p1 = scmp.lt.s32.totalorder %s30_s16, %s30_s16 }
   0x5   :  { %p1275_p2 = scmp.lt.s32.totalorder %s1273_s20, %s1269_s19 }
   0x7   :  { %p1276_p3 = por %p1275_p2, %p1274_p1 }
   0x9   :  { %p1277_p4 = pnand %p1276_p3, %p1270_p0 }
   0xb   :  { %1280 = shalt.err (!%p1277_p4)
}
   0xc   :  { %32 = dma.hbm_to_vmem [thread:$0]  %s1524_s2, 16, %s30_s16, [#allocation5]  }
   0xd   :  { %s1289_s23 = scalar_lea.vmem %s18_s18, 32  ;;  %p1294_p6 = scmp.lt.s32.totalorder %s18_s18, %s18_s18 }
   0xe   :  { %p1290_p5 = scmp.ne.s32.totalorder %s18_s18, %s1289_s23  ;;  %p1295_p7 = scmp.lt.s32.totalorder %s1289_s23, %s1289_s23 }
  0x10   :  { %p1296_p8 = por %p1295_p7, %p1294_p6 }
  0x12   :  { %p1297_p9 = pnand %p1296_p8, %p1290_p5 }
  0x14   :  { %1300 = shalt.err (!%p1297_p9)
}
  0x15   :  { %20 = dma.hbm_to_vmem [thread:$0]  %s1522_s0, 32, %s18_s18, [#allocation3]  }
  0x16   :  { %s1327_s26 = smov [#allocation6]  }
  0x17   :  { %s39_s27 = sshll.u32 %s1327_s26, 4  ;;  %s40_s27 = int_to_ptr.vmem [resolvable:$true] %s39_s27 }
  0x18   :  { %s1309_s28 = scalar_lea.vmem %s40_s27, 16  ;;  %s1313_s29 = scalar_lea.vmem %s40_s27, 32 }
  0x19   :  { %p1310_p10 = scmp.ne.s32.totalorder %s40_s27, %s1309_s28  ;;  %p1314_p11 = scmp.lt.s32.totalorder %s40_s27, %s40_s27 }
  0x1a   :  { %p1315_p12 = scmp.lt.s32.totalorder %s1313_s29, %s1309_s28 }
  0x1c   :  { %p1316_p13 = por %p1315_p12, %p1314_p11 }
  0x1e   :  { %p1317_p0 = pnand %p1316_p13, %p1310_p10 }
  0x20   :  { %1320 = shalt.err (!%p1317_p0)
}
  0x21   :  { %42 = dma.hbm_to_vmem [thread:$0]  %s1525_s3, 16, %s40_s27, [#allocation5]  }
  0x22   :  { %1321 = dma.done.wait [#allocation3], 32  }
  0x23   :  { %1322 = vsyncadd [#allocation3], 4294967264 }
  0x24   :  { %1323 = dma.done.wait [#allocation5], 32  }
  0x25   :  { %1324 = vsyncadd [#allocation5], 4294967264  ;;  %v1328_v0 = vmov 0.0   ;;  %vm61_vm0 = vcmask 130048   ;;  %v58_v1 = vld [vmem:[%s1523_s1 + $0x28] sm:$0xff]  ;;  %v57_v2 = vld [vmem:[%s1523_s1 + $0x20] sm:$0xff] }
  0x26   :  { %133 = vmatprep.mubr.f32.mxu0 %v1328_v0  ;;  %229 = vmatprep.mubr.f32.mxu1 %v1328_v0  ;;  %v54_v3 = vld [vmem:[%s1523_s1 + $0x8] sm:$0xff]  ;;  %v1378_v4 = vand.u32 4294901760, %v58_v1  ;;  %v1380_v5 = vand.u32 4294901760, %v57_v2  ;;  %v53_v7 = vld [vmem:[%s1523_s1] sm:$0xff]  ;;  %v60_v20 = vld [vmem:[%s1523_s1 + $0x38] sm:$0xff]  ;;  %s1330_s19 = smov 64  }
  0x27   :  { %v1382_v6 = vand.u32 4294901760, %v54_v3  ;;  %v52_v8 = vld [vmem:[#allocation2] sm:$0x3]  ;;  %v1387_v9 = vand.u32 4294901760, %v53_v7  ;;  %v59_v26 = vld [vmem:[%s1523_s1 + $0x30] sm:$0xff]  ;;  %v1411_v28 = vand.u32 4294901760, %v60_v20 }
  0x28   :  { %v63_v10 = vsel %vm61_vm0, %v52_v8, 0  ;;  %94 = vmatprep.subr.mxu0 %v1378_v4  ;;  %v174_v11 = vsub.f32 %v58_v1, %v1378_v4  ;;  %v180_v13 = vsub.f32 %v57_v2, %v1380_v5  ;;  %v56_v29 = vld [vmem:[%s1523_s1 + $0x18] sm:$0xff]  ;;  %v55_v34 = vld [vmem:[%s1523_s1 + $0x10] sm:$0xff]  ;;  %v1421_v36 = vand.u32 4294901760, %v59_v26  ;;  %s1329_s1 = smov 96   ;;  %s1331_s20 = smov 32  }
  0x29   :  { %v1391_v12 = vand.u32 4294901760, %v63_v10  ;;  %v186_v14 = vsub.f32 %v54_v3, %v1382_v6  ;;  %96 = vmatpush1.msra.mxu0 %v1380_v5  ;;  %v192_v15 = vsub.f32 %v53_v7, %v1387_v9  ;;  %v1423_v38 = vand.u32 4294901760, %v56_v29 }
  0x2a   :  { %98 = vmatprep.subr.mxu0 %v1382_v6  ;;  %v175_v16 = vand.u32 4294901760, %v174_v11  ;;  %v181_v18 = vand.u32 4294901760, %v180_v13  ;;  %v1425_v39 = vand.u32 4294901760, %v55_v34  ;;  %v665_v40 = vsub.f32 %v60_v20, %v1411_v28 }
  0x2b   :  { %v1399_v17 = vsub.f32 %v63_v10, %v1391_v12  ;;  %v187_v19 = vand.u32 4294901760, %v186_v14  ;;  %100 = vmatpush1.msra.mxu0 %v1387_v9  ;;  %v193_v21 = vand.u32 4294901760, %v192_v15  ;;  %v671_v41 = vsub.f32 %v59_v26, %v1421_v36 }
  0x2c   :  { %v176_v22 = vsub.f32 %v174_v11, %v175_v16  ;;  %v182_v24 = vsub.f32 %v180_v13, %v181_v18  ;;  %267 = vmatprep.subr.mxu0 %v174_v11  ;;  %v677_v42 = vsub.f32 %v56_v29, %v1423_v38  ;;  %v683_v43 = vsub.f32 %v55_v34, %v1425_v39 }
  0x2d   :  { %v1406_v23 = vand.u32 4294901760, %v1399_v17  ;;  %v188_v25 = vsub.f32 %v186_v14, %v187_v19  ;;  %v194_v27 = vsub.f32 %v192_v15, %v193_v21  ;;  %v666_v44 = vand.u32 4294901760, %v665_v40 }
  0x2e   :  { %v177_v30 = vand.u32 4294901760, %v176_v22  ;;  %v183_v32 = vand.u32 4294901760, %v182_v24  ;;  %v672_v45 = vand.u32 4294901760, %v671_v41  ;;  %v678_v46 = vand.u32 4294901760, %v677_v42 }
  0x2f   :  { %v137_v31 = vsub.f32 %v1399_v17, %v1406_v23  ;;  %v189_v33 = vand.u32 4294901760, %v188_v25  ;;  %v195_v35 = vand.u32 4294901760, %v194_v27  ;;  %v684_v47 = vand.u32 4294901760, %v683_v43 }
  0x30   :  { %178 = vmatprep.subr.mxu1 %v177_v30  ;;  %v667_v48 = vsub.f32 %v665_v40, %v666_v44  ;;  %v673_v49 = vsub.f32 %v671_v41, %v672_v45  ;;  %v679_v50 = vsub.f32 %v677_v42, %v678_v46  ;;  %vm1090_vm1 = vcmask 254976  }
  0x31   :  { %v138_v37 = vand.u32 4294901760, %v137_v31  ;;  %184 = vmatpush1.msra.mxu1 %v183_v32  ;;  %v685_v51 = vsub.f32 %v683_v43, %v684_v47  ;;  %vm1179_vm2 = vcmask 261120   ;;  %vm1181_vm3 = vcmask 523264  }
  0x32   :  { %190 = vmatprep.subr.mxu1 %v189_v33  ;;  %v668_v52 = vand.u32 4294901760, %v667_v48  ;;  %v674_v53 = vand.u32 4294901760, %v673_v49  ;;  %v680_v54 = vand.u32 4294901760, %v679_v50  ;;  %vm1183_vm4 = vcmask 785408  }
  0x33   :  { %139 = vmatmul.mubr.f32.vlgmr.msra.gmra.mxu0 %v138_v37  ;;  %196 = vmatpush1.msra.mxu1 %v195_v35  ;;  %v686_v55 = vand.u32 4294901760, %v685_v51 }
  0x34   :  { %270 = vmatpush1.msra.mxu0 %v180_v13  ;;  %231 = vmatmul.mubr.f32.vlgmr.msra.gmra.mxu1 %v1391_v12 }
  0x35   :  { %273 = vmatprep.subr.mxu0 %v186_v14  ;;  %309 = vmatprep.mubr.f32.mxu0 %v1328_v0 }
  0x36   :  { %276 = vmatpush1.msra.mxu0 %v192_v15  ;;  %347 = vmatprep.subr.mxu1 %v1378_v4 }
  0x37   :  { %312 = vmatmul.mubr.f32.vlgmr.msra.gmra.mxu0 %v1399_v17  ;;  %349 = vmatpush1.msra.mxu1 %v1380_v5 }
  0x38   :  { %427 = vmatprep.subr.mxu0 %v175_v16  ;;  %351 = vmatprep.subr.mxu1 %v1382_v6 }
  0x39   :  { %431 = vmatpush1.msra.mxu0 %v181_v18  ;;  %353 = vmatpush1.msra.mxu1 %v1387_v9 }
  0x3a   :  { %386 = vmatprep.mubr.f32.mxu1 %v1328_v0  ;;  %435 = vmatprep.subr.mxu0 %v187_v19 }
  0x3b   :  { %390 = vmatmul.mubr.f32.vlgmr.msra.gmra.mxu1 %v1406_v23  ;;  %439 = vmatpush1.msra.mxu0 %v193_v21 }
  0x3c   :  { %472 = vmatprep.mubr.f32.mxu0 %v1328_v0  ;;  %509 = vmatprep.subr.mxu1 %v1378_v4 }
  0x3d   :  { %474 = vmatmul.mubr.f32.vlgmr.msra.gmra.mxu0 %v1391_v12  ;;  %511 = vmatpush1.msra.mxu1 %v1380_v5 }
  0x3e   :  { %585 = vmatprep.subr.mxu0 %v1411_v28  ;;  %513 = vmatprep.subr.mxu1 %v1382_v6 }
  0x3f   :  { %587 = vmatpush1.msra.mxu0 %v1421_v36  ;;  %515 = vmatpush1.msra.mxu1 %v1387_v9 }
  0x40   :  { %548 = vmatprep.mubr.f32.mxu1 %v1328_v0  ;;  %589 = vmatprep.subr.mxu0 %v1423_v38 }
  0x41   :  { %550 = vmatmul.mubr.f32.vlgmr.msra.gmra.mxu1 %v1391_v12  ;;  %591 = vmatpush1.msra.mxu0 %v1425_v39 }
  0x42   :  { %624 = vmatprep.mubr.f32.mxu0 %v1328_v0  ;;  %669 = vmatprep.subr.mxu1 %v668_v52 }
  0x43   :  { %630 = vmatmul.mubr.f32.vlgmr.msra.gmra.mxu0 %v138_v37  ;;  %675 = vmatpush1.msra.mxu1 %v674_v53 }
  0x44   :  { %758 = vmatprep.subr.mxu0 %v665_v40  ;;  %681 = vmatprep.subr.mxu1 %v680_v54 }
  0x45   :  { %761 = vmatpush1.msra.mxu0 %v671_v41  ;;  %687 = vmatpush1.msra.mxu1 %v686_v55 }
  0x46   :  { %720 = vmatprep.mubr.f32.mxu1 %v1328_v0  ;;  %764 = vmatprep.subr.mxu0 %v677_v42 }
  0x47   :  { %722 = vmatmul.mubr.f32.vlgmr.msra.gmra.mxu1 %v1391_v12  ;;  %767 = vmatpush1.msra.mxu0 %v683_v43 }
  0x48   :  { %800 = vmatprep.mubr.f32.mxu0 %v1328_v0  ;;  %838 = vmatprep.subr.mxu1 %v1411_v28 }
  0x49   :  { %803 = vmatmul.mubr.f32.vlgmr.msra.gmra.mxu0 %v1399_v17  ;;  %840 = vmatpush1.msra.mxu1 %v1421_v36 }
  0x4a   :  { %918 = vmatprep.subr.mxu0 %v666_v44  ;;  %842 = vmatprep.subr.mxu1 %v1423_v38 }
  0x4b   :  { %922 = vmatpush1.msra.mxu0 %v672_v45  ;;  %844 = vmatpush1.msra.mxu1 %v1425_v39 }
  0x4c   :  { %877 = vmatprep.mubr.f32.mxu1 %v1328_v0  ;;  %926 = vmatprep.subr.mxu0 %v678_v46 }
  0x4d   :  { %881 = vmatmul.mubr.f32.vlgmr.msra.gmra.mxu1 %v1406_v23  ;;  %930 = vmatpush1.msra.mxu0 %v684_v47 }
  0x4e   :  { %963 = vmatprep.mubr.f32.mxu0 %v1328_v0  ;;  %1000 = vmatprep.subr.mxu1 %v1411_v28 }
  0x4f   :  { %965 = vmatmul.mubr.f32.vlgmr.msra.gmra.mxu0 %v1391_v12  ;;  %1002 = vmatpush1.msra.mxu1 %v1421_v36 }
  0x50   :  { %1039 = vmatprep.mubr.f32.mxu1 %v1328_v0  ;;  %1004 = vmatprep.subr.mxu1 %v1423_v38 }
  0x51   :  { %1006 = vmatpush1.msra.mxu1 %v1425_v39 }
  0x52   :  { %1041 = vmatmul.mubr.f32.vlgmr.msra.gmra.mxu1 %v1391_v12 }
  0xf3   :  { %v140_v56 = vpop.f32.mrf.mxu0 }
  0xf4   :  { %v232_v58 = vpop.f32.mrf.mxu1 }
  0xf5   :  { %v142_v57 = vpop.f32.mrf.mxu0  ;;  %v233_v59 = vadd.f32 %v232_v58, %v140_v56 }
  0xf6   :  { %v234_v61 = vpop.f32.mrf.mxu1 }
  0xf7   :  { %v313_v60 = vpop.f32.mrf.mxu0  ;;  %v235_v63 = vadd.f32 %v234_v61, %v142_v57 }
  0xf8   :  { %v314_v62 = vadd.f32 %v313_v60, %v233_v59 }
  0xf9   :  { %v315_v1 = vpop.f32.mrf.mxu0 }
  0xfa   :  { %v316_v2 = vadd.f32 %v315_v1, %v235_v63 }
  0xfb   :  { %v391_v3 = vpop.f32.mrf.mxu1 }
  0xfc   :  { %v392_v4 = vadd.f32 %v391_v3, %v314_v62 }
  0xfd   :  { %v475_v5 = vpop.f32.mrf.mxu0  ;;  %v393_v0 = vpop.f32.mrf.mxu1 }
  0xfe   :  { %v476_v6 = vadd.f32 %v475_v5, %v392_v4  ;;  %v394_v7 = vadd.f32 %v393_v0, %v316_v2 }
  0xff   :  { %v477_v8 = vpop.f32.mrf.mxu0 }
 0x100   :  { %v478_v9 = vadd.f32 %v477_v8, %v394_v7 }
 0x101   :  { %v551_v10 = vpop.f32.mrf.mxu1 }
 0x102   :  { %v1471_v11 = vadd.f32 %v551_v10, %v476_v6 }
 0x103   :  { %v631_v12 = vpop.f32.mrf.mxu0  ;;  %v553_v13 = vpop.f32.mrf.mxu1 }
 0x104   :  { %v1473_v14 = vadd.f32 %v553_v13, %v478_v9  ;;  %1048 = vrot.lane.b32.xlu0 %v1471_v11, %s1329_s1  ;;  %v1100_v23 = vmul.f32 %v1471_v11, %v1471_v11 }
 0x105   :  { %v633_v15 = vpop.f32.mrf.mxu0 }
 0x106   :  { %v1101_v16 = vmul.f32 %v1473_v14, %v1473_v14 }
 0x107   :  { %v723_v17 = vpop.f32.mrf.mxu1 }
 0x108   :  { %v724_v18 = vadd.f32 %v723_v17, %v631_v12  ;;  %1053 = vrot.lane.b32.xlu0 %v1473_v14, %s1329_s1  ;;  %1110 = vrot.lane.b32.xlu1 %v1101_v16, %s1329_s1 }
 0x109   :  { %v804_v19 = vpop.f32.mrf.mxu0  ;;  %v725_v20 = vpop.f32.mrf.mxu1 }
 0x10a   :  { %v805_v21 = vadd.f32 %v804_v19, %v724_v18  ;;  %v726_v22 = vadd.f32 %v725_v20, %v633_v15 }
 0x10b   :  { %v806_v24 = vpop.f32.mrf.mxu0 }
 0x10c   :  { %v807_v25 = vadd.f32 %v806_v24, %v726_v22  ;;  %1105 = vrot.lane.b32.xlu0 %v1100_v23, %s1329_s1 }
 0x10d   :  { %v882_v26 = vpop.f32.mrf.mxu1 }
 0x10e   :  { %v883_v27 = vadd.f32 %v882_v26, %v805_v21 }
 0x10f   :  { %v966_v28 = vpop.f32.mrf.mxu0  ;;  %v884_v29 = vpop.f32.mrf.mxu1 }
 0x110   :  { %v967_v30 = vadd.f32 %v966_v28, %v883_v27  ;;  %v885_v31 = vadd.f32 %v884_v29, %v807_v25 }
 0x111   :  { %v968_v32 = vpop.f32.mrf.mxu0 }
 0x112   :  { %v1042_v33 = vpop.f32.mrf.mxu1  ;;  %v969_v34 = vadd.f32 %v968_v32, %v885_v31 }
 0x113   :  { %v1485_v35 = vadd.f32 %v1042_v33, %v967_v30 }
 0x114   :  { %v1044_v36 = vpop.f32.mrf.mxu1 }
 0x115   :  { %1058 = vrot.lane.b32.xlu1 %v1485_v35, %s1329_s1  ;;  %v1102_v37 = vmul.f32 %v1485_v35, %v1485_v35  ;;  %v1491_v38 = vadd.f32 %v1044_v36, %v969_v34 }
 0x117   :  { %1115 = vrot.lane.b32.xlu0 %v1102_v37, %s1329_s1  ;;  %v1103_v39 = vmul.f32 %v1491_v38, %v1491_v38 }
 0x119   :  { %1063 = vrot.lane.b32.xlu1 %v1491_v38, %s1329_s1 }
 0x11d   :  { %1120 = vrot.lane.b32.xlu1 %v1103_v39, %s1329_s1 }
 0x176   :  { %v1049_v40 = vpop.permute.xlu0 %1048 }
 0x177   :  { %v1051_v41 = vadd.f32 %v1049_v40, %v1471_v11  ;;  %v1160_v40 = vld [vmem:[#allocation4] sm:$0x1] }
 0x179   :  { %1068 = vrot.lane.b32.xlu0 %v1051_v41, %s1330_s19 }
 0x17a   :  { %v1054_v42 = vpop.permute.xlu0 %1053  ;;  %v1111_v44 = vpop.permute.xlu1 %1110 }
 0x17b   :  { %v1056_v43 = vadd.f32 %v1054_v42, %v1473_v14  ;;  %v1113_v46 = vadd.f32 %v1111_v44, %v1101_v16  ;;  %v1162_v44 = vld [vmem:[#allocation6] sm:$0x1] }
 0x17d   :  { %1073 = vrot.lane.b32.xlu1 %v1056_v43, %s1330_s19 }
 0x17e   :  { %v1106_v45 = vpop.permute.xlu0 %1105 }
 0x17f   :  { %v1108_v47 = vadd.f32 %v1106_v45, %v1100_v23 }
 0x181   :  { %1125 = vrot.lane.b32.xlu0 %v1108_v47, %s1330_s19  ;;  %1130 = vrot.lane.b32.xlu1 %v1113_v46, %s1330_s19 }
 0x187   :  { %v1059_v48 = vpop.permute.xlu1 %1058 }
 0x188   :  { %v1061_v49 = vadd.f32 %v1059_v48, %v1485_v35 }
 0x189   :  { %v1116_v50 = vpop.permute.xlu0 %1115 }
 0x18a   :  { %1078 = vrot.lane.b32.xlu0 %v1061_v49, %s1330_s19  ;;  %v1118_v52 = vadd.f32 %v1116_v50, %v1102_v37  ;;  %v1166_v37 = vlaneseq }
 0x18b   :  { %v1064_v51 = vpop.permute.xlu1 %1063 }
 0x18c   :  { %v1066_v53 = vadd.f32 %v1064_v51, %v1491_v38 }
 0x18e   :  { %1135 = vrot.lane.b32.xlu0 %v1118_v52, %s1330_s19  ;;  %1083 = vrot.lane.b32.xlu1 %v1066_v53, %s1330_s19 }
 0x18f   :  { %v1121_v54 = vpop.permute.xlu1 %1120 }
 0x190   :  { %v1123_v55 = vadd.f32 %v1121_v54, %v1103_v39  ;;  %v1167_v39 = vshrl.u32 %v1166_v37, 7 }
 0x192   :  { %1140 = vrot.lane.b32.xlu1 %v1123_v55, %s1330_s19 }
 0x1eb   :  { %v1069_v56 = vpop.permute.xlu0 %1068 }
 0x1ec   :  { %v1071_v63 = vadd.f32 %v1069_v56, %v1051_v41  ;;  %v1168_v41 = vsub.s32 0, %v1167_v39  ;;  %v1332_v56 = vmov 1983009808  }
 0x1ef   :  { %v1074_v57 = vpop.permute.xlu1 %1073 }
 0x1f0   :  { %v1076_v61 = vadd.f32 %v1074_v57, %v1056_v43  ;;  %v1229_v57 = vunpack.c.l.s4 %v1332_v56 }
 0x1f2   :  { %v1087_v4 = vadd.f32 %v1076_v61, %v1071_v63  ;;  %v1230_v63 = vunpack.c.0.s8 %v1229_v57 }
 0x1f3   :  { %v1126_v58 = vpop.permute.xlu0 %1125  ;;  %v1131_v59 = vpop.permute.xlu1 %1130 }
 0x1f4   :  { %v1128_v5 = vadd.f32 %v1126_v58, %v1108_v47  ;;  %v1133_v0 = vadd.f32 %v1131_v59, %v1113_v46 }
 0x1f6   :  { %v1144_v12 = vadd.f32 %v1133_v0, %v1128_v5 }
 0x1fc   :  { %v1079_v60 = vpop.permute.xlu0 %1078 }
 0x1fd   :  { %v1081_v1 = vadd.f32 %v1079_v60, %v1061_v49 }
 0x200   :  { %v1084_v62 = vpop.permute.xlu1 %1083  ;;  %v1136_v3 = vpop.permute.xlu0 %1135 }
 0x201   :  { %v1086_v2 = vadd.f32 %v1084_v62, %v1066_v53  ;;  %v1138_v8 = vadd.f32 %v1136_v3, %v1118_v52 }
 0x203   :  { %v1088_v6 = vadd.f32 %v1086_v2, %v1081_v1 }
 0x204   :  { %v1141_v7 = vpop.permute.xlu1 %1140 }
 0x205   :  { %v1089_v9 = vadd.f32 %v1088_v6, %v1087_v4  ;;  %v1143_v10 = vadd.f32 %v1141_v7, %v1123_v55 }
 0x207   :  { %v1091_v13 = vsel %vm1090_vm1, %v1089_v9, 0.0  ;;  %v1145_v15 = vadd.f32 %v1143_v10, %v1138_v8  ;;  %v1233_v10 = vsub.s32 %v1230_v63, %v1167_v39 }
 0x208   :  { %v1092_v16 = vrot.slane %v1091_v13, 4 }
 0x209   :  { %v1146_v17 = vadd.f32 %v1145_v15, %v1144_v12 }
 0x20a   :  { %v1093_v18 = vadd.f32 %v1092_v16, %v1091_v13 }
 0x20b   :  { %v1147_v19 = vsel %vm1090_vm1, %v1146_v17, 0.0 }
 0x20c   :  { %v1094_v20 = vrot.slane %v1093_v18, 2  ;;  %v1148_v21 = vrot.slane %v1147_v19, 4 }
 0x20e   :  { %v1095_v22 = vadd.f32 %v1094_v20, %v1093_v18  ;;  %v1149_v23 = vadd.f32 %v1148_v21, %v1147_v19 }
 0x210   :  { %v1096_v24 = vrot.slane %v1095_v22, 1  ;;  %v1150_v25 = vrot.slane %v1149_v23, 2 }
 0x212   :  { %v1097_v26 = vadd.f32 %v1096_v24, %v1095_v22  ;;  %v1151_v27 = vadd.f32 %v1150_v25, %v1149_v23 }
 0x214   :  { %v1099_v28 = vmul.f32 0.03125, %v1097_v26  ;;  %v1152_v29 = vrot.slane %v1151_v27, 1 }
 0x216   :  { %v1153_v30 = vadd.f32 %v1152_v29, %v1151_v27  ;;  %v1155_v31 = vmul.f32 %v1099_v28, %v1099_v28 }
 0x218   :  { %v1154_v32 = vmul.f32 0.03125, %v1153_v30 }
 0x21a   :  { %v1156_v33 = vsub.f32 %v1154_v32, %v1155_v31 }
 0x21c   :  { %v1157_v34 = vmax.f32 %v1156_v33, 0.0 }
 0x21e   :  { %v1158_v36 = vadd.f32 1e-05, %v1157_v34 }
 0x220   :  { %1259 = vrsqrt.f32 %v1158_v36 }
 0x22d   :  { %v1260_v42 = vpop.eup %1259 }
 0x22e   :  { %v1161_v43 = vmul.f32 %v1260_v42, %v1160_v40 }
 0x230   :  { %v1169_v45 = vrot.slane %v1161_v43, %v1168_v41  ;;  %v1163_v46 = vmul.f32 %v1161_v43, %v1099_v28 }
 0x232   :  { %1173 = vrot.lane.b32.xlu1 %v1169_v45, %s1330_s19  ;;  %1170 = vrot.lane.b32.xlu0 %v1169_v45, %s1331_s20  ;;  %v1164_v47 = vsub.f32 %v1162_v44, %v1163_v46 }
 0x234   :  { %v1189_v48 = vrot.slane %v1164_v47, %v1168_v41 }
 0x236   :  { %1176 = vrot.lane.b32.xlu0 %v1169_v45, %s1329_s1  ;;  %1190 = vrot.lane.b32.xlu1 %v1189_v48, %s1331_s20 }
 0x23a   :  { %1193 = vrot.lane.b32.xlu0 %v1189_v48, %s1330_s19  ;;  %1196 = vrot.lane.b32.xlu1 %v1189_v48, %s1329_s1 }
 0x2a4   :  { %v1174_v49 = vpop.permute.xlu1 %1173  ;;  %v1171_v50 = vpop.permute.xlu0 %1170 }
 0x2a5   :  { %v1180_v51 = vsel %vm1179_vm2, %v1161_v43, %v1171_v50 }
 0x2a6   :  { %v1182_v52 = vsel %vm1181_vm3, %v1180_v51, %v1174_v49 }
 0x2a8   :  { %v1177_v53 = vpop.permute.xlu0 %1176  ;;  %v1191_v54 = vpop.permute.xlu1 %1190 }
 0x2a9   :  { %v1184_v55 = vsel %vm1183_vm4, %v1182_v52, %v1177_v53  ;;  %v1199_v59 = vsel %vm1179_vm2, %v1164_v47, %v1191_v54 }
 0x2aa   :  { %v1205_v58 = vrot.slane %v1184_v55, %v1168_v41 }
 0x2ac   :  { %v1194_v60 = vpop.permute.xlu0 %1193  ;;  %v1197_v61 = vpop.permute.xlu1 %1196  ;;  %v1206_v1 = vmul.f32 %v1205_v58, %v1471_v11  ;;  %v1207_v3 = vmul.f32 %v1205_v58, %v1473_v14  ;;  %v1208_v4 = vmul.f32 %v1205_v58, %v1485_v35  ;;  %v1209_v5 = vmul.f32 %v1205_v58, %v1491_v38 }
 0x2ad   :  { %v1200_v62 = vsel %vm1181_vm3, %v1199_v59, %v1194_v60 }
 0x2ae   :  { %v1201_v2 = vsel %vm1183_vm4, %v1200_v62, %v1197_v61 }
 0x2af   :  { %v1213_v0 = vrot.slane %v1201_v2, %v1168_v41 }
 0x2b1   :  { %v1214_v6 = vadd.f32 %v1213_v0, %v1206_v1  ;;  %v1215_v7 = vadd.f32 %v1213_v0, %v1207_v3  ;;  %v1216_v8 = vadd.f32 %v1213_v0, %v1208_v4  ;;  %v1217_v9 = vadd.f32 %v1213_v0, %v1209_v5 }
 0x2b3   :  { %v1218_v12 = vmax.f32 %v1214_v6, 0.0  ;;  %v1219_v13 = vmax.f32 %v1215_v7, 0.0  ;;  %v1220_v15 = vmax.f32 %v1216_v8, 0.0  ;;  %v1221_v16 = vmax.f32 %v1217_v9, 0.0 }
 0x2b5   :  { %v1226_v17 = vcombine.low %v1218_v12, %v1219_v13  ;;  %v1227_v18 = vcombine.low %v1220_v15, %v1221_v16 }
 0x2b7   :  { %v1234_v11 = vrot.slane %v1226_v17, %v1233_v10  ;;  %v1241_v19 = vrot.slane %v1227_v18, %v1233_v10 }
 0x2b9   :  { %v1242_v20 = vcombine.low %v1234_v11, %v1241_v19 }
 0x2bb   :  { %1244 = vst [vmem:[%s1526_s4] sm:$0xff] %v1242_v20 }
 0x2bc   :  { %1249 = vsyncpa [#allocation3], 1 }
 0x2bd   :  { %1250 = vsyncpa [#allocation5], 1 }

// kernel: dcgan_forward.10
= control target key start
LH: loop header
LB: loop body
LE: loop exit
PB: predicated region body
PF: predicated region fallthrough
CT: control target
= control target key end

     0   :  { %s427_s15 = smov 0   ;;  %s472_s0 = inlined_call_operand.vmem [shape: f32[2,64,128], index: 0, kind: input, shape index: {}]   ;;  %s473_s1 = inlined_call_operand.vmem [shape: f32[2,16,2], index: 1, kind: input, shape index: {}]   ;;  %s474_s2 = inlined_call_operand.vmem [shape: f32[16,1], index: 2, kind: input, shape index: {}]   ;;  %s475_s3 = inlined_call_operand.vmem [shape: f32[16,1], index: 3, kind: input, shape index: {}]   ;;  %s476_s4 = inlined_call_operand.vmem [shape: f32[2,64,128], index: 4, kind: output, shape index: {}]  }
   0x1 LB: > { %s359_s16 = sadd.s32 4294967295, %s397_s15   ;;  %p363_p0 = scmp.ge.s32.totalorder %s397_s15, 1  ;;  %s397_s15 = sphi %s427_s15, %s14_s15  }
   0x2   : > { %p162_p1 = scmp.lt.s32.totalorder %s397_s15, 3 }
   0x4   : > { %p163_p2 = pnand %p363_p0, %p162_p1 }
   0x5   : > { %s399_s25 = smov (!%p163_p2), 1   ;;  %s401_s26 = smov (!%p163_p2), 127  }
   0x6   : > { %166 = sbr.rel (%p163_p2) target bundleno = 410 (0x19a), region = 36  ;;  %p188_p3 = scmp.lt.s32.totalorder (!%p163_p2), %s359_s16, 1 }
   0xb   : > { %v198_v0 = vld [vmem:[%s473_s1] sm:$0xff]  ;;  %v368_v1 = vld [vmem:[%s473_s1 + $0x10] sm:$0xff]  ;;  %v199_v2 = vld [vmem:[%s473_s1 + $0x8] sm:$0xff]  ;;  %v400_v18 = vmov 0   ;;  %s478_s16 = smov (!%p188_p3, %s359_s16), 1 }
   0xc   : > { %v203_v3 = vadd.f32 %v368_v1, %v198_v0  ;;  %v369_v4 = vld [vmem:[%s473_s1 + $0x18] sm:$0xff]  ;;  %385 = vset.pattern.permute.xlu0 %v400_v18  ;;  %386 = vset.pattern.permute.xlu1 %v400_v18  ;;  %v226_v21 = vld [vmem:[%s474_s2] sm:$0xff]  ;;  %v227_v24 = vld [vmem:[%s474_s2 + $0x8] sm:$0xff]  ;;  %s372_s9 = sshll.u32 %s478_s16, 6 }
   0xd   : > { %v204_v5 = vadd.f32 %v369_v4, %v199_v2  ;;  %v238_v28 = vld [vmem:[%s475_s3] sm:$0xff]  ;;  %v239_v29 = vld [vmem:[%s475_s3 + $0x8] sm:$0xff]  ;;  %s192_s12 = scalar_lea.vmem %s472_s0, %s372_s9  ;;  %s197_s16 = scalar_lea.vmem %s476_s4, %s372_s9 }
   0xe   : > { %v206_v6 = vmul.f32 0.0078125, %v203_v3  ;;  %v244_v33 = vld [vmem:[%s192_s12] sm:$0xff]  ;;  %v246_v34 = vld [vmem:[%s192_s12 + $0x10] sm:$0xff]  ;;  %v245_v39 = vld [vmem:[%s192_s12 + $0x8] sm:$0xff] }
   0xf   : > { %v207_v7 = vmul.f32 0.0078125, %v204_v5  ;;  %v248_v37 = vld [vmem:[%s192_s12 + $0x20] sm:$0xff]  ;;  %v250_v38 = vld [vmem:[%s192_s12 + $0x30] sm:$0xff]  ;;  %v247_v40 = vld [vmem:[%s192_s12 + $0x18] sm:$0xff] }
  0x10   : > { %v208_v8 = vmul.f32 %v206_v6, %v206_v6  ;;  %v249_v41 = vld [vmem:[%s192_s12 + $0x28] sm:$0xff]  ;;  %v251_v42 = vld [vmem:[%s192_s12 + $0x38] sm:$0xff] }
  0x11   : > { %v209_v9 = vmul.f32 %v207_v7, %v207_v7 }
  0x12   : > { %212 = vrot.lane.b32.xlu0 %v208_v8, %s399_s25 }
  0x16   : > { %214 = vrot.lane.b32.xlu0 %v209_v9, %s399_s25 }
  0x84   : > { %v213_v10 = vpop.permute.xlu0 %212 }
  0x85   : > { %v218_v11 = vsub.f32 %v206_v6, %v213_v10 }
  0x87   : > { %v220_v12 = vmax.f32 %v218_v11, 0.0 }
  0x88   : > { %v215_v13 = vpop.permute.xlu0 %214 }
  0x89   : > { %v222_v14 = vadd.f32 1e-05, %v220_v12  ;;  %v219_v15 = vsub.f32 %v207_v7, %v215_v13 }
  0x8b   : > { %387 = vrsqrt.f32 %v222_v14  ;;  %v221_v16 = vmax.f32 %v219_v15, 0.0 }
  0x8d   : > { %v223_v17 = vadd.f32 1e-05, %v221_v16 }
  0x8f   : > { %389 = vrsqrt.f32 %v223_v17 }
  0x98   : > { %v388_v19 = vpop.eup %387 }
  0x99   : > { %230 = vrot.lane.b32.xlu1 %v388_v19, %s401_s26 }
  0x9c   : > { %v390_v20 = vpop.eup %389 }
  0x9d   : > { %232 = vrot.lane.b32.xlu1 %v390_v20, %s401_s26 }
 0x10b   : > { %v231_v22 = vpop.permute.xlu1 %230 }
 0x10c   : > { %v236_v23 = vmul.f32 %v231_v22, %v226_v21 }
 0x10e   : > { %254 = vperm.xlu0 %385, %v236_v23   ;;  %v240_v26 = vmul.f32 %v236_v23, %v206_v6 }
 0x10f   : > { %v233_v25 = vpop.permute.xlu1 %232 }
 0x110   : > { %v237_v27 = vmul.f32 %v233_v25, %v227_v24  ;;  %v242_v31 = vsub.f32 %v238_v28, %v240_v26 }
 0x112   : > { %v241_v30 = vmul.f32 %v237_v27, %v207_v7  ;;  %259 = vperm.xlu1 %386, %v237_v27  }
 0x114   : > { %v243_v32 = vsub.f32 %v239_v29, %v241_v30 }
 0x116   : > { %272 = vperm.xlu1 %386, %v242_v31   ;;  %277 = vperm.xlu0 %385, %v243_v32  }
 0x189   : > { %v255_v35 = vpop.permute.xlu0 %254 }
 0x18a   : > { %v262_v43 = vmul.f32 %v255_v35, %v244_v33  ;;  %v264_v44 = vmul.f32 %v255_v35, %v246_v34  ;;  %v266_v45 = vmul.f32 %v255_v35, %v248_v37  ;;  %v268_v46 = vmul.f32 %v255_v35, %v250_v38 }
 0x18d   : > { %v260_v36 = vpop.permute.xlu1 %259 }
 0x18e   : > { %v263_v49 = vmul.f32 %v260_v36, %v245_v39  ;;  %v265_v50 = vmul.f32 %v260_v36, %v247_v40  ;;  %v267_v51 = vmul.f32 %v260_v36, %v249_v41  ;;  %v269_v52 = vmul.f32 %v260_v36, %v251_v42 }
 0x191   : > { %v273_v47 = vpop.permute.xlu1 %272  ;;  %v278_v48 = vpop.permute.xlu0 %277 }
 0x192   : > { %v280_v53 = vadd.f32 %v273_v47, %v262_v43  ;;  %v282_v54 = vadd.f32 %v273_v47, %v264_v44  ;;  %v284_v55 = vadd.f32 %v273_v47, %v266_v45  ;;  %v286_v56 = vadd.f32 %v273_v47, %v268_v46 }
 0x193   : > { %v281_v57 = vadd.f32 %v278_v48, %v263_v49  ;;  %v283_v58 = vadd.f32 %v278_v48, %v265_v50  ;;  %v285_v59 = vadd.f32 %v278_v48, %v267_v51  ;;  %v287_v60 = vadd.f32 %v278_v48, %v269_v52 }
 0x194   : > { %v288_v61 = vmax.f32 %v280_v53, 0.0  ;;  %v290_v62 = vmax.f32 %v282_v54, 0.0  ;;  %v292_v63 = vmax.f32 %v284_v55, 0.0  ;;  %v294_v0 = vmax.f32 %v286_v56, 0.0 }
 0x195   : > { %v289_v1 = vmax.f32 %v281_v57, 0.0  ;;  %v291_v2 = vmax.f32 %v283_v58, 0.0  ;;  %v293_v3 = vmax.f32 %v285_v59, 0.0  ;;  %v295_v4 = vmax.f32 %v287_v60, 0.0 }
 0x196   : > { %296 = vst [vmem:[%s197_s16] sm:$0xff] %v288_v61  ;;  %298 = vst [vmem:[%s197_s16 + $0x10] sm:$0xff] %v290_v62 }
 0x197   : > { %300 = vst [vmem:[%s197_s16 + $0x20] sm:$0xff] %v292_v63  ;;  %302 = vst [vmem:[%s197_s16 + $0x30] sm:$0xff] %v294_v0 }
 0x198   : > { %297 = vst [vmem:[%s197_s16 + $0x8] sm:$0xff] %v289_v1  ;;  %299 = vst [vmem:[%s197_s16 + $0x18] sm:$0xff] %v291_v2 }
 0x199   : > { %301 = vst [vmem:[%s197_s16 + $0x28] sm:$0xff] %v293_v3  ;;  %303 = vst [vmem:[%s197_s16 + $0x38] sm:$0xff] %v295_v4 }
 0x19a PF: > { %s14_s15 = sadd.s32 1, %s397_s15  }
 0x19b   : > { %p11_p4 = scmp.ge.s32.totalorder %s14_s15, 4  }
 0x19d   :  { %13 = sbr.rel (!%p11_p4) target bundleno = 1 (0x1), region = 67 }

// kernel: dcgan_forward.9
= control target key start
LH: loop header
LB: loop body
LE: loop exit
PB: predicated region body
PF: predicated region fallthrough
CT: control target
= control target key end

     0   :  { %s4842_s15 = smov 0   ;;  %s6432_s0 = inlined_call_operand.vmem [shape: f32[2,32,256], index: 0, kind: input, shape index: {}]   ;;  %s6433_s1 = inlined_call_operand.vmem [shape: f32[4,16,128], index: 1, kind: input, shape index: {}]   ;;  %s6434_s2 = inlined_call_operand.vmem [shape: f32[1,128], index: 2, kind: input, shape index: {}]   ;;  %s6435_s3 = inlined_call_operand.vmem [shape: f32[2,64,128], index: 3, kind: output, shape index: {0}]   ;;  %s6436_s4 = inlined_call_operand.vmem [shape: f32[2,16,2], index: 4, kind: output, shape index: {1}]  }
   0x1 LB: > { %s3489_s16 = sadd.s32 4294967295, %s4807_s15   ;;  %p3493_p0 = scmp.ge.s32.totalorder %s4807_s15, 1  ;;  %s4807_s15 = sphi %s4842_s15, %s15_s15  }
   0x2   : > { %p165_p1 = scmp.lt.s32.totalorder %s4807_s15, 3 }
   0x4   : > { %p166_p2 = pnand %p3493_p0, %p165_p1 }
   0x6   : > { %169 = sbr.rel (%p166_p2) target bundleno = 1159 (0x487), region = 32 }
   0xb   : > { %p196_p3 = scmp.lt.s32.totalorder %s3489_s16, 1  ;;  %s4809_s21 = smov 7   ;;  %vm269_vm0 = vcmask 48128   ;;  %vm248_vm1 = vcmask 7168   ;;  %v286_v30 = vld [vmem:[%s6433_s1] sm:$0xff]  ;;  %vm344_vm2 = vcmask 990208  }
   0xc   : > { %s4810_s22 = smov 6   ;;  %s4811_s23 = smov 1   ;;  %v4926_v31 = vand.u32 4294901760, %v286_v30  ;;  %vm1112_vm3 = vcmask 39936   ;;  %vm1091_vm4 = vcmask 1039360   ;;  %vm1901_vm5 = vcmask 1006592  }
   0xd   : > { %s6624_s16 = smov (!%p196_p3, %s3489_s16), 1  ;;  %s4812_s24 = smov 121   ;;  %vm1880_vm6 = vcmask 998400   ;;  %vm3398_vm7 = vcmask 15360  }
   0xe   : > { %s3509_s17 = sshll.u32 %s6624_s16, 6  ;;  %6524 = vst [vmem:[#allocation2_spill] sm:$0xff] %v4926_v31  ;;  %v4931_v34 = vsub.f32 %v286_v30, %v4926_v31  ;;  %4011 = vmatprep.mubr.f32.mxu1 %v4926_v31  ;;  %s4813_s27 = smov 5  }
   0xf   : > { %s200_s20 = scalar_lea.vmem %s6432_s0, %s3509_s17  ;;  %s4814_s28 = smov 127  }
  0x10   : > { %v4858_v0 = vld [vmem:[%s200_s20 + $0x30] sm:$0xff]  ;;  %v4864_v2 = vld [vmem:[%s200_s20 + $0x20] sm:$0xff]  ;;  %v4868_v3 = vld [vmem:[%s200_s20 + $0x38] sm:$0xff]  ;;  %v6437_v36 = vand.u32 4294901760, %v4931_v34  ;;  %s4815_s5 = smov 123   ;;  %s4816_s8 = smov 122  }
  0x11   : > { %v4860_v1 = vld [vmem:[%s200_s20 + $0x10] sm:$0xff]  ;;  %284 = vrot.lane.b32.xlu0 %v4858_v0, %s4809_s21  ;;  %v4870_v4 = vld [vmem:[%s200_s20] sm:$0xff]  ;;  %v4874_v5 = vld [vmem:[%s200_s20 + $0x28] sm:$0xff]  ;;  %s5855_s18 = scalar_lea.vmem %s6435_s3, %s3509_s17 }
  0x12   : > { %280 = vrot.lane.b32.xlu1 %v4860_v1, %s4809_s21  ;;  %v4878_v6 = vld [vmem:[%s200_s20 + $0x18] sm:$0xff]  ;;  %v4882_v7 = vld [vmem:[%s200_s20 + $0x8] sm:$0xff]  ;;  %v457_v39 = vsub.f32 %v4931_v34, %v6437_v36 }
  0x14   : > { %v458_v41 = vand.u32 4294901760, %v457_v39 }
  0x15   : > { %282 = vrot.lane.b32.xlu0 %v4864_v2, %s4809_s21 }
  0x16   : > { %265 = vrot.lane.b32.xlu1 %v4858_v0, %s4810_s22  ;;  %3976 = vmatprep.mubr.f32.mxu0 %v458_v41 }
  0x19   : > { %267 = vrot.lane.b32.xlu0 %v4868_v3, %s4810_s22 }
  0x1a   : > { %278 = vrot.lane.b32.xlu1 %v4870_v4, %s4809_s21 }
  0x1d   : > { %261 = vrot.lane.b32.xlu0 %v4864_v2, %s4810_s22 }
  0x1e   : > { %263 = vrot.lane.b32.xlu1 %v4874_v5, %s4810_s22 }
  0x21   : > { %257 = vrot.lane.b32.xlu0 %v4860_v1, %s4810_s22 }
  0x22   : > { %259 = vrot.lane.b32.xlu1 %v4878_v6, %s4810_s22 }
  0x25   : > { %253 = vrot.lane.b32.xlu0 %v4870_v4, %s4810_s22 }
  0x26   : > { %255 = vrot.lane.b32.xlu1 %v4882_v7, %s4810_s22 }
  0x29   : > { %244 = vrot.lane.b32.xlu0 %v4858_v0, %s4811_s23 }
  0x2a   : > { %246 = vrot.lane.b32.xlu1 %v4868_v3, %s4811_s23 }
  0x2d   : > { %240 = vrot.lane.b32.xlu0 %v4864_v2, %s4811_s23 }
  0x2e   : > { %242 = vrot.lane.b32.xlu1 %v4874_v5, %s4811_s23 }
  0x31   : > { %236 = vrot.lane.b32.xlu0 %v4860_v1, %s4811_s23 }
  0x32   : > { %238 = vrot.lane.b32.xlu1 %v4878_v6, %s4811_s23 }
  0x35   : > { %232 = vrot.lane.b32.xlu0 %v4870_v4, %s4811_s23 }
  0x36   : > { %234 = vrot.lane.b32.xlu1 %v4882_v7, %s4811_s23 }
  0x39   : > { %300 = vrot.lane.b32.xlu0 %v4858_v0, %s4812_s24 }
  0x3a   : > { %302 = vrot.lane.b32.xlu1 %v4868_v3, %s4812_s24 }
  0x3d   : > { %296 = vrot.lane.b32.xlu0 %v4864_v2, %s4812_s24 }
  0x3e   : > { %298 = vrot.lane.b32.xlu1 %v4874_v5, %s4812_s24 }
  0x83   : > { %v285_v8 = vpop.permute.xlu0 %284 }
  0x84   : > { %v281_v9 = vpop.permute.xlu1 %280  ;;  %342 = vrot.lane.b32.xlu0 %v285_v8, %s4812_s24 }
  0x87   : > { %v283_v10 = vpop.permute.xlu0 %282 }
  0x88   : > { %v266_v11 = vpop.permute.xlu1 %265  ;;  %340 = vrot.lane.b32.xlu1 %v283_v10, %s4812_s24  ;;  %338 = vrot.lane.b32.xlu0 %v281_v9, %s4812_s24 }
  0x8b   : > { %v268_v12 = vpop.permute.xlu0 %267 }
  0x8c   : > { %v279_v13 = vpop.permute.xlu1 %278  ;;  %332 = vrot.lane.b32.xlu0 %v266_v11, %s4812_s24  ;;  %v273_v14 = vsel %vm269_vm0, %v266_v11, %v268_v12 }
  0x8d   : > { %336 = vrot.lane.b32.xlu1 %v279_v13, %s4812_s24 }
  0x8f   : > { %v262_v16 = vpop.permute.xlu0 %261 }
  0x90   : > { %v264_v15 = vpop.permute.xlu1 %263  ;;  %328 = vrot.lane.b32.xlu0 %v262_v16, %s4812_s24 }
  0x91   : > { %334 = vrot.lane.b32.xlu1 %v273_v14, %s4812_s24  ;;  %v272_v17 = vsel %vm269_vm0, %v262_v16, %v264_v15 }
  0x93   : > { %v258_v19 = vpop.permute.xlu0 %257 }
  0x94   : > { %v260_v18 = vpop.permute.xlu1 %259  ;;  %324 = vrot.lane.b32.xlu0 %v258_v19, %s4812_s24 }
  0x95   : > { %330 = vrot.lane.b32.xlu1 %v272_v17, %s4812_s24  ;;  %v271_v20 = vsel %vm269_vm0, %v258_v19, %v260_v18 }
  0x97   : > { %v254_v22 = vpop.permute.xlu0 %253 }
  0x98   : > { %v256_v21 = vpop.permute.xlu1 %255  ;;  %320 = vrot.lane.b32.xlu0 %v254_v22, %s4812_s24 }
  0x99   : > { %326 = vrot.lane.b32.xlu1 %v271_v20, %s4812_s24  ;;  %v270_v23 = vsel %vm269_vm0, %v254_v22, %v256_v21 }
  0x9b   : > { %v245_v25 = vpop.permute.xlu0 %244 }
  0x9c   : > { %v247_v24 = vpop.permute.xlu1 %246  ;;  %316 = vrot.lane.b32.xlu0 %v245_v25, %s4812_s24 }
  0x9d   : > { %322 = vrot.lane.b32.xlu1 %v270_v23, %s4812_s24  ;;  %v252_v26 = vsel %vm248_vm1, %v245_v25, %v247_v24 }
  0x9f   : > { %v241_v28 = vpop.permute.xlu0 %240 }
  0xa0   : > { %v243_v27 = vpop.permute.xlu1 %242  ;;  %312 = vrot.lane.b32.xlu0 %v241_v28, %s4812_s24 }
  0xa1   : > { %318 = vrot.lane.b32.xlu1 %v252_v26, %s4812_s24  ;;  %v251_v29 = vsel %vm248_vm1, %v241_v28, %v243_v27 }
  0xa3   : > { %v237_v33 = vpop.permute.xlu0 %236 }
  0xa4   : > { %v239_v32 = vpop.permute.xlu1 %238  ;;  %308 = vrot.lane.b32.xlu0 %v237_v33, %s4812_s24 }
  0xa5   : > { %314 = vrot.lane.b32.xlu1 %v251_v29, %s4812_s24  ;;  %v250_v35 = vsel %vm248_vm1, %v237_v33, %v239_v32 }
  0xa7   : > { %v233_v38 = vpop.permute.xlu0 %232 }
  0xa8   : > { %v235_v37 = vpop.permute.xlu1 %234  ;;  %304 = vrot.lane.b32.xlu0 %v233_v38, %s4812_s24 }
  0xa9   : > { %310 = vrot.lane.b32.xlu1 %v250_v35, %s4812_s24  ;;  %v249_v40 = vsel %vm248_vm1, %v233_v38, %v235_v37 }
  0xab   : > { %v4967_v42 = vpop.permute.xlu0 %300 }
  0xac   : > { %292 = vrot.lane.b32.xlu0 %v4860_v1, %s4812_s24  ;;  %v4969_v43 = vpop.permute.xlu1 %302 }
  0xad   : > { %306 = vrot.lane.b32.xlu1 %v249_v40, %s4812_s24  ;;  %6525 = vst [vmem:[#allocation3_spill] sm:$0xff] %v4969_v43 }
  0xaf   : > { %v4971_v44 = vpop.permute.xlu0 %296 }
  0xb0   : > { %288 = vrot.lane.b32.xlu0 %v4870_v4, %s4812_s24  ;;  %v4973_v45 = vpop.permute.xlu1 %298 }
  0xb1   : > { %294 = vrot.lane.b32.xlu1 %v4878_v6, %s4812_s24  ;;  %6526 = vst [vmem:[#allocation4_spill] sm:$0xff] %v4973_v45 }
  0xb4   : > { %1108 = vrot.lane.b32.xlu0 %v4858_v0, %s4813_s27 }
  0xb5   : > { %290 = vrot.lane.b32.xlu1 %v4882_v7, %s4812_s24 }
  0xb8   : > { %1104 = vrot.lane.b32.xlu0 %v4864_v2, %s4813_s27 }
  0xb9   : > { %1110 = vrot.lane.b32.xlu1 %v4868_v3, %s4813_s27 }
  0xbc   : > { %1100 = vrot.lane.b32.xlu0 %v4860_v1, %s4813_s27 }
  0xbd   : > { %1106 = vrot.lane.b32.xlu1 %v4874_v5, %s4813_s27 }
  0xc0   : > { %1096 = vrot.lane.b32.xlu0 %v4870_v4, %s4813_s27 }
  0xc1   : > { %1102 = vrot.lane.b32.xlu1 %v4878_v6, %s4813_s27 }
  0xc4   : > { %1087 = vrot.lane.b32.xlu0 %v4858_v0, %s4814_s28 }
  0xc5   : > { %1098 = vrot.lane.b32.xlu1 %v4882_v7, %s4813_s27 }
  0xc8   : > { %1083 = vrot.lane.b32.xlu0 %v4864_v2, %s4814_s28 }
  0xc9   : > { %1089 = vrot.lane.b32.xlu1 %v4868_v3, %s4814_s28 }
  0xcc   : > { %1079 = vrot.lane.b32.xlu0 %v4860_v1, %s4814_s28 }
  0xcd   : > { %1085 = vrot.lane.b32.xlu1 %v4874_v5, %s4814_s28 }
  0xd0   : > { %1075 = vrot.lane.b32.xlu0 %v4870_v4, %s4814_s28 }
  0xd1   : > { %1081 = vrot.lane.b32.xlu1 %v4878_v6, %s4814_s28 }
  0xd5   : > { %1077 = vrot.lane.b32.xlu1 %v4882_v7, %s4814_s28  ;;  %s3511_s28 = sshll.u32 %s6624_s16, 4 }
  0xf6   : > { %v343_v46 = vpop.permute.xlu0 %342 }
  0xf7   : > { %v4975_v47 = vand.u32 4294901760, %v343_v46 }
  0xf9   : > { %v4978_v48 = vsub.f32 %v343_v46, %v4975_v47  ;;  %3944 = vmatprep.subr.mxu0 %v4975_v47 }
  0xfa   : > { %v341_v49 = vpop.permute.xlu1 %340  ;;  %3945 = vmatpush3.msra.mxu0 %v4975_v47  ;;  %v339_v50 = vpop.permute.xlu0 %338 }
  0xfb   : > { %v4982_v51 = vand.u32 4294901760, %v341_v49  ;;  %v4984_v52 = vand.u32 4294901760, %v339_v50  ;;  %v4987_v53 = vand.u32 4294901760, %v4978_v48 }
  0xfd   : > { %v4990_v54 = vsub.f32 %v341_v49, %v4982_v51  ;;  %v4993_v55 = vsub.f32 %v339_v50, %v4984_v52  ;;  %3946 = vmatprep.subr.mxu0 %v4982_v51  ;;  %v478_v56 = vsub.f32 %v4978_v48, %v4987_v53 }
  0xfe   : > { %3947 = vmatpush3.msra.mxu0 %v4982_v51  ;;  %v333_v58 = vpop.permute.xlu0 %332 }
  0xff   : > { %v337_v57 = vpop.permute.xlu1 %336  ;;  %3948 = vmatprep.subr.mxu0 %v4984_v52  ;;  %v479_v60 = vand.u32 4294901760, %v478_v56  ;;  %v5003_v61 = vand.u32 4294901760, %v4990_v54  ;;  %v5006_v62 = vand.u32 4294901760, %v4993_v55 }
 0x100   : > { %v4999_v59 = vand.u32 4294901760, %v337_v57  ;;  %3949 = vmatpush3.msra.mxu0 %v4984_v52 }
 0x101   : > { %3979 = vmatprep.subr.mxu1 %v479_v60  ;;  %v485_v8 = vsub.f32 %v4990_v54, %v5003_v61  ;;  %v492_v9 = vsub.f32 %v4993_v55, %v5006_v62 }
 0x102   : > { %v5010_v63 = vsub.f32 %v337_v57, %v4999_v59  ;;  %3950 = vmatprep.subr.mxu0 %v4999_v59  ;;  %3980 = vmatpush3.msra.mxu1 %v479_v60  ;;  %v329_v11 = vpop.permute.xlu0 %328 }
 0x103   : > { %v335_v10 = vpop.permute.xlu1 %334  ;;  %3951 = vmatpush3.msra.mxu0 %v4999_v59  ;;  %v486_v13 = vand.u32 4294901760, %v485_v8  ;;  %v493_v16 = vand.u32 4294901760, %v492_v9 }
 0x104   : > { %v356_v12 = vsel %vm344_vm2, %v333_v58, %v335_v10  ;;  %v5020_v14 = vand.u32 4294901760, %v5010_v63 }
 0x105   : > { %v5022_v15 = vand.u32 4294901760, %v356_v12  ;;  %3981 = vmatprep.subr.mxu1 %v486_v13 }
 0x106   : > { %v499_v17 = vsub.f32 %v5010_v63, %v5020_v14  ;;  %3982 = vmatpush3.msra.mxu1 %v486_v13  ;;  %v325_v20 = vpop.permute.xlu0 %324 }
 0x107   : > { %v5027_v18 = vsub.f32 %v356_v12, %v5022_v15  ;;  %v331_v19 = vpop.permute.xlu1 %330  ;;  %3952 = vmatprep.subr.mxu0 %v5022_v15  ;;  %3983 = vmatprep.subr.mxu1 %v493_v16 }
 0x108   : > { %v355_v21 = vsel %vm344_vm2, %v329_v11, %v331_v19  ;;  %3953 = vmatpush3.msra.mxu0 %v5022_v15  ;;  %v500_v22 = vand.u32 4294901760, %v499_v17  ;;  %3984 = vmatpush3.msra.mxu1 %v493_v16  ;;  %v287_v17 = vld [vmem:[%s6433_s1 + $0x8] sm:$0xff]  ;;  %v5099_v19 = vsel %vm344_vm2, %v4967_v42, %v4969_v43  ;;  %v5119_v42 = vsel %vm344_vm2, %v4971_v44, %v4973_v45 }
 0x109   : > { %v5032_v23 = vand.u32 4294901760, %v355_v21  ;;  %v5035_v24 = vand.u32 4294901760, %v5027_v18  ;;  %6532 = vst [vmem:[#allocation10_spill] sm:$0xff] %v5099_v19  ;;  %6536 = vst [vmem:[#allocation14_spill] sm:$0xff] %v5119_v42 }
 0x10a   : > { %3985 = vmatprep.subr.mxu1 %v500_v22  ;;  %v321_v27 = vpop.permute.xlu0 %320 }
 0x10b   : > { %v5038_v25 = vsub.f32 %v355_v21, %v5032_v23  ;;  %v327_v26 = vpop.permute.xlu1 %326  ;;  %3954 = vmatprep.subr.mxu0 %v5032_v23  ;;  %3986 = vmatpush3.msra.mxu1 %v500_v22  ;;  %v506_v28 = vsub.f32 %v5027_v18, %v5035_v24 }
 0x10c   : > { %v354_v29 = vsel %vm344_vm2, %v325_v20, %v327_v26  ;;  %3955 = vmatpush3.msra.mxu0 %v5032_v23 }
 0x10d   : > { %v5045_v30 = vand.u32 4294901760, %v354_v29  ;;  %v5047_v32 = vand.u32 4294901760, %v506_v28  ;;  %v5050_v33 = vand.u32 4294901760, %v5038_v25  ;;  %v5114_v28 = vand.u32 4294901760, %v5099_v19 }
 0x10e   : > { %v317_v38 = vpop.permute.xlu0 %316 }
 0x10f   : > { %6527 = vst [vmem:[#allocation5_spill] sm:$0xff] %v5047_v32  ;;  %v5053_v35 = vsub.f32 %v354_v29, %v5045_v30  ;;  %v323_v37 = vpop.permute.xlu1 %322  ;;  %3956 = vmatprep.subr.mxu0 %v5045_v30  ;;  %3987 = vmatprep.subr.mxu1 %v5047_v32  ;;  %v513_v39 = vsub.f32 %v5038_v25, %v5050_v33 }
 0x110   : > { %v353_v40 = vsel %vm344_vm2, %v321_v27, %v323_v37  ;;  %3957 = vmatpush3.msra.mxu0 %v5045_v30  ;;  %3988 = vmatpush3.msra.mxu1 %v5047_v32  ;;  %v5111_v27 = vand.u32 4294901760, %v287_v17 }
 0x111   : > { %v5062_v41 = vand.u32 4294901760, %v353_v40  ;;  %v5064_v46 = vand.u32 4294901760, %v513_v39  ;;  %v5067_v49 = vand.u32 4294901760, %v5053_v35 }
 0x112   : > { %v313_v57 = vpop.permute.xlu0 %312 }
 0x113   : > { %6528 = vst [vmem:[#allocation6_spill] sm:$0xff] %v5064_v46  ;;  %v5070_v50 = vsub.f32 %v353_v40, %v5062_v41  ;;  %v319_v56 = vpop.permute.xlu1 %318  ;;  %3958 = vmatprep.subr.mxu0 %v5062_v41  ;;  %3989 = vmatprep.subr.mxu1 %v5064_v46  ;;  %v520_v58 = vsub.f32 %v5053_v35, %v5067_v49 }
 0x114   : > { %v352_v60 = vsel %vm344_vm2, %v317_v38, %v319_v56  ;;  %3959 = vmatpush3.msra.mxu0 %v5062_v41  ;;  %3990 = vmatpush3.msra.mxu1 %v5064_v46 }
 0x115   : > { %v5079_v8 = vand.u32 4294901760, %v352_v60  ;;  %v5081_v9 = vand.u32 4294901760, %v520_v58  ;;  %v5084_v10 = vand.u32 4294901760, %v5070_v50  ;;  %v5139_v58 = vand.u32 4294901760, %v5119_v42 }
 0x116   : > { %v309_v13 = vpop.permute.xlu0 %308 }
 0x117   : > { %6529 = vst [vmem:[#allocation7_spill] sm:$0xff] %v5079_v8  ;;  %6530 = vst [vmem:[#allocation8_spill] sm:$0xff] %v5081_v9  ;;  %v5087_v11 = vsub.f32 %v352_v60, %v5079_v8  ;;  %v315_v12 = vpop.permute.xlu1 %314  ;;  %3960 = vmatprep.subr.mxu0 %v5079_v8  ;;  %3991 = vmatprep.subr.mxu1 %v5081_v9  ;;  %v527_v16 = vsub.f32 %v5070_v50, %v5084_v10 }
 0x118   : > { %v351_v20 = vsel %vm344_vm2, %v313_v57, %v315_v12  ;;  %3961 = vmatpush3.msra.mxu0 %v5079_v8  ;;  %3992 = vmatpush3.msra.mxu1 %v5081_v9  ;;  %v5142_v60 = vsub.f32 %v287_v17, %v5111_v27  ;;  %v5146_v12 = vsub.f32 %v5099_v19, %v5114_v28 }
 0x119   : > { %6531 = vst [vmem:[#allocation9_spill] sm:$0xff] %v5087_v11  ;;  %v5104_v21 = vand.u32 4294901760, %v351_v20  ;;  %v5106_v22 = vand.u32 4294901760, %v527_v16  ;;  %v5109_v26 = vand.u32 4294901760, %v5087_v11  ;;  %v5167_v45 = vsub.f32 %v5119_v42, %v5139_v58 }
 0x11a   : > { %v305_v38 = vpop.permute.xlu0 %304  ;;  %v5171_v43 = vand.u32 4294901760, %v5146_v12 }
 0x11b   : > { %6533 = vst [vmem:[#allocation11_spill] sm:$0xff] %v5104_v21  ;;  %6534 = vst [vmem:[#allocation12_spill] sm:$0xff] %v5106_v22  ;;  %v5122_v29 = vsub.f32 %v351_v20, %v5104_v21  ;;  %v311_v37 = vpop.permute.xlu1 %310  ;;  %3962 = vmatprep.subr.mxu0 %v5104_v21  ;;  %3993 = vmatprep.subr.mxu1 %v5106_v22  ;;  %v534_v39 = vsub.f32 %v5087_v11, %v5109_v26  ;;  %v5198_v9 = vand.u32 4294901760, %v5167_v45 }
 0x11c   : > { %6535 = vst [vmem:[#allocation13_spill] sm:$0xff] %v5109_v26  ;;  %v350_v40 = vsel %vm344_vm2, %v309_v13, %v311_v37  ;;  %3963 = vmatpush3.msra.mxu0 %v5104_v21  ;;  %3994 = vmatpush3.msra.mxu1 %v5106_v22  ;;  %6545 = vst [vmem:[#allocation23_spill] sm:$0xff] %v5171_v43  ;;  %v562_v31 = vsub.f32 %v5146_v12, %v5171_v43 }
 0x11d   : > { %6537 = vst [vmem:[#allocation15_spill] sm:$0xff] %v5122_v29  ;;  %v5131_v44 = vand.u32 4294901760, %v350_v40  ;;  %v5133_v56 = vand.u32 4294901760, %v534_v39  ;;  %v5136_v57 = vand.u32 4294901760, %v5122_v29  ;;  %6551 = vst [vmem:[#allocation29_spill] sm:$0xff] %v5198_v9 }
 0x11e   : > { %v293_v37 = vpop.permute.xlu0 %292 }
 0x11f   : > { %6538 = vst [vmem:[#allocation16_spill] sm:$0xff] %v5131_v44  ;;  %6539 = vst [vmem:[#allocation17_spill] sm:$0xff] %v5133_v56  ;;  %v5149_v13 = vsub.f32 %v350_v40, %v5131_v44  ;;  %v307_v16 = vpop.permute.xlu1 %306  ;;  %3964 = vmatprep.subr.mxu0 %v5131_v44  ;;  %3995 = vmatprep.subr.mxu1 %v5133_v56  ;;  %v541_v20 = vsub.f32 %v5122_v29, %v5136_v57 }
 0x120   : > { %6540 = vst [vmem:[#allocation18_spill] sm:$0xff] %v5136_v57  ;;  %v349_v39 = vsel %vm344_vm2, %v305_v38, %v307_v16  ;;  %3965 = vmatpush3.msra.mxu0 %v5131_v44  ;;  %3996 = vmatpush3.msra.mxu1 %v5133_v56 }
 0x121   : > { %6541 = vst [vmem:[#allocation19_spill] sm:$0xff] %v5149_v13  ;;  %v5158_v17 = vand.u32 4294901760, %v349_v39  ;;  %v5160_v36 = vand.u32 4294901760, %v541_v20  ;;  %v5163_v40 = vand.u32 4294901760, %v5149_v13 }
 0x122   : > { %v289_v56 = vpop.permute.xlu0 %288 }
 0x123   : > { %6542 = vst [vmem:[#allocation20_spill] sm:$0xff] %v5158_v17  ;;  %6543 = vst [vmem:[#allocation21_spill] sm:$0xff] %v5160_v36  ;;  %v5174_v38 = vsub.f32 %v349_v39, %v5158_v17  ;;  %v5176_v16 = vpop.permute.xlu1 %294  ;;  %3966 = vmatprep.subr.mxu0 %v5158_v17  ;;  %3997 = vmatprep.subr.mxu1 %v5160_v36  ;;  %v548_v20 = vsub.f32 %v5149_v13, %v5163_v40 }
 0x124   : > { %6544 = vst [vmem:[#allocation22_spill] sm:$0xff] %v5163_v40  ;;  %6547 = vst [vmem:[#allocation25_spill] sm:$0xff] %v5176_v16  ;;  %v5184_v42 = vsel %vm344_vm2, %v293_v37, %v5176_v16  ;;  %3967 = vmatpush3.msra.mxu0 %v5158_v17  ;;  %3998 = vmatpush3.msra.mxu1 %v5160_v36  ;;  %v6552_v37 = vand.u32 4294901760, %v5142_v60 }
 0x125   : > { %6546 = vst [vmem:[#allocation24_spill] sm:$0xff] %v5174_v38  ;;  %6548 = vst [vmem:[#allocation26_spill] sm:$0xff] %v5184_v42  ;;  %v5189_v39 = vand.u32 4294901760, %v5184_v42  ;;  %3968 = vmatprep.subr.mxu0 %v5114_v28  ;;  %v5192_v19 = vand.u32 4294901760, %v548_v20  ;;  %v5195_v22 = vand.u32 4294901760, %v5174_v38 }
 0x126   : > { %3969 = vmatpush3.msra.mxu0 %v5114_v28  ;;  %v467_v16 = vsub.f32 %v5142_v60, %v6552_v37  ;;  %v1109_v32 = vpop.permute.xlu0 %1108 }
 0x127   : > { %6549 = vst [vmem:[#allocation27_spill] sm:$0xff] %v5192_v19  ;;  %6550 = vst [vmem:[#allocation28_spill] sm:$0xff] %v5195_v22  ;;  %v5206_v36 = vsub.f32 %v5184_v42, %v5189_v39  ;;  %v5208_v46 = vpop.permute.xlu1 %290  ;;  %3970 = vmatprep.subr.mxu0 %v5139_v58  ;;  %3999 = vmatprep.subr.mxu1 %v5192_v19  ;;  %v555_v20 = vsub.f32 %v5174_v38, %v5195_v22 }
 0x128   : > { %6553 = vst [vmem:[#allocation30_spill] sm:$0xff] %v5208_v46  ;;  %v5218_v37 = vsel %vm344_vm2, %v289_v56, %v5208_v46  ;;  %3971 = vmatpush3.msra.mxu0 %v5139_v58  ;;  %4000 = vmatpush3.msra.mxu1 %v5192_v19  ;;  %v468_v56 = vand.u32 4294901760, %v467_v16  ;;  %v569_v46 = vsub.f32 %v5167_v45, %v5198_v9 }
 0x129   : > { %6554 = vst [vmem:[#allocation31_spill] sm:$0xff] %v5218_v37  ;;  %v5223_v42 = vand.u32 4294901760, %v5206_v36  ;;  %v5226_v40 = vand.u32 4294901760, %v5218_v37  ;;  %3972 = vmatprep.subr.mxu0 %v5189_v39  ;;  %v5229_v22 = vand.u32 4294901760, %v555_v20  ;;  %1148 = vrot.lane.b32.xlu0 %v1109_v32, %s4812_s24  ;;  %v5241_v20 = vand.u32 4294901760, %v562_v31 }
 0x12a   : > { %3973 = vmatpush3.msra.mxu0 %v5189_v39  ;;  %v1105_v57 = vpop.permute.xlu0 %1104  ;;  %v5254_v31 = vand.u32 4294901760, %v569_v46 }
 0x12b   : > { %6555 = vst [vmem:[#allocation32_spill] sm:$0xff] %v5223_v42  ;;  %6556 = vst [vmem:[#allocation33_spill] sm:$0xff] %v5229_v22  ;;  %v5237_v19 = vsub.f32 %v5218_v37, %v5226_v40  ;;  %v1111_v43 = vpop.permute.xlu1 %1110  ;;  %3974 = vmatprep.subr.mxu0 %v5226_v40  ;;  %4001 = vmatprep.subr.mxu1 %v5229_v22  ;;  %v576_v9 = vsub.f32 %v5206_v36, %v5223_v42 }
 0x12c   : > { %3975 = vmatpush3.msra.mxu0 %v5226_v40  ;;  %4002 = vmatpush3.msra.mxu1 %v5229_v22  ;;  %v1116_v16 = vsel %vm1112_vm3, %v1109_v32, %v1111_v43 }
 0x12d   : > { %v5249_v37 = vand.u32 4294901760, %v5237_v19  ;;  %4003 = vmatprep.subr.mxu1 %v5241_v20  ;;  %4014 = vmatprep.subr.mxu0 %v4978_v48  ;;  %v5262_v42 = vand.u32 4294901760, %v576_v9 }
 0x12e   : > { %1150 = vrot.lane.b32.xlu1 %v1116_v16, %s4812_s24  ;;  %3977 = vmatmul.mubr.f32.vlgmr.msra.gmra.mxu0 %v468_v56  ;;  %v1101_v22 = vpop.permute.xlu0 %1100 }
 0x12f   : > { %6557 = vst [vmem:[#allocation34_spill] sm:$0xff] %v5249_v37  ;;  %4004 = vmatpush3.msra.mxu1 %v5241_v20  ;;  %4015 = vmatpush3.msra.mxu0 %v4978_v48  ;;  %v1107_v43 = vpop.permute.xlu1 %1106  ;;  %v583_v32 = vsub.f32 %v5237_v19, %v5249_v37 }
 0x130   : > { %4005 = vmatprep.subr.mxu1 %v5254_v31  ;;  %4016 = vmatprep.subr.mxu0 %v4990_v54  ;;  %v1115_v16 = vsel %vm1112_vm3, %v1105_v57, %v1107_v43 }
 0x131   : > { %4006 = vmatpush3.msra.mxu1 %v5254_v31  ;;  %4017 = vmatpush3.msra.mxu0 %v4990_v54  ;;  %v5267_v46 = vand.u32 4294901760, %v583_v32 }
 0x132   : > { %1144 = vrot.lane.b32.xlu0 %v1105_v57, %s4812_s24  ;;  %4007 = vmatprep.subr.mxu1 %v5262_v42  ;;  %v1097_v9 = vpop.permute.xlu0 %1096 }
 0x133   : > { %4018 = vmatprep.subr.mxu0 %v4993_v55  ;;  %1146 = vrot.lane.b32.xlu1 %v1115_v16, %s4812_s24  ;;  %v1103_v48 = vpop.permute.xlu1 %1102 }
 0x134   : > { %4008 = vmatpush3.msra.mxu1 %v5262_v42  ;;  %4019 = vmatpush3.msra.mxu0 %v4993_v55  ;;  %v1114_v54 = vsel %vm1112_vm3, %v1101_v22, %v1103_v48 }
 0x135   : > { %4009 = vmatprep.subr.mxu1 %v5267_v46  ;;  %4020 = vmatprep.subr.mxu0 %v5010_v63 }
 0x136   : > { %4010 = vmatpush3.msra.mxu1 %v5267_v46  ;;  %4021 = vmatpush3.msra.mxu0 %v5010_v63  ;;  %v1088_v55 = vpop.permute.xlu0 %1087 }
 0x137   : > { %1140 = vrot.lane.b32.xlu0 %v1101_v22, %s4812_s24  ;;  %4022 = vmatprep.subr.mxu0 %v5027_v18  ;;  %v1099_v57 = vpop.permute.xlu1 %1098 }
 0x138   : > { %4049 = vmatprep.subr.mxu1 %v4975_v47  ;;  %1142 = vrot.lane.b32.xlu1 %v1114_v54, %s4812_s24  ;;  %v1113_v63 = vsel %vm1112_vm3, %v1097_v9, %v1099_v57 }
 0x139   : > { %4012 = vmatmul.mubr.f32.vlgmr.msra.gmra.mxu1 %v5111_v27  ;;  %4023 = vmatpush3.msra.mxu0 %v5027_v18 }
 0x13a   : > { %4050 = vmatpush3.msra.mxu1 %v4975_v47  ;;  %4024 = vmatprep.subr.mxu0 %v5038_v25  ;;  %v1084_v32 = vpop.permute.xlu0 %1083 }
 0x13b   : > { %4051 = vmatprep.subr.mxu1 %v4982_v51  ;;  %4025 = vmatpush3.msra.mxu0 %v5038_v25  ;;  %v1090_v22 = vpop.permute.xlu1 %1089 }
 0x13c   : > { %4052 = vmatpush3.msra.mxu1 %v4982_v51  ;;  %1136 = vrot.lane.b32.xlu0 %v1097_v9, %s4812_s24  ;;  %v1095_v56 = vsel %vm1091_vm4, %v1088_v55, %v1090_v22 }
 0x13d   : > { %4026 = vmatprep.subr.mxu0 %v5053_v35  ;;  %4053 = vmatprep.subr.mxu1 %v4984_v52 }
 0x13e   : > { %1138 = vrot.lane.b32.xlu1 %v1113_v63, %s4812_s24  ;;  %4027 = vmatpush3.msra.mxu0 %v5053_v35  ;;  %v1080_v9 = vpop.permute.xlu0 %1079 }
 0x13f   : > { %4054 = vmatpush3.msra.mxu1 %v4984_v52  ;;  %4028 = vmatprep.subr.mxu0 %v5070_v50  ;;  %v1086_v43 = vpop.permute.xlu1 %1085 }
 0x140   : > { %4055 = vmatprep.subr.mxu1 %v4999_v59  ;;  %4029 = vmatpush3.msra.mxu0 %v5070_v50  ;;  %v1094_v16 = vsel %vm1091_vm4, %v1084_v32, %v1086_v43 }
 0x141   : > { %4056 = vmatpush3.msra.mxu1 %v4999_v59  ;;  %4030 = vmatprep.subr.mxu0 %v5087_v11 }
 0x142   : > { %4057 = vmatprep.subr.mxu1 %v5022_v15  ;;  %1134 = vrot.lane.b32.xlu1 %v1090_v22, %s4812_s24  ;;  %v1076_v55 = vpop.permute.xlu0 %1075 }
 0x143   : > { %1132 = vrot.lane.b32.xlu0 %v1095_v56, %s4812_s24  ;;  %4031 = vmatpush3.msra.mxu0 %v5087_v11  ;;  %v1082_v48 = vpop.permute.xlu1 %1081 }
 0x144   : > { %4058 = vmatpush3.msra.mxu1 %v5022_v15  ;;  %4032 = vmatprep.subr.mxu0 %v5122_v29  ;;  %v1093_v54 = vsel %vm1091_vm4, %v1080_v9, %v1082_v48 }
 0x145   : > { %4059 = vmatprep.subr.mxu1 %v5032_v23  ;;  %4033 = vmatpush3.msra.mxu0 %v5122_v29 }
 0x146   : > { %4060 = vmatpush3.msra.mxu1 %v5032_v23  ;;  %4034 = vmatprep.subr.mxu0 %v5149_v13 }
 0x147   : > { %4061 = vmatprep.subr.mxu1 %v5045_v30  ;;  %1130 = vrot.lane.b32.xlu1 %v1086_v43, %s4812_s24  ;;  %v1078_v57 = vpop.permute.xlu1 %1077 }
 0x148   : > { %1128 = vrot.lane.b32.xlu0 %v1094_v16, %s4812_s24  ;;  %4035 = vmatpush3.msra.mxu0 %v5149_v13  ;;  %v1092_v63 = vsel %vm1091_vm4, %v1076_v55, %v1078_v57 }
 0x149   : > { %4062 = vmatpush3.msra.mxu1 %v5045_v30  ;;  %4036 = vmatprep.subr.mxu0 %v5174_v38 }
 0x14a   : > { %4063 = vmatprep.subr.mxu1 %v5062_v41  ;;  %4037 = vmatpush3.msra.mxu0 %v5174_v38 }
 0x14b   : > { %4064 = vmatpush3.msra.mxu1 %v5062_v41  ;;  %4038 = vmatprep.subr.mxu0 %v5146_v12 }
 0x14c   : > { %4065 = vmatprep.subr.mxu1 %v5079_v8  ;;  %1126 = vrot.lane.b32.xlu1 %v1082_v48, %s4812_s24 }
 0x14d   : > { %1124 = vrot.lane.b32.xlu0 %v1093_v54, %s4812_s24  ;;  %4039 = vmatpush3.msra.mxu0 %v5146_v12 }
 0x14e   : > { %4066 = vmatpush3.msra.mxu1 %v5079_v8  ;;  %4040 = vmatprep.subr.mxu0 %v5167_v45 }
 0x14f   : > { %4067 = vmatprep.subr.mxu1 %v5104_v21  ;;  %4041 = vmatpush3.msra.mxu0 %v5167_v45 }
 0x150   : > { %4068 = vmatpush3.msra.mxu1 %v5104_v21  ;;  %4042 = vmatprep.subr.mxu0 %v5206_v36 }
 0x151   : > { %4069 = vmatprep.subr.mxu1 %v5131_v44  ;;  %1122 = vrot.lane.b32.xlu1 %v1078_v57, %s4812_s24 }
 0x152   : > { %1120 = vrot.lane.b32.xlu0 %v1092_v63, %s4812_s24  ;;  %4043 = vmatpush3.msra.mxu0 %v5206_v36 }
 0x153   : > { %4070 = vmatpush3.msra.mxu1 %v5131_v44  ;;  %4044 = vmatprep.subr.mxu0 %v5237_v19 }
 0x154   : > { %4071 = vmatprep.subr.mxu1 %v5158_v17  ;;  %4045 = vmatpush3.msra.mxu0 %v5237_v19 }
 0x155   : > { %4072 = vmatpush3.msra.mxu1 %v5158_v17  ;;  %4046 = vmatprep.mubr.f32.mxu0 %v4931_v34 }
 0x156   : > { %4073 = vmatprep.subr.mxu1 %v5114_v28  ;;  %4084 = vmatprep.subr.mxu0 %v4987_v53 }
 0x157   : > { %1899 = vrot.lane.b32.xlu1 %v4868_v3, %s4815_s5  ;;  %1897 = vrot.lane.b32.xlu0 %v4858_v0, %s4815_s5 }
 0x158   : > { %4047 = vmatmul.mubr.f32.vlgmr.msra.gmra.mxu0 %v5142_v60  ;;  %4074 = vmatpush3.msra.mxu1 %v5114_v28 }
 0x159   : > { %4085 = vmatpush3.msra.mxu0 %v4987_v53  ;;  %4075 = vmatprep.subr.mxu1 %v5139_v58  ;;  %v6558_v53 = vand.u32 4294901760, %v4931_v34  ;;  %v3501_v34 = vld [vmem:[%s6433_s1 + $0x10] sm:$0xff] }
 0x15a   : > { %4086 = vmatprep.subr.mxu0 %v5003_v61  ;;  %4076 = vmatpush3.msra.mxu1 %v5139_v58 }
 0x15b   : > { %4087 = vmatpush3.msra.mxu0 %v5003_v61  ;;  %4077 = vmatprep.subr.mxu1 %v5189_v39  ;;  %v6559_v61 = vand.u32 4294901760, %v5142_v60 }
 0x15c   : > { %4088 = vmatprep.subr.mxu0 %v5006_v62  ;;  %1895 = vrot.lane.b32.xlu1 %v4874_v5, %s4815_s5 }
 0x15d   : > { %1893 = vrot.lane.b32.xlu0 %v4864_v2, %s4815_s5  ;;  %4078 = vmatpush3.msra.mxu1 %v5189_v39 }
 0x15e   : > { %4089 = vmatpush3.msra.mxu0 %v5006_v62  ;;  %4079 = vmatprep.subr.mxu1 %v5226_v40  ;;  %v6565_v62 = vld [vmem:[#allocation32_spill] sm:$0xff] }
 0x15f   : > { %4090 = vmatprep.subr.mxu0 %v5020_v14  ;;  %4080 = vmatpush3.msra.mxu1 %v5226_v40 }
 0x160   : > { %4091 = vmatpush3.msra.mxu0 %v5020_v14  ;;  %4081 = vmatprep.mubr.f32.mxu1 %v6558_v53  ;;  %v6566_v14 = vld [vmem:[#allocation2_spill] sm:$0xff] }
 0x161   : > { %4092 = vmatprep.subr.mxu0 %v5035_v24  ;;  %4119 = vmatprep.subr.mxu1 %v4975_v47 }
 0x162   : > { %1891 = vrot.lane.b32.xlu1 %v4878_v6, %s4815_s5  ;;  %1889 = vrot.lane.b32.xlu0 %v4860_v1, %s4815_s5 }
 0x163   : > { %4082 = vmatmul.mubr.f32.vlgmr.msra.gmra.mxu1 %v6559_v61  ;;  %4093 = vmatpush3.msra.mxu0 %v5035_v24 }
 0x164   : > { %4120 = vmatpush3.msra.mxu1 %v4975_v47  ;;  %4094 = vmatprep.subr.mxu0 %v5050_v33  ;;  %v6560_v47 = vld [vmem:[#allocation18_spill] sm:$0xff] }
 0x165   : > { %4121 = vmatprep.subr.mxu1 %v4982_v51  ;;  %4095 = vmatpush3.msra.mxu0 %v5050_v33 }
 0x166   : > { %4122 = vmatpush3.msra.mxu1 %v4982_v51  ;;  %4096 = vmatprep.subr.mxu0 %v5067_v49  ;;  %v5412_v51 = vand.u32 4294901760, %v3501_v34 }
 0x167   : > { %4123 = vmatprep.subr.mxu1 %v4984_v52  ;;  %1887 = vrot.lane.b32.xlu1 %v4882_v7, %s4815_s5 }
 0x168   : > { %1885 = vrot.lane.b32.xlu0 %v4870_v4, %s4815_s5  ;;  %4097 = vmatpush3.msra.mxu0 %v5067_v49  ;;  %s210_s5 = scalar_lea.vmem %s6436_s4, %s3511_s28 }
 0x169   : > { %4124 = vmatpush3.msra.mxu1 %v4984_v52  ;;  %4098 = vmatprep.subr.mxu0 %v5084_v10  ;;  %v6561_v52 = vld [vmem:[#allocation22_spill] sm:$0xff] }
 0x16a   : > { %4125 = vmatprep.subr.mxu1 %v4999_v59  ;;  %4099 = vmatpush3.msra.mxu0 %v5084_v10 }
 0x16b   : > { %4126 = vmatpush3.msra.mxu1 %v4999_v59  ;;  %4100 = vmatprep.subr.mxu0 %v5109_v26  ;;  %v6563_v59 = vld [vmem:[#allocation23_spill] sm:$0xff] }
 0x16c   : > { %4127 = vmatprep.subr.mxu1 %v5022_v15  ;;  %1878 = vrot.lane.b32.xlu1 %v4868_v3, %s4816_s8  ;;  %v6562_v3 = vld [vmem:[#allocation28_spill] sm:$0xff] }
 0x16d   : > { %1876 = vrot.lane.b32.xlu0 %v4858_v0, %s4816_s8  ;;  %4101 = vmatpush3.msra.mxu0 %v5109_v26  ;;  %v5425_v0 = vsub.f32 %v3501_v34, %v5412_v51 }
 0x16e   : > { %4128 = vmatpush3.msra.mxu1 %v5022_v15  ;;  %4102 = vmatprep.subr.mxu0 %v6560_v47 }
 0x16f   : > { %4129 = vmatprep.subr.mxu1 %v5032_v23  ;;  %4103 = vmatpush3.msra.mxu0 %v6560_v47 }
 0x170   : > { %4130 = vmatpush3.msra.mxu1 %v5032_v23  ;;  %4104 = vmatprep.subr.mxu0 %v6561_v52 }
 0x171   : > { %4131 = vmatprep.subr.mxu1 %v5045_v30  ;;  %1874 = vrot.lane.b32.xlu1 %v4874_v5, %s4816_s8  ;;  %v6564_v5 = vld [vmem:[#allocation29_spill] sm:$0xff] }
 0x172   : > { %1872 = vrot.lane.b32.xlu0 %v4864_v2, %s4816_s8  ;;  %4105 = vmatpush3.msra.mxu0 %v6561_v52  ;;  %v6476_v2 = vand.u32 4294901760, %v5425_v0 }
 0x173   : > { %4132 = vmatpush3.msra.mxu1 %v5045_v30  ;;  %4106 = vmatprep.subr.mxu0 %v6562_v3 }
 0x174   : > { %4133 = vmatprep.subr.mxu1 %v5062_v41  ;;  %4107 = vmatpush3.msra.mxu0 %v6562_v3 }
 0x175   : > { %4134 = vmatpush3.msra.mxu1 %v5062_v41  ;;  %4108 = vmatprep.subr.mxu0 %v6563_v59 }
 0x176   : > { %4135 = vmatprep.subr.mxu1 %v5079_v8  ;;  %1870 = vrot.lane.b32.xlu1 %v4878_v6, %s4816_s8  ;;  %v1252_v6 = vsub.f32 %v5425_v0, %v6476_v2 }
 0x177   : > { %1868 = vrot.lane.b32.xlu0 %v4860_v1, %s4816_s8  ;;  %4109 = vmatpush3.msra.mxu0 %v6563_v59 }
 0x178   : > { %4136 = vmatpush3.msra.mxu1 %v5079_v8  ;;  %4110 = vmatprep.subr.mxu0 %v6564_v5  ;;  %v1253_v1 = vand.u32 4294901760, %v1252_v6 }
 0x179   : > { %4137 = vmatprep.subr.mxu1 %v5104_v21  ;;  %4111 = vmatpush3.msra.mxu0 %v6564_v5 }
 0x17a   : > { %4138 = vmatpush3.msra.mxu1 %v5104_v21  ;;  %4112 = vmatprep.subr.mxu0 %v6565_v62 }
 0x17b   : > { %4139 = vmatprep.subr.mxu1 %v5131_v44  ;;  %1866 = vrot.lane.b32.xlu1 %v4882_v7, %s4816_s8 }
 0x17c   : > { %1864 = vrot.lane.b32.xlu0 %v4870_v4, %s4816_s8  ;;  %4113 = vmatpush3.msra.mxu0 %v6565_v62 }
 0x17d   : > { %4140 = vmatpush3.msra.mxu1 %v5131_v44  ;;  %4114 = vmatprep.subr.mxu0 %v5249_v37 }
 0x17e   : > { %4141 = vmatprep.subr.mxu1 %v5158_v17  ;;  %4115 = vmatpush3.msra.mxu0 %v5249_v37 }
 0x17f   : > { %4142 = vmatpush3.msra.mxu1 %v5158_v17  ;;  %4116 = vmatprep.mubr.f32.mxu0 %v6566_v14 }
 0x180   : > { %4143 = vmatprep.subr.mxu1 %v5114_v28  ;;  %4117 = vmatmul.mubr.f32.vlgmr.msra.gmra.mxu0 %v5111_v27 }
 0x181   : > { %4144 = vmatpush3.msra.mxu1 %v5114_v28  ;;  %4151 = vmatprep.mubr.f32.mxu1 %v6566_v14 }
 0x182   : > { %4145 = vmatprep.subr.mxu1 %v5139_v58  ;;  %4186 = vmatprep.mubr.f32.mxu0 %v1253_v1 }
 0x183   : > { %4146 = vmatpush3.msra.mxu1 %v5139_v58 }
 0x184   : > { %4147 = vmatprep.subr.mxu1 %v5189_v39 }
 0x185   : > { %4148 = vmatpush3.msra.mxu1 %v5189_v39 }
 0x186   : > { %4149 = vmatprep.subr.mxu1 %v5226_v40 }
 0x187   : > { %4150 = vmatpush3.msra.mxu1 %v5226_v40 }
 0x188   : > { %4152 = vmatmul.mubr.f32.vlgmr.msra.gmra.mxu1 %v5111_v27 }
 0x189   : > { %4221 = vmatprep.mubr.f32.mxu1 %v5412_v51 }
 0x19b   : > { %v1149_v4 = vpop.permute.xlu0 %1148 }
 0x1a0   : > { %v1151_v7 = vpop.permute.xlu1 %1150 }
 0x1a1   : > { %v1159_v60 = vsel %vm344_vm2, %v1149_v4, %v1151_v7 }
 0x1a2   : > { %v5474_v22 = vand.u32 4294901760, %v1159_v60 }
 0x1a4   : > { %v5477_v56 = vsub.f32 %v1159_v60, %v5474_v22  ;;  %v1145_v43 = vpop.permute.xlu0 %1144  ;;  %4154 = vmatprep.subr.mxu0 %v5474_v22 }
 0x1a5   : > { %v1147_v32 = vpop.permute.xlu1 %1146  ;;  %4155 = vmatpush3.msra.mxu0 %v5474_v22 }
 0x1a6   : > { %v1158_v16 = vsel %vm344_vm2, %v1145_v43, %v1147_v32  ;;  %v5483_v27 = vand.u32 4294901760, %v5477_v56 }
 0x1a7   : > { %v5485_v48 = vand.u32 4294901760, %v1158_v16 }
 0x1a8   : > { %v1273_v9 = vsub.f32 %v5477_v56, %v5483_v27 }
 0x1a9   : > { %v5490_v54 = vsub.f32 %v1158_v16, %v5485_v48  ;;  %v1141_v57 = vpop.permute.xlu0 %1140  ;;  %4156 = vmatprep.subr.mxu0 %v5485_v48 }
 0x1aa   : > { %v1143_v55 = vpop.permute.xlu1 %1142  ;;  %4157 = vmatpush3.msra.mxu0 %v5485_v48  ;;  %v1274_v63 = vand.u32 4294901760, %v1273_v9 }
 0x1ab   : > { %v1157_v53 = vsel %vm344_vm2, %v1141_v57, %v1143_v55  ;;  %v5496_v61 = vand.u32 4294901760, %v5490_v54 }
 0x1ac   : > { %v5498_v34 = vand.u32 4294901760, %v1157_v53  ;;  %4189 = vmatprep.subr.mxu1 %v1274_v63 }
 0x1ad   : > { %4190 = vmatpush3.msra.mxu1 %v1274_v63  ;;  %v1280_v6 = vsub.f32 %v5490_v54, %v5496_v61 }
 0x1ae   : > { %v5503_v1 = vsub.f32 %v1157_v53, %v5498_v34  ;;  %v1137_v14 = vpop.permute.xlu0 %1136  ;;  %4158 = vmatprep.subr.mxu0 %v5498_v34 }
 0x1af   : > { %4159 = vmatpush3.msra.mxu0 %v5498_v34  ;;  %v1281_v4 = vand.u32 4294901760, %v1280_v6 }
 0x1b0   : > { %v1139_v7 = vpop.permute.xlu1 %1138  ;;  %v5508_v60 = vand.u32 4294901760, %v5503_v1 }
 0x1b1   : > { %v1156_v43 = vsel %vm344_vm2, %v1137_v14, %v1139_v7  ;;  %4191 = vmatprep.subr.mxu1 %v1281_v4 }
 0x1b2   : > { %v5511_v32 = vand.u32 4294901760, %v1156_v43  ;;  %4192 = vmatpush3.msra.mxu1 %v1281_v4  ;;  %v1287_v16 = vsub.f32 %v5503_v1, %v5508_v60 }
 0x1b4   : > { %v5516_v9 = vsub.f32 %v1156_v43, %v5511_v32  ;;  %v1135_v57 = vpop.permute.xlu1 %1134  ;;  %4160 = vmatprep.subr.mxu0 %v5511_v32  ;;  %v1288_v55 = vand.u32 4294901760, %v1287_v16 }
 0x1b5   : > { %v1133_v63 = vpop.permute.xlu0 %1132  ;;  %4161 = vmatpush3.msra.mxu0 %v5511_v32 }
 0x1b6   : > { %v1155_v53 = vsel %vm344_vm2, %v1133_v63, %v1135_v57  ;;  %4162 = vmatprep.subr.mxu0 %v5022_v15  ;;  %4193 = vmatprep.subr.mxu1 %v1288_v55  ;;  %v5523_v6 = vand.u32 4294901760, %v5516_v9 }
 0x1b7   : > { %v5525_v14 = vand.u32 4294901760, %v1155_v53  ;;  %4163 = vmatpush3.msra.mxu0 %v5022_v15  ;;  %4194 = vmatpush3.msra.mxu1 %v1288_v55 }
 0x1b8   : > { %4164 = vmatprep.subr.mxu0 %v5032_v23  ;;  %v1294_v4 = vsub.f32 %v5516_v9, %v5523_v6 }
 0x1b9   : > { %v5532_v7 = vsub.f32 %v1155_v53, %v5525_v14  ;;  %v1131_v43 = vpop.permute.xlu1 %1130  ;;  %4165 = vmatpush3.msra.mxu0 %v5032_v23  ;;  %v3502_v53 = vld [vmem:[%s6433_s1 + $0x18] sm:$0xff] }
 0x1ba   : > { %v1129_v16 = vpop.permute.xlu0 %1128  ;;  %4166 = vmatprep.subr.mxu0 %v5045_v30  ;;  %v1295_v57 = vand.u32 4294901760, %v1294_v4  ;;  %v5555_v52 = vand.u32 4294901760, %v3502_v53 }
 0x1bb   : > { %v1154_v63 = vsel %vm344_vm2, %v1129_v16, %v1131_v43  ;;  %4167 = vmatpush3.msra.mxu0 %v5045_v30  ;;  %v5542_v2 = vand.u32 4294901760, %v5532_v7  ;;  %v6569_v16 = vld [vmem:[#allocation5_spill] sm:$0xff] }
 0x1bc   : > { %v5538_v55 = vand.u32 4294901760, %v1154_v63  ;;  %4168 = vmatprep.subr.mxu0 %v5062_v41  ;;  %4195 = vmatprep.subr.mxu1 %v1295_v57  ;;  %v5578_v29 = vsub.f32 %v3502_v53, %v5555_v52 }
 0x1bd   : > { %6567 = vst [vmem:[#allocation23_spill] sm:$0xff] %v5542_v2  ;;  %4169 = vmatpush3.msra.mxu0 %v5062_v41  ;;  %4196 = vmatpush3.msra.mxu1 %v1295_v57  ;;  %v6570_v57 = vld [vmem:[#allocation6_spill] sm:$0xff] }
 0x1be   : > { %v5549_v4 = vsub.f32 %v1154_v63, %v5538_v55  ;;  %v1127_v43 = vpop.permute.xlu1 %1126  ;;  %4170 = vmatprep.subr.mxu0 %v5525_v14  ;;  %4197 = vmatprep.subr.mxu1 %v6569_v16  ;;  %v1329_v63 = vsub.f32 %v5532_v7, %v5542_v2 }
 0x1bf   : > { %v1125_v3 = vpop.permute.xlu0 %1124  ;;  %4171 = vmatpush3.msra.mxu0 %v5525_v14  ;;  %4198 = vmatpush3.msra.mxu1 %v6569_v16  ;;  %v6572_v16 = vld [vmem:[#allocation8_spill] sm:$0xff] }
 0x1c0   : > { %6568 = vst [vmem:[#allocation29_spill] sm:$0xff] %v5549_v4  ;;  %v1153_v47 = vsel %vm344_vm2, %v1125_v3, %v1127_v43  ;;  %4172 = vmatprep.subr.mxu0 %v5538_v55  ;;  %4199 = vmatprep.subr.mxu1 %v6570_v57  ;;  %v5563_v26 = vand.u32 4294901760, %v5549_v4  ;;  %v5582_v17 = vand.u32 4294901760, %v1329_v63 }
 0x1c1   : > { %v5565_v38 = vand.u32 4294901760, %v1153_v47  ;;  %4173 = vmatpush3.msra.mxu0 %v5538_v55  ;;  %4200 = vmatpush3.msra.mxu1 %v6570_v57  ;;  %v6574_v57 = vld [vmem:[#allocation12_spill] sm:$0xff] }
 0x1c2   : > { %6571 = vst [vmem:[#allocation32_spill] sm:$0xff] %v5563_v26  ;;  %4201 = vmatprep.subr.mxu1 %v6572_v16  ;;  %v1336_v3 = vsub.f32 %v5549_v4, %v5563_v26  ;;  %6575 = vst [vmem:[#allocation5_spill] sm:$0xff] %v5582_v17 }
 0x1c3   : > { %v5573_v43 = vsub.f32 %v1153_v47, %v5565_v38  ;;  %v1123_v13 = vpop.permute.xlu1 %1122  ;;  %4174 = vmatprep.subr.mxu0 %v5565_v38  ;;  %4202 = vmatpush3.msra.mxu1 %v6572_v16 }
 0x1c4   : > { %v1121_v11 = vpop.permute.xlu0 %1120  ;;  %4175 = vmatpush3.msra.mxu0 %v5565_v38  ;;  %4203 = vmatprep.subr.mxu1 %v6574_v57  ;;  %v5592_v53 = vand.u32 4294901760, %v1336_v3 }
 0x1c5   : > { %6573 = vst [vmem:[#allocation2_spill] sm:$0xff] %v5573_v43  ;;  %v1152_v44 = vsel %vm344_vm2, %v1121_v11, %v1123_v13  ;;  %4204 = vmatpush3.msra.mxu1 %v6574_v57  ;;  %v5587_v47 = vand.u32 4294901760, %v5573_v43 }
 0x1c6   : > { %v5589_v21 = vand.u32 4294901760, %v1152_v44  ;;  %4205 = vmatprep.subr.mxu1 %v5582_v17  ;;  %6577 = vst [vmem:[#allocation8_spill] sm:$0xff] %v5592_v53 }
 0x1c7   : > { %6576 = vst [vmem:[#allocation6_spill] sm:$0xff] %v5587_v47  ;;  %4206 = vmatpush3.msra.mxu1 %v5582_v17  ;;  %v1343_v63 = vsub.f32 %v5573_v43, %v5587_v47  ;;  %v6581_v17 = vand.u32 4294901760, %v5578_v29 }
 0x1c8   : > { %v5599_v11 = vsub.f32 %v1152_v44, %v5589_v21  ;;  %4176 = vmatprep.subr.mxu0 %v5589_v21  ;;  %4207 = vmatprep.subr.mxu1 %v5592_v53 }
 0x1c9   : > { %v1900_v13 = vpop.permute.xlu1 %1899  ;;  %v1898_v57 = vpop.permute.xlu0 %1897  ;;  %4177 = vmatpush3.msra.mxu0 %v5589_v21  ;;  %4208 = vmatpush3.msra.mxu1 %v5592_v53  ;;  %v5608_v16 = vand.u32 4294901760, %v1343_v63  ;;  %v1262_v8 = vsub.f32 %v5578_v29, %v6581_v17 }
 0x1ca   : > { %6578 = vst [vmem:[#allocation12_spill] sm:$0xff] %v5599_v11  ;;  %1939 = vrot.lane.b32.xlu1 %v1900_v13, %s4812_s24  ;;  %4178 = vmatprep.subr.mxu0 %v5114_v28  ;;  %v1905_v3 = vsel %vm1901_vm5, %v1898_v57, %v1900_v13  ;;  %v5611_v44 = vand.u32 4294901760, %v5599_v11 }
 0x1cb   : > { %6579 = vst [vmem:[#allocation35_spill] sm:$0xff] %v5608_v16  ;;  %1937 = vrot.lane.b32.xlu0 %v1905_v3, %s4812_s24  ;;  %4179 = vmatpush3.msra.mxu0 %v5114_v28  ;;  %v1263_v17 = vand.u32 4294901760, %v1262_v8 }
 0x1cc   : > { %6580 = vst [vmem:[#allocation36_spill] sm:$0xff] %v5611_v44  ;;  %4180 = vmatprep.subr.mxu0 %v5139_v58  ;;  %4209 = vmatprep.subr.mxu1 %v5608_v16  ;;  %v1350_v13 = vsub.f32 %v5599_v11, %v5611_v44 }
 0x1cd   : > { %4181 = vmatpush3.msra.mxu0 %v5139_v58  ;;  %4210 = vmatpush3.msra.mxu1 %v5608_v16 }
 0x1ce   : > { %v1896_v63 = vpop.permute.xlu1 %1895  ;;  %4182 = vmatprep.subr.mxu0 %v5189_v39  ;;  %v5625_v57 = vand.u32 4294901760, %v1350_v13 }
 0x1cf   : > { %v1894_v3 = vpop.permute.xlu0 %1893  ;;  %1935 = vrot.lane.b32.xlu1 %v1896_v63, %s4812_s24  ;;  %4183 = vmatpush3.msra.mxu0 %v5189_v39 }
 0x1d0   : > { %v1904_v53 = vsel %vm1901_vm5, %v1894_v3, %v1896_v63  ;;  %4184 = vmatprep.subr.mxu0 %v5226_v40  ;;  %4211 = vmatprep.subr.mxu1 %v5625_v57 }
 0x1d1   : > { %1933 = vrot.lane.b32.xlu0 %v1904_v53, %s4812_s24  ;;  %4185 = vmatpush3.msra.mxu0 %v5226_v40 }
 0x1d2   : > { %4212 = vmatpush3.msra.mxu1 %v5625_v57  ;;  %4224 = vmatprep.subr.mxu0 %v5477_v56 }
 0x1d3   : > { %4213 = vmatprep.subr.mxu1 %v5241_v20  ;;  %4187 = vmatmul.mubr.f32.vlgmr.msra.gmra.mxu0 %v1263_v17 }
 0x1d4   : > { %v1892_v13 = vpop.permute.xlu1 %1891  ;;  %v1890_v16 = vpop.permute.xlu0 %1889  ;;  %4214 = vmatpush3.msra.mxu1 %v5241_v20  ;;  %4225 = vmatpush3.msra.mxu0 %v5477_v56 }
 0x1d5   : > { %v1903_v8 = vsel %vm1901_vm5, %v1890_v16, %v1892_v13  ;;  %1931 = vrot.lane.b32.xlu1 %v1892_v13, %s4812_s24  ;;  %4215 = vmatprep.subr.mxu1 %v5254_v31 }
 0x1d6   : > { %1929 = vrot.lane.b32.xlu0 %v1903_v8, %s4812_s24  ;;  %4226 = vmatprep.subr.mxu0 %v5490_v54 }
 0x1d7   : > { %4216 = vmatpush3.msra.mxu1 %v5254_v31  ;;  %4227 = vmatpush3.msra.mxu0 %v5490_v54 }
 0x1d8   : > { %4217 = vmatprep.subr.mxu1 %v5262_v42  ;;  %4228 = vmatprep.subr.mxu0 %v5503_v1 }
 0x1d9   : > { %v1888_v53 = vpop.permute.xlu1 %1887  ;;  %4218 = vmatpush3.msra.mxu1 %v5262_v42  ;;  %4229 = vmatpush3.msra.mxu0 %v5503_v1 }
 0x1da   : > { %v1886_v56 = vpop.permute.xlu0 %1885  ;;  %1927 = vrot.lane.b32.xlu1 %v1888_v53, %s4812_s24  ;;  %4219 = vmatprep.subr.mxu1 %v5267_v46 }
 0x1db   : > { %v1902_v16 = vsel %vm1901_vm5, %v1886_v56, %v1888_v53  ;;  %4230 = vmatprep.subr.mxu0 %v5516_v9  ;;  %4220 = vmatpush3.msra.mxu1 %v5267_v46  ;;  %v6582_v53 = vld [vmem:[#allocation3_spill] sm:$0xff]  ;;  %v6583_v56 = vld [vmem:[#allocation10_spill] sm:$0xff] }
 0x1dc   : > { %1925 = vrot.lane.b32.xlu0 %v1902_v16, %s4812_s24  ;;  %4231 = vmatpush3.msra.mxu0 %v5516_v9  ;;  %v6584_v16 = vld [vmem:[#allocation4_spill] sm:$0xff] }
 0x1dd   : > { %4232 = vmatprep.subr.mxu0 %v5027_v18  ;;  %4259 = vmatprep.subr.mxu1 %v5474_v22 }
 0x1de   : > { %v1879_v54 = vpop.permute.xlu1 %1878  ;;  %4222 = vmatmul.mubr.f32.vlgmr.msra.gmra.mxu1 %v5555_v52  ;;  %4233 = vmatpush3.msra.mxu0 %v5027_v18 }
 0x1df   : > { %v1877_v1 = vpop.permute.xlu0 %1876  ;;  %1923 = vrot.lane.b32.xlu1 %v1879_v54, %s4812_s24  ;;  %4260 = vmatpush3.msra.mxu1 %v5474_v22 }
 0x1e0   : > { %v1884_v63 = vsel %vm1880_vm6, %v1877_v1, %v1879_v54  ;;  %4234 = vmatprep.subr.mxu0 %v5038_v25  ;;  %4261 = vmatprep.subr.mxu1 %v5485_v48  ;;  %v6585_v54 = vld [vmem:[#allocation14_spill] sm:$0xff]  ;;  %v6586_v1 = vld [vmem:[#allocation25_spill] sm:$0xff] }
 0x1e1   : > { %1921 = vrot.lane.b32.xlu0 %v1884_v63, %s4812_s24  ;;  %4235 = vmatpush3.msra.mxu0 %v5038_v25  ;;  %v6587_v63 = vld [vmem:[#allocation26_spill] sm:$0xff] }
 0x1e2   : > { %4262 = vmatpush3.msra.mxu1 %v5485_v48  ;;  %4236 = vmatprep.subr.mxu0 %v5053_v35 }
 0x1e3   : > { %v1875_v18 = vpop.permute.xlu1 %1874  ;;  %4263 = vmatprep.subr.mxu1 %v5498_v34  ;;  %4237 = vmatpush3.msra.mxu0 %v5053_v35 }
 0x1e4   : > { %v1873_v9 = vpop.permute.xlu0 %1872  ;;  %1919 = vrot.lane.b32.xlu1 %v1875_v18, %s4812_s24  ;;  %4264 = vmatpush3.msra.mxu1 %v5498_v34 }
 0x1e5   : > { %v1883_v3 = vsel %vm1880_vm6, %v1873_v9, %v1875_v18  ;;  %4238 = vmatprep.subr.mxu0 %v5070_v50  ;;  %4265 = vmatprep.subr.mxu1 %v5511_v32  ;;  %v6588_v18 = vld [vmem:[#allocation30_spill] sm:$0xff]  ;;  %v6589_v9 = vld [vmem:[#allocation31_spill] sm:$0xff] }
 0x1e6   : > { %1917 = vrot.lane.b32.xlu0 %v1883_v3, %s4812_s24  ;;  %4239 = vmatpush3.msra.mxu0 %v5070_v50 }
 0x1e7   : > { %4266 = vmatpush3.msra.mxu1 %v5511_v32  ;;  %4240 = vmatprep.subr.mxu0 %v5532_v7 }
 0x1e8   : > { %v1871_v25 = vpop.permute.xlu1 %1870  ;;  %4267 = vmatprep.subr.mxu1 %v5022_v15  ;;  %4241 = vmatpush3.msra.mxu0 %v5532_v7 }
 0x1e9   : > { %v1869_v35 = vpop.permute.xlu0 %1868  ;;  %1915 = vrot.lane.b32.xlu1 %v1871_v25, %s4812_s24  ;;  %4268 = vmatpush3.msra.mxu1 %v5022_v15 }
 0x1ea   : > { %v1882_v17 = vsel %vm1880_vm6, %v1869_v35, %v1871_v25  ;;  %4242 = vmatprep.subr.mxu0 %v5549_v4  ;;  %4269 = vmatprep.subr.mxu1 %v5032_v23 }
 0x1eb   : > { %1913 = vrot.lane.b32.xlu0 %v1882_v17, %s4812_s24  ;;  %4243 = vmatpush3.msra.mxu0 %v5549_v4  ;;  %v6598_v4 = vld [vmem:[#allocation27_spill] sm:$0xff] }
 0x1ec   : > { %4270 = vmatpush3.msra.mxu1 %v5032_v23  ;;  %4244 = vmatprep.subr.mxu0 %v5573_v43 }
 0x1ed   : > { %v1867_v50 = vpop.permute.xlu1 %1866  ;;  %4271 = vmatprep.subr.mxu1 %v5045_v30  ;;  %4245 = vmatpush3.msra.mxu0 %v5573_v43  ;;  %v6597_v43 = vld [vmem:[#allocation21_spill] sm:$0xff] }
 0x1ee   : > { %v1865_v13 = vpop.permute.xlu0 %1864  ;;  %1911 = vrot.lane.b32.xlu1 %v1867_v50, %s4812_s24  ;;  %4272 = vmatpush3.msra.mxu1 %v5045_v30 }
 0x1ef   : > { %v1881_v8 = vsel %vm1880_vm6, %v1865_v13, %v1867_v50  ;;  %4246 = vmatprep.subr.mxu0 %v5599_v11  ;;  %4273 = vmatprep.subr.mxu1 %v5062_v41 }
 0x1f0   : > { %1909 = vrot.lane.b32.xlu0 %v1881_v8, %s4812_s24  ;;  %4247 = vmatpush3.msra.mxu0 %v5599_v11  ;;  %v6595_v11 = vld [vmem:[#allocation20_spill] sm:$0xff] }
 0x1f1   : > { %4274 = vmatpush3.msra.mxu1 %v5062_v41  ;;  %4248 = vmatprep.subr.mxu0 %v5146_v12 }
 0x1f2   : > { %2670 = vrot.lane.b32.xlu1 %v6582_v53, %s4812_s24  ;;  %4275 = vmatprep.subr.mxu1 %v5525_v14 }
 0x1f3   : > { %4249 = vmatpush3.msra.mxu0 %v5146_v12  ;;  %4276 = vmatpush3.msra.mxu1 %v5525_v14 }
 0x1f4   : > { %2668 = vrot.lane.b32.xlu0 %v6583_v56, %s4812_s24  ;;  %4250 = vmatprep.subr.mxu0 %v5167_v45 }
 0x1f5   : > { %4277 = vmatprep.subr.mxu1 %v5538_v55  ;;  %4251 = vmatpush3.msra.mxu0 %v5167_v45 }
 0x1f6   : > { %2666 = vrot.lane.b32.xlu1 %v6584_v16, %s4812_s24  ;;  %4278 = vmatpush3.msra.mxu1 %v5538_v55 }
 0x1f7   : > { %4252 = vmatprep.subr.mxu0 %v5206_v36  ;;  %4279 = vmatprep.subr.mxu1 %v5565_v38 }
 0x1f8   : > { %2664 = vrot.lane.b32.xlu0 %v6585_v54, %s4812_s24  ;;  %4253 = vmatpush3.msra.mxu0 %v5206_v36 }
 0x1f9   : > { %4280 = vmatpush3.msra.mxu1 %v5565_v38  ;;  %4254 = vmatprep.subr.mxu0 %v5237_v19 }
 0x1fa   : > { %4281 = vmatprep.subr.mxu1 %v5589_v21  ;;  %2662 = vrot.lane.b32.xlu1 %v6586_v1, %s4812_s24 }
 0x1fb   : > { %4255 = vmatpush3.msra.mxu0 %v5237_v19  ;;  %4282 = vmatpush3.msra.mxu1 %v5589_v21 }
 0x1fc   : > { %4256 = vmatprep.mubr.f32.mxu0 %v5425_v0  ;;  %4283 = vmatprep.subr.mxu1 %v5114_v28 }
 0x1fd   : > { %4294 = vmatprep.subr.mxu0 %v5483_v27  ;;  %2660 = vrot.lane.b32.xlu0 %v6587_v63, %s4812_s24 }
 0x1fe   : > { %4257 = vmatmul.mubr.f32.vlgmr.msra.gmra.mxu0 %v5578_v29  ;;  %4284 = vmatpush3.msra.mxu1 %v5114_v28 }
 0x1ff   : > { %4295 = vmatpush3.msra.mxu0 %v5483_v27  ;;  %4285 = vmatprep.subr.mxu1 %v5139_v58  ;;  %v6590_v27 = vand.u32 4294901760, %v5425_v0  ;;  %v3503_v0 = vld [vmem:[%s6433_s1 + $0x20] sm:$0xff] }
 0x200   : > { %4296 = vmatprep.subr.mxu0 %v5496_v61  ;;  %2658 = vrot.lane.b32.xlu1 %v6588_v18, %s4812_s24 }
 0x201   : > { %4286 = vmatpush3.msra.mxu1 %v5139_v58  ;;  %4297 = vmatpush3.msra.mxu0 %v5496_v61  ;;  %v6591_v61 = vand.u32 4294901760, %v5578_v29 }
 0x202   : > { %4287 = vmatprep.subr.mxu1 %v5189_v39  ;;  %4298 = vmatprep.subr.mxu0 %v5508_v60 }
 0x203   : > { %2656 = vrot.lane.b32.xlu0 %v6589_v9, %s4812_s24  ;;  %4288 = vmatpush3.msra.mxu1 %v5189_v39 }
 0x204   : > { %4299 = vmatpush3.msra.mxu0 %v5508_v60  ;;  %4289 = vmatprep.subr.mxu1 %v5226_v40 }
 0x205   : > { %4300 = vmatprep.subr.mxu0 %v5523_v6  ;;  %4290 = vmatpush3.msra.mxu1 %v5226_v40 }
 0x206   : > { %4301 = vmatpush3.msra.mxu0 %v5523_v6  ;;  %4291 = vmatprep.mubr.f32.mxu1 %v6590_v27 }
 0x207   : > { %4302 = vmatprep.subr.mxu0 %v5035_v24  ;;  %4329 = vmatprep.subr.mxu1 %v5474_v22 }
 0x208   : > { %4292 = vmatmul.mubr.f32.vlgmr.msra.gmra.mxu1 %v6591_v61  ;;  %4303 = vmatpush3.msra.mxu0 %v5035_v24  ;;  %v5774_v24 = vand.u32 4294901760, %v3503_v0 }
 0x209   : > { %4330 = vmatpush3.msra.mxu1 %v5474_v22  ;;  %4304 = vmatprep.subr.mxu0 %v5050_v33 }
 0x20a   : > { %4331 = vmatprep.subr.mxu1 %v5485_v48  ;;  %4305 = vmatpush3.msra.mxu0 %v5050_v33  ;;  %v5785_v33 = vsub.f32 %v3503_v0, %v5774_v24 }
 0x20b   : > { %4332 = vmatpush3.msra.mxu1 %v5485_v48  ;;  %4306 = vmatprep.subr.mxu0 %v5067_v49 }
 0x20c   : > { %4333 = vmatprep.subr.mxu1 %v5498_v34  ;;  %4307 = vmatpush3.msra.mxu0 %v5067_v49 }
 0x20d   : > { %4334 = vmatpush3.msra.mxu1 %v5498_v34  ;;  %4308 = vmatprep.subr.mxu0 %v5084_v10 }
 0x20e   : > { %4335 = vmatprep.subr.mxu1 %v5511_v32  ;;  %4309 = vmatpush3.msra.mxu0 %v5084_v10  ;;  %v4013_v10 = vpop.f32.mrf.mxu1 }
 0x20f   : > { %4336 = vmatpush3.msra.mxu1 %v5511_v32  ;;  %4310 = vmatprep.subr.mxu0 %v5542_v2 }
 0x210   : > { %4337 = vmatprep.subr.mxu1 %v5022_v15  ;;  %4311 = vmatpush3.msra.mxu0 %v5542_v2 }
 0x211   : > { %4338 = vmatpush3.msra.mxu1 %v5022_v15  ;;  %4312 = vmatprep.subr.mxu0 %v5563_v26  ;;  %v6504_v15 = vand.u32 4294901760, %v5785_v33 }
 0x212   : > { %4339 = vmatprep.subr.mxu1 %v5032_v23  ;;  %4313 = vmatpush3.msra.mxu0 %v5563_v26 }
 0x213   : > { %4340 = vmatpush3.msra.mxu1 %v5032_v23  ;;  %4314 = vmatprep.subr.mxu0 %v5587_v47  ;;  %v2041_v23 = vsub.f32 %v5785_v33, %v6504_v15 }
 0x214   : > { %4341 = vmatprep.subr.mxu1 %v5045_v30  ;;  %4315 = vmatpush3.msra.mxu0 %v5587_v47  ;;  %v6594_v47 = vld [vmem:[#allocation16_spill] sm:$0xff] }
 0x215   : > { %4342 = vmatpush3.msra.mxu1 %v5045_v30  ;;  %4316 = vmatprep.subr.mxu0 %v5611_v44  ;;  %v2042_v30 = vand.u32 4294901760, %v2041_v23 }
 0x216   : > { %4343 = vmatprep.subr.mxu1 %v5062_v41  ;;  %4317 = vmatpush3.msra.mxu0 %v5611_v44 }
 0x217   : > { %4344 = vmatpush3.msra.mxu1 %v5062_v41  ;;  %4318 = vmatprep.subr.mxu0 %v6563_v59  ;;  %v3978_v41 = vpop.f32.mrf.mxu0 }
 0x218   : > { %4345 = vmatprep.subr.mxu1 %v5525_v14  ;;  %4319 = vmatpush3.msra.mxu0 %v6563_v59  ;;  %v628_v22 = vadd.f32 %v4013_v10, %v3978_v41 }
 0x219   : > { %4346 = vmatpush3.msra.mxu1 %v5525_v14  ;;  %4320 = vmatprep.subr.mxu0 %v6564_v5  ;;  %v460_v49 = vpop.f32.mrf.mxu0 }
 0x21a   : > { %4347 = vmatprep.subr.mxu1 %v5538_v55  ;;  %4321 = vmatpush3.msra.mxu0 %v6564_v5 }
 0x21b   : > { %4348 = vmatpush3.msra.mxu1 %v5538_v55  ;;  %4322 = vmatprep.subr.mxu0 %v6565_v62  ;;  %v4048_v29 = vpop.f32.mrf.mxu0 }
 0x21c   : > { %4349 = vmatprep.subr.mxu1 %v5565_v38  ;;  %4323 = vmatpush3.msra.mxu0 %v6565_v62  ;;  %v739_v3 = vadd.f32 %v4048_v29, %v628_v22 }
 0x21d   : > { %4350 = vmatpush3.msra.mxu1 %v5565_v38  ;;  %4324 = vmatprep.subr.mxu0 %v5249_v37  ;;  %v731_v34 = vpop.f32.mrf.mxu0 }
 0x21e   : > { %4351 = vmatprep.subr.mxu1 %v5589_v21  ;;  %4325 = vmatpush3.msra.mxu0 %v5249_v37 }
 0x21f   : > { %4352 = vmatpush3.msra.mxu1 %v5589_v21  ;;  %4326 = vmatprep.mubr.f32.mxu0 %v5412_v51 }
 0x220   : > { %4353 = vmatprep.subr.mxu1 %v5114_v28  ;;  %4327 = vmatmul.mubr.f32.vlgmr.msra.gmra.mxu0 %v5555_v52 }
 0x221   : > { %4354 = vmatpush3.msra.mxu1 %v5114_v28  ;;  %4361 = vmatprep.mubr.f32.mxu1 %v5412_v51  ;;  %v621_v51 = vpop.f32.mrf.mxu1 }
 0x222   : > { %4355 = vmatprep.subr.mxu1 %v5139_v58  ;;  %4396 = vmatprep.mubr.f32.mxu0 %v2042_v30  ;;  %v622_v48 = vadd.f32 %v621_v51, %v460_v49 }
 0x223   : > { %4356 = vmatpush3.msra.mxu1 %v5139_v58  ;;  %v4083_v32 = vpop.f32.mrf.mxu1 }
 0x224   : > { %4357 = vmatprep.subr.mxu1 %v5189_v39  ;;  %v732_v17 = vadd.f32 %v731_v34, %v622_v48  ;;  %v836_v53 = vadd.f32 %v4083_v32, %v739_v3  ;;  %v5866_v48 = vld [vmem:[%s6434_s2] ss:$0 sm:$0xff] }
 0x225   : > { %4358 = vmatpush3.msra.mxu1 %v5189_v39 }
 0x226   : > { %4359 = vmatprep.subr.mxu1 %v5226_v40 }
 0x227   : > { %4360 = vmatpush3.msra.mxu1 %v5226_v40 }
 0x228   : > { %4362 = vmatmul.mubr.f32.vlgmr.msra.gmra.mxu1 %v5555_v52  ;;  %v827_v52 = vpop.f32.mrf.mxu1 }
 0x229   : > { %4431 = vmatprep.mubr.f32.mxu1 %v5774_v24  ;;  %v828_v54 = vadd.f32 %v827_v52, %v732_v17 }
 0x23c   : > { %v1940_v60 = vpop.permute.xlu1 %1939 }
 0x23d   : > { %v1938_v6 = vpop.permute.xlu0 %1937 }
 0x23e   : > { %v1948_v25 = vsel %vm344_vm2, %v1938_v6, %v1940_v60 }
 0x23f   : > { %v5830_v35 = vand.u32 4294901760, %v1948_v25 }
 0x240   : > { %v4118_v50 = vpop.f32.mrf.mxu0 }
 0x241   : > { %v5833_v13 = vsub.f32 %v1948_v25, %v5830_v35  ;;  %v1936_v8 = vpop.permute.xlu1 %1935  ;;  %4364 = vmatprep.subr.mxu0 %v5830_v35  ;;  %v961_v27 = vadd.f32 %v4118_v50, %v836_v53 }
 0x242   : > { %4365 = vmatpush3.msra.mxu0 %v5830_v35  ;;  %v954_v63 = vpop.f32.mrf.mxu0 }
 0x243   : > { %v1934_v56 = vpop.permute.xlu0 %1933  ;;  %v5838_v16 = vand.u32 4294901760, %v5833_v13  ;;  %v955_v30 = vadd.f32 %v954_v63, %v828_v54 }
 0x244   : > { %v1947_v1 = vsel %vm344_vm2, %v1934_v56, %v1936_v8 }
 0x245   : > { %v5841_v18 = vand.u32 4294901760, %v1947_v1  ;;  %v2062_v9 = vsub.f32 %v5833_v13, %v5838_v16 }
 0x247   : > { %v5846_v61 = vsub.f32 %v1947_v1, %v5841_v18  ;;  %v1932_v0 = vpop.permute.xlu1 %1931  ;;  %4366 = vmatprep.subr.mxu0 %v5841_v18  ;;  %v2063_v23 = vand.u32 4294901760, %v2062_v9 }
 0x248   : > { %v1930_v41 = vpop.permute.xlu0 %1929  ;;  %4367 = vmatpush3.msra.mxu0 %v5841_v18  ;;  %v4153_v49 = vpop.f32.mrf.mxu1 }
 0x249   : > { %v1946_v10 = vsel %vm344_vm2, %v1930_v41, %v1932_v0  ;;  %4399 = vmatprep.subr.mxu1 %v2063_v23  ;;  %v5859_v29 = vand.u32 4294901760, %v5846_v61  ;;  %v1054_v51 = vadd.f32 %v4153_v49, %v961_v27 }
 0x24a   : > { %v5861_v22 = vand.u32 4294901760, %v1946_v10  ;;  %4400 = vmatpush3.msra.mxu1 %v2063_v23  ;;  %v1047_v34 = vpop.f32.mrf.mxu1 }
 0x24b   : > { %v2069_v60 = vsub.f32 %v5846_v61, %v5859_v29  ;;  %v1064_v32 = vmul.f32 %v5866_v48, %v1054_v51  ;;  %3377 = vst [vmem:[%s5855_s18 + $0x8] sm:$0xff] %v1054_v51  ;;  %v1048_v6 = vadd.f32 %v1047_v34, %v955_v30 }
 0x24c   : > { %v5873_v3 = vsub.f32 %v1946_v10, %v5861_v22  ;;  %v1928_v25 = vpop.permute.xlu1 %1927  ;;  %4368 = vmatprep.subr.mxu0 %v5861_v22 }
 0x24d   : > { %4369 = vmatpush3.msra.mxu0 %v5861_v22  ;;  %v2070_v17 = vand.u32 4294901760, %v2069_v60  ;;  %3376 = vst [vmem:[%s5855_s18] sm:$0xff] %v1048_v6  ;;  %v1063_v52 = vmul.f32 %v5866_v48, %v1048_v6  ;;  %1067 = vadd.xlane.f32.xlu1 %v1064_v32  ;;  %v1070_v56 = vmul.f32 %v1064_v32, %v1054_v51 }
 0x24e   : > { %v1926_v50 = vpop.permute.xlu0 %1925  ;;  %v5880_v8 = vand.u32 4294901760, %v5873_v3 }
 0x24f   : > { %v1945_v53 = vsel %vm344_vm2, %v1926_v50, %v1928_v25  ;;  %4401 = vmatprep.subr.mxu1 %v2070_v17  ;;  %1065 = vadd.xlane.f32.xlu0 %v1063_v52  ;;  %v1069_v23 = vmul.f32 %v1063_v52, %v1048_v6 }
 0x250   : > { %v5883_v54 = vand.u32 4294901760, %v1945_v53  ;;  %4402 = vmatpush3.msra.mxu1 %v2070_v17  ;;  %v2076_v1 = vsub.f32 %v5873_v3, %v5880_v8 }
 0x251   : > { %v1924_v63 = vpop.permute.xlu1 %1923 }
 0x252   : > { %v5888_v9 = vsub.f32 %v1945_v53, %v5883_v54  ;;  %4370 = vmatprep.subr.mxu0 %v5883_v54  ;;  %v2077_v27 = vand.u32 4294901760, %v2076_v1 }
 0x253   : > { %v1922_v0 = vpop.permute.xlu0 %1921  ;;  %4371 = vmatpush3.msra.mxu0 %v5883_v54  ;;  %1073 = vadd.xlane.f32.xlu0 %v1070_v56 }
 0x254   : > { %v1944_v30 = vsel %vm344_vm2, %v1922_v0, %v1924_v63  ;;  %4403 = vmatprep.subr.mxu1 %v2077_v27  ;;  %v5894_v41 = vand.u32 4294901760, %v5888_v9 }
 0x255   : > { %v5896_v49 = vand.u32 4294901760, %v1944_v30  ;;  %4404 = vmatpush3.msra.mxu1 %v2077_v27 }
 0x256   : > { %v1920_v10 = vpop.permute.xlu1 %1919  ;;  %v2083_v51 = vsub.f32 %v5888_v9, %v5894_v41 }
 0x257   : > { %v5901_v34 = vsub.f32 %v1944_v30, %v5896_v49  ;;  %4372 = vmatprep.subr.mxu0 %v5896_v49  ;;  %1071 = vadd.xlane.f32.xlu0 %v1069_v23 }
 0x258   : > { %v1918_v60 = vpop.permute.xlu0 %1917  ;;  %4373 = vmatpush3.msra.mxu0 %v5896_v49  ;;  %v2084_v32 = vand.u32 4294901760, %v2083_v51 }
 0x259   : > { %v1943_v6 = vsel %vm344_vm2, %v1918_v60, %v1920_v10  ;;  %v5907_v25 = vand.u32 4294901760, %v5901_v34 }
 0x25a   : > { %v5909_v17 = vand.u32 4294901760, %v1943_v6  ;;  %4405 = vmatprep.subr.mxu1 %v2084_v32 }
 0x25b   : > { %v1916_v52 = vpop.permute.xlu1 %1915  ;;  %4406 = vmatpush3.msra.mxu1 %v2084_v32  ;;  %v2090_v50 = vsub.f32 %v5901_v34, %v5907_v25  ;;  %v3504_v32 = vld [vmem:[%s6433_s1 + $0x28] sm:$0xff] }
 0x25c   : > { %v5914_v53 = vsub.f32 %v1943_v6, %v5909_v17  ;;  %4374 = vmatprep.subr.mxu0 %v5909_v17 }
 0x25d   : > { %v1914_v56 = vpop.permute.xlu0 %1913  ;;  %4375 = vmatpush3.msra.mxu0 %v5909_v17  ;;  %v5918_v1 = vand.u32 4294901760, %v2090_v50 }
 0x25e   : > { %v1942_v63 = vsel %vm344_vm2, %v1914_v56, %v1916_v52  ;;  %v5922_v27 = vand.u32 4294901760, %v5914_v53 }
 0x25f   : > { %v5924_v0 = vand.u32 4294901760, %v1942_v63  ;;  %4407 = vmatprep.subr.mxu1 %v5918_v1 }
 0x260   : > { %v1912_v23 = vpop.permute.xlu1 %1911  ;;  %4408 = vmatpush3.msra.mxu1 %v5918_v1  ;;  %v2097_v30 = vsub.f32 %v5914_v53, %v5922_v27 }
 0x261   : > { %v5931_v10 = vsub.f32 %v1942_v63, %v5924_v0  ;;  %4376 = vmatprep.subr.mxu0 %v5924_v0  ;;  %v5950_v63 = vand.u32 4294901760, %v3504_v32 }
 0x262   : > { %v1910_v51 = vpop.permute.xlu0 %1909  ;;  %4377 = vmatpush3.msra.mxu0 %v5924_v0  ;;  %v5935_v60 = vand.u32 4294901760, %v2097_v30 }
 0x263   : > { %v1941_v6 = vsel %vm344_vm2, %v1910_v51, %v1912_v23  ;;  %v5942_v52 = vand.u32 4294901760, %v5931_v10  ;;  %v6592_v51 = vld [vmem:[#allocation7_spill] sm:$0xff]  ;;  %v5966_v44 = vsub.f32 %v3504_v32, %v5950_v63  ;;  %v6596_v32 = vld [vmem:[#allocation17_spill] sm:$0xff] }
 0x264   : > { %v5944_v50 = vand.u32 4294901760, %v1941_v6  ;;  %4409 = vmatprep.subr.mxu1 %v5935_v60 }
 0x265   : > { %4410 = vmatpush3.msra.mxu1 %v5935_v60  ;;  %v2104_v56 = vsub.f32 %v5931_v10, %v5942_v52  ;;  %v6519_v2 = vand.u32 4294901760, %v5966_v44 }
 0x266   : > { %v5953_v30 = vsub.f32 %v1941_v6, %v5944_v50  ;;  %4378 = vmatprep.subr.mxu0 %v5944_v50  ;;  %v6593_v6 = vld [vmem:[#allocation11_spill] sm:$0xff] }
 0x267   : > { %4379 = vmatpush3.msra.mxu0 %v5944_v50  ;;  %v5957_v23 = vand.u32 4294901760, %v2104_v56 }
 0x268   : > { %4380 = vmatprep.subr.mxu0 %v6592_v51  ;;  %v5961_v15 = vand.u32 4294901760, %v5953_v30 }
 0x269   : > { %4381 = vmatpush3.msra.mxu0 %v6592_v51  ;;  %4411 = vmatprep.subr.mxu1 %v5957_v23 }
 0x26a   : > { %4382 = vmatprep.subr.mxu0 %v6593_v6  ;;  %4412 = vmatpush3.msra.mxu1 %v5957_v23  ;;  %v2111_v56 = vsub.f32 %v5953_v30, %v5961_v15 }
 0x26b   : > { %4383 = vmatpush3.msra.mxu0 %v6593_v6 }
 0x26c   : > { %4384 = vmatprep.subr.mxu0 %v6594_v47  ;;  %v5974_v26 = vand.u32 4294901760, %v2111_v56  ;;  %v2051_v56 = vsub.f32 %v5966_v44, %v6519_v2  ;;  %v6599_v2 = vld [vmem:[#allocation33_spill] sm:$0xff] }
 0x26d   : > { %4385 = vmatpush3.msra.mxu0 %v6594_v47 }
 0x26e   : > { %4386 = vmatprep.subr.mxu0 %v6595_v11  ;;  %4413 = vmatprep.subr.mxu1 %v5974_v26 }
 0x26f   : > { %4387 = vmatpush3.msra.mxu0 %v6595_v11  ;;  %4414 = vmatpush3.msra.mxu1 %v5974_v26 }
 0x270   : > { %4388 = vmatprep.subr.mxu0 %v5114_v28  ;;  %4415 = vmatprep.subr.mxu1 %v6596_v32 }
 0x271   : > { %4389 = vmatpush3.msra.mxu0 %v5114_v28  ;;  %4416 = vmatpush3.msra.mxu1 %v6596_v32  ;;  %v2052_v32 = vand.u32 4294901760, %v2051_v56 }
 0x272   : > { %4390 = vmatprep.subr.mxu0 %v5139_v58  ;;  %4417 = vmatprep.subr.mxu1 %v6597_v43 }
 0x273   : > { %4391 = vmatpush3.msra.mxu0 %v5139_v58  ;;  %4418 = vmatpush3.msra.mxu1 %v6597_v43  ;;  %v6602_v43 = vld [vmem:[#allocation19_spill] sm:$0xff] }
 0x274   : > { %4392 = vmatprep.subr.mxu0 %v5189_v39  ;;  %4419 = vmatprep.subr.mxu1 %v6598_v4 }
 0x275   : > { %4393 = vmatpush3.msra.mxu0 %v5189_v39  ;;  %4420 = vmatpush3.msra.mxu1 %v6598_v4  ;;  %v6601_v4 = vld [vmem:[#allocation15_spill] sm:$0xff] }
 0x276   : > { %4394 = vmatprep.subr.mxu0 %v5226_v40  ;;  %4421 = vmatprep.subr.mxu1 %v6599_v2 }
 0x277   : > { %4395 = vmatpush3.msra.mxu0 %v5226_v40  ;;  %4422 = vmatpush3.msra.mxu1 %v6599_v2  ;;  %v6600_v2 = vld [vmem:[#allocation9_spill] sm:$0xff] }
 0x278   : > { %4423 = vmatprep.subr.mxu1 %v5241_v20  ;;  %4434 = vmatprep.subr.mxu0 %v5833_v13 }
 0x279   : > { %4397 = vmatmul.mubr.f32.vlgmr.msra.gmra.mxu0 %v2052_v32  ;;  %4424 = vmatpush3.msra.mxu1 %v5241_v20 }
 0x27a   : > { %4435 = vmatpush3.msra.mxu0 %v5833_v13  ;;  %4425 = vmatprep.subr.mxu1 %v5254_v31  ;;  %v6603_v13 = vld [vmem:[#allocation24_spill] sm:$0xff] }
 0x27b   : > { %4436 = vmatprep.subr.mxu0 %v5846_v61  ;;  %4426 = vmatpush3.msra.mxu1 %v5254_v31 }
 0x27c   : > { %4437 = vmatpush3.msra.mxu0 %v5846_v61  ;;  %4427 = vmatprep.subr.mxu1 %v5262_v42  ;;  %v2669_v61 = vpop.permute.xlu0 %2668 }
 0x27d   : > { %4438 = vmatprep.subr.mxu0 %v5873_v3  ;;  %4428 = vmatpush3.msra.mxu1 %v5262_v42 }
 0x27e   : > { %4439 = vmatpush3.msra.mxu0 %v5873_v3  ;;  %4429 = vmatprep.subr.mxu1 %v5267_v46  ;;  %v6604_v3 = vand.u32 4294901760, %v5785_v33 }
 0x27f   : > { %4440 = vmatprep.subr.mxu0 %v5888_v9  ;;  %4430 = vmatpush3.msra.mxu1 %v5267_v46 }
 0x280   : > { %4441 = vmatpush3.msra.mxu0 %v5888_v9  ;;  %4432 = vmatmul.mubr.f32.vlgmr.msra.gmra.mxu1 %v5950_v63  ;;  %v6607_v9 = vld [vmem:[#allocation18_spill] sm:$0xff] }
 0x281   : > { %4442 = vmatprep.subr.mxu0 %v5901_v34  ;;  %4469 = vmatprep.subr.mxu1 %v5830_v35 }
 0x282   : > { %4443 = vmatpush3.msra.mxu0 %v5901_v34  ;;  %4470 = vmatpush3.msra.mxu1 %v5830_v35 }
 0x283   : > { %4444 = vmatprep.subr.mxu0 %v5914_v53  ;;  %4471 = vmatprep.subr.mxu1 %v5841_v18 }
 0x284   : > { %4445 = vmatpush3.msra.mxu0 %v5914_v53  ;;  %4472 = vmatpush3.msra.mxu1 %v5841_v18 }
 0x285   : > { %4446 = vmatprep.subr.mxu0 %v5931_v10  ;;  %4473 = vmatprep.subr.mxu1 %v5861_v22 }
 0x286   : > { %4447 = vmatpush3.msra.mxu0 %v5931_v10  ;;  %4474 = vmatpush3.msra.mxu1 %v5861_v22 }
 0x287   : > { %4448 = vmatprep.subr.mxu0 %v5953_v30  ;;  %4475 = vmatprep.subr.mxu1 %v5883_v54 }
 0x288   : > { %4449 = vmatpush3.msra.mxu0 %v5953_v30  ;;  %4476 = vmatpush3.msra.mxu1 %v5883_v54 }
 0x289   : > { %4450 = vmatprep.subr.mxu0 %v6600_v2  ;;  %4477 = vmatprep.subr.mxu1 %v5896_v49 }
 0x28a   : > { %4451 = vmatpush3.msra.mxu0 %v6600_v2  ;;  %4478 = vmatpush3.msra.mxu1 %v5896_v49 }
 0x28b   : > { %4452 = vmatprep.subr.mxu0 %v6601_v4  ;;  %4479 = vmatprep.subr.mxu1 %v5909_v17 }
 0x28c   : > { %4453 = vmatpush3.msra.mxu0 %v6601_v4  ;;  %4480 = vmatpush3.msra.mxu1 %v5909_v17 }
 0x28d   : > { %4454 = vmatprep.subr.mxu0 %v6602_v43  ;;  %4481 = vmatprep.subr.mxu1 %v5924_v0 }
 0x28e   : > { %4455 = vmatpush3.msra.mxu0 %v6602_v43  ;;  %4482 = vmatpush3.msra.mxu1 %v5924_v0 }
 0x28f   : > { %4456 = vmatprep.subr.mxu0 %v6603_v13  ;;  %4483 = vmatprep.subr.mxu1 %v5944_v50 }
 0x290   : > { %4457 = vmatpush3.msra.mxu0 %v6603_v13  ;;  %4484 = vmatpush3.msra.mxu1 %v5944_v50 }
 0x291   : > { %4458 = vmatprep.subr.mxu0 %v5146_v12  ;;  %4485 = vmatprep.subr.mxu1 %v6592_v51 }
 0x292   : > { %4459 = vmatpush3.msra.mxu0 %v5146_v12  ;;  %4486 = vmatpush3.msra.mxu1 %v6592_v51 }
 0x293   : > { %4460 = vmatprep.subr.mxu0 %v5167_v45  ;;  %4487 = vmatprep.subr.mxu1 %v6593_v6 }
 0x294   : > { %4461 = vmatpush3.msra.mxu0 %v5167_v45  ;;  %4488 = vmatpush3.msra.mxu1 %v6593_v6 }
 0x295   : > { %4462 = vmatprep.subr.mxu0 %v5206_v36  ;;  %4489 = vmatprep.subr.mxu1 %v6594_v47 }
 0x296   : > { %4463 = vmatpush3.msra.mxu0 %v5206_v36  ;;  %4490 = vmatpush3.msra.mxu1 %v6594_v47 }
 0x297   : > { %4464 = vmatprep.subr.mxu0 %v5237_v19  ;;  %4491 = vmatprep.subr.mxu1 %v6595_v11 }
 0x298   : > { %4465 = vmatpush3.msra.mxu0 %v5237_v19  ;;  %4466 = vmatprep.mubr.f32.mxu0 %v5785_v33 }
 0x299   : > { %4492 = vmatpush3.msra.mxu1 %v6595_v11  ;;  %4467 = vmatmul.mubr.f32.vlgmr.msra.gmra.mxu0 %v5966_v44 }
 0x29a   : > { %4493 = vmatprep.subr.mxu1 %v5114_v28  ;;  %4504 = vmatprep.subr.mxu0 %v5838_v16 }
 0x29b   : > { %4494 = vmatpush3.msra.mxu1 %v5114_v28  ;;  %4505 = vmatpush3.msra.mxu0 %v5838_v16  ;;  %v2671_v16 = vpop.permute.xlu1 %2670 }
 0x29c   : > { %4495 = vmatprep.subr.mxu1 %v5139_v58  ;;  %4506 = vmatprep.subr.mxu0 %v5859_v29 }
 0x29d   : > { %4496 = vmatpush3.msra.mxu1 %v5139_v58  ;;  %4507 = vmatpush3.msra.mxu0 %v5859_v29  ;;  %v6605_v29 = vand.u32 4294901760, %v5966_v44  ;;  %v6606_v44 = vld [vmem:[#allocation13_spill] sm:$0xff] }
 0x29e   : > { %4497 = vmatprep.subr.mxu1 %v5189_v39  ;;  %4508 = vmatprep.subr.mxu0 %v5880_v8 }
 0x29f   : > { %4498 = vmatpush3.msra.mxu1 %v5189_v39  ;;  %4509 = vmatpush3.msra.mxu0 %v5880_v8  ;;  %v2667_v33 = vpop.permute.xlu1 %2666  ;;  %v2665_v8 = vpop.permute.xlu0 %2664 }
 0x2a0   : > { %4499 = vmatprep.subr.mxu1 %v5226_v40  ;;  %4510 = vmatprep.subr.mxu0 %v5894_v41  ;;  %v2674_v56 = vsel %vm344_vm2, %v2665_v8, %v2667_v33 }
 0x2a1   : > { %4500 = vmatpush3.msra.mxu1 %v5226_v40  ;;  %4501 = vmatprep.mubr.f32.mxu1 %v6604_v3  ;;  %v6129_v13 = vand.u32 4294901760, %v2674_v56 }
 0x2a2   : > { %4511 = vmatpush3.msra.mxu0 %v5894_v41  ;;  %4502 = vmatmul.mubr.f32.vlgmr.msra.gmra.mxu1 %v6605_v29  ;;  %v6609_v41 = vld [vmem:[#allocation28_spill] sm:$0xff] }
 0x2a3   : > { %4512 = vmatprep.subr.mxu0 %v5907_v25  ;;  %4539 = vmatprep.subr.mxu1 %v5830_v35 }
 0x2a4   : > { %4513 = vmatpush3.msra.mxu0 %v5907_v25  ;;  %4540 = vmatpush3.msra.mxu1 %v5830_v35  ;;  %v2663_v35 = vpop.permute.xlu1 %2662 }
 0x2a5   : > { %4514 = vmatprep.subr.mxu0 %v5922_v27  ;;  %4541 = vmatprep.subr.mxu1 %v5841_v18 }
 0x2a6   : > { %4515 = vmatpush3.msra.mxu0 %v5922_v27  ;;  %4542 = vmatpush3.msra.mxu1 %v5841_v18  ;;  %v2661_v18 = vpop.permute.xlu0 %2660 }
 0x2a7   : > { %4516 = vmatprep.subr.mxu0 %v5942_v52  ;;  %4543 = vmatprep.subr.mxu1 %v5861_v22  ;;  %v2673_v43 = vsel %vm344_vm2, %v2661_v18, %v2663_v35 }
 0x2a8   : > { %4517 = vmatpush3.msra.mxu0 %v5942_v52  ;;  %4544 = vmatpush3.msra.mxu1 %v5861_v22  ;;  %v6608_v22 = vld [vmem:[#allocation22_spill] sm:$0xff]  ;;  %v2659_v2 = vpop.permute.xlu1 %2658  ;;  %v6139_v3 = vand.u32 4294901760, %v2673_v43 }
 0x2a9   : > { %4518 = vmatprep.subr.mxu0 %v5961_v15  ;;  %4545 = vmatprep.subr.mxu1 %v5883_v54 }
 0x2aa   : > { %4519 = vmatpush3.msra.mxu0 %v5961_v15  ;;  %4546 = vmatpush3.msra.mxu1 %v5883_v54  ;;  %v2675_v54 = vsel %vm344_vm2, %v2669_v61, %v2671_v16  ;;  %v2657_v4 = vpop.permute.xlu0 %2656 }
 0x2ab   : > { %4520 = vmatprep.subr.mxu0 %v6606_v44  ;;  %4547 = vmatprep.subr.mxu1 %v5896_v49  ;;  %v6122_v32 = vand.u32 4294901760, %v2675_v54  ;;  %v2672_v16 = vsel %vm344_vm2, %v2657_v4, %v2659_v2 }
 0x2ac   : > { %4521 = vmatpush3.msra.mxu0 %v6606_v44  ;;  %4548 = vmatpush3.msra.mxu1 %v5896_v49  ;;  %v6148_v29 = vand.u32 4294901760, %v2672_v16 }
 0x2ad   : > { %4522 = vmatprep.subr.mxu0 %v6607_v9  ;;  %4549 = vmatprep.subr.mxu1 %v5909_v17  ;;  %v6137_v61 = vsub.f32 %v2675_v54, %v6122_v32 }
 0x2ae   : > { %4523 = vmatpush3.msra.mxu0 %v6607_v9  ;;  %4550 = vmatpush3.msra.mxu1 %v5909_v17  ;;  %v6165_v33 = vsub.f32 %v2672_v16, %v6148_v29 }
 0x2af   : > { %4524 = vmatprep.subr.mxu0 %v6608_v22  ;;  %4551 = vmatprep.subr.mxu1 %v5924_v0 }
 0x2b0   : > { %4525 = vmatpush3.msra.mxu0 %v6608_v22  ;;  %4552 = vmatpush3.msra.mxu1 %v5924_v0  ;;  %v6188_v18 = vand.u32 4294901760, %v6165_v33 }
 0x2b1   : > { %4526 = vmatprep.subr.mxu0 %v6609_v41  ;;  %4553 = vmatprep.subr.mxu1 %v5944_v50 }
 0x2b2   : > { %4527 = vmatpush3.msra.mxu0 %v6609_v41  ;;  %4554 = vmatpush3.msra.mxu1 %v5944_v50  ;;  %v2806_v41 = vsub.f32 %v6165_v33, %v6188_v18 }
 0x2b3   : > { %4528 = vmatprep.subr.mxu0 %v6563_v59  ;;  %4555 = vmatprep.subr.mxu1 %v6592_v51 }
 0x2b4   : > { %4529 = vmatpush3.msra.mxu0 %v6563_v59  ;;  %4556 = vmatpush3.msra.mxu1 %v6592_v51  ;;  %v6146_v51 = vsub.f32 %v2674_v56, %v6129_v13  ;;  %v2807_v2 = vand.u32 4294901760, %v2806_v41 }
 0x2b5   : > { %4530 = vmatprep.subr.mxu0 %v6564_v5  ;;  %4557 = vmatprep.subr.mxu1 %v6593_v6 }
 0x2b6   : > { %4531 = vmatpush3.msra.mxu0 %v6564_v5  ;;  %4558 = vmatpush3.msra.mxu1 %v6593_v6  ;;  %v6155_v6 = vsub.f32 %v2673_v43, %v6139_v3  ;;  %v6170_v8 = vand.u32 4294901760, %v6146_v51 }
 0x2b7   : > { %4532 = vmatprep.subr.mxu0 %v6565_v62  ;;  %4559 = vmatprep.subr.mxu1 %v6594_v47 }
 0x2b8   : > { %4533 = vmatpush3.msra.mxu0 %v6565_v62  ;;  %4560 = vmatpush3.msra.mxu1 %v6594_v47  ;;  %v6160_v47 = vand.u32 4294901760, %v6137_v61  ;;  %v6179_v44 = vand.u32 4294901760, %v6155_v6  ;;  %v2792_v35 = vsub.f32 %v6146_v51, %v6170_v8 }
 0x2b9   : > { %4534 = vmatprep.subr.mxu0 %v5249_v37  ;;  %4561 = vmatprep.subr.mxu1 %v6595_v11 }
 0x2ba   : > { %4535 = vmatpush3.msra.mxu0 %v5249_v37  ;;  %4536 = vmatprep.mubr.f32.mxu0 %v5774_v24  ;;  %v2799_v22 = vsub.f32 %v6155_v6, %v6179_v44  ;;  %v2793_v54 = vand.u32 4294901760, %v2792_v35  ;;  %v4188_v35 = vpop.f32.mrf.mxu0 }
 0x2bb   : > { %4562 = vmatpush3.msra.mxu1 %v6595_v11  ;;  %4537 = vmatmul.mubr.f32.vlgmr.msra.gmra.mxu0 %v5950_v63  ;;  %v2785_v11 = vsub.f32 %v6137_v61, %v6160_v47 }
 0x2bc   : > { %4563 = vmatprep.subr.mxu1 %v5114_v28  ;;  %4574 = vmatprep.subr.mxu0 %v6122_v32  ;;  %v2800_v56 = vand.u32 4294901760, %v2799_v22  ;;  %v4223_v22 = vpop.f32.mrf.mxu1 }
 0x2bd   : > { %4564 = vmatpush3.msra.mxu1 %v5114_v28  ;;  %4575 = vmatpush3.msra.mxu0 %v6122_v32  ;;  %v2786_v9 = vand.u32 4294901760, %v2785_v11 }
 0x2be   : > { %4565 = vmatprep.subr.mxu1 %v5139_v58  ;;  %4576 = vmatprep.subr.mxu0 %v6129_v13 }
 0x2bf   : > { %4566 = vmatpush3.msra.mxu1 %v5139_v58  ;;  %4577 = vmatpush3.msra.mxu0 %v6129_v13 }
 0x2c0   : > { %4567 = vmatprep.subr.mxu1 %v5189_v39  ;;  %4578 = vmatprep.subr.mxu0 %v6139_v3 }
 0x2c1   : > { %4568 = vmatpush3.msra.mxu1 %v5189_v39  ;;  %4579 = vmatpush3.msra.mxu0 %v6139_v3 }
 0x2c2   : > { %4569 = vmatprep.subr.mxu1 %v5226_v40  ;;  %4580 = vmatprep.subr.mxu0 %v6148_v29 }
 0x2c3   : > { %4570 = vmatpush3.msra.mxu1 %v5226_v40  ;;  %4571 = vmatprep.mubr.f32.mxu1 %v5774_v24  ;;  %v3505_v24 = vld [vmem:[%s6433_s1 + $0x30] sm:$0xff] }
 0x2c4   : > { %4581 = vmatpush3.msra.mxu0 %v6148_v29  ;;  %4572 = vmatmul.mubr.f32.vlgmr.msra.gmra.mxu1 %v5950_v63  ;;  %v3506_v63 = vld [vmem:[%s6433_s1 + $0x38] sm:$0xff]  ;;  %v6211_v4 = vand.u32 4294901760, %v3505_v24 }
 0x2c5   : > { %4582 = vmatprep.subr.mxu0 %v5896_v49  ;;  %4609 = vmatprep.subr.mxu1 %v2786_v9  ;;  %v6214_v43 = vand.u32 4294901760, %v3506_v63 }
 0x2c6   : > { %4583 = vmatpush3.msra.mxu0 %v5896_v49  ;;  %4610 = vmatpush3.msra.mxu1 %v2786_v9  ;;  %v6221_v16 = vsub.f32 %v3505_v24, %v6211_v4  ;;  %v1416_v24 = vpop.f32.mrf.mxu1 }
 0x2c7   : > { %4584 = vmatprep.subr.mxu0 %v5909_v17  ;;  %4611 = vmatprep.subr.mxu1 %v2793_v54  ;;  %v6226_v11 = vsub.f32 %v3506_v63, %v6214_v43  ;;  %v6612_v63 = vld [vmem:[#allocation35_spill] sm:$0xff] }
 0x2c8   : > { %4585 = vmatpush3.msra.mxu0 %v5909_v17  ;;  %4612 = vmatpush3.msra.mxu1 %v2793_v54  ;;  %v6521_v9 = vand.u32 4294901760, %v6221_v16  ;;  %v6610_v54 = vld [vmem:[#allocation5_spill] sm:$0xff]  ;;  %v4293_v37 = vpop.f32.mrf.mxu1 }
 0x2c9   : > { %4586 = vmatprep.subr.mxu0 %v5924_v0  ;;  %4613 = vmatprep.subr.mxu1 %v2800_v56 }
 0x2ca   : > { %4587 = vmatpush3.msra.mxu0 %v5924_v0  ;;  %4614 = vmatpush3.msra.mxu1 %v2800_v56 }
 0x2cb   : > { %4588 = vmatprep.subr.mxu0 %v5944_v50  ;;  %4615 = vmatprep.subr.mxu1 %v2807_v2 }
 0x2cc   : > { %4589 = vmatpush3.msra.mxu0 %v5944_v50  ;;  %4616 = vmatpush3.msra.mxu1 %v2807_v2 }
 0x2cd   : > { %4590 = vmatprep.subr.mxu0 %v5525_v14  ;;  %4617 = vmatprep.subr.mxu1 %v5918_v1 }
 0x2ce   : > { %4591 = vmatpush3.msra.mxu0 %v5525_v14  ;;  %4618 = vmatpush3.msra.mxu1 %v5918_v1  ;;  %v6520_v1 = vand.u32 4294901760, %v6226_v11 }
 0x2cf   : > { %4592 = vmatprep.subr.mxu0 %v5538_v55  ;;  %4619 = vmatprep.subr.mxu1 %v5935_v60 }
 0x2d0   : > { %4593 = vmatpush3.msra.mxu0 %v5538_v55  ;;  %4620 = vmatpush3.msra.mxu1 %v5935_v60  ;;  %v1255_v60 = vpop.f32.mrf.mxu0  ;;  %v2774_v41 = vsub.f32 %v6226_v11, %v6520_v1 }
 0x2d1   : > { %4594 = vmatprep.subr.mxu0 %v5565_v38  ;;  %4621 = vmatprep.subr.mxu1 %v5957_v23 }
 0x2d2   : > { %4595 = vmatpush3.msra.mxu0 %v5565_v38  ;;  %4622 = vmatpush3.msra.mxu1 %v5957_v23  ;;  %v2764_v23 = vsub.f32 %v6221_v16, %v6521_v9  ;;  %v4258_v56 = vpop.f32.mrf.mxu0  ;;  %v2775_v1 = vand.u32 4294901760, %v2774_v41  ;;  %v1417_v9 = vadd.f32 %v1416_v24, %v1255_v60  ;;  %v1622_v60 = vpop.f32.mrf.mxu1 }
 0x2d3   : > { %4596 = vmatprep.subr.mxu0 %v5589_v21  ;;  %4623 = vmatprep.subr.mxu1 %v5974_v26 }
 0x2d4   : > { %4597 = vmatpush3.msra.mxu0 %v5589_v21  ;;  %4624 = vmatpush3.msra.mxu1 %v5974_v26  ;;  %v6611_v26 = vld [vmem:[#allocation8_spill] sm:$0xff]  ;;  %v2765_v2 = vand.u32 4294901760, %v2764_v23 }
 0x2d5   : > { %4598 = vmatprep.subr.mxu0 %v5114_v28  ;;  %4625 = vmatprep.subr.mxu1 %v6610_v54 }
 0x2d6   : > { %4599 = vmatpush3.msra.mxu0 %v5114_v28  ;;  %4626 = vmatpush3.msra.mxu1 %v6610_v54  ;;  %v1423_v54 = vadd.f32 %v4223_v22, %v4188_v35 }
 0x2d7   : > { %4600 = vmatprep.subr.mxu0 %v5139_v58  ;;  %4627 = vmatprep.subr.mxu1 %v6611_v26 }
 0x2d8   : > { %4601 = vmatpush3.msra.mxu0 %v5139_v58  ;;  %4628 = vmatpush3.msra.mxu1 %v6611_v26  ;;  %v1526_v26 = vpop.f32.mrf.mxu0  ;;  %v1534_v35 = vadd.f32 %v4258_v56, %v1423_v54 }
 0x2d9   : > { %4602 = vmatprep.subr.mxu0 %v5189_v39  ;;  %4629 = vmatprep.subr.mxu1 %v6612_v63  ;;  %v1527_v22 = vadd.f32 %v1526_v26, %v1417_v9 }
 0x2da   : > { %4603 = vmatpush3.msra.mxu0 %v5189_v39  ;;  %4630 = vmatpush3.msra.mxu1 %v6612_v63  ;;  %v1631_v23 = vadd.f32 %v4293_v37, %v1534_v35 }
 0x2db   : > { %4604 = vmatprep.subr.mxu0 %v5226_v40  ;;  %4631 = vmatprep.subr.mxu1 %v5625_v57 }
 0x2dc   : > { %4605 = vmatpush3.msra.mxu0 %v5226_v40  ;;  %4632 = vmatpush3.msra.mxu1 %v5625_v57 }
 0x2dd   : > { %4606 = vmatprep.mubr.f32.mxu0 %v2765_v2  ;;  %4633 = vmatprep.subr.mxu1 %v5241_v20 }
 0x2de   : > { %4644 = vmatprep.subr.mxu0 %v6137_v61  ;;  %4607 = vmatmul.mubr.f32.vlgmr.msra.gmra.mxu0 %v2775_v1 }
 0x2df   : > { %4634 = vmatpush3.msra.mxu1 %v5241_v20  ;;  %4645 = vmatpush3.msra.mxu0 %v6137_v61  ;;  %v1623_v20 = vadd.f32 %v1622_v60, %v1527_v22 }
 0x2e0   : > { %4635 = vmatprep.subr.mxu1 %v5254_v31  ;;  %4646 = vmatprep.subr.mxu0 %v6146_v51  ;;  %v4328_v57 = vpop.f32.mrf.mxu0 }
 0x2e1   : > { %4636 = vmatpush3.msra.mxu1 %v5254_v31  ;;  %4647 = vmatpush3.msra.mxu0 %v6146_v51  ;;  %v1756_v37 = vadd.f32 %v4328_v57, %v1631_v23 }
 0x2e2   : > { %4637 = vmatprep.subr.mxu1 %v5262_v42  ;;  %4648 = vmatprep.subr.mxu0 %v6155_v6  ;;  %v1749_v61 = vpop.f32.mrf.mxu0 }
 0x2e3   : > { %4638 = vmatpush3.msra.mxu1 %v5262_v42  ;;  %4649 = vmatpush3.msra.mxu0 %v6155_v6  ;;  %v1750_v42 = vadd.f32 %v1749_v61, %v1623_v20 }
 0x2e4   : > { %4639 = vmatprep.subr.mxu1 %v5267_v46  ;;  %4650 = vmatprep.subr.mxu0 %v6165_v33 }
 0x2e5   : > { %4640 = vmatpush3.msra.mxu1 %v5267_v46  ;;  %4641 = vmatprep.mubr.f32.mxu1 %v6211_v4 }
 0x2e6   : > { %4651 = vmatpush3.msra.mxu0 %v6165_v33  ;;  %4642 = vmatmul.mubr.f32.vlgmr.msra.gmra.mxu1 %v6214_v43 }
 0x2e7   : > { %4652 = vmatprep.subr.mxu0 %v5901_v34  ;;  %4679 = vmatprep.subr.mxu1 %v6122_v32 }
 0x2e8   : > { %4653 = vmatpush3.msra.mxu0 %v5901_v34  ;;  %4680 = vmatpush3.msra.mxu1 %v6122_v32  ;;  %v4363_v31 = vpop.f32.mrf.mxu1 }
 0x2e9   : > { %4654 = vmatprep.subr.mxu0 %v5914_v53  ;;  %4681 = vmatprep.subr.mxu1 %v6129_v13  ;;  %v1849_v46 = vadd.f32 %v4363_v31, %v1756_v37 }
 0x2ea   : > { %4655 = vmatpush3.msra.mxu0 %v5914_v53  ;;  %4682 = vmatpush3.msra.mxu1 %v6129_v13  ;;  %v1842_v51 = vpop.f32.mrf.mxu1 }
 0x2eb   : > { %3379 = vst [vmem:[%s5855_s18 + $0x18] sm:$0xff] %v1849_v46  ;;  %4656 = vmatprep.subr.mxu0 %v5931_v10  ;;  %4683 = vmatprep.subr.mxu1 %v6139_v3  ;;  %v1843_v34 = vadd.f32 %v1842_v51, %v1750_v42  ;;  %v1853_v6 = vmul.f32 %v5866_v48, %v1849_v46 }
 0x2ec   : > { %4657 = vmatpush3.msra.mxu0 %v5931_v10  ;;  %4684 = vmatpush3.msra.mxu1 %v6139_v3  ;;  %v6613_v10 = vld [vmem:[#allocation29_spill] sm:$0xff] }
 0x2ed   : > { %3378 = vst [vmem:[%s5855_s18 + $0x10] sm:$0xff] %v1843_v34  ;;  %4658 = vmatprep.subr.mxu0 %v5953_v30  ;;  %4685 = vmatprep.subr.mxu1 %v6148_v29  ;;  %v1852_v53 = vmul.f32 %v5866_v48, %v1843_v34  ;;  %v1859_v33 = vmul.f32 %v1853_v6, %v1849_v46  ;;  %v6614_v48 = vld [vmem:[#allocation2_spill] sm:$0xff] }
 0x2ee   : > { %4659 = vmatpush3.msra.mxu0 %v5953_v30  ;;  %4686 = vmatpush3.msra.mxu1 %v6148_v29  ;;  %v6615_v30 = vld [vmem:[#allocation12_spill] sm:$0xff] }
 0x2ef   : > { %4660 = vmatprep.subr.mxu0 %v5532_v7  ;;  %4687 = vmatprep.subr.mxu1 %v5896_v49 }
 0x2f0   : > { %1856 = vadd.xlane.f32.xlu0 %v1853_v6  ;;  %4661 = vmatpush3.msra.mxu0 %v5532_v7  ;;  %v1858_v7 = vmul.f32 %v1852_v53, %v1843_v34 }
 0x2f1   : > { %4688 = vmatpush3.msra.mxu1 %v5896_v49  ;;  %4662 = vmatprep.subr.mxu0 %v6613_v10 }
 0x2f2   : > { %4689 = vmatprep.subr.mxu1 %v5909_v17  ;;  %1854 = vadd.xlane.f32.xlu1 %v1852_v53 }
 0x2f3   : > { %4663 = vmatpush3.msra.mxu0 %v6613_v10  ;;  %4690 = vmatpush3.msra.mxu1 %v5909_v17 }
 0x2f4   : > { %4664 = vmatprep.subr.mxu0 %v6614_v48  ;;  %4691 = vmatprep.subr.mxu1 %v5924_v0 }
 0x2f5   : > { %1862 = vadd.xlane.f32.xlu0 %v1859_v33  ;;  %4665 = vmatpush3.msra.mxu0 %v6614_v48  ;;  %v1066_v33 = vpop.xlane.xlu0 %1065 }
 0x2f6   : > { %4692 = vmatpush3.msra.mxu1 %v5924_v0  ;;  %4666 = vmatprep.subr.mxu0 %v6615_v30 }
 0x2f7   : > { %4693 = vmatprep.subr.mxu1 %v5944_v50  ;;  %1860 = vadd.xlane.f32.xlu1 %v1858_v7 }
 0x2f8   : > { %4667 = vmatpush3.msra.mxu0 %v6615_v30  ;;  %4694 = vmatpush3.msra.mxu1 %v5944_v50  ;;  %v1068_v30 = vpop.xlane.xlu1 %1067 }
 0x2f9   : > { %4668 = vmatprep.subr.mxu0 %v5146_v12  ;;  %4695 = vmatprep.subr.mxu1 %v5525_v14  ;;  %v1074_v48 = vpop.xlane.xlu0 %1073 }
 0x2fa   : > { %4669 = vmatpush3.msra.mxu0 %v5146_v12  ;;  %4696 = vmatpush3.msra.mxu1 %v5525_v14  ;;  %v6619_v12 = vld [vmem:[#allocation32_spill] sm:$0xff] }
 0x2fb   : > { %4670 = vmatprep.subr.mxu0 %v5167_v45  ;;  %4697 = vmatprep.subr.mxu1 %v5538_v55 }
 0x2fc   : > { %4671 = vmatpush3.msra.mxu0 %v5167_v45  ;;  %4698 = vmatpush3.msra.mxu1 %v5538_v55  ;;  %v6617_v45 = vand.u32 4294901760, %v6226_v11 }
 0x2fd   : > { %4672 = vmatprep.subr.mxu0 %v5206_v36  ;;  %4699 = vmatprep.subr.mxu1 %v5565_v38  ;;  %v1072_v7 = vpop.xlane.xlu0 %1071 }
 0x2fe   : > { %4673 = vmatpush3.msra.mxu0 %v5206_v36  ;;  %4700 = vmatpush3.msra.mxu1 %v5565_v38  ;;  %v6616_v36 = vand.u32 4294901760, %v6221_v16 }
 0x2ff   : > { %4674 = vmatprep.subr.mxu0 %v5237_v19  ;;  %4701 = vmatprep.subr.mxu1 %v5589_v21 }
 0x300   : > { %4675 = vmatpush3.msra.mxu0 %v5237_v19  ;;  %4676 = vmatprep.mubr.f32.mxu0 %v6221_v16  ;;  %v6618_v19 = vld [vmem:[#allocation23_spill] sm:$0xff] }
 0x301   : > { %4702 = vmatpush3.msra.mxu1 %v5589_v21  ;;  %4677 = vmatmul.mubr.f32.vlgmr.msra.gmra.mxu0 %v6226_v11 }
 0x302   : > { %4703 = vmatprep.subr.mxu1 %v5114_v28  ;;  %4714 = vmatprep.subr.mxu0 %v6160_v47 }
 0x303   : > { %4704 = vmatpush3.msra.mxu1 %v5114_v28  ;;  %4715 = vmatpush3.msra.mxu0 %v6160_v47 }
 0x304   : > { %4705 = vmatprep.subr.mxu1 %v5139_v58  ;;  %4716 = vmatprep.subr.mxu0 %v6170_v8 }
 0x305   : > { %4706 = vmatpush3.msra.mxu1 %v5139_v58  ;;  %4717 = vmatpush3.msra.mxu0 %v6170_v8 }
 0x306   : > { %4707 = vmatprep.subr.mxu1 %v5189_v39  ;;  %4718 = vmatprep.subr.mxu0 %v6179_v44 }
 0x307   : > { %4708 = vmatpush3.msra.mxu1 %v5189_v39  ;;  %4719 = vmatpush3.msra.mxu0 %v6179_v44  ;;  %v4800_v44 = vld [vmem:[%s6434_s2] ss:$0 sm:$0xff] }
 0x308   : > { %4709 = vmatprep.subr.mxu1 %v5226_v40  ;;  %4720 = vmatprep.subr.mxu0 %v6188_v18 }
 0x309   : > { %4710 = vmatpush3.msra.mxu1 %v5226_v40  ;;  %4711 = vmatprep.mubr.f32.mxu1 %v6616_v36 }
 0x30a   : > { %4721 = vmatpush3.msra.mxu0 %v6188_v18  ;;  %4712 = vmatmul.mubr.f32.vlgmr.msra.gmra.mxu1 %v6617_v45 }
 0x30b   : > { %4722 = vmatprep.subr.mxu0 %v5907_v25  ;;  %4749 = vmatprep.subr.mxu1 %v6122_v32 }
 0x30c   : > { %4723 = vmatpush3.msra.mxu0 %v5907_v25  ;;  %4750 = vmatpush3.msra.mxu1 %v6122_v32  ;;  %v6620_v25 = vld [vmem:[#allocation6_spill] sm:$0xff] }
 0x30d   : > { %4724 = vmatprep.subr.mxu0 %v5922_v27  ;;  %4751 = vmatprep.subr.mxu1 %v6129_v13 }
 0x30e   : > { %4725 = vmatpush3.msra.mxu0 %v5922_v27  ;;  %4752 = vmatpush3.msra.mxu1 %v6129_v13 }
 0x30f   : > { %4726 = vmatprep.subr.mxu0 %v5942_v52  ;;  %4753 = vmatprep.subr.mxu1 %v6139_v3 }
 0x310   : > { %4727 = vmatpush3.msra.mxu0 %v5942_v52  ;;  %4754 = vmatpush3.msra.mxu1 %v6139_v3 }
 0x311   : > { %4728 = vmatprep.subr.mxu0 %v5961_v15  ;;  %4755 = vmatprep.subr.mxu1 %v6148_v29 }
 0x312   : > { %4729 = vmatpush3.msra.mxu0 %v5961_v15  ;;  %4756 = vmatpush3.msra.mxu1 %v6148_v29  ;;  %v6621_v15 = vld [vmem:[#allocation36_spill] sm:$0xff] }
 0x313   : > { %4730 = vmatprep.subr.mxu0 %v6618_v19  ;;  %4757 = vmatprep.subr.mxu1 %v5896_v49 }
 0x314   : > { %4731 = vmatpush3.msra.mxu0 %v6618_v19  ;;  %4758 = vmatpush3.msra.mxu1 %v5896_v49  ;;  %v6622_v49 = vld [vmem:[#allocation34_spill] sm:$0xff] }
 0x315   : > { %4732 = vmatprep.subr.mxu0 %v6619_v12  ;;  %4759 = vmatprep.subr.mxu1 %v5909_v17 }
 0x316   : > { %4733 = vmatpush3.msra.mxu0 %v6619_v12  ;;  %4760 = vmatpush3.msra.mxu1 %v5909_v17 }
 0x317   : > { %4734 = vmatprep.subr.mxu0 %v6620_v25  ;;  %4761 = vmatprep.subr.mxu1 %v5924_v0 }
 0x318   : > { %4735 = vmatpush3.msra.mxu0 %v6620_v25  ;;  %4762 = vmatpush3.msra.mxu1 %v5924_v0 }
 0x319   : > { %4736 = vmatprep.subr.mxu0 %v6621_v15  ;;  %4763 = vmatprep.subr.mxu1 %v5944_v50 }
 0x31a   : > { %4737 = vmatpush3.msra.mxu0 %v6621_v15  ;;  %4764 = vmatpush3.msra.mxu1 %v5944_v50 }
 0x31b   : > { %4738 = vmatprep.subr.mxu0 %v6563_v59  ;;  %4765 = vmatprep.subr.mxu1 %v5525_v14 }
 0x31c   : > { %4739 = vmatpush3.msra.mxu0 %v6563_v59  ;;  %4766 = vmatpush3.msra.mxu1 %v5525_v14 }
 0x31d   : > { %4740 = vmatprep.subr.mxu0 %v6564_v5  ;;  %4767 = vmatprep.subr.mxu1 %v5538_v55 }
 0x31e   : > { %4741 = vmatpush3.msra.mxu0 %v6564_v5  ;;  %4768 = vmatpush3.msra.mxu1 %v5538_v55 }
 0x31f   : > { %4742 = vmatprep.subr.mxu0 %v6565_v62  ;;  %4769 = vmatprep.subr.mxu1 %v5565_v38 }
 0x320   : > { %4743 = vmatpush3.msra.mxu0 %v6565_v62  ;;  %4770 = vmatpush3.msra.mxu1 %v5565_v38 }
 0x321   : > { %4744 = vmatprep.subr.mxu0 %v6622_v49  ;;  %4771 = vmatprep.subr.mxu1 %v5589_v21 }
 0x322   : > { %4745 = vmatpush3.msra.mxu0 %v6622_v49  ;;  %4746 = vmatprep.mubr.f32.mxu0 %v6211_v4 }
 0x323   : > { %4772 = vmatpush3.msra.mxu1 %v5589_v21  ;;  %4747 = vmatmul.mubr.f32.vlgmr.msra.gmra.mxu0 %v6214_v43 }
 0x324   : > { %4773 = vmatprep.subr.mxu1 %v5114_v28  ;;  %4781 = vmatprep.mubr.f32.mxu1 %v6211_v4 }
 0x325   : > { %4774 = vmatpush3.msra.mxu1 %v5114_v28 }
 0x326   : > { %4775 = vmatprep.subr.mxu1 %v5139_v58 }
 0x327   : > { %4776 = vmatpush3.msra.mxu1 %v5139_v58 }
 0x328   : > { %4777 = vmatprep.subr.mxu1 %v5189_v39 }
 0x329   : > { %4778 = vmatpush3.msra.mxu1 %v5189_v39 }
 0x32a   : > { %4779 = vmatprep.subr.mxu1 %v5226_v40 }
 0x32b   : > { %4780 = vmatpush3.msra.mxu1 %v5226_v40 }
 0x32c   : > { %4782 = vmatmul.mubr.f32.vlgmr.msra.gmra.mxu1 %v6214_v43 }
 0x339   : > { %v4398_v21 = vpop.f32.mrf.mxu0 }
 0x33b   : > { %v2044_v38 = vpop.f32.mrf.mxu0 }
 0x340   : > { %v4433_v59 = vpop.f32.mrf.mxu1 }
 0x341   : > { %v2212_v55 = vadd.f32 %v4433_v59, %v4398_v21 }
 0x342   : > { %v2205_v62 = vpop.f32.mrf.mxu1 }
 0x343   : > { %v2206_v17 = vadd.f32 %v2205_v62, %v2044_v38 }
 0x359   : > { %v4468_v5 = vpop.f32.mrf.mxu0 }
 0x35a   : > { %v2323_v27 = vadd.f32 %v4468_v5, %v2212_v55 }
 0x35b   : > { %v2315_v28 = vpop.f32.mrf.mxu0 }
 0x35c   : > { %v2316_v0 = vadd.f32 %v2315_v28, %v2206_v17 }
 0x362   : > { %v4503_v14 = vpop.f32.mrf.mxu1 }
 0x363   : > { %v2420_v52 = vadd.f32 %v4503_v14, %v2323_v27 }
 0x364   : > { %v2411_v39 = vpop.f32.mrf.mxu1 }
 0x365   : > { %v2412_v40 = vadd.f32 %v2411_v39, %v2316_v0 }
 0x379   : > { %v1857_v36 = vpop.xlane.xlu0 %1856 }
 0x37a   : > { %v3385_v28 = vadd.f32 %v1857_v36, %v1068_v30 }
 0x37b   : > { %v4538_v58 = vpop.f32.mrf.mxu0  ;;  %v1855_v45 = vpop.xlane.xlu1 %1854 }
 0x37c   : > { %v2545_v32 = vadd.f32 %v4538_v58, %v2420_v52  ;;  %v3384_v17 = vadd.f32 %v1855_v45, %v1066_v33 }
 0x37d   : > { %v2538_v50 = vpop.f32.mrf.mxu0 }
 0x37e   : > { %v2539_v3 = vadd.f32 %v2538_v50, %v2412_v40  ;;  %v1863_v19 = vpop.xlane.xlu0 %1862 }
 0x37f   : > { %v3391_v14 = vadd.f32 %v1863_v19, %v1074_v48 }
 0x380   : > { %v1861_v12 = vpop.xlane.xlu1 %1860 }
 0x381   : > { %v3390_v27 = vadd.f32 %v1861_v12, %v1072_v7 }
 0x384   : > { %v4573_v13 = vpop.f32.mrf.mxu1 }
 0x385   : > { %v2638_v29 = vadd.f32 %v4573_v13, %v2545_v32 }
 0x386   : > { %v2631_v47 = vpop.f32.mrf.mxu1 }
 0x387   : > { %3381 = vst [vmem:[%s5855_s18 + $0x28] sm:$0xff] %v2638_v29  ;;  %v2632_v8 = vadd.f32 %v2631_v47, %v2539_v3  ;;  %v2642_v18 = vmul.f32 %v4800_v44, %v2638_v29 }
 0x389   : > { %3380 = vst [vmem:[%s5855_s18 + $0x20] sm:$0xff] %v2632_v8  ;;  %2645 = vadd.xlane.f32.xlu0 %v2642_v18  ;;  %v2641_v4 = vmul.f32 %v4800_v44, %v2632_v8  ;;  %v2648_v43 = vmul.f32 %v2642_v18, %v2638_v29 }
 0x38b   : > { %2643 = vadd.xlane.f32.xlu1 %v2641_v4  ;;  %v2647_v16 = vmul.f32 %v2641_v4, %v2632_v8 }
 0x38d   : > { %2651 = vadd.xlane.f32.xlu0 %v2648_v43 }
 0x38f   : > { %2649 = vadd.xlane.f32.xlu1 %v2647_v16 }
 0x39e   : > { %v4608_v11 = vpop.f32.mrf.mxu0 }
 0x3a0   : > { %v2767_v9 = vpop.f32.mrf.mxu0 }
 0x3a6   : > { %v4643_v1 = vpop.f32.mrf.mxu1 }
 0x3a7   : > { %v2935_v2 = vadd.f32 %v4643_v1, %v4608_v11 }
 0x3a8   : > { %v2928_v24 = vpop.f32.mrf.mxu1 }
 0x3a9   : > { %v2929_v26 = vadd.f32 %v2928_v24, %v2767_v9 }
 0x3c1   : > { %v4678_v41 = vpop.f32.mrf.mxu0 }
 0x3c2   : > { %v3046_v35 = vadd.f32 %v4678_v41, %v2935_v2 }
 0x3c3   : > { %v3038_v56 = vpop.f32.mrf.mxu0 }
 0x3c4   : > { %v3039_v60 = vadd.f32 %v3038_v56, %v2929_v26 }
 0x3ca   : > { %v4713_v63 = vpop.f32.mrf.mxu1 }
 0x3cb   : > { %v3143_v57 = vadd.f32 %v4713_v63, %v3046_v35 }
 0x3cc   : > { %v3134_v22 = vpop.f32.mrf.mxu1 }
 0x3cd   : > { %v3135_v20 = vadd.f32 %v3134_v22, %v3039_v60 }
 0x3e3   : > { %v4748_v54 = vpop.f32.mrf.mxu0 }
 0x3e4   : > { %v3268_v61 = vadd.f32 %v4748_v54, %v3143_v57 }
 0x3e5   : > { %v3261_v23 = vpop.f32.mrf.mxu0 }
 0x3e6   : > { %v3262_v42 = vadd.f32 %v3261_v23, %v3135_v20 }
 0x3ec   : > { %v4783_v37 = vpop.f32.mrf.mxu1 }
 0x3ed   : > { %v3361_v31 = vadd.f32 %v4783_v37, %v3268_v61 }
 0x3ee   : > { %v3354_v46 = vpop.f32.mrf.mxu1 }
 0x3ef   : > { %3383 = vst [vmem:[%s5855_s18 + $0x38] sm:$0xff] %v3361_v31  ;;  %v3355_v51 = vadd.f32 %v3354_v46, %v3262_v42  ;;  %v3365_v34 = vmul.f32 %v4800_v44, %v3361_v31 }
 0x3f1   : > { %3382 = vst [vmem:[%s5855_s18 + $0x30] sm:$0xff] %v3355_v51  ;;  %3368 = vadd.xlane.f32.xlu0 %v3365_v34  ;;  %v3364_v6 = vmul.f32 %v4800_v44, %v3355_v51  ;;  %v3371_v53 = vmul.f32 %v3365_v34, %v3361_v31 }
 0x3f3   : > { %3366 = vadd.xlane.f32.xlu1 %v3364_v6  ;;  %v3370_v10 = vmul.f32 %v3364_v6, %v3355_v51 }
 0x3f5   : > { %3374 = vadd.xlane.f32.xlu0 %v3371_v53 }
 0x3f7   : > { %3372 = vadd.xlane.f32.xlu1 %v3370_v10 }
 0x412   : > { %v2646_v25 = vpop.xlane.xlu0 %2645 }
 0x414   : > { %v2644_v15 = vpop.xlane.xlu1 %2643 }
 0x416   : > { %v2652_v49 = vpop.xlane.xlu0 %2651 }
 0x418   : > { %v2650_v21 = vpop.xlane.xlu1 %2649 }
 0x47a   : > { %v3369_v38 = vpop.xlane.xlu0 %3368 }
 0x47b   : > { %v3387_v5 = vadd.f32 %v3369_v38, %v2646_v25 }
 0x47c   : > { %v3367_v59 = vpop.xlane.xlu1 %3366 }
 0x47d   : > { %v3386_v55 = vadd.f32 %v3367_v59, %v2644_v15  ;;  %v3389_v0 = vadd.f32 %v3387_v5, %v3385_v28 }
 0x47e   : > { %v3375_v62 = vpop.xlane.xlu0 %3374 }
 0x47f   : > { %v3393_v58 = vadd.f32 %v3375_v62, %v2652_v49  ;;  %v3388_v40 = vadd.f32 %v3386_v55, %v3384_v17 }
 0x480   : > { %v3373_v39 = vpop.xlane.xlu1 %3372 }
 0x481   : > { %v3395_v52 = vadd.f32 %v3393_v58, %v3391_v14  ;;  %v3392_v50 = vadd.f32 %v3373_v39, %v2650_v21 }
 0x483   : > { %v3397_v32 = vsel %vm248_vm1, %v3389_v0, %v3395_v52  ;;  %v3394_v13 = vadd.f32 %v3392_v50, %v3390_v27 }
 0x484   : > { %3400 = vst.msk [vmem:[%s210_s5 + $0x8] sm:$0xff] %vm3398_vm7, %v3397_v32 }
 0x485   : > { %v3396_v3 = vsel %vm248_vm1, %v3388_v40, %v3394_v13 }
 0x486   : > { %3399 = vst.msk [vmem:[%s210_s5] sm:$0xff] %vm3398_vm7, %v3396_v3 }
 0x487 PF: > { %s15_s15 = sadd.s32 1, %s4807_s15  }
 0x488   : > { %p12_p4 = scmp.ge.s32.totalorder %s15_s15, 4  }
 0x48a   :  { %14 = sbr.rel (!%p12_p4) target bundleno = 1 (0x1), region = 77 }

// kernel: dcgan_forward.12
= control target key start
LH: loop header
LB: loop body
LE: loop exit
PB: predicated region body
PF: predicated region fallthrough
CT: control target
= control target key end

     0   :  { %s372_s15 = smov 0   ;;  %s405_s0 = inlined_call_operand.vmem [shape: f32[2,32,128], index: 0, kind: input, shape index: {}]   ;;  %s406_s1 = inlined_call_operand.vmem [shape: f32[2,8,2], index: 1, kind: input, shape index: {}]   ;;  %s407_s2 = inlined_call_operand.vmem [shape: f32[8,1], index: 2, kind: input, shape index: {}]   ;;  %s408_s3 = inlined_call_operand.vmem [shape: f32[8,1], index: 3, kind: input, shape index: {}]   ;;  %s409_s4 = inlined_call_operand.vmem [shape: f32[2,32,128], index: 4, kind: output, shape index: {}]  }
   0x1 LB: > { %s307_s16 = sadd.s32 4294967295, %s342_s15   ;;  %p311_p0 = scmp.ge.s32.totalorder %s342_s15, 1  ;;  %s342_s15 = sphi %s372_s15, %s14_s15  }
   0x2   : > { %p162_p1 = scmp.lt.s32.totalorder %s342_s15, 3 }
   0x4   : > { %p163_p2 = pnand %p311_p0, %p162_p1 }
   0x5   : > { %s344_s21 = smov (!%p163_p2), 1   ;;  %s346_s22 = smov (!%p163_p2), 127  }
   0x6   : > { %166 = sbr.rel (%p163_p2) target bundleno = 404 (0x194), region = 36  ;;  %p188_p3 = scmp.lt.s32.totalorder (!%p163_p2), %s307_s16, 1 }
   0xb   : > { %v198_v0 = vld [vmem:[%s406_s1] sm:$0xff]  ;;  %v316_v1 = vld [vmem:[%s406_s1 + $0x8] sm:$0xff]  ;;  %v345_v9 = vmov 0   ;;  %s411_s16 = smov (!%p188_p3, %s307_s16), 1 }
   0xc   : > { %v201_v2 = vadd.f32 %v316_v1, %v198_v0  ;;  %332 = vset.pattern.permute.xlu1 %v345_v9  ;;  %333 = vset.pattern.permute.xlu0 %v345_v9  ;;  %v213_v11 = vld [vmem:[%s407_s2] sm:$0xff]  ;;  %s319_s27 = sshll.u32 %s411_s16, 5 }
   0xd   : > { %v219_v14 = vld [vmem:[%s408_s3] sm:$0xff]  ;;  %s192_s30 = scalar_lea.vmem %s405_s0, %s319_s27  ;;  %s197_s7 = scalar_lea.vmem %s409_s4, %s319_s27 }
   0xe   : > { %v203_v3 = vmul.f32 0.001953125, %v201_v2  ;;  %v222_v17 = vld [vmem:[%s192_s30] sm:$0xff]  ;;  %v223_v19 = vld [vmem:[%s192_s30 + $0x8] sm:$0xff]  ;;  %v224_v20 = vld [vmem:[%s192_s30 + $0x10] sm:$0xff] }
   0xf   : > { %v225_v21 = vld [vmem:[%s192_s30 + $0x18] sm:$0xff] }
  0x10   : > { %v204_v4 = vmul.f32 %v203_v3, %v203_v3 }
  0x12   : > { %206 = vrot.lane.b32.xlu0 %v204_v4, %s344_s21 }
  0x84   : > { %v207_v5 = vpop.permute.xlu0 %206 }
  0x85   : > { %v209_v6 = vsub.f32 %v203_v3, %v207_v5 }
  0x87   : > { %v210_v7 = vmax.f32 %v209_v6, 0.0 }
  0x89   : > { %v211_v8 = vadd.f32 1e-05, %v210_v7 }
  0x8b   : > { %334 = vrsqrt.f32 %v211_v8 }
  0x98   : > { %v335_v10 = vpop.eup %334 }
  0x99   : > { %215 = vrot.lane.b32.xlu0 %v335_v10, %s346_s22 }
 0x10b   : > { %v216_v12 = vpop.permute.xlu0 %215 }
 0x10c   : > { %v218_v13 = vmul.f32 %v216_v12, %v213_v11 }
 0x10e   : > { %v220_v15 = vmul.f32 %v218_v13, %v203_v3  ;;  %228 = vperm.xlu1 %332, %v218_v13  }
 0x110   : > { %v221_v16 = vsub.f32 %v219_v14, %v220_v15 }
 0x112   : > { %237 = vperm.xlu1 %332, %v221_v16  }
 0x189   : > { %v229_v18 = vpop.permute.xlu1 %228 }
 0x18a   : > { %v231_v22 = vmul.f32 %v229_v18, %v222_v17  ;;  %v232_v23 = vmul.f32 %v229_v18, %v223_v19  ;;  %v233_v24 = vmul.f32 %v229_v18, %v224_v20  ;;  %v234_v25 = vmul.f32 %v229_v18, %v225_v21 }
 0x18d   : > { %v238_v26 = vpop.permute.xlu1 %237 }
 0x18e   : > { %v240_v27 = vadd.f32 %v238_v26, %v231_v22  ;;  %v241_v28 = vadd.f32 %v238_v26, %v232_v23  ;;  %v242_v29 = vadd.f32 %v238_v26, %v233_v24  ;;  %v243_v30 = vadd.f32 %v238_v26, %v234_v25 }
 0x190   : > { %v244_v31 = vmax.f32 %v240_v27, 0.0  ;;  %v245_v32 = vmax.f32 %v241_v28, 0.0  ;;  %v246_v33 = vmax.f32 %v242_v29, 0.0  ;;  %v247_v34 = vmax.f32 %v243_v30, 0.0 }
 0x192   : > { %248 = vst [vmem:[%s197_s7] sm:$0xff] %v244_v31  ;;  %249 = vst [vmem:[%s197_s7 + $0x8] sm:$0xff] %v245_v32 }
 0x193   : > { %250 = vst [vmem:[%s197_s7 + $0x10] sm:$0xff] %v246_v33  ;;  %251 = vst [vmem:[%s197_s7 + $0x18] sm:$0xff] %v247_v34 }
 0x194 PF: > { %s14_s15 = sadd.s32 1, %s342_s15  }
 0x195   : > { %p11_p4 = scmp.ge.s32.totalorder %s14_s15, 4  }
 0x197   :  { %13 = sbr.rel (!%p11_p4) target bundleno = 1 (0x1), region = 67 }

// kernel: dcgan_forward.11
= control target key start
LH: loop header
LB: loop body
LE: loop exit
PB: predicated region body
PF: predicated region fallthrough
CT: control target
= control target key end

     0   :  { %s3443_s15 = smov 0   ;;  %s4302_s0 = inlined_call_operand.vmem [shape: f32[2,16,256], index: 0, kind: input, shape index: {}]   ;;  %s4303_s1 = inlined_call_operand.vmem [shape: f32[4,8,64], index: 1, kind: input, shape index: {}]   ;;  %s4304_s2 = inlined_call_operand.vmem [shape: f32[1,128], index: 2, kind: input, shape index: {}]   ;;  %s4305_s3 = inlined_call_operand.vmem [shape: f32[2,32,128], index: 3, kind: output, shape index: {0}]   ;;  %s4306_s4 = inlined_call_operand.vmem [shape: f32[2,8,2], index: 4, kind: output, shape index: {1}]  }
   0x1 LB: > { %s2692_s16 = sadd.s32 4294967295, %s3406_s15   ;;  %p2696_p0 = scmp.ge.s32.totalorder %s3406_s15, 1  ;;  %s3406_s15 = sphi %s3443_s15, %s15_s15  }
   0x2   : > { %p165_p1 = scmp.lt.s32.totalorder %s3406_s15, 3 }
   0x4   : > { %p166_p2 = pnand %p2696_p0, %p165_p1 }
   0x5   : > { %p195_p3 = scmp.lt.s32.totalorder (!%p166_p2), %s2692_s16, 1  ;;  %s3408_s21 = smov (!%p166_p2), 11  }
   0x6   : > { %169 = sbr.rel (%p166_p2) target bundleno = 858 (0x35a), region = 32  ;;  %s3409_s22 = smov (!%p166_p2), 10  }
   0x7   : > { %s3410_s23 = smov (!%p166_p2), 1   ;;  %s3411_s24 = smov (!%p166_p2), 9  }
   0x8   : > { %s3412_s25 = smov (!%p166_p2), 127   ;;  %s3413_s26 = smov (!%p166_p2), 117  }
   0x9   : > { %s3416_s27 = smov (!%p166_p2), 119   ;;  %s3417_s28 = smov (!%p166_p2), 118  }
   0xb   : > { %s4308_s16 = smov (!%p195_p3, %s2692_s16), 1  ;;  %v3414_v4 = vmov 0.0   ;;  %vm239_vm0 = vcmask 80896   ;;  %vm228_vm1 = vcmask 7168   ;;  %vm3415_vm2 = vmmov 0   ;;  %v248_v36 = vld [vmem:[%s4303_s1] sm:$0xff] }
   0xc   : > { %s2708_s17 = sshll.u32 %s4308_s16, 5  ;;  %2926 = vmatprep.subr.mxu0 %v3414_v4  ;;  %2945 = vmatprep.subr.mxu1 %v3414_v4  ;;  %vm864_vm3 = vcmask 72704   ;;  %vm853_vm4 = vcmask 1039360   ;;  %vm292_vm5 = vcmask 523264   ;;  %vm277_vm6 = vcmask 957440  }
   0xd   : > { %s199_s20 = scalar_lea.vmem %s4302_s0, %s2708_s17  ;;  %2942 = vmatprep.mubr.msk.f32.mxu0 %vm3415_vm2, %v3414_v4  ;;  %2961 = vmatprep.mubr.msk.f32.mxu1 %vm3415_vm2, %v3414_v4  ;;  %v294_v41 = vsel %vm292_vm5, %v248_v36, 0  ;;  %vm1458_vm7 = vcmask 973824   ;;  %vm1447_vm8 = vcmask 965632   ;;  %s4279_s13 = scalar_lea.vmem %s4305_s3, %s2708_s17  ;;  %vm2604_vm9 = vcmask 15360  }
   0xe   : > { %v3459_v0 = vld [vmem:[%s199_s20 + $0x10] sm:$0xff]  ;;  %v3461_v1 = vld [vmem:[%s199_s20 + $0x18] sm:$0xff]  ;;  %v3465_v2 = vld [vmem:[%s199_s20] sm:$0xff]  ;;  %v3553_v49 = vand.u32 4294901760, %v294_v41  ;;  %s2701_s17 = sshll.u32 %s4308_s16, 3 }
   0xf   : > { %246 = vrot.lane.b32.xlu0 %v3459_v0, %s3408_s21  ;;  %237 = vrot.lane.b32.xlu1 %v3461_v1, %s3409_s22  ;;  %v3469_v3 = vld [vmem:[%s199_s20 + $0x8] sm:$0xff] }
  0x10   : > { %v3568_v57 = vsub.f32 %v294_v41, %v3553_v49 }
  0x13   : > { %244 = vrot.lane.b32.xlu1 %v3465_v2, %s3408_s21  ;;  %235 = vrot.lane.b32.xlu0 %v3459_v0, %s3409_s22  ;;  %s208_s21 = scalar_lea.vmem %s4306_s4, %s2701_s17 }
  0x17   : > { %233 = vrot.lane.b32.xlu1 %v3469_v3, %s3409_s22  ;;  %231 = vrot.lane.b32.xlu0 %v3465_v2, %s3409_s22 }
  0x1b   : > { %226 = vrot.lane.b32.xlu1 %v3461_v1, %s3410_s23  ;;  %224 = vrot.lane.b32.xlu0 %v3459_v0, %s3410_s23 }
  0x1f   : > { %222 = vrot.lane.b32.xlu1 %v3469_v3, %s3410_s23  ;;  %220 = vrot.lane.b32.xlu0 %v3465_v2, %s3410_s23 }
  0x23   : > { %862 = vrot.lane.b32.xlu1 %v3461_v1, %s3411_s24  ;;  %860 = vrot.lane.b32.xlu0 %v3459_v0, %s3411_s24 }
  0x27   : > { %858 = vrot.lane.b32.xlu1 %v3469_v3, %s3411_s24  ;;  %856 = vrot.lane.b32.xlu0 %v3465_v2, %s3411_s24 }
  0x2b   : > { %851 = vrot.lane.b32.xlu1 %v3461_v1, %s3412_s25  ;;  %849 = vrot.lane.b32.xlu0 %v3459_v0, %s3412_s25 }
  0x2f   : > { %847 = vrot.lane.b32.xlu1 %v3469_v3, %s3412_s25  ;;  %845 = vrot.lane.b32.xlu0 %v3465_v2, %s3412_s25 }
  0x33   : > { %255 = vrot.lane.b32.xlu1 %v3461_v1, %s3413_s26  ;;  %253 = vrot.lane.b32.xlu0 %v3459_v0, %s3413_s26 }
  0x81   : > { %v247_v5 = vpop.permute.xlu0 %246  ;;  %v238_v6 = vpop.permute.xlu1 %237 }
  0x82   : > { %275 = vrot.lane.b32.xlu0 %v247_v5, %s3413_s26 }
  0x85   : > { %v245_v7 = vpop.permute.xlu1 %244  ;;  %v236_v8 = vpop.permute.xlu0 %235 }
  0x86   : > { %273 = vrot.lane.b32.xlu1 %v245_v7, %s3413_s26  ;;  %269 = vrot.lane.b32.xlu0 %v236_v8, %s3413_s26  ;;  %v241_v9 = vsel %vm239_vm0, %v236_v8, %v238_v6 }
  0x89   : > { %v234_v10 = vpop.permute.xlu1 %233  ;;  %v232_v11 = vpop.permute.xlu0 %231 }
  0x8a   : > { %271 = vrot.lane.b32.xlu1 %v241_v9, %s3413_s26  ;;  %265 = vrot.lane.b32.xlu0 %v232_v11, %s3413_s26  ;;  %v240_v12 = vsel %vm239_vm0, %v232_v11, %v234_v10 }
  0x8d   : > { %v227_v13 = vpop.permute.xlu1 %226  ;;  %v225_v14 = vpop.permute.xlu0 %224 }
  0x8e   : > { %267 = vrot.lane.b32.xlu1 %v240_v12, %s3413_s26  ;;  %261 = vrot.lane.b32.xlu0 %v225_v14, %s3413_s26  ;;  %v230_v15 = vsel %vm228_vm1, %v225_v14, %v227_v13 }
  0x91   : > { %v223_v16 = vpop.permute.xlu1 %222  ;;  %v221_v17 = vpop.permute.xlu0 %220 }
  0x92   : > { %263 = vrot.lane.b32.xlu1 %v230_v15, %s3413_s26  ;;  %257 = vrot.lane.b32.xlu0 %v221_v17, %s3413_s26  ;;  %v229_v18 = vsel %vm228_vm1, %v221_v17, %v223_v16 }
  0x95   : > { %v863_v19 = vpop.permute.xlu1 %862  ;;  %v861_v20 = vpop.permute.xlu0 %860 }
  0x96   : > { %259 = vrot.lane.b32.xlu1 %v229_v18, %s3413_s26  ;;  %249 = vrot.lane.b32.xlu0 %v3465_v2, %s3413_s26  ;;  %v866_v25 = vsel %vm864_vm3, %v861_v20, %v863_v19 }
  0x99   : > { %v859_v21 = vpop.permute.xlu1 %858  ;;  %v857_v22 = vpop.permute.xlu0 %856 }
  0x9a   : > { %251 = vrot.lane.b32.xlu1 %v3469_v3, %s3413_s26  ;;  %1454 = vrot.lane.b32.xlu0 %v3459_v0, %s3416_s27  ;;  %v865_v26 = vsel %vm864_vm3, %v857_v22, %v859_v21 }
  0x9d   : > { %v852_v23 = vpop.permute.xlu1 %851  ;;  %v850_v24 = vpop.permute.xlu0 %849 }
  0x9e   : > { %1456 = vrot.lane.b32.xlu1 %v3461_v1, %s3416_s27  ;;  %1450 = vrot.lane.b32.xlu0 %v3465_v2, %s3416_s27  ;;  %v855_v27 = vsel %vm853_vm4, %v850_v24, %v852_v23 }
  0xa1   : > { %v848_v28 = vpop.permute.xlu1 %847  ;;  %v846_v29 = vpop.permute.xlu0 %845 }
  0xa2   : > { %1452 = vrot.lane.b32.xlu1 %v3469_v3, %s3416_s27  ;;  %1443 = vrot.lane.b32.xlu0 %v3459_v0, %s3417_s28  ;;  %v854_v30 = vsel %vm853_vm4, %v846_v29, %v848_v28 }
  0xa5   : > { %v254_v31 = vpop.permute.xlu0 %253  ;;  %v3527_v32 = vpop.permute.xlu1 %255 }
  0xa6   : > { %1445 = vrot.lane.b32.xlu1 %v3461_v1, %s3417_s28  ;;  %1439 = vrot.lane.b32.xlu0 %v3465_v2, %s3417_s28  ;;  %v3572_v58 = vsel %vm277_vm6, %v254_v31, %v3527_v32 }
  0xa7   : > { %v3587_v1 = vand.u32 4294901760, %v3572_v58 }
  0xa9   : > { %v3608_v12 = vsub.f32 %v3572_v58, %v3587_v1 }
  0xaa   : > { %1441 = vrot.lane.b32.xlu1 %v3469_v3, %s3417_s28  ;;  %881 = vrot.lane.b32.xlu0 %v861_v20, %s3413_s26  ;;  %v371_v3 = vand.u32 4294901760, %v3568_v57 }
  0xab   : > { %v3639_v24 = vand.u32 4294901760, %v3608_v12 }
  0xac   : > { %v372_v14 = vsub.f32 %v3568_v57, %v371_v3 }
  0xad   : > { %v441_v36 = vsub.f32 %v3608_v12, %v3639_v24 }
  0xae   : > { %883 = vrot.lane.b32.xlu1 %v866_v25, %s3413_s26  ;;  %877 = vrot.lane.b32.xlu0 %v857_v22, %s3413_s26 }
  0xb2   : > { %879 = vrot.lane.b32.xlu1 %v865_v26, %s3413_s26  ;;  %873 = vrot.lane.b32.xlu0 %v855_v27, %s3413_s26 }
  0xb6   : > { %875 = vrot.lane.b32.xlu1 %v852_v23, %s3413_s26  ;;  %869 = vrot.lane.b32.xlu0 %v854_v30, %s3413_s26  ;;  %v373_v23 = vand.u32 4294901760, %v372_v14 }
  0xba   : > { %871 = vrot.lane.b32.xlu1 %v848_v28, %s3413_s26 }
  0xf4   : > { %v276_v33 = vpop.permute.xlu0 %275 }
  0xf5   : > { %v3529_v34 = vand.u32 4294901760, %v276_v33 }
  0xf7   : > { %v3532_v35 = vsub.f32 %v276_v33, %v3529_v34  ;;  %2927 = vmatpush3.msra.mxu0 %v3529_v34 }
  0xf8   : > { %v274_v37 = vpop.permute.xlu1 %273  ;;  %2928 = vmatprep.subr.mxu0 %v3414_v4  ;;  %v270_v38 = vpop.permute.xlu0 %269 }
  0xf9   : > { %v3539_v39 = vand.u32 4294901760, %v274_v37  ;;  %v398_v40 = vand.u32 4294901760, %v3532_v35 }
  0xfb   : > { %v3544_v42 = vsub.f32 %v274_v37, %v3539_v39  ;;  %2929 = vmatpush3.msra.mxu0 %v3539_v39  ;;  %v399_v43 = vsub.f32 %v3532_v35, %v398_v40 }
  0xfc   : > { %v272_v44 = vpop.permute.xlu1 %271  ;;  %2930 = vmatprep.subr.mxu0 %v3414_v4  ;;  %v266_v45 = vpop.permute.xlu0 %265 }
  0xfd   : > { %v405_v46 = vand.u32 4294901760, %v3544_v42  ;;  %v283_v47 = vsel %vm277_vm6, %v270_v38, %v272_v44  ;;  %v400_v48 = vand.u32 4294901760, %v399_v43  ;;  %v3678_v44 = vand.u32 4294901760, %v441_v36 }
  0xfe   : > { %v3555_v50 = vand.u32 4294901760, %v283_v47 }
  0xff   : > { %2946 = vmatpush3.msra.mxu1 %v400_v48  ;;  %v406_v51 = vsub.f32 %v3544_v42, %v405_v46 }
 0x100   : > { %v3561_v52 = vsub.f32 %v283_v47, %v3555_v50  ;;  %v268_v53 = vpop.permute.xlu1 %267  ;;  %2931 = vmatpush3.msra.mxu0 %v3555_v50  ;;  %2947 = vmatprep.subr.mxu1 %v3414_v4  ;;  %v262_v54 = vpop.permute.xlu0 %261 }
 0x101   : > { %v282_v55 = vsel %vm277_vm6, %v266_v45, %v268_v53  ;;  %2932 = vmatprep.subr.mxu0 %v3414_v4  ;;  %v407_v56 = vand.u32 4294901760, %v406_v51 }
 0x102   : > { %v3574_v59 = vand.u32 4294901760, %v282_v55  ;;  %v3577_v60 = vand.u32 4294901760, %v3561_v52 }
 0x103   : > { %2948 = vmatpush3.msra.mxu1 %v407_v56 }
 0x104   : > { %v3580_v61 = vsub.f32 %v282_v55, %v3574_v59  ;;  %v264_v62 = vpop.permute.xlu1 %263  ;;  %2933 = vmatpush3.msra.mxu0 %v3574_v59  ;;  %2949 = vmatprep.subr.mxu1 %v3414_v4  ;;  %v258_v63 = vpop.permute.xlu0 %257  ;;  %v413_v0 = vsub.f32 %v3561_v52, %v3577_v60 }
 0x105   : > { %v281_v2 = vsel %vm277_vm6, %v262_v54, %v264_v62  ;;  %2934 = vmatprep.subr.mxu0 %v3414_v4 }
 0x106   : > { %v3592_v5 = vand.u32 4294901760, %v281_v2  ;;  %v3594_v6 = vand.u32 4294901760, %v413_v0  ;;  %v3597_v7 = vand.u32 4294901760, %v3580_v61 }
 0x108   : > { %v3600_v8 = vsub.f32 %v281_v2, %v3592_v5  ;;  %v260_v9 = vpop.permute.xlu1 %259  ;;  %2935 = vmatpush3.msra.mxu0 %v3592_v5  ;;  %2950 = vmatpush3.msra.mxu1 %v3594_v6  ;;  %v420_v10 = vsub.f32 %v3580_v61, %v3597_v7  ;;  %v250_v11 = vpop.permute.xlu0 %249 }
 0x109   : > { %v280_v13 = vsel %vm277_vm6, %v258_v63, %v260_v9  ;;  %2936 = vmatprep.subr.mxu0 %v3414_v4  ;;  %2951 = vmatprep.subr.mxu1 %v3414_v4  ;;  %v2703_v9 = vld [vmem:[%s4303_s1 + $0x8] sm:$0xff] }
 0x10a   : > { %v3616_v15 = vand.u32 4294901760, %v280_v13  ;;  %v3618_v16 = vand.u32 4294901760, %v420_v10  ;;  %v3621_v17 = vand.u32 4294901760, %v3600_v8  ;;  %v894_v10 = vsel %vm292_vm5, %v2703_v9, 0 }
 0x10c   : > { %v3624_v18 = vsub.f32 %v280_v13, %v3616_v15  ;;  %v3626_v19 = vpop.permute.xlu1 %251  ;;  %2937 = vmatpush3.msra.mxu0 %v3616_v15  ;;  %2952 = vmatpush3.msra.mxu1 %v3618_v16  ;;  %v427_v20 = vsub.f32 %v3600_v8, %v3621_v17  ;;  %v1455_v21 = vpop.permute.xlu0 %1454 }
 0x10d   : > { %v3634_v22 = vsel %vm277_vm6, %v250_v11, %v3626_v19  ;;  %2938 = vmatprep.subr.mxu0 %v3414_v4  ;;  %2953 = vmatprep.subr.mxu1 %v3414_v4 }
 0x10e   : > { %v3642_v25 = vand.u32 4294901760, %v3634_v22  ;;  %2939 = vmatpush3.msra.mxu0 %v3587_v1  ;;  %v3645_v26 = vand.u32 4294901760, %v427_v20  ;;  %v3648_v27 = vand.u32 4294901760, %v3624_v18 }
 0x10f   : > { %2940 = vmatprep.subr.mxu0 %v3414_v4 }
 0x110   : > { %v3653_v28 = vsub.f32 %v3634_v22, %v3642_v25  ;;  %v1457_v29 = vpop.permute.xlu1 %1456  ;;  %2941 = vmatpush3.msra.mxu0 %v3642_v25  ;;  %2954 = vmatpush3.msra.mxu1 %v3645_v26  ;;  %v434_v30 = vsub.f32 %v3624_v18, %v3648_v27  ;;  %v1451_v31 = vpop.permute.xlu0 %1450 }
 0x111   : > { %1477 = vrot.lane.b32.xlu1 %v1457_v29, %s3413_s26  ;;  %2964 = vmatprep.subr.mxu0 %v3414_v4  ;;  %v1460_v33 = vsel %vm1458_vm7, %v1455_v21, %v1457_v29 }
 0x112   : > { %2943 = vmatmul.mubr.f32.vlgmr.msra.gmra.mxu0 %v373_v23  ;;  %1475 = vrot.lane.b32.xlu0 %v1460_v33, %s3413_s26  ;;  %v3665_v37 = vand.u32 4294901760, %v434_v30  ;;  %v3668_v38 = vand.u32 4294901760, %v3653_v28 }
 0x113   : > { %2965 = vmatpush3.msra.mxu0 %v3532_v35  ;;  %2955 = vmatprep.subr.mxu1 %v3414_v4 }
 0x114   : > { %2966 = vmatprep.subr.mxu0 %v3414_v4  ;;  %v1453_v41 = vpop.permute.xlu1 %1452  ;;  %2956 = vmatpush3.msra.mxu1 %v3665_v37  ;;  %v448_v43 = vsub.f32 %v3653_v28, %v3668_v38  ;;  %v1444_v48 = vpop.permute.xlu0 %1443 }
 0x115   : > { %2967 = vmatpush3.msra.mxu0 %v3544_v42  ;;  %1473 = vrot.lane.b32.xlu1 %v1453_v41, %s3413_s26  ;;  %v1459_v45 = vsel %vm1458_vm7, %v1451_v31, %v1453_v41 }
 0x116   : > { %2957 = vmatprep.subr.mxu1 %v3414_v4  ;;  %2968 = vmatprep.subr.mxu0 %v3414_v4  ;;  %v3683_v47 = vand.u32 4294901760, %v448_v43 }
 0x117   : > { %2958 = vmatpush3.msra.mxu1 %v3678_v44  ;;  %2969 = vmatpush3.msra.mxu0 %v3561_v52 }
 0x118   : > { %1471 = vrot.lane.b32.xlu0 %v1459_v45, %s3413_s26  ;;  %2959 = vmatprep.subr.mxu1 %v3414_v4  ;;  %v1446_v51 = vpop.permute.xlu1 %1445  ;;  %v1440_v55 = vpop.permute.xlu0 %1439 }
 0x119   : > { %2970 = vmatprep.subr.mxu0 %v3414_v4  ;;  %2960 = vmatpush3.msra.mxu1 %v3683_v47  ;;  %v1449_v53 = vsel %vm1447_vm8, %v1444_v48, %v1446_v51 }
 0x11a   : > { %2971 = vmatpush3.msra.mxu0 %v3580_v61  ;;  %1469 = vrot.lane.b32.xlu1 %v1446_v51, %s3413_s26 }
 0x11b   : > { %2972 = vmatprep.subr.mxu0 %v3414_v4  ;;  %2983 = vmatprep.subr.mxu1 %v3414_v4 }
 0x11c   : > { %2962 = vmatmul.mubr.f32.vlgmr.msra.gmra.mxu1 %v3553_v49  ;;  %2973 = vmatpush3.msra.mxu0 %v3600_v8  ;;  %v1442_v54 = vpop.permute.xlu1 %1441  ;;  %v882_v63 = vpop.permute.xlu0 %881 }
 0x11d   : > { %2984 = vmatpush3.msra.mxu1 %v3529_v34  ;;  %1467 = vrot.lane.b32.xlu0 %v1449_v53, %s3413_s26  ;;  %v1448_v56 = vsel %vm1447_vm8, %v1440_v55, %v1442_v54 }
 0x11e   : > { %2974 = vmatprep.subr.mxu0 %v3414_v4  ;;  %2985 = vmatprep.subr.mxu1 %v3414_v4 }
 0x11f   : > { %2975 = vmatpush3.msra.mxu0 %v3624_v18  ;;  %2986 = vmatpush3.msra.mxu1 %v3539_v39 }
 0x120   : > { %1465 = vrot.lane.b32.xlu1 %v1442_v54, %s3413_s26  ;;  %2976 = vmatprep.subr.mxu0 %v3414_v4  ;;  %v884_v62 = vpop.permute.xlu1 %883  ;;  %v878_v0 = vpop.permute.xlu0 %877 }
 0x121   : > { %2987 = vmatprep.subr.mxu1 %v3414_v4  ;;  %2977 = vmatpush3.msra.mxu0 %v3608_v12  ;;  %v888_v35 = vsel %vm277_vm6, %v882_v63, %v884_v62 }
 0x122   : > { %2988 = vmatpush3.msra.mxu1 %v3555_v50  ;;  %1463 = vrot.lane.b32.xlu0 %v1448_v56, %s3413_s26 }
 0x123   : > { %2978 = vmatprep.subr.mxu0 %v3414_v4  ;;  %2989 = vmatprep.subr.mxu1 %v3414_v4 }
 0x124   : > { %2979 = vmatpush3.msra.mxu0 %v3653_v28  ;;  %2990 = vmatpush3.msra.mxu1 %v3574_v59 }
 0x125   : > { %2041 = vrot.lane.b32.xlu1 %v3527_v32, %s3413_s26  ;;  %2980 = vmatprep.mubr.msk.f32.mxu0 %vm3415_vm2, %v3414_v4  ;;  %v880_v32 = vpop.permute.xlu1 %879 }
 0x126   : > { %2991 = vmatprep.subr.mxu1 %v3414_v4  ;;  %3002 = vmatprep.subr.mxu0 %v3414_v4 }
 0x127   : > { %2981 = vmatmul.mubr.f32.vlgmr.msra.gmra.mxu0 %v3568_v57  ;;  %2992 = vmatpush3.msra.mxu1 %v3592_v5 }
 0x128   : > { %3003 = vmatpush3.msra.mxu0 %v398_v40  ;;  %2039 = vrot.lane.b32.xlu0 %v3572_v58, %s3413_s26  ;;  %v887_v40 = vsel %vm277_vm6, %v878_v0, %v880_v32  ;;  %v3749_v58 = vand.u32 4294901760, %v888_v35 }
 0x129   : > { %2993 = vmatprep.subr.mxu1 %v3414_v4  ;;  %3004 = vmatprep.subr.mxu0 %v3414_v4  ;;  %v876_v42 = vpop.permute.xlu1 %875  ;;  %v3756_v2 = vand.u32 4294901760, %v887_v40 }
 0x12a   : > { %2994 = vmatpush3.msra.mxu1 %v3616_v15  ;;  %3005 = vmatpush3.msra.mxu0 %v405_v46  ;;  %v874_v46 = vpop.permute.xlu0 %873  ;;  %v3766_v57 = vsub.f32 %v888_v35, %v3749_v58 }
 0x12b   : > { %2037 = vrot.lane.b32.xlu1 %v3626_v19, %s3413_s26  ;;  %2995 = vmatprep.subr.mxu1 %v3414_v4  ;;  %v3774_v11 = vsub.f32 %v887_v40, %v3756_v2  ;;  %v3783_v19 = vand.u32 4294901760, %v894_v10 }
 0x12c   : > { %3006 = vmatprep.subr.mxu0 %v3414_v4  ;;  %2996 = vmatpush3.msra.mxu1 %v3587_v1  ;;  %v998_v13 = vand.u32 4294901760, %v3766_v57 }
 0x12d   : > { %3007 = vmatpush3.msra.mxu0 %v3577_v60  ;;  %2035 = vrot.lane.b32.xlu0 %v3634_v22, %s3413_s26  ;;  %v1005_v21 = vand.u32 4294901760, %v3774_v11  ;;  %v3803_v29 = vsub.f32 %v894_v10, %v3783_v19 }
 0x12e   : > { %2997 = vmatprep.subr.mxu1 %v3414_v4  ;;  %3008 = vmatprep.subr.mxu0 %v3414_v4  ;;  %v999_v23 = vsub.f32 %v3766_v57, %v998_v13 }
 0x12f   : > { %2998 = vmatpush3.msra.mxu1 %v3642_v25  ;;  %3009 = vmatpush3.msra.mxu0 %v3597_v7  ;;  %v1006_v31 = vsub.f32 %v3774_v11, %v1005_v21  ;;  %v971_v41 = vand.u32 4294901760, %v3803_v29 }
 0x130   : > { %2999 = vmatprep.mubr.msk.f32.mxu1 %vm3415_vm2, %v3414_v4  ;;  %3010 = vmatprep.subr.mxu0 %v3414_v4  ;;  %v1000_v36 = vand.u32 4294901760, %v999_v23 }
 0x131   : > { %3021 = vmatprep.subr.mxu1 %v3414_v4  ;;  %3000 = vmatmul.mubr.f32.vlgmr.msra.gmra.mxu1 %v371_v3  ;;  %v870_v3 = vpop.permute.xlu0 %869  ;;  %v1007_v45 = vand.u32 4294901760, %v1006_v31  ;;  %v972_v51 = vsub.f32 %v3803_v29, %v971_v41 }
 0x132   : > { %3011 = vmatpush3.msra.mxu0 %v3621_v17  ;;  %3022 = vmatpush3.msra.mxu1 %v3529_v34  ;;  %v872_v34 = vpop.permute.xlu1 %871 }
 0x133   : > { %3012 = vmatprep.subr.mxu0 %v3414_v4  ;;  %3023 = vmatprep.subr.mxu1 %v3414_v4  ;;  %v885_v14 = vsel %vm277_vm6, %v870_v3, %v872_v34  ;;  %v973_v54 = vand.u32 4294901760, %v972_v51 }
 0x134   : > { %3013 = vmatpush3.msra.mxu0 %v3648_v27  ;;  %3024 = vmatpush3.msra.mxu1 %v3539_v39  ;;  %v886_v39 = vsel %vm277_vm6, %v874_v46, %v876_v42  ;;  %v3795_v22 = vand.u32 4294901760, %v885_v14 }
 0x135   : > { %3014 = vmatprep.subr.mxu0 %v3414_v4  ;;  %3025 = vmatprep.subr.mxu1 %v3414_v4  ;;  %v3788_v20 = vand.u32 4294901760, %v886_v39 }
 0x136   : > { %3015 = vmatpush3.msra.mxu0 %v3639_v24  ;;  %3026 = vmatpush3.msra.mxu1 %v3555_v50  ;;  %v3818_v33 = vsub.f32 %v885_v14, %v3795_v22 }
 0x137   : > { %3016 = vmatprep.subr.mxu0 %v3414_v4  ;;  %3027 = vmatprep.subr.mxu1 %v3414_v4  ;;  %v3808_v30 = vsub.f32 %v886_v39, %v3788_v20 }
 0x138   : > { %3017 = vmatpush3.msra.mxu0 %v3668_v38  ;;  %3028 = vmatpush3.msra.mxu1 %v3574_v59  ;;  %v3832_v48 = vand.u32 4294901760, %v3818_v33 }
 0x139   : > { %3018 = vmatprep.mubr.msk.f32.mxu0 %vm3415_vm2, %v3414_v4  ;;  %3029 = vmatprep.subr.mxu1 %v3414_v4  ;;  %v3824_v43 = vand.u32 4294901760, %v3808_v30 }
 0x13a   : > { %3040 = vmatprep.subr.mxu0 %v3414_v4  ;;  %3019 = vmatmul.mubr.f32.vlgmr.msra.gmra.mxu0 %v3553_v49 }
 0x13b   : > { %3030 = vmatpush3.msra.mxu1 %v3592_v5  ;;  %3041 = vmatpush3.msra.mxu0 %v3749_v58  ;;  %v1027_v53 = vsub.f32 %v3808_v30, %v3824_v43 }
 0x13c   : > { %3031 = vmatprep.subr.mxu1 %v3414_v4  ;;  %3042 = vmatprep.subr.mxu0 %v3414_v4 }
 0x13d   : > { %3032 = vmatpush3.msra.mxu1 %v3616_v15  ;;  %3043 = vmatpush3.msra.mxu0 %v3756_v2  ;;  %v3853_v55 = vand.u32 4294901760, %v1027_v53 }
 0x13e   : > { %3033 = vmatprep.subr.mxu1 %v3414_v4  ;;  %3044 = vmatprep.subr.mxu0 %v3414_v4 }
 0x13f   : > { %3034 = vmatpush3.msra.mxu1 %v3587_v1  ;;  %3045 = vmatpush3.msra.mxu0 %v3555_v50 }
 0x140   : > { %3035 = vmatprep.subr.mxu1 %v3414_v4  ;;  %3046 = vmatprep.subr.mxu0 %v3414_v4 }
 0x141   : > { %3036 = vmatpush3.msra.mxu1 %v3642_v25  ;;  %3047 = vmatpush3.msra.mxu0 %v3574_v59 }
 0x142   : > { %3037 = vmatprep.mubr.msk.f32.mxu1 %vm3415_vm2, %v3414_v4  ;;  %3048 = vmatprep.subr.mxu0 %v3414_v4 }
 0x143   : > { %3059 = vmatprep.subr.mxu1 %v3414_v4  ;;  %3038 = vmatmul.mubr.f32.vlgmr.msra.gmra.mxu1 %v3553_v49  ;;  %v1034_v49 = vsub.f32 %v3818_v33, %v3832_v48 }
 0x144   : > { %3049 = vmatpush3.msra.mxu0 %v3788_v20  ;;  %3060 = vmatpush3.msra.mxu1 %v1000_v36 }
 0x145   : > { %3050 = vmatprep.subr.mxu0 %v3414_v4  ;;  %3061 = vmatprep.subr.mxu1 %v3414_v4  ;;  %v3860_v56 = vand.u32 4294901760, %v1034_v49 }
 0x146   : > { %3051 = vmatpush3.msra.mxu0 %v3795_v22  ;;  %3062 = vmatpush3.msra.mxu1 %v1007_v45 }
 0x147   : > { %3052 = vmatprep.subr.mxu0 %v3414_v4  ;;  %3063 = vmatprep.subr.mxu1 %v3414_v4 }
 0x148   : > { %3053 = vmatpush3.msra.mxu0 %v3587_v1  ;;  %3064 = vmatpush3.msra.mxu1 %v3594_v6 }
 0x149   : > { %3054 = vmatprep.subr.mxu0 %v3414_v4  ;;  %3065 = vmatprep.subr.mxu1 %v3414_v4 }
 0x14a   : > { %3055 = vmatpush3.msra.mxu0 %v3642_v25  ;;  %3066 = vmatpush3.msra.mxu1 %v3618_v16 }
 0x14b   : > { %3056 = vmatprep.mubr.msk.f32.mxu0 %vm3415_vm2, %v3414_v4  ;;  %3067 = vmatprep.subr.mxu1 %v3414_v4 }
 0x14c   : > { %3078 = vmatprep.subr.mxu0 %v3414_v4  ;;  %3057 = vmatmul.mubr.f32.vlgmr.msra.gmra.mxu0 %v973_v54 }
 0x14d   : > { %3068 = vmatpush3.msra.mxu1 %v3853_v55  ;;  %3079 = vmatpush3.msra.mxu0 %v3766_v57 }
 0x14e   : > { %3069 = vmatprep.subr.mxu1 %v3414_v4  ;;  %3080 = vmatprep.subr.mxu0 %v3414_v4 }
 0x14f   : > { %3070 = vmatpush3.msra.mxu1 %v3860_v56  ;;  %3081 = vmatpush3.msra.mxu0 %v3774_v11 }
 0x150   : > { %3071 = vmatprep.subr.mxu1 %v3414_v4  ;;  %3082 = vmatprep.subr.mxu0 %v3414_v4 }
 0x151   : > { %3072 = vmatpush3.msra.mxu1 %v3678_v44  ;;  %3083 = vmatpush3.msra.mxu0 %v3561_v52 }
 0x152   : > { %3073 = vmatprep.subr.mxu1 %v3414_v4  ;;  %3084 = vmatprep.subr.mxu0 %v3414_v4 }
 0x153   : > { %3074 = vmatpush3.msra.mxu1 %v3683_v47  ;;  %3085 = vmatpush3.msra.mxu0 %v3580_v61 }
 0x154   : > { %3075 = vmatprep.mubr.msk.f32.mxu1 %vm3415_vm2, %v3414_v4  ;;  %3086 = vmatprep.subr.mxu0 %v3414_v4 }
 0x155   : > { %3097 = vmatprep.subr.mxu1 %v3414_v4  ;;  %3076 = vmatmul.mubr.f32.vlgmr.msra.gmra.mxu1 %v3783_v19 }
 0x156   : > { %3087 = vmatpush3.msra.mxu0 %v3808_v30  ;;  %3098 = vmatpush3.msra.mxu1 %v3749_v58 }
 0x157   : > { %3088 = vmatprep.subr.mxu0 %v3414_v4  ;;  %3099 = vmatprep.subr.mxu1 %v3414_v4 }
 0x158   : > { %3089 = vmatpush3.msra.mxu0 %v3818_v33  ;;  %3100 = vmatpush3.msra.mxu1 %v3756_v2 }
 0x159   : > { %3090 = vmatprep.subr.mxu0 %v3414_v4  ;;  %3101 = vmatprep.subr.mxu1 %v3414_v4 }
 0x15a   : > { %3091 = vmatpush3.msra.mxu0 %v3608_v12  ;;  %3102 = vmatpush3.msra.mxu1 %v3555_v50 }
 0x15b   : > { %3092 = vmatprep.subr.mxu0 %v3414_v4  ;;  %3103 = vmatprep.subr.mxu1 %v3414_v4 }
 0x15c   : > { %3093 = vmatpush3.msra.mxu0 %v3653_v28  ;;  %3104 = vmatpush3.msra.mxu1 %v3574_v59 }
 0x15d   : > { %3094 = vmatprep.mubr.msk.f32.mxu0 %vm3415_vm2, %v3414_v4  ;;  %3105 = vmatprep.subr.mxu1 %v3414_v4 }
 0x15e   : > { %3116 = vmatprep.subr.mxu0 %v3414_v4  ;;  %3095 = vmatmul.mubr.f32.vlgmr.msra.gmra.mxu0 %v3803_v29 }
 0x15f   : > { %3106 = vmatpush3.msra.mxu1 %v3788_v20  ;;  %3117 = vmatpush3.msra.mxu0 %v998_v13 }
 0x160   : > { %3107 = vmatprep.subr.mxu1 %v3414_v4  ;;  %3118 = vmatprep.subr.mxu0 %v3414_v4 }
 0x161   : > { %3108 = vmatpush3.msra.mxu1 %v3795_v22  ;;  %3119 = vmatpush3.msra.mxu0 %v1005_v21 }
 0x162   : > { %3109 = vmatprep.subr.mxu1 %v3414_v4  ;;  %3120 = vmatprep.subr.mxu0 %v3414_v4 }
 0x163   : > { %3110 = vmatpush3.msra.mxu1 %v3587_v1  ;;  %3121 = vmatpush3.msra.mxu0 %v3577_v60 }
 0x164   : > { %3111 = vmatprep.subr.mxu1 %v3414_v4  ;;  %3122 = vmatprep.subr.mxu0 %v3414_v4 }
 0x165   : > { %3112 = vmatpush3.msra.mxu1 %v3642_v25  ;;  %3123 = vmatpush3.msra.mxu0 %v3597_v7  ;;  %v2704_v7 = vld [vmem:[%s4303_s1 + $0x10] sm:$0xff] }
 0x166   : > { %3113 = vmatprep.mubr.msk.f32.mxu1 %vm3415_vm2, %v3414_v4  ;;  %3124 = vmatprep.subr.mxu0 %v3414_v4  ;;  %v1488_v32 = vsel %vm292_vm5, %v2704_v7, 0 }
 0x167   : > { %3135 = vmatprep.subr.mxu1 %v3414_v4  ;;  %3114 = vmatmul.mubr.f32.vlgmr.msra.gmra.mxu1 %v971_v41 }
 0x168   : > { %3125 = vmatpush3.msra.mxu0 %v3824_v43  ;;  %3136 = vmatpush3.msra.mxu1 %v3749_v58  ;;  %v3980_v58 = vand.u32 4294901760, %v1488_v32 }
 0x169   : > { %3126 = vmatprep.subr.mxu0 %v3414_v4  ;;  %3137 = vmatprep.subr.mxu1 %v3414_v4 }
 0x16a   : > { %3127 = vmatpush3.msra.mxu0 %v3832_v48  ;;  %3138 = vmatpush3.msra.mxu1 %v3756_v2  ;;  %v3992_v11 = vsub.f32 %v1488_v32, %v3980_v58 }
 0x16b   : > { %3128 = vmatprep.subr.mxu0 %v3414_v4  ;;  %3139 = vmatprep.subr.mxu1 %v3414_v4 }
 0x16c   : > { %3129 = vmatpush3.msra.mxu0 %v3639_v24  ;;  %3140 = vmatpush3.msra.mxu1 %v3555_v50  ;;  %v1565_v29 = vand.u32 4294901760, %v3992_v11 }
 0x16d   : > { %3130 = vmatprep.subr.mxu0 %v3414_v4  ;;  %3141 = vmatprep.subr.mxu1 %v3414_v4 }
 0x16e   : > { %3131 = vmatpush3.msra.mxu0 %v3668_v38  ;;  %3142 = vmatpush3.msra.mxu1 %v3574_v59  ;;  %v1566_v51 = vsub.f32 %v3992_v11, %v1565_v29 }
 0x16f   : > { %3143 = vmatprep.subr.mxu1 %v3414_v4  ;;  %3132 = vmatprep.mubr.msk.f32.mxu0 %vm3415_vm2, %v3414_v4 }
 0x170   : > { %3144 = vmatpush3.msra.mxu1 %v3788_v20  ;;  %3133 = vmatmul.mubr.f32.vlgmr.msra.gmra.mxu0 %v3783_v19  ;;  %v1567_v54 = vand.u32 4294901760, %v1566_v51 }
 0x171   : > { %3145 = vmatprep.subr.mxu1 %v3414_v4  ;;  %3151 = vmatprep.mubr.msk.f32.mxu1 %vm3415_vm2, %v3414_v4 }
 0x172   : > { %3146 = vmatpush3.msra.mxu1 %v3795_v22  ;;  %3154 = vmatprep.subr.mxu0 %v3414_v4 }
 0x173   : > { %3147 = vmatprep.subr.mxu1 %v3414_v4  ;;  %3170 = vmatprep.mubr.msk.f32.mxu0 %vm3415_vm2, %v3414_v4 }
 0x174   : > { %3148 = vmatpush3.msra.mxu1 %v3587_v1 }
 0x175   : > { %3149 = vmatprep.subr.mxu1 %v3414_v4 }
 0x176   : > { %3150 = vmatpush3.msra.mxu1 %v3642_v25 }
 0x177   : > { %3152 = vmatmul.mubr.f32.vlgmr.msra.gmra.mxu1 %v3783_v19  ;;  %3173 = vmatprep.subr.mxu1 %v3414_v4 }
 0x178   : > { %3189 = vmatprep.mubr.msk.f32.mxu1 %vm3415_vm2, %v3414_v4 }
 0x183   : > { %v1478_v50 = vpop.permute.xlu1 %1477 }
 0x184   : > { %v1476_v52 = vpop.permute.xlu0 %1475 }
 0x185   : > { %v1482_v59 = vsel %vm277_vm6, %v1476_v52, %v1478_v50 }
 0x186   : > { %v3958_v60 = vand.u32 4294901760, %v1482_v59 }
 0x187   : > { %v1474_v61 = vpop.permute.xlu1 %1473 }
 0x188   : > { %v3961_v6 = vsub.f32 %v1482_v59, %v3958_v60  ;;  %3155 = vmatpush3.msra.mxu0 %v3958_v60 }
 0x189   : > { %3156 = vmatprep.subr.mxu0 %v3414_v4 }
 0x18a   : > { %v1592_v16 = vand.u32 4294901760, %v3961_v6  ;;  %v1472_v62 = vpop.permute.xlu0 %1471 }
 0x18b   : > { %v1481_v63 = vsel %vm277_vm6, %v1472_v62, %v1474_v61  ;;  %v2705_v61 = vld [vmem:[%s4303_s1 + $0x18] sm:$0xff] }
 0x18c   : > { %v1593_v0 = vsub.f32 %v3961_v6, %v1592_v16  ;;  %v3974_v35 = vand.u32 4294901760, %v1481_v63  ;;  %v1470_v40 = vpop.permute.xlu1 %1469 }
 0x18e   : > { %v3977_v42 = vsub.f32 %v1481_v63, %v3974_v35  ;;  %3157 = vmatpush3.msra.mxu0 %v3974_v35  ;;  %v1594_v46 = vand.u32 4294901760, %v1593_v0 }
 0x18f   : > { %v1468_v2 = vpop.permute.xlu0 %1467  ;;  %3158 = vmatprep.subr.mxu0 %v3414_v4 }
 0x190   : > { %v1599_v9 = vand.u32 4294901760, %v3977_v42  ;;  %v1480_v57 = vsel %vm277_vm6, %v1468_v2, %v1470_v40  ;;  %3174 = vmatpush3.msra.mxu1 %v1594_v46 }
 0x191   : > { %v3985_v34 = vand.u32 4294901760, %v1480_v57  ;;  %3175 = vmatprep.subr.mxu1 %v3414_v4 }
 0x192   : > { %v1600_v3 = vsub.f32 %v3977_v42, %v1599_v9  ;;  %v1466_v10 = vpop.permute.xlu1 %1465 }
 0x193   : > { %v3995_v39 = vsub.f32 %v1480_v57, %v3985_v34  ;;  %3159 = vmatpush3.msra.mxu0 %v3985_v34 }
 0x194   : > { %v1464_v13 = vpop.permute.xlu0 %1463  ;;  %3160 = vmatprep.subr.mxu0 %v3414_v4  ;;  %v1601_v14 = vand.u32 4294901760, %v1600_v3 }
 0x195   : > { %v4000_v19 = vand.u32 4294901760, %v3995_v39  ;;  %v1479_v21 = vsel %vm277_vm6, %v1464_v13, %v1466_v10 }
 0x196   : > { %v4003_v23 = vand.u32 4294901760, %v1479_v21  ;;  %3176 = vmatpush3.msra.mxu1 %v1601_v14 }
 0x197   : > { %3177 = vmatprep.subr.mxu1 %v3414_v4  ;;  %v1607_v31 = vsub.f32 %v3995_v39, %v4000_v19 }
 0x198   : > { %v4010_v36 = vsub.f32 %v1479_v21, %v4003_v23  ;;  %3161 = vmatpush3.msra.mxu0 %v4003_v23 }
 0x199   : > { %3162 = vmatprep.subr.mxu0 %v3414_v4  ;;  %v4014_v41 = vand.u32 4294901760, %v1607_v31 }
 0x19a   : > { %v4017_v45 = vand.u32 4294901760, %v4010_v36  ;;  %3163 = vmatpush3.msra.mxu0 %v3592_v5 }
 0x19b   : > { %3164 = vmatprep.subr.mxu0 %v3414_v4  ;;  %3178 = vmatpush3.msra.mxu1 %v4014_v41 }
 0x19c   : > { %3165 = vmatpush3.msra.mxu0 %v3616_v15  ;;  %3179 = vmatprep.subr.mxu1 %v3414_v4  ;;  %v1614_v53 = vsub.f32 %v4010_v36, %v4017_v45 }
 0x19d   : > { %3166 = vmatprep.subr.mxu0 %v3414_v4 }
 0x19e   : > { %3167 = vmatpush3.msra.mxu0 %v3587_v1  ;;  %v4031_v49 = vand.u32 4294901760, %v1614_v53 }
 0x19f   : > { %3168 = vmatprep.subr.mxu0 %v3414_v4 }
 0x1a0   : > { %3169 = vmatpush3.msra.mxu0 %v3642_v25  ;;  %3180 = vmatpush3.msra.mxu1 %v4031_v49 }
 0x1a1   : > { %3181 = vmatprep.subr.mxu1 %v3414_v4  ;;  %3192 = vmatprep.subr.mxu0 %v3414_v4 }
 0x1a2   : > { %3171 = vmatmul.mubr.f32.vlgmr.msra.gmra.mxu0 %v1567_v54  ;;  %3182 = vmatpush3.msra.mxu1 %v3645_v26 }
 0x1a3   : > { %3193 = vmatpush3.msra.mxu0 %v3961_v6  ;;  %3183 = vmatprep.subr.mxu1 %v3414_v4 }
 0x1a4   : > { %3194 = vmatprep.subr.mxu0 %v3414_v4  ;;  %3184 = vmatpush3.msra.mxu1 %v3665_v37 }
 0x1a5   : > { %3195 = vmatpush3.msra.mxu0 %v3977_v42  ;;  %3185 = vmatprep.subr.mxu1 %v3414_v4 }
 0x1a6   : > { %3196 = vmatprep.subr.mxu0 %v3414_v4  ;;  %3186 = vmatpush3.msra.mxu1 %v3678_v44 }
 0x1a7   : > { %3197 = vmatpush3.msra.mxu0 %v3995_v39  ;;  %3187 = vmatprep.subr.mxu1 %v3414_v4 }
 0x1a8   : > { %3198 = vmatprep.subr.mxu0 %v3414_v4  ;;  %3188 = vmatpush3.msra.mxu1 %v3683_v47 }
 0x1a9   : > { %3199 = vmatpush3.msra.mxu0 %v4010_v36  ;;  %3190 = vmatmul.mubr.f32.vlgmr.msra.gmra.mxu1 %v3980_v58 }
 0x1aa   : > { %3200 = vmatprep.subr.mxu0 %v3414_v4  ;;  %3211 = vmatprep.subr.mxu1 %v3414_v4 }
 0x1ab   : > { %3201 = vmatpush3.msra.mxu0 %v3600_v8  ;;  %3212 = vmatpush3.msra.mxu1 %v3958_v60  ;;  %v2042_v8 = vpop.permute.xlu1 %2041 }
 0x1ac   : > { %3202 = vmatprep.subr.mxu0 %v3414_v4  ;;  %3213 = vmatprep.subr.mxu1 %v3414_v4 }
 0x1ad   : > { %3203 = vmatpush3.msra.mxu0 %v3624_v18  ;;  %3214 = vmatpush3.msra.mxu1 %v3974_v35  ;;  %v2040_v18 = vpop.permute.xlu0 %2039 }
 0x1ae   : > { %3204 = vmatprep.subr.mxu0 %v3414_v4  ;;  %3215 = vmatprep.subr.mxu1 %v3414_v4  ;;  %v2044_v50 = vsel %vm277_vm6, %v2040_v18, %v2042_v8 }
 0x1af   : > { %3205 = vmatpush3.msra.mxu0 %v3608_v12  ;;  %3216 = vmatpush3.msra.mxu1 %v3985_v34  ;;  %v2038_v26 = vpop.permute.xlu1 %2037  ;;  %v4098_v59 = vand.u32 4294901760, %v2044_v50 }
 0x1b0   : > { %3206 = vmatprep.subr.mxu0 %v3414_v4  ;;  %3217 = vmatprep.subr.mxu1 %v3414_v4 }
 0x1b1   : > { %3207 = vmatpush3.msra.mxu0 %v3653_v28  ;;  %3208 = vmatprep.mubr.msk.f32.mxu0 %vm3415_vm2, %v3414_v4  ;;  %v2036_v37 = vpop.permute.xlu0 %2035 }
 0x1b2   : > { %3218 = vmatpush3.msra.mxu1 %v4003_v23  ;;  %3209 = vmatmul.mubr.f32.vlgmr.msra.gmra.mxu0 %v3992_v11  ;;  %v2043_v52 = vsel %vm277_vm6, %v2036_v37, %v2038_v26 }
 0x1b3   : > { %3219 = vmatprep.subr.mxu1 %v3414_v4  ;;  %3230 = vmatprep.subr.mxu0 %v3414_v4  ;;  %v4107_v6 = vand.u32 4294901760, %v2043_v52 }
 0x1b4   : > { %3220 = vmatpush3.msra.mxu1 %v3592_v5  ;;  %3231 = vmatpush3.msra.mxu0 %v1592_v16 }
 0x1b5   : > { %3221 = vmatprep.subr.mxu1 %v3414_v4  ;;  %3232 = vmatprep.subr.mxu0 %v3414_v4 }
 0x1b6   : > { %3222 = vmatpush3.msra.mxu1 %v3616_v15  ;;  %3233 = vmatpush3.msra.mxu0 %v1599_v9 }
 0x1b7   : > { %3223 = vmatprep.subr.mxu1 %v3414_v4  ;;  %3234 = vmatprep.subr.mxu0 %v3414_v4 }
 0x1b8   : > { %3224 = vmatpush3.msra.mxu1 %v3587_v1  ;;  %3235 = vmatpush3.msra.mxu0 %v4000_v19 }
 0x1b9   : > { %3225 = vmatprep.subr.mxu1 %v3414_v4  ;;  %3236 = vmatprep.subr.mxu0 %v3414_v4 }
 0x1ba   : > { %3226 = vmatpush3.msra.mxu1 %v3642_v25  ;;  %3227 = vmatprep.mubr.msk.f32.mxu1 %vm3415_vm2, %v3414_v4 }
 0x1bb   : > { %3237 = vmatpush3.msra.mxu0 %v4017_v45  ;;  %3228 = vmatmul.mubr.f32.vlgmr.msra.gmra.mxu1 %v1565_v29 }
 0x1bc   : > { %3238 = vmatprep.subr.mxu0 %v3414_v4  ;;  %3249 = vmatprep.subr.mxu1 %v3414_v4 }
 0x1bd   : > { %3239 = vmatpush3.msra.mxu0 %v3621_v17  ;;  %3250 = vmatpush3.msra.mxu1 %v3958_v60  ;;  %v2048_v17 = vsel %vm292_vm5, %v2705_v61, 0  ;;  %v4115_v60 = vsub.f32 %v2044_v50, %v4098_v59 }
 0x1be   : > { %3240 = vmatprep.subr.mxu0 %v3414_v4  ;;  %3251 = vmatprep.subr.mxu1 %v3414_v4  ;;  %v4127_v7 = vand.u32 4294901760, %v2048_v17 }
 0x1bf   : > { %3241 = vmatpush3.msra.mxu0 %v3648_v27  ;;  %3252 = vmatpush3.msra.mxu1 %v3974_v35  ;;  %v4122_v27 = vsub.f32 %v2043_v52, %v4107_v6  ;;  %v2152_v16 = vand.u32 4294901760, %v4115_v60 }
 0x1c0   : > { %3242 = vmatprep.subr.mxu0 %v3414_v4  ;;  %3253 = vmatprep.subr.mxu1 %v3414_v4  ;;  %v4140_v63 = vsub.f32 %v2048_v17, %v4127_v7 }
 0x1c1   : > { %3243 = vmatpush3.msra.mxu0 %v3639_v24  ;;  %3254 = vmatpush3.msra.mxu1 %v3985_v34  ;;  %v2159_v62 = vand.u32 4294901760, %v4122_v27  ;;  %v2153_v32 = vsub.f32 %v4115_v60, %v2152_v16 }
 0x1c2   : > { %3244 = vmatprep.subr.mxu0 %v3414_v4  ;;  %3255 = vmatprep.subr.mxu1 %v3414_v4 }
 0x1c3   : > { %3245 = vmatpush3.msra.mxu0 %v3668_v38  ;;  %3246 = vmatprep.mubr.msk.f32.mxu0 %vm3415_vm2, %v3414_v4  ;;  %v2154_v0 = vand.u32 4294901760, %v2153_v32 }
 0x1c4   : > { %3256 = vmatpush3.msra.mxu1 %v4003_v23  ;;  %3247 = vmatmul.mubr.f32.vlgmr.msra.gmra.mxu0 %v3980_v58 }
 0x1c5   : > { %3257 = vmatprep.subr.mxu1 %v3414_v4  ;;  %3268 = vmatprep.subr.mxu0 %v3414_v4 }
 0x1c6   : > { %3258 = vmatpush3.msra.mxu1 %v3592_v5  ;;  %3269 = vmatpush3.msra.mxu0 %v4098_v59  ;;  %v2160_v5 = vsub.f32 %v4122_v27, %v2159_v62 }
 0x1c7   : > { %3259 = vmatprep.subr.mxu1 %v3414_v4  ;;  %3270 = vmatprep.subr.mxu0 %v3414_v4 }
 0x1c8   : > { %3260 = vmatpush3.msra.mxu1 %v3616_v15  ;;  %3271 = vmatpush3.msra.mxu0 %v4107_v6  ;;  %v2125_v15 = vand.u32 4294901760, %v4140_v63  ;;  %v2161_v35 = vand.u32 4294901760, %v2160_v5 }
 0x1c9   : > { %3261 = vmatprep.subr.mxu1 %v3414_v4  ;;  %3272 = vmatprep.subr.mxu0 %v3414_v4 }
 0x1ca   : > { %3262 = vmatpush3.msra.mxu1 %v3587_v1  ;;  %3273 = vmatpush3.msra.mxu0 %v3985_v34  ;;  %v2126_v40 = vsub.f32 %v4140_v63, %v2125_v15 }
 0x1cb   : > { %3263 = vmatprep.subr.mxu1 %v3414_v4  ;;  %3274 = vmatprep.subr.mxu0 %v3414_v4 }
 0x1cc   : > { %3264 = vmatpush3.msra.mxu1 %v3642_v25  ;;  %3265 = vmatprep.mubr.msk.f32.mxu1 %vm3415_vm2, %v3414_v4  ;;  %v2127_v46 = vand.u32 4294901760, %v2126_v40 }
 0x1cd   : > { %3275 = vmatpush3.msra.mxu0 %v4003_v23  ;;  %3266 = vmatmul.mubr.f32.vlgmr.msra.gmra.mxu1 %v3980_v58 }
 0x1ce   : > { %3276 = vmatprep.subr.mxu0 %v3414_v4  ;;  %3287 = vmatprep.subr.mxu1 %v3414_v4 }
 0x1cf   : > { %3277 = vmatpush3.msra.mxu0 %v3788_v20  ;;  %3288 = vmatpush3.msra.mxu1 %v2154_v0 }
 0x1d0   : > { %3278 = vmatprep.subr.mxu0 %v3414_v4  ;;  %3289 = vmatprep.subr.mxu1 %v3414_v4 }
 0x1d1   : > { %3279 = vmatpush3.msra.mxu0 %v3795_v22  ;;  %3290 = vmatpush3.msra.mxu1 %v2161_v35 }
 0x1d2   : > { %3280 = vmatprep.subr.mxu0 %v3414_v4  ;;  %3291 = vmatprep.subr.mxu1 %v3414_v4  ;;  %v4173_v42 = vpop.f32.mrf.mxu0 }
 0x1d3   : > { %3281 = vmatpush3.msra.mxu0 %v3587_v1  ;;  %3292 = vmatpush3.msra.mxu1 %v4014_v41 }
 0x1d4   : > { %3282 = vmatprep.subr.mxu0 %v3414_v4  ;;  %3293 = vmatprep.subr.mxu1 %v3414_v4  ;;  %v2944_v58 = vpop.f32.mrf.mxu0 }
 0x1d5   : > { %3283 = vmatpush3.msra.mxu0 %v3642_v25  ;;  %3294 = vmatpush3.msra.mxu1 %v4031_v49 }
 0x1d6   : > { %3284 = vmatprep.mubr.msk.f32.mxu0 %vm3415_vm2, %v3414_v4  ;;  %3295 = vmatprep.subr.mxu1 %v3414_v4 }
 0x1d7   : > { %3306 = vmatprep.subr.mxu0 %v3414_v4  ;;  %3285 = vmatmul.mubr.f32.vlgmr.msra.gmra.mxu0 %v2127_v46 }
 0x1d8   : > { %3296 = vmatpush3.msra.mxu1 %v3853_v55  ;;  %3307 = vmatpush3.msra.mxu0 %v4115_v60 }
 0x1d9   : > { %3297 = vmatprep.subr.mxu1 %v3414_v4  ;;  %3308 = vmatprep.subr.mxu0 %v3414_v4 }
 0x1da   : > { %3298 = vmatpush3.msra.mxu1 %v3860_v56  ;;  %3309 = vmatpush3.msra.mxu0 %v4122_v27 }
 0x1db   : > { %3299 = vmatprep.subr.mxu1 %v3414_v4  ;;  %3310 = vmatprep.subr.mxu0 %v3414_v4 }
 0x1dc   : > { %3300 = vmatpush3.msra.mxu1 %v3678_v44  ;;  %3311 = vmatpush3.msra.mxu0 %v3995_v39  ;;  %v486_v2 = vpop.f32.mrf.mxu1 }
 0x1dd   : > { %3301 = vmatprep.subr.mxu1 %v3414_v4  ;;  %3312 = vmatprep.subr.mxu0 %v3414_v4 }
 0x1de   : > { %3302 = vmatpush3.msra.mxu1 %v3683_v47  ;;  %3303 = vmatprep.mubr.msk.f32.mxu1 %vm3415_vm2, %v3414_v4  ;;  %v2963_v55 = vpop.f32.mrf.mxu1 }
 0x1df   : > { %3313 = vmatpush3.msra.mxu0 %v4010_v36  ;;  %3304 = vmatmul.mubr.f32.vlgmr.msra.gmra.mxu1 %v4127_v7 }
 0x1e0   : > { %3314 = vmatprep.subr.mxu0 %v3414_v4  ;;  %3325 = vmatprep.subr.mxu1 %v3414_v4 }
 0x1e1   : > { %3315 = vmatpush3.msra.mxu0 %v3808_v30  ;;  %3326 = vmatpush3.msra.mxu1 %v4098_v59  ;;  %v487_v30 = vadd.f32 %v486_v2, %v4173_v42 }
 0x1e2   : > { %3316 = vmatprep.subr.mxu0 %v3414_v4  ;;  %3327 = vmatprep.subr.mxu1 %v3414_v4 }
 0x1e3   : > { %3317 = vmatpush3.msra.mxu0 %v3818_v33  ;;  %3328 = vmatpush3.msra.mxu1 %v4107_v6 }
 0x1e4   : > { %3318 = vmatprep.subr.mxu0 %v3414_v4  ;;  %3329 = vmatprep.subr.mxu1 %v3414_v4 }
 0x1e5   : > { %3319 = vmatpush3.msra.mxu0 %v3608_v12  ;;  %3330 = vmatpush3.msra.mxu1 %v3985_v34 }
 0x1e6   : > { %3320 = vmatprep.subr.mxu0 %v3414_v4  ;;  %3331 = vmatprep.subr.mxu1 %v3414_v4 }
 0x1e7   : > { %3321 = vmatpush3.msra.mxu0 %v3653_v28  ;;  %3322 = vmatprep.mubr.msk.f32.mxu0 %vm3415_vm2, %v3414_v4  ;;  %v574_v44 = vpop.f32.mrf.mxu0 }
 0x1e8   : > { %3332 = vmatpush3.msra.mxu1 %v4003_v23  ;;  %3323 = vmatmul.mubr.f32.vlgmr.msra.gmra.mxu0 %v4140_v63  ;;  %v575_v33 = vadd.f32 %v574_v44, %v487_v30 }
 0x1e9   : > { %3333 = vmatprep.subr.mxu1 %v3414_v4  ;;  %3344 = vmatprep.subr.mxu0 %v3414_v4  ;;  %v2982_v12 = vpop.f32.mrf.mxu0 }
 0x1ea   : > { %3334 = vmatpush3.msra.mxu1 %v3788_v20  ;;  %3345 = vmatpush3.msra.mxu0 %v2152_v16 }
 0x1eb   : > { %3335 = vmatprep.subr.mxu1 %v3414_v4  ;;  %3346 = vmatprep.subr.mxu0 %v3414_v4 }
 0x1ec   : > { %3336 = vmatpush3.msra.mxu1 %v3795_v22  ;;  %3347 = vmatpush3.msra.mxu0 %v2159_v62 }
 0x1ed   : > { %3337 = vmatprep.subr.mxu1 %v3414_v4  ;;  %3348 = vmatprep.subr.mxu0 %v3414_v4 }
 0x1ee   : > { %3338 = vmatpush3.msra.mxu1 %v3587_v1  ;;  %3349 = vmatpush3.msra.mxu0 %v4000_v19 }
 0x1ef   : > { %3339 = vmatprep.subr.mxu1 %v3414_v4  ;;  %3350 = vmatprep.subr.mxu0 %v3414_v4 }
 0x1f0   : > { %3340 = vmatpush3.msra.mxu1 %v3642_v25  ;;  %3341 = vmatprep.mubr.msk.f32.mxu1 %vm3415_vm2, %v3414_v4 }
 0x1f1   : > { %3351 = vmatpush3.msra.mxu0 %v4017_v45  ;;  %3342 = vmatmul.mubr.f32.vlgmr.msra.gmra.mxu1 %v2125_v15  ;;  %v655_v28 = vpop.f32.mrf.mxu1 }
 0x1f2   : > { %3352 = vmatprep.subr.mxu0 %v3414_v4  ;;  %3363 = vmatprep.subr.mxu1 %v3414_v4 }
 0x1f3   : > { %3353 = vmatpush3.msra.mxu0 %v3824_v43  ;;  %3364 = vmatpush3.msra.mxu1 %v4098_v59  ;;  %v3001_v47 = vpop.f32.mrf.mxu1 }
 0x1f4   : > { %3354 = vmatprep.subr.mxu0 %v3414_v4  ;;  %3365 = vmatprep.subr.mxu1 %v3414_v4 }
 0x1f5   : > { %3355 = vmatpush3.msra.mxu0 %v3832_v48  ;;  %3366 = vmatpush3.msra.mxu1 %v4107_v6 }
 0x1f6   : > { %3356 = vmatprep.subr.mxu0 %v3414_v4  ;;  %3367 = vmatprep.subr.mxu1 %v3414_v4 }
 0x1f7   : > { %3357 = vmatpush3.msra.mxu0 %v3639_v24  ;;  %3368 = vmatpush3.msra.mxu1 %v3985_v34  ;;  %v656_v24 = vadd.f32 %v655_v28, %v575_v33 }
 0x1f8   : > { %3358 = vmatprep.subr.mxu0 %v3414_v4  ;;  %3369 = vmatprep.subr.mxu1 %v3414_v4 }
 0x1f9   : > { %3359 = vmatpush3.msra.mxu0 %v3668_v38  ;;  %3360 = vmatprep.mubr.msk.f32.mxu0 %vm3415_vm2, %v3414_v4 }
 0x1fa   : > { %3370 = vmatpush3.msra.mxu1 %v4003_v23  ;;  %3361 = vmatmul.mubr.f32.vlgmr.msra.gmra.mxu0 %v4127_v7  ;;  %v750_v43 = vpop.f32.mrf.mxu0 }
 0x1fb   : > { %3371 = vmatprep.subr.mxu1 %v3414_v4  ;;  %3379 = vmatprep.mubr.msk.f32.mxu1 %vm3415_vm2, %v3414_v4  ;;  %v751_v38 = vadd.f32 %v750_v43, %v656_v24 }
 0x1fc   : > { %3372 = vmatpush3.msra.mxu1 %v3788_v20  ;;  %v3020_v48 = vpop.f32.mrf.mxu0 }
 0x1fd   : > { %3373 = vmatprep.subr.mxu1 %v3414_v4 }
 0x1fe   : > { %3374 = vmatpush3.msra.mxu1 %v3795_v22  ;;  %v4284_v22 = vld [vmem:[%s4304_s2] ss:$0 sm:$0xff] }
 0x1ff   : > { %3375 = vmatprep.subr.mxu1 %v3414_v4 }
 0x200   : > { %3376 = vmatpush3.msra.mxu1 %v3587_v1 }
 0x201   : > { %3377 = vmatprep.subr.mxu1 %v3414_v4 }
 0x202   : > { %3378 = vmatpush3.msra.mxu1 %v3642_v25 }
 0x203   : > { %3380 = vmatmul.mubr.f32.vlgmr.msra.gmra.mxu1 %v4127_v7  ;;  %v829_v20 = vpop.f32.mrf.mxu1 }
 0x204   : > { %v830_v1 = vadd.f32 %v829_v20, %v751_v38 }
 0x205   : > { %v3039_v56 = vpop.f32.mrf.mxu1 }
 0x206   : > { %2593 = vst [vmem:[%s4279_s13] sm:$0xff] %v830_v1  ;;  %v839_v4 = vmul.f32 %v4284_v22, %v830_v1 }
 0x208   : > { %v842_v25 = vmul.f32 %v839_v4, %v830_v1  ;;  %840 = vadd.xlane.f32.xlu0 %v839_v4 }
 0x20a   : > { %843 = vadd.xlane.f32.xlu1 %v842_v25 }
 0x20c   : > { %v975_v9 = vpop.f32.mrf.mxu0 }
 0x20e   : > { %v3058_v57 = vpop.f32.mrf.mxu0 }
 0x215   : > { %v1086_v34 = vpop.f32.mrf.mxu1 }
 0x216   : > { %v1087_v13 = vadd.f32 %v1086_v34, %v975_v9 }
 0x217   : > { %v3077_v3 = vpop.f32.mrf.mxu1 }
 0x21e   : > { %v1174_v10 = vpop.f32.mrf.mxu0 }
 0x21f   : > { %v1175_v19 = vadd.f32 %v1174_v10, %v1087_v13 }
 0x220   : > { %v3096_v11 = vpop.f32.mrf.mxu0 }
 0x227   : > { %v1255_v39 = vpop.f32.mrf.mxu1 }
 0x228   : > { %v1256_v21 = vadd.f32 %v1255_v39, %v1175_v19 }
 0x229   : > { %v3115_v14 = vpop.f32.mrf.mxu1 }
 0x230   : > { %v1350_v23 = vpop.f32.mrf.mxu0 }
 0x231   : > { %v1351_v31 = vadd.f32 %v1350_v23, %v1256_v21 }
 0x232   : > { %v3134_v29 = vpop.f32.mrf.mxu0 }
 0x237   : > { %v1429_v36 = vpop.f32.mrf.mxu1 }
 0x238   : > { %v1430_v41 = vadd.f32 %v1429_v36, %v1351_v31 }
 0x239   : > { %v3153_v45 = vpop.f32.mrf.mxu1 }
 0x23a   : > { %2594 = vst [vmem:[%s4279_s13 + $0x8] sm:$0xff] %v1430_v41  ;;  %v1433_v51 = vmul.f32 %v4284_v22, %v1430_v41 }
 0x23c   : > { %1434 = vadd.xlane.f32.xlu0 %v1433_v51  ;;  %v1436_v53 = vmul.f32 %v1433_v51, %v1430_v41 }
 0x240   : > { %1437 = vadd.xlane.f32.xlu0 %v1436_v53 }
 0x262   : > { %v1569_v49 = vpop.f32.mrf.mxu0 }
 0x264   : > { %v3172_v54 = vpop.f32.mrf.mxu0 }
 0x269   : > { %v1680_v8 = vpop.f32.mrf.mxu1 }
 0x26a   : > { %v1681_v61 = vadd.f32 %v1680_v8, %v1569_v49 }
 0x26b   : > { %v3191_v18 = vpop.f32.mrf.mxu1 }
 0x272   : > { %v1768_v26 = vpop.f32.mrf.mxu0 }
 0x273   : > { %v1769_v17 = vadd.f32 %v1768_v26, %v1681_v61 }
 0x274   : > { %v3210_v37 = vpop.f32.mrf.mxu0 }
 0x27b   : > { %v1849_v50 = vpop.f32.mrf.mxu1 }
 0x27c   : > { %v1850_v60 = vadd.f32 %v1849_v50, %v1769_v17 }
 0x27d   : > { %v3229_v52 = vpop.f32.mrf.mxu1 }
 0x284   : > { %v1944_v59 = vpop.f32.mrf.mxu0 }
 0x285   : > { %v1945_v27 = vadd.f32 %v1944_v59, %v1850_v60 }
 0x286   : > { %v3248_v6 = vpop.f32.mrf.mxu0 }
 0x28d   : > { %v2023_v7 = vpop.f32.mrf.mxu1 }
 0x28e   : > { %v2024_v16 = vadd.f32 %v2023_v7, %v1945_v27 }
 0x28f   : > { %v3267_v62 = vpop.f32.mrf.mxu1 }
 0x290   : > { %2595 = vst [vmem:[%s4279_s13 + $0x10] sm:$0xff] %v2024_v16  ;;  %v2027_v63 = vmul.f32 %v4284_v22, %v2024_v16 }
 0x291   : > { %v841_v38 = vpop.xlane.xlu0 %840 }
 0x292   : > { %2028 = vadd.xlane.f32.xlu1 %v2027_v63  ;;  %v2030_v32 = vmul.f32 %v2027_v63, %v2024_v16 }
 0x293   : > { %v844_v1 = vpop.xlane.xlu1 %843 }
 0x294   : > { %2031 = vadd.xlane.f32.xlu0 %v2030_v32 }
 0x297   : > { %v2129_v5 = vpop.f32.mrf.mxu0 }
 0x299   : > { %v3286_v15 = vpop.f32.mrf.mxu0 }
 0x29f   : > { %v2240_v0 = vpop.f32.mrf.mxu1 }
 0x2a0   : > { %v2241_v55 = vadd.f32 %v2240_v0, %v2129_v5 }
 0x2a1   : > { %v3305_v35 = vpop.f32.mrf.mxu1 }
 0x2a8   : > { %v2328_v40 = vpop.f32.mrf.mxu0 }
 0x2a9   : > { %v2329_v12 = vadd.f32 %v2328_v40, %v2241_v55 }
 0x2aa   : > { %v3324_v42 = vpop.f32.mrf.mxu0 }
 0x2b1   : > { %v2409_v46 = vpop.f32.mrf.mxu1 }
 0x2b2   : > { %v2410_v28 = vadd.f32 %v2409_v46, %v2329_v12 }
 0x2b3   : > { %v3343_v58 = vpop.f32.mrf.mxu1 }
 0x2ba   : > { %v2504_v2 = vpop.f32.mrf.mxu0 }
 0x2bb   : > { %v2505_v47 = vadd.f32 %v2504_v2, %v2410_v28 }
 0x2bc   : > { %v3362_v44 = vpop.f32.mrf.mxu0 }
 0x2c3   : > { %v2583_v30 = vpop.f32.mrf.mxu1 }
 0x2c4   : > { %v2584_v33 = vadd.f32 %v2583_v30, %v2505_v47 }
 0x2c5   : > { %v3381_v43 = vpop.f32.mrf.mxu1  ;;  %v1435_v20 = vpop.xlane.xlu0 %1434 }
 0x2c6   : > { %2596 = vst [vmem:[%s4279_s13 + $0x18] sm:$0xff] %v2584_v33  ;;  %v2587_v24 = vmul.f32 %v4284_v22, %v2584_v33  ;;  %v2597_v3 = vadd.f32 %v1435_v20, %v841_v38 }
 0x2c8   : > { %2588 = vadd.xlane.f32.xlu1 %v2587_v24  ;;  %v2590_v48 = vmul.f32 %v2587_v24, %v2584_v33 }
 0x2c9   : > { %v1438_v56 = vpop.xlane.xlu0 %1437 }
 0x2ca   : > { %2591 = vadd.xlane.f32.xlu0 %v2590_v48  ;;  %v2600_v10 = vadd.f32 %v1438_v56, %v844_v1 }
 0x31b   : > { %v2029_v4 = vpop.xlane.xlu1 %2028 }
 0x31d   : > { %v2032_v25 = vpop.xlane.xlu0 %2031 }
 0x351   : > { %v2589_v9 = vpop.xlane.xlu1 %2588 }
 0x352   : > { %v2598_v57 = vadd.f32 %v2589_v9, %v2029_v4 }
 0x353   : > { %v2592_v34 = vpop.xlane.xlu0 %2591 }
 0x354   : > { %v2601_v11 = vadd.f32 %v2592_v34, %v2032_v25  ;;  %v2599_v39 = vadd.f32 %v2598_v57, %v2597_v3 }
 0x356   : > { %v2602_v22 = vadd.f32 %v2601_v11, %v2600_v10 }
 0x358   : > { %v2603_v13 = vsel %vm228_vm1, %v2599_v39, %v2602_v22 }
 0x359   : > { %2605 = vst.msk [vmem:[%s208_s21] sm:$0xff] %vm2604_vm9, %v2603_v13 }
 0x35a PF: > { %s15_s15 = sadd.s32 1, %s3406_s15  }
 0x35b   : > { %p12_p4 = scmp.ge.s32.totalorder %s15_s15, 4  }
 0x35d   :  { %14 = sbr.rel (!%p12_p4) target bundleno = 1 (0x1), region = 77 }

// kernel: dcgan_forward.14
= control target key start
LH: loop header
LB: loop body
LE: loop exit
PB: predicated region body
PF: predicated region fallthrough
CT: control target
= control target key end

     0   :  { %s388_s15 = smov 0   ;;  %s421_s0 = inlined_call_operand.vmem [shape: f32[2,16,384], index: 0, kind: input, shape index: {}]   ;;  %s422_s1 = inlined_call_operand.vmem [shape: f32[2,4,2], index: 1, kind: input, shape index: {}]   ;;  %s423_s2 = inlined_call_operand.vmem [shape: f32[4,1], index: 2, kind: input, shape index: {}]   ;;  %s424_s3 = inlined_call_operand.vmem [shape: f32[4,1], index: 3, kind: input, shape index: {}]   ;;  %s425_s4 = inlined_call_operand.vmem [shape: f32[2,16,384], index: 4, kind: output, shape index: {}]  }
   0x1 LB: > { %s326_s16 = sadd.s32 4294967295, %s358_s15   ;;  %p330_p0 = scmp.ge.s32.totalorder %s358_s15, 1  ;;  %s358_s15 = sphi %s388_s15, %s14_s15  }
   0x2   : > { %p162_p1 = scmp.lt.s32.totalorder %s358_s15, 3 }
   0x4   : > { %p163_p2 = pnand %p330_p0, %p162_p1 }
   0x5   : > { %s360_s21 = smov (!%p163_p2), 1   ;;  %s362_s22 = smov (!%p163_p2), 127  }
   0x6   : > { %166 = sbr.rel (%p163_p2) target bundleno = 408 (0x198), region = 36  ;;  %p188_p3 = scmp.lt.s32.totalorder (!%p163_p2), %s326_s16, 1 }
   0xb   : > { %v198_v0 = vld [vmem:[%s422_s1] sm:$0xf]  ;;  %v333_v1 = vld [vmem:[%s422_s1 + $0x4] sm:$0xf]  ;;  %v361_v9 = vmov 0   ;;  %vm225_vm0 = vcmask 1043456  }
   0xc   : > { %v201_v2 = vadd.f32 %v333_v1, %v198_v0  ;;  %348 = vset.pattern.permute.xlu1 %v361_v9  ;;  %349 = vset.pattern.permute.xlu0 %v361_v9  ;;  %v213_v11 = vld [vmem:[%s423_s2] sm:$0xf]  ;;  %s427_s16 = smov (!%p188_p3, %s326_s16), 1 }
   0xd   : > { %v219_v14 = vld [vmem:[%s424_s3] sm:$0xf]  ;;  %s336_s27 = smul.u32 48, %s427_s16 }
   0xe   : > { %v203_v3 = vmul.f32 0.00048828125, %v201_v2 }
   0xf   : > { %s192_s30 = scalar_lea.vmem %s421_s0, %s336_s27  ;;  %s197_s7 = scalar_lea.vmem %s425_s4, %s336_s27 }
  0x10   : > { %v204_v4 = vmul.f32 %v203_v3, %v203_v3  ;;  %v231_v21 = vld [vmem:[%s192_s30] sm:$0xff]  ;;  %v232_v23 = vld [vmem:[%s192_s30 + $0x8] sm:$0xff]  ;;  %v233_v24 = vld [vmem:[%s192_s30 + $0x10] sm:$0xff] }
  0x11   : > { %v234_v25 = vld [vmem:[%s192_s30 + $0x18] sm:$0xff]  ;;  %v235_v26 = vld [vmem:[%s192_s30 + $0x20] sm:$0xff]  ;;  %v236_v27 = vld [vmem:[%s192_s30 + $0x28] sm:$0xff] }
  0x12   : > { %206 = vrot.lane.b32.xlu0 %v204_v4, %s360_s21 }
  0x84   : > { %v207_v5 = vpop.permute.xlu0 %206 }
  0x85   : > { %v209_v6 = vsub.f32 %v203_v3, %v207_v5 }
  0x87   : > { %v210_v7 = vmax.f32 %v209_v6, 0.0 }
  0x89   : > { %v211_v8 = vadd.f32 1e-05, %v210_v7 }
  0x8b   : > { %350 = vrsqrt.f32 %v211_v8 }
  0x98   : > { %v351_v10 = vpop.eup %350 }
  0x99   : > { %215 = vrot.lane.b32.xlu0 %v351_v10, %s362_s22 }
 0x10b   : > { %v216_v12 = vpop.permute.xlu0 %215 }
 0x10c   : > { %v218_v13 = vmul.f32 %v216_v12, %v213_v11 }
 0x10e   : > { %v220_v15 = vmul.f32 %v218_v13, %v203_v3  ;;  %v223_v16 = vrot.slane %v218_v13, 4 }
 0x110   : > { %v226_v17 = vsel %vm225_vm0, %v218_v13, %v223_v16  ;;  %v221_v18 = vsub.f32 %v219_v14, %v220_v15 }
 0x111   : > { %239 = vperm.xlu1 %348, %v226_v17  }
 0x112   : > { %v228_v19 = vrot.slane %v221_v18, 4 }
 0x114   : > { %v230_v20 = vsel %vm225_vm0, %v221_v18, %v228_v19 }
 0x115   : > { %250 = vperm.xlu1 %348, %v230_v20  }
 0x18c   : > { %v240_v22 = vpop.permute.xlu1 %239 }
 0x18d   : > { %v242_v28 = vmul.f32 %v240_v22, %v231_v21  ;;  %v243_v29 = vmul.f32 %v240_v22, %v232_v23  ;;  %v244_v30 = vmul.f32 %v240_v22, %v233_v24  ;;  %v245_v31 = vmul.f32 %v240_v22, %v234_v25 }
 0x18e   : > { %v246_v33 = vmul.f32 %v240_v22, %v235_v26  ;;  %v247_v34 = vmul.f32 %v240_v22, %v236_v27 }
 0x190   : > { %v251_v32 = vpop.permute.xlu1 %250 }
 0x191   : > { %v253_v35 = vadd.f32 %v251_v32, %v242_v28  ;;  %v254_v36 = vadd.f32 %v251_v32, %v243_v29  ;;  %v255_v37 = vadd.f32 %v251_v32, %v244_v30  ;;  %v256_v38 = vadd.f32 %v251_v32, %v245_v31 }
 0x192   : > { %v257_v39 = vadd.f32 %v251_v32, %v246_v33  ;;  %v258_v40 = vadd.f32 %v251_v32, %v247_v34 }
 0x193   : > { %v259_v41 = vmax.f32 %v253_v35, 0.0  ;;  %v260_v42 = vmax.f32 %v254_v36, 0.0  ;;  %v261_v43 = vmax.f32 %v255_v37, 0.0  ;;  %v262_v44 = vmax.f32 %v256_v38, 0.0 }
 0x194   : > { %v263_v45 = vmax.f32 %v257_v39, 0.0  ;;  %v264_v46 = vmax.f32 %v258_v40, 0.0 }
 0x195   : > { %265 = vst [vmem:[%s197_s7] sm:$0xff] %v259_v41  ;;  %266 = vst [vmem:[%s197_s7 + $0x8] sm:$0xff] %v260_v42 }
 0x196   : > { %267 = vst [vmem:[%s197_s7 + $0x10] sm:$0xff] %v261_v43  ;;  %268 = vst [vmem:[%s197_s7 + $0x18] sm:$0xff] %v262_v44 }
 0x197   : > { %269 = vst [vmem:[%s197_s7 + $0x20] sm:$0xff] %v263_v45  ;;  %270 = vst [vmem:[%s197_s7 + $0x28] sm:$0xff] %v264_v46 }
 0x198 PF: > { %s14_s15 = sadd.s32 1, %s358_s15  }
 0x199   : > { %p11_p4 = scmp.ge.s32.totalorder %s14_s15, 4  }
 0x19b   :  { %13 = sbr.rel (!%p11_p4) target bundleno = 1 (0x1), region = 67 }

// kernel: dcgan_forward.13
= control target key start
LH: loop header
LB: loop body
LE: loop exit
PB: predicated region body
PF: predicated region fallthrough
CT: control target
= control target key end

     0   :  { %s5247_s15 = smov 0   ;;  %s6390_s0 = inlined_call_operand.vmem [shape: f32[2,8,512], index: 0, kind: input, shape index: {}]   ;;  %s6391_s1 = inlined_call_operand.vmem [shape: f32[4,4,32], index: 1, kind: input, shape index: {}]   ;;  %s6392_s2 = inlined_call_operand.vmem [shape: f32[1,384], index: 2, kind: input, shape index: {}]   ;;  %s6393_s3 = inlined_call_operand.vmem [shape: f32[2,16,384], index: 3, kind: output, shape index: {0}]   ;;  %s6394_s4 = inlined_call_operand.vmem [shape: f32[2,4,2], index: 4, kind: output, shape index: {1}]  }
   0x1 LB: > { %s4786_s16 = sadd.s32 4294967295, %s5210_s15   ;;  %p4790_p0 = scmp.ge.s32.totalorder %s5210_s15, 1  ;;  %s5210_s15 = sphi %s5247_s15, %s15_s15  }
   0x2   : > { %p165_p1 = scmp.lt.s32.totalorder %s5210_s15, 3 }
   0x4   : > { %p166_p2 = pnand %p4790_p0, %p165_p1 }
   0x5   : > { %p195_p3 = scmp.lt.s32.totalorder (!%p166_p2), %s4786_s16, 1  ;;  %s5212_s21 = smov (!%p166_p2), 19  }
   0x6   : > { %169 = sbr.rel (%p166_p2) target bundleno = 895 (0x37f), region = 32  ;;  %s5213_s22 = smov (!%p166_p2), 18  }
   0x7   : > { %s5214_s23 = smov (!%p166_p2), 1   ;;  %s5215_s24 = smov (!%p166_p2), 17  }
   0x8   : > { %s5216_s25 = smov (!%p166_p2), 127   ;;  %s5217_s26 = smov (!%p166_p2), 109  }
   0x9   : > { %s5219_s27 = smov (!%p166_p2), 111   ;;  %s5220_s28 = smov (!%p166_p2), 110  }
   0xb   : > { %s6396_s16 = smov (!%p195_p3, %s4786_s16), 1  ;;  %vm254_vm0 = vcmask 154624   ;;  %vm241_vm1 = vcmask 146432   ;;  %vm229_vm2 = vcmask 7168   ;;  %v5218_v18 = vmov 0.0  }
   0xc   : > { %s4800_s17 = sshll.u32 %s6396_s16, 5  ;;  %391 = vmatprep.mubr.f32.mxu0 %v5218_v18  ;;  %507 = vmatprep.mubr.f32.mxu1 %v5218_v18  ;;  %vm1404_vm3 = vcmask 138240   ;;  %vm1392_vm4 = vcmask 1039360   ;;  %v257_v40 = vld [vmem:[%s6391_s1] sm:$0xf]  ;;  %vm315_vm5 = vcmask 261120  }
   0xd   : > { %s199_s20 = scalar_lea.vmem %s6390_s0, %s4800_s17  ;;  %vm290_vm6 = vcmask 891904   ;;  %v317_v43 = vsel %vm315_vm5, %v257_v40, 0  ;;  %vm2509_vm7 = vcmask 908288   ;;  %vm2497_vm8 = vcmask 900096   ;;  %s5185_s13 = smul.u32 48, %s6396_s16 }
   0xe   : > { %v5261_v0 = vld [vmem:[%s199_s20 + $0x10] sm:$0xff]  ;;  %v5263_v1 = vld [vmem:[%s199_s20] sm:$0xff]  ;;  %v5267_v2 = vld [vmem:[%s199_s20 + $0x8] sm:$0xff]  ;;  %v5347_v45 = vand.u32 4294901760, %v317_v43  ;;  %vm5221_vm9 = vmmov 0   ;;  %vm1366_vm10 = vcmask 1043456  }
   0xf   : > { %252 = vrot.lane.b32.xlu1 %v5261_v0, %s5212_s21  ;;  %248 = vrot.lane.b32.xlu0 %v5263_v1, %s5212_s21  ;;  %v5275_v3 = vld [vmem:[%s199_s20 + $0x18] sm:$0xff]  ;;  %s6333_s18 = scalar_lea.vmem %s6393_s3, %s5185_s13  ;;  %s4794_s19 = sshll.u32 %s6396_s16, 2  ;;  %vm4698_vm11 = vcmask 11264  }
  0x10   : > { %v5361_v53 = vsub.f32 %v317_v43, %v5347_v45 }
  0x13   : > { %250 = vrot.lane.b32.xlu0 %v5267_v2, %s5212_s21  ;;  %233 = vrot.lane.b32.xlu1 %v5263_v1, %s5213_s22 }
  0x17   : > { %235 = vrot.lane.b32.xlu0 %v5267_v2, %s5213_s22  ;;  %237 = vrot.lane.b32.xlu1 %v5261_v0, %s5213_s22 }
  0x1b   : > { %221 = vrot.lane.b32.xlu0 %v5263_v1, %s5214_s23  ;;  %223 = vrot.lane.b32.xlu1 %v5267_v2, %s5214_s23 }
  0x1f   : > { %225 = vrot.lane.b32.xlu0 %v5261_v0, %s5214_s23  ;;  %239 = vrot.lane.b32.xlu1 %v5275_v3, %s5213_s22  ;;  %s208_s22 = scalar_lea.vmem %s6394_s4, %s4794_s19 }
  0x23   : > { %227 = vrot.lane.b32.xlu0 %v5275_v3, %s5214_s23  ;;  %1396 = vrot.lane.b32.xlu1 %v5263_v1, %s5215_s24 }
  0x27   : > { %1398 = vrot.lane.b32.xlu0 %v5267_v2, %s5215_s24  ;;  %1400 = vrot.lane.b32.xlu1 %v5261_v0, %s5215_s24 }
  0x2b   : > { %1386 = vrot.lane.b32.xlu0 %v5267_v2, %s5216_s25  ;;  %1388 = vrot.lane.b32.xlu1 %v5261_v0, %s5216_s25 }
  0x2f   : > { %1390 = vrot.lane.b32.xlu0 %v5275_v3, %s5216_s25  ;;  %1384 = vrot.lane.b32.xlu1 %v5263_v1, %s5216_s25 }
  0x33   : > { %260 = vrot.lane.b32.xlu1 %v5267_v2, %s5217_s26 }
  0x81   : > { %v253_v4 = vpop.permute.xlu1 %252  ;;  %v249_v5 = vpop.permute.xlu0 %248 }
  0x82   : > { %282 = vrot.lane.b32.xlu0 %v249_v5, %s5217_s26 }
  0x85   : > { %v251_v6 = vpop.permute.xlu0 %250  ;;  %v234_v7 = vpop.permute.xlu1 %233 }
  0x86   : > { %274 = vrot.lane.b32.xlu1 %v234_v7, %s5217_s26  ;;  %v256_v9 = vsel %vm254_vm0, %v251_v6, %v253_v4  ;;  %v255_v15 = vsel %vm254_vm0, %v249_v5, %v251_v6 }
  0x89   : > { %v236_v8 = vpop.permute.xlu0 %235  ;;  %v238_v10 = vpop.permute.xlu1 %237 }
  0x8a   : > { %286 = vrot.lane.b32.xlu1 %v256_v9, %s5217_s26  ;;  %v242_v12 = vsel %vm241_vm1, %v234_v7, %v236_v8  ;;  %v243_v17 = vsel %vm241_vm1, %v236_v8, %v238_v10 }
  0x8d   : > { %v222_v11 = vpop.permute.xlu0 %221  ;;  %v224_v13 = vpop.permute.xlu1 %223 }
  0x8e   : > { %266 = vrot.lane.b32.xlu0 %v222_v11, %s5217_s26  ;;  %276 = vrot.lane.b32.xlu1 %v242_v12, %s5217_s26  ;;  %v230_v19 = vsel %vm229_vm2, %v222_v11, %v224_v13 }
  0x91   : > { %v226_v14 = vpop.permute.xlu0 %225  ;;  %v240_v22 = vpop.permute.xlu1 %239 }
  0x92   : > { %284 = vrot.lane.b32.xlu0 %v255_v15, %s5217_s26  ;;  %v231_v16 = vsel %vm229_vm2, %v224_v13, %v226_v14  ;;  %v244_v23 = vsel %vm241_vm1, %v238_v10, %v240_v22 }
  0x93   : > { %270 = vrot.lane.b32.xlu1 %v231_v16, %s5217_s26 }
  0x95   : > { %v228_v20 = vpop.permute.xlu0 %227  ;;  %v1397_v25 = vpop.permute.xlu1 %1396 }
  0x96   : > { %278 = vrot.lane.b32.xlu0 %v243_v17, %s5217_s26  ;;  %v232_v21 = vsel %vm229_vm2, %v226_v14, %v228_v20 }
  0x97   : > { %258 = vrot.lane.b32.xlu1 %v5263_v1, %s5217_s26 }
  0x99   : > { %v1399_v24 = vpop.permute.xlu0 %1398  ;;  %v5325_v27 = vpop.permute.xlu1 %1400 }
  0x9a   : > { %268 = vrot.lane.b32.xlu0 %v230_v19, %s5217_s26  ;;  %v1405_v28 = vsel %vm1404_vm3, %v1397_v25, %v1399_v24  ;;  %v1406_v32 = vsel %vm1404_vm3, %v1399_v24, %v5325_v27 }
  0x9b   : > { %288 = vrot.lane.b32.xlu1 %v253_v4, %s5217_s26 }
  0x9d   : > { %v1387_v26 = vpop.permute.xlu0 %1386  ;;  %v1389_v30 = vpop.permute.xlu1 %1388 }
  0x9e   : > { %262 = vrot.lane.b32.xlu0 %v5261_v0, %s5217_s26  ;;  %v1394_v33 = vsel %vm1392_vm4, %v1387_v26, %v1389_v30 }
  0x9f   : > { %2503 = vrot.lane.b32.xlu1 %v5267_v2, %s5219_s27 }
  0xa1   : > { %v1391_v29 = vpop.permute.xlu0 %1390  ;;  %v1385_v34 = vpop.permute.xlu1 %1384 }
  0xa2   : > { %1402 = vrot.lane.b32.xlu0 %v5275_v3, %s5215_s24  ;;  %v1395_v31 = vsel %vm1392_vm4, %v1389_v30, %v1391_v29  ;;  %v1393_v35 = vsel %vm1392_vm4, %v1385_v34, %v1387_v26 }
  0xa3   : > { %272 = vrot.lane.b32.xlu1 %v232_v21, %s5217_s26 }
  0xa5   : > { %v261_v36 = vpop.permute.xlu1 %260 }
  0xa6   : > { %264 = vrot.lane.b32.xlu0 %v5275_v3, %s5217_s26 }
  0xa7   : > { %2507 = vrot.lane.b32.xlu1 %v5275_v3, %s5219_s27 }
  0xaa   : > { %280 = vrot.lane.b32.xlu0 %v244_v23, %s5217_s26 }
  0xab   : > { %2491 = vrot.lane.b32.xlu1 %v5267_v2, %s5220_s28 }
  0xae   : > { %2505 = vrot.lane.b32.xlu0 %v5261_v0, %s5219_s27 }
  0xaf   : > { %2495 = vrot.lane.b32.xlu1 %v5275_v3, %s5220_s28 }
  0xb2   : > { %2501 = vrot.lane.b32.xlu0 %v5263_v1, %s5219_s27 }
  0xb3   : > { %1418 = vrot.lane.b32.xlu1 %v1397_v25, %s5217_s26 }
  0xb6   : > { %2493 = vrot.lane.b32.xlu0 %v5261_v0, %s5220_s28 }
  0xb7   : > { %1420 = vrot.lane.b32.xlu1 %v1405_v28, %s5217_s26 }
  0xba   : > { %2489 = vrot.lane.b32.xlu0 %v5263_v1, %s5220_s28  ;;  %v5389_v1 = vand.u32 4294901760, %v5361_v53 }
  0xbb   : > { %1414 = vrot.lane.b32.xlu1 %v1395_v31, %s5217_s26 }
  0xbc   : > { %v395_v16 = vsub.f32 %v5361_v53, %v5389_v1 }
  0xbe   : > { %1422 = vrot.lane.b32.xlu0 %v1406_v32, %s5217_s26 }
  0xc2   : > { %1412 = vrot.lane.b32.xlu0 %v1394_v33, %s5217_s26 }
  0xc6   : > { %1410 = vrot.lane.b32.xlu0 %v1393_v35, %s5217_s26 }
  0xca   : > { %1416 = vrot.lane.b32.xlu0 %v1391_v29, %s5217_s26  ;;  %v5452_v29 = vand.u32 4294901760, %v395_v16 }
  0xf4   : > { %v283_v38 = vpop.permute.xlu0 %282 }
  0xf8   : > { %v275_v37 = vpop.permute.xlu1 %274 }
  0xfc   : > { %v5340_v39 = vpop.permute.xlu1 %286 }
 0x100   : > { %v267_v41 = vpop.permute.xlu0 %266  ;;  %v277_v42 = vpop.permute.xlu1 %276 }
 0x101   : > { %v297_v44 = vsel %vm290_vm6, %v275_v37, %v277_v42 }
 0x102   : > { %v5349_v46 = vand.u32 4294901760, %v297_v44 }
 0x104   : > { %v285_v47 = vpop.permute.xlu0 %284  ;;  %v5364_v54 = vsub.f32 %v297_v44, %v5349_v46 }
 0x105   : > { %v300_v48 = vsel %vm290_vm6, %v283_v38, %v285_v47  ;;  %v301_v49 = vsel %vm290_vm6, %v285_v47, %v5340_v39  ;;  %v5354_v50 = vpop.permute.xlu1 %270 }
 0x106   : > { %v5356_v51 = vand.u32 4294901760, %v301_v49  ;;  %v5358_v52 = vand.u32 4294901760, %v300_v48  ;;  %v5402_v6 = vand.u32 4294901760, %v5364_v54 }
 0x108   : > { %v5367_v55 = vsub.f32 %v301_v49, %v5356_v51  ;;  %v5370_v56 = vsub.f32 %v300_v48, %v5358_v52  ;;  %v5372_v57 = vpop.permute.xlu0 %278  ;;  %344 = vmatprep.subr.mxu0 %v5356_v51  ;;  %v448_v21 = vsub.f32 %v5364_v54, %v5402_v6 }
 0x109   : > { %v298_v58 = vsel %vm290_vm6, %v277_v42, %v5372_v57  ;;  %346 = vmatpush1.msra.mxu0 %v5358_v52  ;;  %v259_v59 = vpop.permute.xlu1 %258 }
 0x10a   : > { %v5378_v60 = vand.u32 4294901760, %v298_v58  ;;  %v5381_v61 = vsel %vm290_vm6, %v259_v59, %v261_v36  ;;  %v429_v62 = vand.u32 4294901760, %v5367_v55  ;;  %v435_v63 = vand.u32 4294901760, %v5370_v56 }
 0x10b   : > { %v5386_v0 = vand.u32 4294901760, %v5381_v61  ;;  %v5464_v34 = vand.u32 4294901760, %v448_v21 }
 0x10c   : > { %v5392_v2 = vsub.f32 %v298_v58, %v5378_v60  ;;  %v269_v3 = vpop.permute.xlu0 %268  ;;  %348 = vmatprep.subr.mxu0 %v5378_v60  ;;  %v430_v4 = vsub.f32 %v5367_v55, %v429_v62  ;;  %v436_v5 = vsub.f32 %v5370_v56, %v435_v63 }
 0x10d   : > { %v294_v7 = vsel %vm290_vm6, %v267_v41, %v269_v3  ;;  %v295_v8 = vsel %vm290_vm6, %v269_v3, %v5354_v50  ;;  %350 = vmatpush1.msra.mxu0 %v5349_v46  ;;  %v5412_v11 = vpop.permute.xlu1 %288  ;;  %v5416_v13 = vsub.f32 %v5381_v61, %v5386_v0 }
 0x10e   : > { %v5408_v9 = vand.u32 4294901760, %v295_v8  ;;  %v5410_v10 = vand.u32 4294901760, %v294_v7  ;;  %v431_v12 = vand.u32 4294901760, %v430_v4  ;;  %v437_v14 = vand.u32 4294901760, %v436_v5 }
 0x10f   : > { %v5419_v15 = vand.u32 4294901760, %v5392_v2  ;;  %v5455_v30 = vand.u32 4294901760, %v5416_v13 }
 0x110   : > { %v5424_v17 = vsub.f32 %v295_v8, %v5408_v9  ;;  %v5427_v19 = vsub.f32 %v294_v7, %v5410_v10  ;;  %v5429_v20 = vpop.permute.xlu0 %262  ;;  %352 = vmatprep.subr.mxu0 %v5408_v9  ;;  %432 = vmatprep.subr.mxu1 %v431_v12 }
 0x111   : > { %v5436_v22 = vsel %vm290_vm6, %v261_v36, %v5429_v20  ;;  %354 = vmatpush1.msra.mxu0 %v5410_v10  ;;  %438 = vmatpush1.msra.mxu1 %v437_v14  ;;  %v442_v23 = vsub.f32 %v5392_v2, %v5419_v15  ;;  %v5461_v32 = vpop.permute.xlu1 %2503  ;;  %v472_v42 = vsub.f32 %v5416_v13, %v5455_v30 }
 0x112   : > { %v5442_v24 = vand.u32 4294901760, %v5436_v22  ;;  %v5445_v25 = vand.u32 4294901760, %v5424_v17  ;;  %v5448_v26 = vand.u32 4294901760, %v5427_v19 }
 0x113   : > { %v5450_v28 = vand.u32 4294901760, %v442_v23  ;;  %v5500_v48 = vand.u32 4294901760, %v472_v42 }
 0x114   : > { %v5459_v31 = vsub.f32 %v5436_v22, %v5442_v24  ;;  %v1403_v33 = vpop.permute.xlu0 %1402  ;;  %356 = vmatprep.subr.mxu0 %v5442_v24  ;;  %v454_v35 = vsub.f32 %v5424_v17, %v5445_v25  ;;  %v460_v36 = vsub.f32 %v5427_v19, %v5448_v26 }
 0x115   : > { %444 = vmatprep.subr.mxu1 %v5450_v28  ;;  %358 = vmatpush1.msra.mxu0 %v5386_v0  ;;  %v1407_v37 = vsel %vm1404_vm3, %v5325_v27, %v1403_v33  ;;  %v273_v44 = vpop.permute.xlu1 %272 }
 0x116   : > { %450 = vmatpush1.msra.mxu1 %v5464_v34  ;;  %1424 = vrot.lane.b32.xlu1 %v1407_v37, %s5217_s26  ;;  %v5476_v38 = vand.u32 4294901760, %v454_v35  ;;  %v5478_v40 = vand.u32 4294901760, %v460_v36  ;;  %v5481_v41 = vand.u32 4294901760, %v5459_v31 }
 0x117   : > { %541 = vmatprep.subr.mxu0 %v5367_v55  ;;  %397 = vmatmul.mubr.f32.vlgmr.msra.gmra.mxu0 %v5452_v29 }
 0x118   : > { %544 = vmatpush1.msra.mxu0 %v5370_v56  ;;  %v5488_v27 = vpop.permute.xlu0 %264  ;;  %456 = vmatprep.subr.mxu1 %v5476_v38  ;;  %v466_v43 = vsub.f32 %v5459_v31, %v5481_v41 }
 0x119   : > { %547 = vmatprep.subr.mxu0 %v5392_v2  ;;  %462 = vmatpush1.msra.mxu1 %v5478_v40  ;;  %v5508_v58 = vpop.permute.xlu1 %2507 }
 0x11a   : > { %550 = vmatpush1.msra.mxu0 %v5364_v54  ;;  %v5496_v47 = vand.u32 4294901760, %v466_v43  ;;  %595 = vmatprep.mubr.f32.mxu0 %v5218_v18 }
 0x11b   : > { %553 = vmatprep.subr.mxu0 %v5424_v17 }
 0x11c   : > { %556 = vmatpush1.msra.mxu0 %v5427_v19  ;;  %v281_v49 = vpop.permute.xlu0 %280  ;;  %468 = vmatprep.subr.mxu1 %v5496_v47 }
 0x11d   : > { %559 = vmatprep.subr.mxu0 %v5459_v31  ;;  %474 = vmatpush1.msra.mxu1 %v5500_v48  ;;  %v299_v4 = vsel %vm290_vm6, %v5372_v57, %v281_v49  ;;  %v296_v57 = vsel %vm290_vm6, %v5354_v50, %v273_v44 }
 0x11e   : > { %562 = vmatpush1.msra.mxu0 %v5416_v13  ;;  %629 = vmatprep.subr.mxu1 %v5356_v51  ;;  %v5545_v7 = vand.u32 4294901760, %v299_v4  ;;  %v5561_v14 = vand.u32 4294901760, %v296_v57 }
 0x11f   : > { %713 = vmatprep.subr.mxu0 %v429_v62  ;;  %509 = vmatmul.mubr.f32.vlgmr.msra.gmra.mxu1 %v5347_v45  ;;  %v302_v62 = vsel %vm290_vm6, %v5340_v39, %v5412_v11  ;;  %v5557_v11 = vsel %vm290_vm6, %v5429_v20, %v5488_v27 }
 0x120   : > { %598 = vmatmul.mubr.f32.vlgmr.msra.gmra.mxu0 %v5361_v53  ;;  %631 = vmatpush1.msra.mxu1 %v5358_v52  ;;  %v2506_v59 = vpop.permute.xlu0 %2505  ;;  %v5535_v5 = vand.u32 4294901760, %v302_v62  ;;  %v5571_v16 = vand.u32 4294901760, %v5557_v11 }
 0x121   : > { %717 = vmatpush1.msra.mxu0 %v435_v63  ;;  %633 = vmatprep.subr.mxu1 %v5378_v60  ;;  %v2511_v3 = vsel %vm2509_vm7, %v5461_v32, %v2506_v59  ;;  %v2512_v55 = vsel %vm2509_vm7, %v2506_v59, %v5508_v58  ;;  %v2492_v63 = vpop.permute.xlu1 %2491 }
 0x122   : > { %721 = vmatprep.subr.mxu0 %v5419_v15  ;;  %635 = vmatpush1.msra.mxu1 %v5349_v46  ;;  %v5552_v8 = vsub.f32 %v302_v62, %v5535_v5  ;;  %v5592_v35 = vsub.f32 %v5557_v11, %v5571_v16 }
 0x123   : > { %725 = vmatpush1.msra.mxu0 %v5402_v6  ;;  %637 = vmatprep.subr.mxu1 %v5408_v9 }
 0x124   : > { %729 = vmatprep.subr.mxu0 %v5445_v25  ;;  %2525 = vrot.lane.b32.xlu1 %v2511_v3, %s5217_s26  ;;  %v2502_v56 = vpop.permute.xlu0 %2501  ;;  %v968_v23 = vand.u32 4294901760, %v5552_v8  ;;  %v5615_v44 = vand.u32 4294901760, %v5592_v35 }
 0x125   : > { %2527 = vrot.lane.b32.xlu0 %v2512_v55, %s5217_s26  ;;  %639 = vmatpush1.msra.mxu1 %v5410_v10  ;;  %v2510_v39 = vsel %vm2509_vm7, %v2502_v56, %v5461_v32  ;;  %v2496_v12 = vpop.permute.xlu1 %2495 }
 0x126   : > { %733 = vmatpush1.msra.mxu0 %v5448_v26  ;;  %641 = vmatprep.subr.mxu1 %v5442_v24  ;;  %v969_v36 = vsub.f32 %v5552_v8, %v968_v23 }
 0x127   : > { %737 = vmatprep.subr.mxu0 %v5481_v41  ;;  %643 = vmatpush1.msra.mxu1 %v5386_v0 }
 0x128   : > { %741 = vmatpush1.msra.mxu0 %v5455_v30  ;;  %676 = vmatprep.mubr.f32.mxu1 %v5218_v18  ;;  %v2494_v50 = vpop.permute.xlu0 %2493  ;;  %v970_v59 = vand.u32 4294901760, %v969_v36 }
 0x129   : > { %774 = vmatprep.mubr.f32.mxu0 %v5218_v18  ;;  %807 = vmatprep.subr.mxu1 %v5356_v51  ;;  %v5566_v51 = vsub.f32 %v299_v4, %v5545_v7  ;;  %v2499_v20 = vsel %vm2497_vm8, %v2492_v63, %v2494_v50  ;;  %v2500_v21 = vsel %vm2497_vm8, %v2494_v50, %v2496_v12  ;;  %v1419_v49 = vpop.permute.xlu1 %1418 }
 0x12a   : > { %4921 = vmatprep.subr.mxu0 %v5218_v18  ;;  %2523 = vrot.lane.b32.xlu1 %v2510_v39, %s5217_s26  ;;  %v4795_v39 = vld [vmem:[%s6391_s1 + $0x4] sm:$0xf] }
 0x12b   : > { %680 = vmatmul.mubr.f32.vlgmr.msra.gmra.mxu1 %v5389_v1  ;;  %776 = vmatmul.mubr.f32.vlgmr.msra.gmra.mxu0 %v5347_v45  ;;  %v5586_v32 = vand.u32 4294901760, %v5566_v51 }
 0x12c   : > { %809 = vmatpush1.msra.mxu1 %v5358_v52  ;;  %4922 = vmatpush3.msra.mxu0 %v5535_v5  ;;  %v5581_v52 = vsub.f32 %v296_v57, %v5561_v14  ;;  %v2490_v33 = vpop.permute.xlu0 %2489 }
 0x12d   : > { %811 = vmatprep.subr.mxu1 %v5378_v60  ;;  %4923 = vmatprep.subr.mxu0 %v5218_v18  ;;  %v2498_v42 = vsel %vm2497_vm8, %v2490_v33, %v2492_v63  ;;  %v976_v43 = vsub.f32 %v5566_v51, %v5586_v32  ;;  %v1421_v56 = vpop.permute.xlu1 %1420 }
 0x12e   : > { %813 = vmatpush1.msra.mxu1 %v5349_v46  ;;  %4924 = vmatpush3.msra.mxu0 %v5545_v7  ;;  %v5602_v37 = vand.u32 4294901760, %v5581_v52  ;;  %v1429_v57 = vsel %vm290_vm6, %v1419_v49, %v1421_v56 }
 0x12f   : > { %815 = vmatprep.subr.mxu1 %v5408_v9  ;;  %4925 = vmatprep.subr.mxu0 %v5218_v18  ;;  %v5627_v62 = vand.u32 4294901760, %v976_v43  ;;  %v5676_v33 = vand.u32 4294901760, %v1429_v57 }
 0x130   : > { %2517 = vrot.lane.b32.xlu0 %v2499_v20, %s5217_s26  ;;  %2519 = vrot.lane.b32.xlu1 %v2500_v21, %s5217_s26  ;;  %v5620_v3 = vpop.permute.xlu0 %1422  ;;  %v983_v55 = vsub.f32 %v5581_v52, %v5602_v37 }
 0x131   : > { %817 = vmatpush1.msra.mxu1 %v5410_v10  ;;  %4926 = vmatpush3.msra.mxu0 %v5561_v14  ;;  %v5662_v50 = vpop.permute.xlu1 %1414 }
 0x132   : > { %819 = vmatprep.subr.mxu1 %v5442_v24  ;;  %4927 = vmatprep.subr.mxu0 %v5218_v18 }
 0x133   : > { %821 = vmatpush1.msra.mxu1 %v5386_v0  ;;  %4928 = vmatpush3.msra.mxu0 %v5571_v16 }
 0x134   : > { %854 = vmatprep.mubr.f32.mxu1 %v5218_v18  ;;  %4929 = vmatprep.mubr.msk.f32.mxu0 %vm5221_vm9, %v5218_v18  ;;  %v1413_v63 = vpop.permute.xlu0 %1412 }
 0x135   : > { %4932 = vmatprep.subr.mxu1 %v5218_v18  ;;  %4943 = vmatprep.subr.mxu0 %v5218_v18 }
 0x136   : > { %2515 = vrot.lane.b32.xlu0 %v2498_v42, %s5217_s26  ;;  %2529 = vrot.lane.b32.xlu1 %v5508_v58, %s5217_s26  ;;  %v990_v58 = vsub.f32 %v5592_v35, %v5615_v44 }
 0x137   : > { %856 = vmatmul.mubr.f32.vlgmr.msra.gmra.mxu1 %v5347_v45  ;;  %4930 = vmatmul.mubr.f32.vlgmr.msra.gmra.mxu0 %v5452_v29  ;;  %v5637_v29 = vand.u32 4294901760, %v983_v55 }
 0x138   : > { %4933 = vmatpush3.msra.mxu1 %v970_v59  ;;  %4944 = vmatpush3.msra.mxu0 %v5552_v8  ;;  %v5644_v4 = vand.u32 4294901760, %v990_v58  ;;  %v1411_v21 = vpop.permute.xlu0 %1410 }
 0x139   : > { %4934 = vmatprep.subr.mxu1 %v5218_v18  ;;  %4945 = vmatprep.subr.mxu0 %v5218_v18 }
 0x13a   : > { %4935 = vmatpush3.msra.mxu1 %v5627_v62  ;;  %4946 = vmatpush3.msra.mxu0 %v5566_v51 }
 0x13b   : > { %4936 = vmatprep.subr.mxu1 %v5218_v18  ;;  %4947 = vmatprep.subr.mxu0 %v5218_v18 }
 0x13c   : > { %3598 = vrot.lane.b32.xlu1 %v5436_v22, %s5217_s26  ;;  %2521 = vrot.lane.b32.xlu0 %v2496_v12, %s5217_s26  ;;  %v1430_v22 = vsel %vm290_vm6, %v1421_v56, %v5620_v3  ;;  %v1439_v12 = vsel %vm315_vm5, %v4795_v39, 0 }
 0x13d   : > { %4937 = vmatpush3.msra.mxu1 %v5637_v29  ;;  %4948 = vmatpush3.msra.mxu0 %v5581_v52  ;;  %v5669_v20 = vand.u32 4294901760, %v1430_v22  ;;  %v5680_v36 = vand.u32 4294901760, %v1439_v12 }
 0x13e   : > { %4938 = vmatprep.subr.mxu1 %v5218_v18  ;;  %4949 = vmatprep.subr.mxu0 %v5218_v18 }
 0x13f   : > { %4939 = vmatpush3.msra.mxu1 %v5644_v4  ;;  %4950 = vmatpush3.msra.mxu0 %v5592_v35  ;;  %v5703_v43 = vsub.f32 %v1439_v12, %v5680_v36 }
 0x140   : > { %4940 = vmatprep.mubr.msk.f32.mxu1 %vm5221_vm9, %v5218_v18  ;;  %4951 = vmatprep.mubr.msk.f32.mxu0 %vm5221_vm9, %v5218_v18 }
 0x141   : > { %4954 = vmatprep.subr.mxu1 %v5218_v18  ;;  %4965 = vmatprep.subr.mxu0 %v5218_v18  ;;  %v5724_v58 = vand.u32 4294901760, %v5703_v43 }
 0x142   : > { %3596 = vrot.lane.b32.xlu1 %v5381_v61, %s5217_s26  ;;  %3600 = vrot.lane.b32.xlu0 %v5557_v11, %s5217_s26  ;;  %v1427_v61 = vsel %vm290_vm6, %v1413_v63, %v5662_v50  ;;  %v1426_v11 = vsel %vm290_vm6, %v1411_v21, %v1413_v63 }
 0x143   : > { %4941 = vmatmul.mubr.f32.vlgmr.msra.gmra.mxu1 %v5347_v45  ;;  %4952 = vmatmul.mubr.f32.vlgmr.msra.gmra.mxu0 %v5361_v53  ;;  %v5688_v53 = vsub.f32 %v1430_v22, %v5669_v20  ;;  %v5692_v8 = vand.u32 4294901760, %v1427_v61  ;;  %v5700_v42 = vand.u32 4294901760, %v1426_v11 }
 0x144   : > { %4955 = vmatpush3.msra.mxu1 %v5535_v5  ;;  %4966 = vmatpush3.msra.mxu0 %v968_v23  ;;  %v5697_v23 = vsub.f32 %v1429_v57, %v5676_v33 }
 0x145   : > { %4956 = vmatprep.subr.mxu1 %v5218_v18  ;;  %4967 = vmatprep.subr.mxu0 %v5218_v18  ;;  %v5714_v49 = vsub.f32 %v1427_v61, %v5692_v8  ;;  %v5721_v55 = vsub.f32 %v1426_v11, %v5700_v42 }
 0x146   : > { %4957 = vmatpush3.msra.mxu1 %v5545_v7  ;;  %4968 = vmatpush3.msra.mxu0 %v5586_v32  ;;  %v1557_v59 = vand.u32 4294901760, %v5697_v23 }
 0x147   : > { %4958 = vmatprep.subr.mxu1 %v5218_v18  ;;  %4969 = vmatprep.subr.mxu0 %v5218_v18  ;;  %v5734_v63 = vand.u32 4294901760, %v5714_v49  ;;  %v5738_v22 = vand.u32 4294901760, %v5721_v55 }
 0x148   : > { %3602 = vrot.lane.b32.xlu0 %v5488_v27, %s5217_s26  ;;  %4959 = vmatpush3.msra.mxu1 %v5561_v14  ;;  %v1551_v27 = vand.u32 4294901760, %v5688_v53  ;;  %v1558_v39 = vsub.f32 %v5697_v23, %v1557_v59 }
 0x149   : > { %4970 = vmatpush3.msra.mxu0 %v5602_v37  ;;  %4960 = vmatprep.subr.mxu1 %v5218_v18  ;;  %v1576_v57 = vsub.f32 %v5714_v49, %v5734_v63  ;;  %v1582_v61 = vsub.f32 %v5721_v55, %v5738_v22 }
 0x14a   : > { %4971 = vmatprep.subr.mxu0 %v5218_v18  ;;  %4961 = vmatpush3.msra.mxu1 %v5571_v16  ;;  %v1552_v56 = vsub.f32 %v5688_v53, %v1551_v27  ;;  %v1559_v21 = vand.u32 4294901760, %v1558_v39 }
 0x14b   : > { %4972 = vmatpush3.msra.mxu0 %v5615_v44  ;;  %4962 = vmatprep.mubr.msk.f32.mxu1 %vm5221_vm9, %v5218_v18  ;;  %v5764_v11 = vand.u32 4294901760, %v1576_v57 }
 0x14c   : > { %4973 = vmatprep.mubr.msk.f32.mxu0 %vm5221_vm9, %v5218_v18  ;;  %4976 = vmatprep.subr.mxu1 %v5218_v18 }
 0x14d   : > { %1466 = vmatprep.subr.mxu0 %v5669_v20  ;;  %4963 = vmatmul.mubr.f32.vlgmr.msra.gmra.mxu1 %v5389_v1  ;;  %v1517_v1 = vsub.f32 %v5703_v43, %v5724_v58 }
 0x14e   : > { %4974 = vmatmul.mubr.f32.vlgmr.msra.gmra.mxu0 %v5347_v45  ;;  %4977 = vmatpush3.msra.mxu1 %v5535_v5  ;;  %v1553_v5 = vand.u32 4294901760, %v1552_v56  ;;  %v5767_v56 = vand.u32 4294901760, %v1582_v61 }
 0x14f   : > { %1468 = vmatpush1.msra.mxu0 %v5676_v33  ;;  %4978 = vmatprep.subr.mxu1 %v5218_v18  ;;  %v5754_v12 = vand.u32 4294901760, %v1517_v1 }
 0x150   : > { %1470 = vmatprep.subr.mxu0 %v5378_v60  ;;  %4979 = vmatpush3.msra.mxu1 %v5545_v7 }
 0x151   : > { %1472 = vmatpush1.msra.mxu0 %v5349_v46  ;;  %4980 = vmatprep.subr.mxu1 %v5218_v18 }
 0x152   : > { %1474 = vmatprep.subr.mxu0 %v5692_v8  ;;  %4981 = vmatpush3.msra.mxu1 %v5561_v14 }
 0x153   : > { %1476 = vmatpush1.msra.mxu0 %v5700_v42  ;;  %4982 = vmatprep.subr.mxu1 %v5218_v18 }
 0x154   : > { %1478 = vmatprep.subr.mxu0 %v5442_v24  ;;  %4983 = vmatpush3.msra.mxu1 %v5571_v16 }
 0x155   : > { %1480 = vmatpush1.msra.mxu0 %v5386_v0  ;;  %4984 = vmatprep.mubr.msk.f32.mxu1 %vm5221_vm9, %v5218_v18 }
 0x156   : > { %1513 = vmatprep.mubr.f32.mxu0 %v5218_v18  ;;  %1554 = vmatprep.subr.mxu1 %v1553_v5 }
 0x157   : > { %1663 = vmatprep.subr.mxu0 %v5688_v53  ;;  %4985 = vmatmul.mubr.f32.vlgmr.msra.gmra.mxu1 %v5347_v45  ;;  %v1417_v45 = vpop.permute.xlu0 %1416 }
 0x158   : > { %1519 = vmatmul.mubr.f32.vlgmr.msra.gmra.mxu0 %v5754_v12  ;;  %1560 = vmatpush1.msra.mxu1 %v1559_v21 }
 0x159   : > { %1666 = vmatpush1.msra.mxu0 %v5697_v23  ;;  %1566 = vmatprep.subr.mxu1 %v5450_v28 }
 0x15a   : > { %1669 = vmatprep.subr.mxu0 %v5392_v2  ;;  %1572 = vmatpush1.msra.mxu1 %v5464_v34 }
 0x15b   : > { %1672 = vmatpush1.msra.mxu0 %v5364_v54  ;;  %1578 = vmatprep.subr.mxu1 %v5764_v11 }
 0x15c   : > { %1675 = vmatprep.subr.mxu0 %v5714_v49  ;;  %1584 = vmatpush1.msra.mxu1 %v5767_v56 }
 0x15d   : > { %1678 = vmatpush1.msra.mxu0 %v5721_v55  ;;  %1590 = vmatprep.subr.mxu1 %v5496_v47 }
 0x15e   : > { %1681 = vmatprep.subr.mxu0 %v5459_v31  ;;  %1596 = vmatpush1.msra.mxu1 %v5500_v48 }
 0x15f   : > { %1684 = vmatpush1.msra.mxu0 %v5416_v13  ;;  %1629 = vmatprep.mubr.f32.mxu1 %v5218_v18 }
 0x160   : > { %1717 = vmatprep.mubr.f32.mxu0 %v5218_v18  ;;  %1751 = vmatprep.subr.mxu1 %v5669_v20 }
 0x161   : > { %1835 = vmatprep.subr.mxu0 %v1551_v27  ;;  %1631 = vmatmul.mubr.f32.vlgmr.msra.gmra.mxu1 %v5680_v36 }
 0x162   : > { %1720 = vmatmul.mubr.f32.vlgmr.msra.gmra.mxu0 %v5703_v43  ;;  %1753 = vmatpush1.msra.mxu1 %v5676_v33 }
 0x163   : > { %1839 = vmatpush1.msra.mxu0 %v1557_v59  ;;  %1755 = vmatprep.subr.mxu1 %v5378_v60  ;;  %v4796_v59 = vld [vmem:[%s6391_s1 + $0x8] sm:$0xf] }
 0x164   : > { %1843 = vmatprep.subr.mxu0 %v5419_v15  ;;  %1757 = vmatpush1.msra.mxu1 %v5349_v46 }
 0x165   : > { %1847 = vmatpush1.msra.mxu0 %v5402_v6  ;;  %1759 = vmatprep.subr.mxu1 %v5692_v8 }
 0x166   : > { %1851 = vmatprep.subr.mxu0 %v5734_v63  ;;  %1761 = vmatpush1.msra.mxu1 %v5700_v42 }
 0x167   : > { %1855 = vmatpush1.msra.mxu0 %v5738_v22  ;;  %1763 = vmatprep.subr.mxu1 %v5442_v24 }
 0x168   : > { %1859 = vmatprep.subr.mxu0 %v5481_v41  ;;  %1765 = vmatpush1.msra.mxu1 %v5386_v0 }
 0x169   : > { %1863 = vmatpush1.msra.mxu0 %v5455_v30  ;;  %1798 = vmatprep.mubr.f32.mxu1 %v5218_v18 }
 0x16a   : > { %1929 = vmatprep.subr.mxu1 %v5669_v20  ;;  %1802 = vmatmul.mubr.f32.vlgmr.msra.gmra.mxu1 %v5724_v58 }
 0x16b   : > { %1931 = vmatpush1.msra.mxu1 %v5676_v33  ;;  %1896 = vmatprep.mubr.f32.mxu0 %v5218_v18 }
 0x16c   : > { %1933 = vmatprep.subr.mxu1 %v5378_v60  ;;  %1898 = vmatmul.mubr.f32.vlgmr.msra.gmra.mxu0 %v5680_v36 }
 0x16d   : > { %1935 = vmatpush1.msra.mxu1 %v5349_v46  ;;  %1976 = vmatprep.mubr.f32.mxu1 %v5218_v18  ;;  %v1428_v46 = vsel %vm290_vm6, %v5662_v50, %v1417_v45 }
 0x16e   : > { %1937 = vmatprep.subr.mxu1 %v5692_v8  ;;  %4987 = vmatprep.subr.mxu0 %v5218_v18  ;;  %v5822_v54 = vand.u32 4294901760, %v1428_v46 }
 0x16f   : > { %1939 = vmatpush1.msra.mxu1 %v5700_v42  ;;  %4995 = vmatprep.mubr.msk.f32.mxu0 %vm5221_vm9, %v5218_v18 }
 0x170   : > { %1941 = vmatprep.subr.mxu1 %v5442_v24  ;;  %v5827_v6 = vsub.f32 %v1428_v46, %v5822_v54 }
 0x171   : > { %1943 = vmatpush1.msra.mxu1 %v5386_v0 }
 0x172   : > { %1978 = vmatmul.mubr.f32.vlgmr.msra.gmra.mxu1 %v5680_v36  ;;  %4998 = vmatprep.subr.mxu1 %v5218_v18  ;;  %v5835_v34 = vand.u32 4294901760, %v5827_v6 }
 0x173   : > { %5006 = vmatprep.mubr.msk.f32.mxu1 %vm5221_vm9, %v5218_v18 }
 0x174   : > { %v2105_v33 = vsub.f32 %v5827_v6, %v5835_v34 }
 0x176   : > { %v5850_v23 = vand.u32 4294901760, %v2105_v33 }
 0x188   : > { %v1425_v60 = vpop.permute.xlu1 %1424 }
 0x189   : > { %v1431_v2 = vsel %vm290_vm6, %v5620_v3, %v1425_v60 }
 0x18a   : > { %v5829_v15 = vand.u32 4294901760, %v1431_v2 }
 0x18c   : > { %v2089_v28 = vsub.f32 %v1431_v2, %v5829_v15  ;;  %4988 = vmatpush3.msra.mxu0 %v5829_v15 }
 0x18d   : > { %4989 = vmatprep.subr.mxu0 %v5218_v18 }
 0x18e   : > { %v2090_v50 = vand.u32 4294901760, %v2089_v28  ;;  %4990 = vmatpush3.msra.mxu0 %v5545_v7 }
 0x18f   : > { %4991 = vmatprep.subr.mxu0 %v5218_v18 }
 0x190   : > { %v2091_v3 = vsub.f32 %v2089_v28, %v2090_v50  ;;  %4992 = vmatpush3.msra.mxu0 %v5822_v54 }
 0x191   : > { %4993 = vmatprep.subr.mxu0 %v5218_v18 }
 0x192   : > { %4994 = vmatpush3.msra.mxu0 %v5571_v16  ;;  %v2092_v20 = vand.u32 4294901760, %v2091_v3 }
 0x193   : > { %5009 = vmatprep.subr.mxu0 %v5218_v18  ;;  %4996 = vmatmul.mubr.f32.vlgmr.msra.gmra.mxu0 %v5754_v12 }
 0x194   : > { %4999 = vmatpush3.msra.mxu1 %v2092_v20  ;;  %5010 = vmatpush3.msra.mxu0 %v2089_v28 }
 0x195   : > { %5000 = vmatprep.subr.mxu1 %v5218_v18  ;;  %5011 = vmatprep.subr.mxu0 %v5218_v18 }
 0x196   : > { %v2526_v53 = vpop.permute.xlu1 %2525  ;;  %5001 = vmatpush3.msra.mxu1 %v5627_v62  ;;  %5012 = vmatpush3.msra.mxu0 %v5566_v51  ;;  %v2544_v62 = vsel %vm315_vm5, %v4796_v59, 0 }
 0x197   : > { %v5852_v27 = vpop.permute.xlu0 %2527  ;;  %5002 = vmatprep.subr.mxu1 %v5218_v18  ;;  %5013 = vmatprep.subr.mxu0 %v5218_v18  ;;  %v5878_v57 = vand.u32 4294901760, %v2544_v62 }
 0x198   : > { %5003 = vmatpush3.msra.mxu1 %v5850_v23  ;;  %5014 = vmatpush3.msra.mxu0 %v5827_v6  ;;  %v2535_v51 = vsel %vm290_vm6, %v2526_v53, %v5852_v27 }
 0x199   : > { %5004 = vmatprep.subr.mxu1 %v5218_v18  ;;  %5015 = vmatprep.subr.mxu0 %v5218_v18  ;;  %v5873_v1 = vand.u32 4294901760, %v2535_v51 }
 0x19a   : > { %5005 = vmatpush3.msra.mxu1 %v5644_v4  ;;  %5016 = vmatpush3.msra.mxu0 %v5592_v35 }
 0x19b   : > { %5007 = vmatmul.mubr.f32.vlgmr.msra.gmra.mxu1 %v5680_v36  ;;  %5017 = vmatprep.mubr.msk.f32.mxu0 %vm5221_vm9, %v5218_v18  ;;  %v5888_v21 = vsub.f32 %v2535_v51, %v5873_v1 }
 0x19c   : > { %v2524_v39 = vpop.permute.xlu1 %2523  ;;  %5020 = vmatprep.subr.mxu1 %v5218_v18  ;;  %5031 = vmatprep.subr.mxu0 %v5218_v18 }
 0x19d   : > { %v2534_v5 = vsel %vm290_vm6, %v2524_v39, %v2526_v53  ;;  %5018 = vmatmul.mubr.f32.vlgmr.msra.gmra.mxu0 %v5703_v43  ;;  %5021 = vmatpush3.msra.mxu1 %v5829_v15  ;;  %v5893_v43 = vsub.f32 %v2544_v62, %v5878_v57  ;;  %v2656_v2 = vand.u32 4294901760, %v5888_v21 }
 0x19e   : > { %v5880_v12 = vand.u32 4294901760, %v2534_v5  ;;  %5032 = vmatpush3.msra.mxu0 %v2090_v50  ;;  %5022 = vmatprep.subr.mxu1 %v5218_v18 }
 0x19f   : > { %5033 = vmatprep.subr.mxu0 %v5218_v18  ;;  %5023 = vmatpush3.msra.mxu1 %v5545_v7  ;;  %v5916_v28 = vand.u32 4294901760, %v5893_v43  ;;  %v2657_v53 = vsub.f32 %v5888_v21, %v2656_v2 }
 0x1a0   : > { %5034 = vmatpush3.msra.mxu0 %v5586_v32  ;;  %5024 = vmatprep.subr.mxu1 %v5218_v18  ;;  %v5896_v61 = vsub.f32 %v2534_v5, %v5880_v12 }
 0x1a1   : > { %5035 = vmatprep.subr.mxu0 %v5218_v18  ;;  %5025 = vmatpush3.msra.mxu1 %v5822_v54  ;;  %v2658_v39 = vand.u32 4294901760, %v2657_v53 }
 0x1a2   : > { %v2518_v45 = vpop.permute.xlu0 %2517  ;;  %v5898_v46 = vpop.permute.xlu1 %2519  ;;  %5036 = vmatpush3.msra.mxu0 %v5835_v34  ;;  %5026 = vmatprep.subr.mxu1 %v5218_v18  ;;  %v2662_v50 = vand.u32 4294901760, %v5896_v61 }
 0x1a3   : > { %v2532_v32 = vsel %vm290_vm6, %v2518_v45, %v5898_v46  ;;  %5037 = vmatprep.subr.mxu0 %v5218_v18  ;;  %5027 = vmatpush3.msra.mxu1 %v5571_v16 }
 0x1a4   : > { %v5906_v60 = vand.u32 4294901760, %v2532_v32  ;;  %5028 = vmatprep.mubr.msk.f32.mxu1 %vm5221_vm9, %v5218_v18  ;;  %5038 = vmatpush3.msra.mxu0 %v5615_v44  ;;  %v2663_v59 = vsub.f32 %v5896_v61, %v2662_v50 }
 0x1a5   : > { %5029 = vmatmul.mubr.f32.vlgmr.msra.gmra.mxu1 %v5724_v58  ;;  %5039 = vmatprep.mubr.msk.f32.mxu0 %vm5221_vm9, %v5218_v18 }
 0x1a6   : > { %v5920_v3 = vsub.f32 %v2532_v32, %v5906_v60  ;;  %5042 = vmatprep.subr.mxu1 %v5218_v18  ;;  %2571 = vmatprep.subr.mxu0 %v5873_v1  ;;  %v2664_v32 = vand.u32 4294901760, %v2663_v59 }
 0x1a7   : > { %5040 = vmatmul.mubr.f32.vlgmr.msra.gmra.mxu0 %v5680_v36  ;;  %5043 = vmatpush3.msra.mxu1 %v5829_v15  ;;  %v2622_v15 = vsub.f32 %v5893_v43, %v5916_v28 }
 0x1a8   : > { %v2516_v58 = vpop.permute.xlu0 %2515  ;;  %2573 = vmatpush1.msra.mxu0 %v5880_v12  ;;  %5044 = vmatprep.subr.mxu1 %v5218_v18  ;;  %v5929_v20 = vand.u32 4294901760, %v5920_v3  ;;  %v2530_v53 = vpop.permute.xlu1 %2529 }
 0x1a9   : > { %v2531_v33 = vsel %vm290_vm6, %v2516_v58, %v2518_v45  ;;  %2575 = vmatprep.subr.mxu0 %v5906_v60  ;;  %5045 = vmatpush3.msra.mxu1 %v5545_v7  ;;  %v5958_v5 = vand.u32 4294901760, %v2622_v15 }
 0x1aa   : > { %v5942_v51 = vand.u32 4294901760, %v2531_v33  ;;  %5046 = vmatprep.subr.mxu1 %v5218_v18  ;;  %5050 = vmatprep.mubr.msk.f32.mxu1 %vm5221_vm9, %v5218_v18  ;;  %v2669_v62 = vsub.f32 %v5920_v3, %v5929_v20 }
 0x1ab   : > { %5047 = vmatpush3.msra.mxu1 %v5822_v54  ;;  %2618 = vmatprep.mubr.f32.mxu0 %v5218_v18 }
 0x1ac   : > { %v5950_v7 = vsub.f32 %v2531_v33, %v5942_v51  ;;  %2577 = vmatpush1.msra.mxu0 %v5942_v51  ;;  %5048 = vmatprep.subr.mxu1 %v5218_v18  ;;  %v5967_v58 = vand.u32 4294901760, %v2669_v62 }
 0x1ad   : > { %2579 = vmatprep.subr.mxu0 %v5408_v9  ;;  %5049 = vmatpush3.msra.mxu1 %v5571_v16 }
 0x1ae   : > { %v5961_v45 = vand.u32 4294901760, %v5950_v7  ;;  %2581 = vmatpush1.msra.mxu0 %v5410_v10  ;;  %5051 = vmatmul.mubr.f32.vlgmr.msra.gmra.mxu1 %v5680_v36  ;;  %v2522_v15 = vpop.permute.xlu0 %2521 }
 0x1af   : > { %2583 = vmatprep.subr.mxu0 %v5442_v24  ;;  %2659 = vmatprep.subr.mxu1 %v2658_v39 }
 0x1b0   : > { %2585 = vmatpush1.msra.mxu0 %v5386_v0  ;;  %2665 = vmatpush1.msra.mxu1 %v2664_v32  ;;  %v2675_v33 = vsub.f32 %v5950_v7, %v5961_v45 }
 0x1b1   : > { %2768 = vmatprep.subr.mxu0 %v5888_v21  ;;  %2624 = vmatmul.mubr.f32.vlgmr.msra.gmra.mxu0 %v5958_v5 }
 0x1b2   : > { %2771 = vmatpush1.msra.mxu0 %v5896_v61  ;;  %2671 = vmatprep.subr.mxu1 %v5967_v58  ;;  %v5975_v36 = vand.u32 4294901760, %v2675_v33 }
 0x1b3   : > { %2774 = vmatprep.subr.mxu0 %v5920_v3  ;;  %2734 = vmatprep.mubr.f32.mxu1 %v5218_v18 }
 0x1b4   : > { %2677 = vmatpush1.msra.mxu1 %v5975_v36  ;;  %2777 = vmatpush1.msra.mxu0 %v5950_v7 }
 0x1b5   : > { %2683 = vmatprep.subr.mxu1 %v5476_v38  ;;  %2780 = vmatprep.subr.mxu0 %v5424_v17  ;;  %v2536_v17 = vsel %vm290_vm6, %v5852_v27, %v2530_v53 }
 0x1b6   : > { %2689 = vmatpush1.msra.mxu1 %v5478_v40  ;;  %2783 = vmatpush1.msra.mxu0 %v5427_v19  ;;  %v2533_v19 = vsel %vm290_vm6, %v5898_v46, %v2522_v15  ;;  %v6003_v38 = vand.u32 4294901760, %v2536_v17  ;;  %v4797_v46 = vld [vmem:[%s6391_s1 + $0xc] sm:$0xf] }
 0x1b7   : > { %2695 = vmatprep.subr.mxu1 %v5496_v47  ;;  %2786 = vmatprep.subr.mxu0 %v5459_v31  ;;  %v6009_v40 = vand.u32 4294901760, %v2533_v19 }
 0x1b8   : > { %2701 = vmatpush1.msra.mxu1 %v5500_v48  ;;  %2789 = vmatpush1.msra.mxu0 %v5416_v13  ;;  %v6016_v27 = vsub.f32 %v2536_v17, %v6003_v38 }
 0x1b9   : > { %2736 = vmatmul.mubr.f32.vlgmr.msra.gmra.mxu1 %v5878_v57  ;;  %2822 = vmatprep.mubr.f32.mxu0 %v5218_v18  ;;  %v6023_v21 = vsub.f32 %v2533_v19, %v6009_v40 }
 0x1ba   : > { %2856 = vmatprep.subr.mxu1 %v5873_v1  ;;  %2940 = vmatprep.subr.mxu0 %v2656_v2  ;;  %v6071_v2 = vpop.permute.xlu0 %3600 }
 0x1bb   : > { %2825 = vmatmul.mubr.f32.vlgmr.msra.gmra.mxu0 %v5893_v43  ;;  %2858 = vmatpush1.msra.mxu1 %v5880_v12 }
 0x1bc   : > { %2944 = vmatpush1.msra.mxu0 %v2662_v50  ;;  %2860 = vmatprep.subr.mxu1 %v5906_v60 }
 0x1bd   : > { %2948 = vmatprep.subr.mxu0 %v5929_v20  ;;  %2862 = vmatpush1.msra.mxu1 %v5942_v51 }
 0x1be   : > { %2952 = vmatpush1.msra.mxu0 %v5961_v45  ;;  %2864 = vmatprep.subr.mxu1 %v5408_v9 }
 0x1bf   : > { %2956 = vmatprep.subr.mxu0 %v5445_v25  ;;  %2866 = vmatpush1.msra.mxu1 %v5410_v10  ;;  %v3195_v25 = vand.u32 4294901760, %v6016_v27 }
 0x1c0   : > { %2960 = vmatpush1.msra.mxu0 %v5448_v26  ;;  %2868 = vmatprep.subr.mxu1 %v5442_v24  ;;  %v6035_v26 = vand.u32 4294901760, %v6023_v21 }
 0x1c1   : > { %2964 = vmatprep.subr.mxu0 %v5481_v41  ;;  %2870 = vmatpush1.msra.mxu1 %v5386_v0 }
 0x1c2   : > { %2903 = vmatprep.mubr.f32.mxu1 %v5218_v18  ;;  %2968 = vmatpush1.msra.mxu0 %v5455_v30 }
 0x1c3   : > { %2907 = vmatmul.mubr.f32.vlgmr.msra.gmra.mxu1 %v5916_v28  ;;  %3001 = vmatprep.mubr.f32.mxu0 %v5218_v18 }
 0x1c4   : > { %3034 = vmatprep.subr.mxu1 %v5873_v1  ;;  %5053 = vmatprep.subr.mxu0 %v5218_v18  ;;  %v3196_v1 = vsub.f32 %v6016_v27, %v3195_v25 }
 0x1c5   : > { %3003 = vmatmul.mubr.f32.vlgmr.msra.gmra.mxu0 %v5878_v57  ;;  %3036 = vmatpush1.msra.mxu1 %v5880_v12  ;;  %v3203_v12 = vsub.f32 %v6023_v21, %v6035_v26 }
 0x1c6   : > { %5054 = vmatpush3.msra.mxu0 %v6003_v38  ;;  %3038 = vmatprep.subr.mxu1 %v5906_v60 }
 0x1c7   : > { %5055 = vmatprep.subr.mxu0 %v5218_v18  ;;  %3040 = vmatpush1.msra.mxu1 %v5942_v51  ;;  %v6058_v61 = vand.u32 4294901760, %v3203_v12 }
 0x1c8   : > { %5056 = vmatpush3.msra.mxu0 %v6009_v40  ;;  %3042 = vmatprep.subr.mxu1 %v5408_v9  ;;  %v3197_v9 = vand.u32 4294901760, %v3196_v1 }
 0x1c9   : > { %5057 = vmatprep.subr.mxu0 %v5218_v18  ;;  %3044 = vmatpush1.msra.mxu1 %v5410_v10  ;;  %v3599_v10 = vpop.permute.xlu1 %3598 }
 0x1ca   : > { %5058 = vmatpush3.msra.mxu0 %v5561_v14  ;;  %3046 = vmatprep.subr.mxu1 %v5442_v24  ;;  %v3605_v59 = vsel %vm290_vm6, %v3599_v10, %v6071_v2 }
 0x1cb   : > { %5059 = vmatprep.subr.mxu0 %v5218_v18  ;;  %3048 = vmatpush1.msra.mxu1 %v5386_v0  ;;  %v6093_v39 = vand.u32 4294901760, %v3605_v59 }
 0x1cc   : > { %3081 = vmatprep.mubr.f32.mxu1 %v5218_v18  ;;  %5060 = vmatpush3.msra.mxu0 %v5571_v16 }
 0x1cd   : > { %3083 = vmatmul.mubr.f32.vlgmr.msra.gmra.mxu1 %v5878_v57  ;;  %5061 = vmatprep.mubr.msk.f32.mxu0 %vm5221_vm9, %v5218_v18  ;;  %v3597_v50 = vpop.permute.xlu1 %3596  ;;  %v6108_v32 = vsub.f32 %v3605_v59, %v6093_v39 }
 0x1ce   : > { %5064 = vmatprep.subr.mxu1 %v5218_v18  ;;  %5075 = vmatprep.subr.mxu0 %v5218_v18 }
 0x1cf   : > { %5062 = vmatmul.mubr.f32.vlgmr.msra.gmra.mxu0 %v5958_v5  ;;  %5065 = vmatpush3.msra.mxu1 %v3197_v9  ;;  %v3723_v15 = vand.u32 4294901760, %v6108_v32 }
 0x1d0   : > { %5076 = vmatpush3.msra.mxu0 %v6016_v27  ;;  %5066 = vmatprep.subr.mxu1 %v5218_v18 }
 0x1d1   : > { %5077 = vmatprep.subr.mxu0 %v5218_v18  ;;  %5067 = vmatpush3.msra.mxu1 %v6058_v61  ;;  %v3724_v27 = vsub.f32 %v6108_v32, %v3723_v15 }
 0x1d2   : > { %5078 = vmatpush3.msra.mxu0 %v6023_v21  ;;  %5068 = vmatprep.subr.mxu1 %v5218_v18 }
 0x1d3   : > { %5079 = vmatprep.subr.mxu0 %v5218_v18  ;;  %5069 = vmatpush3.msra.mxu1 %v5637_v29  ;;  %v3611_v29 = vsel %vm315_vm5, %v4797_v46, 0  ;;  %v3725_v12 = vand.u32 4294901760, %v3724_v27 }
 0x1d4   : > { %5080 = vmatpush3.msra.mxu0 %v5581_v52  ;;  %5070 = vmatprep.subr.mxu1 %v5218_v18  ;;  %v3604_v52 = vsel %vm290_vm6, %v3597_v50, %v3599_v10  ;;  %v6091_v62 = vand.u32 4294901760, %v3611_v29  ;;  %v3603_v50 = vpop.permute.xlu0 %3602 }
 0x1d5   : > { %5081 = vmatprep.subr.mxu0 %v5218_v18  ;;  %5071 = vmatpush3.msra.mxu1 %v5644_v4  ;;  %v6096_v5 = vand.u32 4294901760, %v3604_v52 }
 0x1d6   : > { %5072 = vmatprep.mubr.msk.f32.mxu1 %vm5221_vm9, %v5218_v18  ;;  %5082 = vmatpush3.msra.mxu0 %v5592_v35 }
 0x1d7   : > { %5073 = vmatmul.mubr.f32.vlgmr.msra.gmra.mxu1 %v5878_v57  ;;  %5083 = vmatprep.mubr.msk.f32.mxu0 %vm5221_vm9, %v5218_v18  ;;  %v6113_v33 = vsub.f32 %v3604_v52, %v6096_v5  ;;  %v6117_v53 = vpop.f32.mrf.mxu0 }
 0x1d8   : > { %5086 = vmatprep.subr.mxu1 %v5218_v18  ;;  %5097 = vmatprep.subr.mxu0 %v5218_v18 }
 0x1d9   : > { %5084 = vmatmul.mubr.f32.vlgmr.msra.gmra.mxu0 %v5893_v43  ;;  %5087 = vmatpush3.msra.mxu1 %v6003_v38  ;;  %v6105_v43 = vsub.f32 %v3611_v29, %v6091_v62  ;;  %v3729_v17 = vand.u32 4294901760, %v6113_v33  ;;  %v6134_v19 = vpop.f32.mrf.mxu0 }
 0x1da   : > { %5098 = vmatpush3.msra.mxu0 %v3195_v25  ;;  %5088 = vmatprep.subr.mxu1 %v5218_v18 }
 0x1db   : > { %5099 = vmatprep.subr.mxu0 %v5218_v18  ;;  %5089 = vmatpush3.msra.mxu1 %v6009_v40 }
 0x1dc   : > { %5100 = vmatpush3.msra.mxu0 %v6035_v26  ;;  %5090 = vmatprep.subr.mxu1 %v5218_v18 }
 0x1dd   : > { %5101 = vmatprep.subr.mxu0 %v5218_v18  ;;  %5091 = vmatpush3.msra.mxu1 %v5561_v14 }
 0x1de   : > { %5102 = vmatpush3.msra.mxu0 %v5602_v37  ;;  %5092 = vmatprep.subr.mxu1 %v5218_v18  ;;  %v6126_v37 = vand.u32 4294901760, %v6105_v43 }
 0x1df   : > { %5103 = vmatprep.subr.mxu0 %v5218_v18  ;;  %5093 = vmatpush3.msra.mxu1 %v5571_v16  ;;  %v510_v9 = vpop.f32.mrf.mxu1 }
 0x1e0   : > { %5094 = vmatprep.mubr.msk.f32.mxu1 %vm5221_vm9, %v5218_v18  ;;  %5104 = vmatpush3.msra.mxu0 %v5615_v44  ;;  %v6148_v25 = vpop.f32.mrf.mxu0 }
 0x1e1   : > { %5095 = vmatmul.mubr.f32.vlgmr.msra.gmra.mxu1 %v5916_v28  ;;  %5105 = vmatprep.mubr.msk.f32.mxu0 %vm5221_vm9, %v5218_v18  ;;  %v3689_v28 = vsub.f32 %v6105_v43, %v6126_v37 }
 0x1e2   : > { %5108 = vmatprep.subr.mxu1 %v5218_v18  ;;  %3638 = vmatprep.subr.mxu0 %v6093_v39  ;;  %v601_v10 = vpop.f32.mrf.mxu0 }
 0x1e3   : > { %5106 = vmatmul.mubr.f32.vlgmr.msra.gmra.mxu0 %v5878_v57  ;;  %5109 = vmatpush3.msra.mxu1 %v6003_v38  ;;  %v3730_v38 = vsub.f32 %v6113_v33, %v3729_v17  ;;  %v6154_v1 = vand.u32 4294901760, %v3689_v28 }
 0x1e4   : > { %3640 = vmatpush1.msra.mxu0 %v6096_v5  ;;  %5110 = vmatprep.subr.mxu1 %v5218_v18 }
 0x1e5   : > { %3642 = vmatprep.subr.mxu0 %v5906_v60  ;;  %5111 = vmatpush3.msra.mxu1 %v6009_v40 }
 0x1e6   : > { %3644 = vmatpush1.msra.mxu0 %v5942_v51  ;;  %5112 = vmatprep.subr.mxu1 %v5218_v18 }
 0x1e7   : > { %3646 = vmatprep.subr.mxu0 %v5692_v8  ;;  %5113 = vmatpush3.msra.mxu1 %v5561_v14  ;;  %v3731_v14 = vand.u32 4294901760, %v3730_v38 }
 0x1e8   : > { %3648 = vmatpush1.msra.mxu0 %v5700_v42  ;;  %5114 = vmatprep.subr.mxu1 %v5218_v18 }
 0x1e9   : > { %3650 = vmatprep.subr.mxu0 %v5442_v24  ;;  %5115 = vmatpush3.msra.mxu1 %v5571_v16 }
 0x1ea   : > { %5116 = vmatprep.mubr.msk.f32.mxu1 %vm5221_vm9, %v5218_v18  ;;  %3652 = vmatpush1.msra.mxu0 %v5386_v0 }
 0x1eb   : > { %5117 = vmatmul.mubr.f32.vlgmr.msra.gmra.mxu1 %v5878_v57  ;;  %3685 = vmatprep.mubr.f32.mxu0 %v5218_v18  ;;  %v512_v57 = vpop.f32.mrf.mxu1  ;;  %v6167_v46 = vpop.f32.mrf.mxu0 }
 0x1ec   : > { %3726 = vmatprep.subr.mxu1 %v3725_v12  ;;  %3835 = vmatprep.subr.mxu0 %v6108_v32 }
 0x1ed   : > { %3691 = vmatmul.mubr.f32.vlgmr.msra.gmra.mxu0 %v6154_v1  ;;  %3732 = vmatpush1.msra.mxu1 %v3731_v14 }
 0x1ee   : > { %3838 = vmatpush1.msra.mxu0 %v6113_v33  ;;  %3738 = vmatprep.subr.mxu1 %v5967_v58  ;;  %v6177_v58 = vpop.f32.mrf.mxu0 }
 0x1ef   : > { %3841 = vmatprep.subr.mxu0 %v5920_v3  ;;  %3744 = vmatpush1.msra.mxu1 %v5975_v36  ;;  %v681_v3 = vpop.f32.mrf.mxu1 }
 0x1f0   : > { %3844 = vmatpush1.msra.mxu0 %v5950_v7  ;;  %3750 = vmatprep.subr.mxu1 %v5764_v11  ;;  %v511_v11 = vadd.f32 %v510_v9, %v6117_v53 }
 0x1f1   : > { %3847 = vmatprep.subr.mxu0 %v5714_v49  ;;  %3756 = vmatpush1.msra.mxu1 %v5767_v56  ;;  %v3606_v49 = vsel %vm290_vm6, %v6071_v2, %v3603_v50  ;;  %v513_v56 = vadd.f32 %v512_v57, %v6134_v19 }
 0x1f2   : > { %3850 = vmatpush1.msra.mxu0 %v5721_v55  ;;  %3762 = vmatprep.subr.mxu1 %v5496_v47  ;;  %v600_v7 = vadd.f32 %v6148_v25, %v511_v11 }
 0x1f3   : > { %3853 = vmatprep.subr.mxu0 %v5459_v31  ;;  %3768 = vmatpush1.msra.mxu1 %v5500_v48  ;;  %v683_v31 = vpop.f32.mrf.mxu1 }
 0x1f4   : > { %3801 = vmatprep.mubr.f32.mxu1 %v5218_v18  ;;  %3856 = vmatpush1.msra.mxu0 %v5416_v13  ;;  %v6189_v13 = vand.u32 4294901760, %v3606_v49  ;;  %v682_v29 = vadd.f32 %v681_v3, %v600_v7 }
 0x1f5   : > { %3803 = vmatmul.mubr.f32.vlgmr.msra.gmra.mxu1 %v6091_v62  ;;  %3889 = vmatprep.mubr.f32.mxu0 %v5218_v18 }
 0x1f6   : > { %3923 = vmatprep.subr.mxu1 %v6093_v39  ;;  %4007 = vmatprep.subr.mxu0 %v3723_v15 }
 0x1f7   : > { %3892 = vmatmul.mubr.f32.vlgmr.msra.gmra.mxu0 %v6105_v43  ;;  %3925 = vmatpush1.msra.mxu1 %v6096_v5  ;;  %v937_v47 = vpop.f32.mrf.mxu0  ;;  %v857_v55 = vpop.f32.mrf.mxu1 }
 0x1f8   : > { %4011 = vmatpush1.msra.mxu0 %v3729_v17  ;;  %3927 = vmatprep.subr.mxu1 %v5906_v60 }
 0x1f9   : > { %4015 = vmatprep.subr.mxu0 %v5929_v20  ;;  %3929 = vmatpush1.msra.mxu1 %v5942_v51  ;;  %v4931_v48 = vpop.f32.mrf.mxu0  ;;  %v6202_v20 = vsub.f32 %v3606_v49, %v6189_v13 }
 0x1fa   : > { %4019 = vmatpush1.msra.mxu0 %v5961_v45  ;;  %3931 = vmatprep.subr.mxu1 %v5692_v8  ;;  %v602_v45 = vadd.f32 %v601_v10, %v513_v56 }
 0x1fb   : > { %4023 = vmatprep.subr.mxu0 %v5734_v63  ;;  %3933 = vmatpush1.msra.mxu1 %v5700_v42  ;;  %v1348_v63 = vlaneseq }
 0x1fc   : > { %4027 = vmatpush1.msra.mxu0 %v5738_v22  ;;  %3935 = vmatprep.subr.mxu1 %v5442_v24  ;;  %v859_v22 = vpop.f32.mrf.mxu1  ;;  %v684_v59 = vadd.f32 %v683_v31, %v602_v45 }
 0x1fd   : > { %4031 = vmatprep.subr.mxu0 %v5481_v41  ;;  %3937 = vmatpush1.msra.mxu1 %v5386_v0  ;;  %v4262_v41 = vand.u32 4294901760, %v6202_v20 }
 0x1fe   : > { %3970 = vmatprep.mubr.f32.mxu1 %v5218_v18  ;;  %4035 = vmatpush1.msra.mxu0 %v5455_v30  ;;  %v6220_v30 = vshrl.u32 %v1348_v63, 7 }
 0x1ff   : > { %3974 = vmatmul.mubr.f32.vlgmr.msra.gmra.mxu1 %v6126_v37  ;;  %4068 = vmatprep.mubr.f32.mxu0 %v5218_v18  ;;  %v4263_v52 = vsub.f32 %v6202_v20, %v4262_v41 }
 0x200   : > { %4101 = vmatprep.subr.mxu1 %v6093_v39  ;;  %5119 = vmatprep.subr.mxu0 %v5218_v18  ;;  %v1354_v39 = vsub.s32 1, %v6220_v30 }
 0x201   : > { %4070 = vmatmul.mubr.f32.vlgmr.msra.gmra.mxu0 %v6091_v62  ;;  %4103 = vmatpush1.msra.mxu1 %v6096_v5  ;;  %v780_v5 = vadd.f32 %v6177_v58, %v684_v59 }
 0x202   : > { %5120 = vmatpush3.msra.mxu0 %v6189_v13  ;;  %4105 = vmatprep.subr.mxu1 %v5906_v60 }
 0x203   : > { %5121 = vmatprep.subr.mxu0 %v5218_v18  ;;  %4107 = vmatpush1.msra.mxu1 %v5942_v51  ;;  %v1028_v36 = vpop.f32.mrf.mxu1  ;;  %v1108_v2 = vpop.f32.mrf.mxu0  ;;  %v6256_v17 = vadd.f32 %v859_v22, %v780_v5 }
 0x204   : > { %5122 = vmatpush3.msra.mxu0 %v6009_v40  ;;  %4109 = vmatprep.subr.mxu1 %v5692_v8  ;;  %v1350_v8 = vsub.s32 0, %v6220_v30  ;;  %v1029_v32 = vadd.f32 %v1028_v36, %v937_v47 }
 0x205   : > { %5123 = vmatprep.subr.mxu0 %v5218_v18  ;;  %4111 = vmatpush1.msra.mxu1 %v5700_v42  ;;  %v4942_v60 = vpop.f32.mrf.mxu1  ;;  %v4953_v51 = vpop.f32.mrf.mxu0  ;;  %v778_v42 = vadd.f32 %v6167_v46, %v682_v29 }
 0x206   : > { %5124 = vmatpush3.msra.mxu0 %v5822_v54  ;;  %4113 = vmatprep.subr.mxu1 %v5442_v24  ;;  %v209_v24 = vld [vmem:[%s6392_s2] sm:$0x7]  ;;  %v1109_v19 = vadd.f32 %v1108_v2, %v1029_v32 }
 0x207   : > { %5125 = vmatprep.subr.mxu0 %v5218_v18  ;;  %4115 = vmatpush1.msra.mxu1 %v5386_v0  ;;  %v4264_v0 = vand.u32 4294901760, %v4263_v52  ;;  %v6248_v33 = vrot.slane %v209_v24, %v1350_v8  ;;  %v6250_v53 = vrot.slane %v209_v24, %v1354_v39  ;;  %v6254_v15 = vadd.f32 %v857_v55, %v778_v42 }
 0x208   : > { %4148 = vmatprep.mubr.f32.mxu1 %v5218_v18  ;;  %5126 = vmatpush3.msra.mxu0 %v5571_v16 }
 0x209   : > { %4150 = vmatmul.mubr.f32.vlgmr.msra.gmra.mxu1 %v6091_v62  ;;  %5127 = vmatprep.mubr.msk.f32.mxu0 %vm5221_vm9, %v5218_v18  ;;  %v1363_v25 = vmul.f32 %v6248_v33, %v6254_v15 }
 0x20a   : > { %5130 = vmatprep.subr.mxu1 %v5218_v18  ;;  %5141 = vmatprep.subr.mxu0 %v5218_v18 }
 0x20b   : > { %5128 = vmatmul.mubr.f32.vlgmr.msra.gmra.mxu0 %v6154_v1  ;;  %5131 = vmatpush3.msra.mxu1 %v4264_v0  ;;  %v1367_v14 = vsel %vm1366_vm10, %v1363_v25, 0.0 }
 0x20c   : > { %5142 = vmatpush3.msra.mxu0 %v6202_v20  ;;  %5132 = vmatprep.subr.mxu1 %v5218_v18 }
 0x20d   : > { %5143 = vmatprep.subr.mxu0 %v5218_v18  ;;  %5133 = vmatpush3.msra.mxu1 %v6058_v61  ;;  %v1185_v28 = vpop.f32.mrf.mxu1  ;;  %v1364_v61 = vmul.f32 %v6250_v53, %v6256_v17 }
 0x20e   : > { %5144 = vmatpush3.msra.mxu0 %v6023_v21  ;;  %5134 = vmatprep.subr.mxu1 %v5218_v18  ;;  %v1268_v27 = vpop.f32.mrf.mxu0  ;;  %v1186_v1 = vadd.f32 %v1185_v28, %v1109_v19 }
 0x20f   : > { %5145 = vmatprep.subr.mxu0 %v5218_v18  ;;  %5135 = vmatpush3.msra.mxu1 %v5850_v23  ;;  %v4964_v38 = vpop.f32.mrf.mxu1  ;;  %v1374_v23 = vmul.f32 %v1363_v25, %v6254_v15  ;;  %v1368_v9 = vsel %vm1366_vm10, %v1364_v61, 0.0 }
 0x210   : > { %5146 = vmatpush3.msra.mxu0 %v5827_v6  ;;  %5136 = vmatprep.subr.mxu1 %v5218_v18  ;;  %v4975_v21 = vpop.f32.mrf.mxu0  ;;  %v1358_v6 = vsub.s32 2, %v6220_v30  ;;  %v1269_v12 = vadd.f32 %v1268_v27, %v1186_v1  ;;  %v1369_v3 = vadd.f32 %v1368_v9, %v1367_v14 }
 0x211   : > { %5147 = vmatprep.subr.mxu0 %v5218_v18  ;;  %5137 = vmatpush3.msra.mxu1 %v5644_v4  ;;  %v1375_v4 = vmul.f32 %v1364_v61, %v6256_v17  ;;  %v1377_v57 = vsel %vm1366_vm10, %v1374_v23, 0.0 }
 0x212   : > { %5138 = vmatprep.mubr.msk.f32.mxu1 %vm5221_vm9, %v5218_v18  ;;  %5148 = vmatpush3.msra.mxu0 %v5592_v35  ;;  %v6288_v35 = vrot.slane %v209_v24, %v1358_v6 }
 0x213   : > { %5139 = vmatmul.mubr.f32.vlgmr.msra.gmra.mxu1 %v6091_v62  ;;  %5149 = vmatprep.mubr.msk.f32.mxu0 %vm5221_vm9, %v5218_v18  ;;  %v1378_v46 = vsel %vm1366_vm10, %v1375_v4, 0.0 }
 0x214   : > { %5152 = vmatprep.subr.mxu1 %v5218_v18  ;;  %5163 = vmatprep.subr.mxu0 %v5218_v18  ;;  %v1379_v49 = vadd.f32 %v1378_v46, %v1377_v57 }
 0x215   : > { %5150 = vmatmul.mubr.f32.vlgmr.msra.gmra.mxu0 %v6105_v43  ;;  %5153 = vmatpush3.msra.mxu1 %v6189_v13 }
 0x216   : > { %5164 = vmatpush3.msra.mxu0 %v4262_v41  ;;  %5154 = vmatprep.subr.mxu1 %v5218_v18 }
 0x217   : > { %5165 = vmatprep.subr.mxu0 %v5218_v18  ;;  %5155 = vmatpush3.msra.mxu1 %v6009_v40  ;;  %v1343_v10 = vpop.f32.mrf.mxu1 }
 0x218   : > { %5166 = vmatpush3.msra.mxu0 %v6035_v26  ;;  %5156 = vmatprep.subr.mxu1 %v5218_v18  ;;  %v6296_v43 = vadd.f32 %v1343_v10, %v1269_v12  ;;  %v1520_v58 = vpop.f32.mrf.mxu0 }
 0x219   : > { %5167 = vmatprep.subr.mxu0 %v5218_v18  ;;  %5157 = vmatpush3.msra.mxu1 %v5822_v54  ;;  %v4986_v50 = vpop.f32.mrf.mxu1 }
 0x21a   : > { %5168 = vmatpush3.msra.mxu0 %v5835_v34  ;;  %5158 = vmatprep.subr.mxu1 %v5218_v18  ;;  %v1365_v26 = vmul.f32 %v6288_v35, %v6296_v43  ;;  %v1522_v48 = vpop.f32.mrf.mxu0 }
 0x21b   : > { %5169 = vmatprep.subr.mxu0 %v5218_v18  ;;  %5159 = vmatpush3.msra.mxu1 %v5571_v16 }
 0x21c   : > { %5160 = vmatprep.mubr.msk.f32.mxu1 %vm5221_vm9, %v5218_v18  ;;  %5170 = vmatpush3.msra.mxu0 %v5615_v44  ;;  %v1370_v31 = vsel %vm1366_vm10, %v1365_v26, 0.0  ;;  %v1376_v34 = vmul.f32 %v1365_v26, %v6296_v43 }
 0x21d   : > { %5161 = vmatmul.mubr.f32.vlgmr.msra.gmra.mxu1 %v6126_v37  ;;  %5174 = vmatprep.subr.mxu1 %v5218_v18  ;;  %v1371_v47 = vadd.f32 %v1370_v31, %v1369_v3 }
 0x21e   : > { %5171 = vmatprep.mubr.msk.f32.mxu0 %vm5221_vm9, %v5218_v18  ;;  %5175 = vmatpush3.msra.mxu1 %v6189_v13  ;;  %v1380_v55 = vsel %vm1366_vm10, %v1376_v34, 0.0 }
 0x21f   : > { %5172 = vmatmul.mubr.f32.vlgmr.msra.gmra.mxu0 %v6091_v62  ;;  %5176 = vmatprep.subr.mxu1 %v5218_v18  ;;  %v1381_v44 = vadd.f32 %v1380_v55, %v1379_v49 }
 0x220   : > { %5177 = vmatpush3.msra.mxu1 %v6009_v40  ;;  %5182 = vmatprep.mubr.msk.f32.mxu1 %vm5221_vm9, %v5218_v18 }
 0x221   : > { %5178 = vmatprep.subr.mxu1 %v5218_v18  ;;  %v1632_v37 = vpop.f32.mrf.mxu1  ;;  %1372 = vadd.xlane.f32.xlu1 %v1371_v47 }
 0x222   : > { %5179 = vmatpush3.msra.mxu1 %v5822_v54  ;;  %v1721_v13 = vpop.f32.mrf.mxu0  ;;  %1382 = vadd.xlane.f32.xlu0 %v1381_v44  ;;  %v1633_v11 = vadd.f32 %v1632_v37, %v1520_v58 }
 0x223   : > { %5180 = vmatprep.subr.mxu1 %v5218_v18  ;;  %v1634_v56 = vpop.f32.mrf.mxu1 }
 0x224   : > { %5181 = vmatpush3.msra.mxu1 %v5571_v16  ;;  %v1635_v40 = vadd.f32 %v1634_v56, %v1522_v48  ;;  %v1723_v20 = vpop.f32.mrf.mxu0  ;;  %v1722_v63 = vadd.f32 %v1721_v13, %v1633_v11 }
 0x225   : > { %5183 = vmatmul.mubr.f32.vlgmr.msra.gmra.mxu1 %v6091_v62 }
 0x226   : > { %v1724_v22 = vadd.f32 %v1723_v20, %v1635_v40 }
 0x22a   : > { %v1803_v7 = vpop.f32.mrf.mxu1 }
 0x22b   : > { %v1804_v45 = vadd.f32 %v1803_v7, %v1722_v63 }
 0x22c   : > { %v1805_v41 = vpop.f32.mrf.mxu1  ;;  %v1899_v30 = vpop.f32.mrf.mxu0 }
 0x22d   : > { %v1806_v54 = vadd.f32 %v1805_v41, %v1724_v22  ;;  %v1900_v2 = vadd.f32 %v1899_v30, %v1804_v45 }
 0x22e   : > { %v1901_v36 = vpop.f32.mrf.mxu0 }
 0x22f   : > { %v1902_v29 = vadd.f32 %v1901_v36, %v1806_v54 }
 0x232   : > { %v1979_v18 = vpop.f32.mrf.mxu1 }
 0x233   : > { %v1980_v59 = vadd.f32 %v1979_v18, %v1900_v2 }
 0x234   : > { %v1981_v52 = vpop.f32.mrf.mxu1 }
 0x235   : > { %v4664_v16 = vrot.slane %v1980_v59, 4  ;;  %v1982_v62 = vadd.f32 %v1981_v52, %v1902_v29  ;;  %v2469_v61 = vmul.f32 %v1980_v59, %v6248_v33 }
 0x237   : > { %v4679_v60 = vsel %vm1366_vm10, %v6254_v15, %v4664_v16  ;;  %v4665_v51 = vrot.slane %v1982_v62, 4  ;;  %v2470_v15 = vmul.f32 %v1982_v62, %v6250_v53  ;;  %v2479_v6 = vmul.f32 %v2469_v61, %v1980_v59 }
 0x238   : > { %4685 = vst [vmem:[%s6333_s18] sm:$0xff] %v4679_v60  ;;  %v2472_v14 = vsel %vm1366_vm10, %v2469_v61, 0.0 }
 0x239   : > { %v4680_v8 = vsel %vm1366_vm10, %v6256_v17, %v4665_v51  ;;  %v2480_v17 = vmul.f32 %v2470_v15, %v1982_v62  ;;  %v2473_v9 = vsel %vm1366_vm10, %v2470_v15, 0.0  ;;  %v2482_v50 = vsel %vm1366_vm10, %v2479_v6, 0.0 }
 0x23a   : > { %4686 = vst [vmem:[%s6333_s18 + $0x8] sm:$0xff] %v4680_v8  ;;  %v2474_v58 = vadd.f32 %v2473_v9, %v2472_v14 }
 0x23b   : > { %v2483_v3 = vsel %vm1366_vm10, %v2480_v17, 0.0 }
 0x23c   : > { %v2484_v47 = vadd.f32 %v2483_v3, %v2482_v50 }
 0x253   : > { %v2059_v39 = vpop.f32.mrf.mxu0 }
 0x255   : > { %v4997_v42 = vpop.f32.mrf.mxu0 }
 0x25b   : > { %v2150_v5 = vpop.f32.mrf.mxu1 }
 0x25c   : > { %v2151_v19 = vadd.f32 %v2150_v5, %v2059_v39 }
 0x25d   : > { %v5008_v24 = vpop.f32.mrf.mxu1  ;;  %v2230_v32 = vpop.f32.mrf.mxu0 }
 0x25e   : > { %v2231_v27 = vadd.f32 %v2230_v32, %v2151_v19 }
 0x25f   : > { %v5019_v0 = vpop.f32.mrf.mxu0 }
 0x265   : > { %v2307_v28 = vpop.f32.mrf.mxu1 }
 0x266   : > { %v2308_v1 = vadd.f32 %v2307_v28, %v2231_v27 }
 0x267   : > { %v5030_v38 = vpop.f32.mrf.mxu1  ;;  %v2390_v25 = vpop.f32.mrf.mxu0 }
 0x268   : > { %v2391_v23 = vadd.f32 %v2390_v25, %v2308_v1 }
 0x269   : > { %v5041_v21 = vpop.f32.mrf.mxu0 }
 0x26e   : > { %v2465_v4 = vpop.f32.mrf.mxu1 }
 0x26f   : > { %v2466_v12 = vadd.f32 %v2465_v4, %v2391_v23 }
 0x270   : > { %v5052_v10 = vpop.f32.mrf.mxu1 }
 0x271   : > { %v4666_v57 = vrot.slane %v2466_v12, 4  ;;  %v2471_v46 = vmul.f32 %v2466_v12, %v6288_v35  ;;  %v2625_v44 = vpop.f32.mrf.mxu0 }
 0x273   : > { %v4681_v26 = vsel %vm1366_vm10, %v6296_v43, %v4666_v57  ;;  %v2475_v49 = vsel %vm1366_vm10, %v2471_v46, 0.0  ;;  %v2481_v31 = vmul.f32 %v2471_v46, %v2466_v12  ;;  %v2627_v37 = vpop.f32.mrf.mxu0 }
 0x274   : > { %4687 = vst [vmem:[%s6333_s18 + $0x10] sm:$0xff] %v4681_v26  ;;  %v2476_v34 = vadd.f32 %v2475_v49, %v2474_v58 }
 0x275   : > { %v2485_v48 = vsel %vm1366_vm10, %v2481_v31, 0.0 }
 0x276   : > { %2477 = vadd.xlane.f32.xlu0 %v2476_v34  ;;  %v2486_v55 = vadd.f32 %v2485_v48, %v2484_v47 }
 0x278   : > { %2487 = vadd.xlane.f32.xlu1 %v2486_v55 }
 0x279   : > { %v2737_v11 = vpop.f32.mrf.mxu1 }
 0x27a   : > { %v2738_v2 = vadd.f32 %v2737_v11, %v2625_v44 }
 0x27b   : > { %v2826_v13 = vpop.f32.mrf.mxu0  ;;  %v2739_v40 = vpop.f32.mrf.mxu1 }
 0x27c   : > { %v2740_v54 = vadd.f32 %v2739_v40, %v2627_v37  ;;  %v2827_v16 = vadd.f32 %v2826_v13, %v2738_v2 }
 0x27d   : > { %v2828_v56 = vpop.f32.mrf.mxu0 }
 0x27e   : > { %v2829_v59 = vadd.f32 %v2828_v56, %v2740_v54 }
 0x283   : > { %v2908_v63 = vpop.f32.mrf.mxu1 }
 0x284   : > { %v2909_v60 = vadd.f32 %v2908_v63, %v2827_v16 }
 0x285   : > { %v3004_v20 = vpop.f32.mrf.mxu0  ;;  %v2910_v22 = vpop.f32.mrf.mxu1 }
 0x286   : > { %v2911_v62 = vadd.f32 %v2910_v22, %v2829_v59  ;;  %v3005_v42 = vadd.f32 %v3004_v20, %v2909_v60 }
 0x287   : > { %v3006_v43 = vpop.f32.mrf.mxu0 }
 0x288   : > { %v3007_v51 = vadd.f32 %v3006_v43, %v2911_v62 }
 0x28d   : > { %v3084_v45 = vpop.f32.mrf.mxu1 }
 0x28e   : > { %v3085_v0 = vadd.f32 %v3084_v45, %v3005_v42 }
 0x28f   : > { %v3164_v7 = vpop.f32.mrf.mxu0  ;;  %v3086_v30 = vpop.f32.mrf.mxu1 }
 0x290   : > { %v3087_v5 = vadd.f32 %v3086_v30, %v3007_v51  ;;  %v3574_v25 = vmul.f32 %v3085_v0, %v6248_v33 }
 0x291   : > { %v5063_v41 = vpop.f32.mrf.mxu0 }
 0x292   : > { %v3575_v27 = vmul.f32 %v3087_v5, %v6250_v53  ;;  %v3584_v21 = vmul.f32 %v3574_v25, %v3085_v0  ;;  %v3577_v12 = vsel %vm1366_vm10, %v3574_v25, 0.0 }
 0x294   : > { %v3585_v61 = vmul.f32 %v3575_v27, %v3087_v5  ;;  %v3578_v17 = vsel %vm1366_vm10, %v3575_v27, 0.0  ;;  %v3587_v46 = vsel %vm1366_vm10, %v3584_v21, 0.0 }
 0x295   : > { %v3579_v9 = vadd.f32 %v3578_v17, %v3577_v12 }
 0x296   : > { %v3588_v14 = vsel %vm1366_vm10, %v3585_v61, 0.0 }
 0x297   : > { %v3255_v36 = vpop.f32.mrf.mxu1  ;;  %v3589_v3 = vadd.f32 %v3588_v14, %v3587_v46 }
 0x298   : > { %v3256_v8 = vadd.f32 %v3255_v36, %v3164_v7 }
 0x299   : > { %v5074_v29 = vpop.f32.mrf.mxu1  ;;  %v3335_v18 = vpop.f32.mrf.mxu0 }
 0x29a   : > { %v3336_v19 = vadd.f32 %v3335_v18, %v3256_v8 }
 0x29b   : > { %v5085_v52 = vpop.f32.mrf.mxu0 }
 0x2a1   : > { %v3412_v39 = vpop.f32.mrf.mxu1 }
 0x2a2   : > { %v3413_v38 = vadd.f32 %v3412_v39, %v3336_v19 }
 0x2a3   : > { %v5096_v24 = vpop.f32.mrf.mxu1  ;;  %v3495_v32 = vpop.f32.mrf.mxu0 }
 0x2a4   : > { %v3496_v15 = vadd.f32 %v3495_v32, %v3413_v38 }
 0x2a5   : > { %v5107_v28 = vpop.f32.mrf.mxu0 }
 0x2ab   : > { %v3570_v1 = vpop.f32.mrf.mxu1 }
 0x2ac   : > { %v6355_v6 = vadd.f32 %v3570_v1, %v3496_v15 }
 0x2ad   : > { %v5118_v23 = vpop.f32.mrf.mxu1  ;;  %v3692_v49 = vpop.f32.mrf.mxu0 }
 0x2ae   : > { %v3576_v4 = vmul.f32 %v6355_v6, %v6288_v35 }
 0x2af   : > { %v3694_v31 = vpop.f32.mrf.mxu0 }
 0x2b0   : > { %v3580_v10 = vsel %vm1366_vm10, %v3576_v4, 0.0  ;;  %v3586_v57 = vmul.f32 %v3576_v4, %v6355_v6 }
 0x2b1   : > { %v3581_v50 = vadd.f32 %v3580_v10, %v3579_v9 }
 0x2b2   : > { %v3590_v58 = vsel %vm1366_vm10, %v3586_v57, 0.0 }
 0x2b3   : > { %3582 = vadd.xlane.f32.xlu0 %v3581_v50  ;;  %v3591_v26 = vadd.f32 %v3590_v58, %v3589_v3  ;;  %v1383_v58 = vpop.xlane.xlu0 %1382 }
 0x2b5   : > { %3592 = vadd.xlane.f32.xlu1 %v3591_v26  ;;  %v3804_v34 = vpop.f32.mrf.mxu1  ;;  %v1373_v26 = vpop.xlane.xlu1 %1372 }
 0x2b6   : > { %v3805_v55 = vadd.f32 %v3804_v34, %v3692_v49 }
 0x2b7   : > { %v3806_v47 = vpop.f32.mrf.mxu1  ;;  %v3893_v48 = vpop.f32.mrf.mxu0 }
 0x2b8   : > { %v3807_v37 = vadd.f32 %v3806_v47, %v3694_v31  ;;  %v3894_v11 = vadd.f32 %v3893_v48, %v3805_v55 }
 0x2b9   : > { %v3895_v13 = vpop.f32.mrf.mxu0 }
 0x2ba   : > { %v3896_v20 = vadd.f32 %v3895_v13, %v3807_v37 }
 0x2bf   : > { %v3975_v44 = vpop.f32.mrf.mxu1 }
 0x2c0   : > { %v3976_v63 = vadd.f32 %v3975_v44, %v3894_v11 }
 0x2c1   : > { %v3977_v56 = vpop.f32.mrf.mxu1  ;;  %v4071_v40 = vpop.f32.mrf.mxu0 }
 0x2c2   : > { %v3978_v43 = vadd.f32 %v3977_v56, %v3896_v20  ;;  %v4072_v7 = vadd.f32 %v4071_v40, %v3976_v63 }
 0x2c3   : > { %v4073_v22 = vpop.f32.mrf.mxu0 }
 0x2c4   : > { %v4074_v41 = vadd.f32 %v4073_v22, %v3978_v43 }
 0x2c9   : > { %v4151_v45 = vpop.f32.mrf.mxu1 }
 0x2ca   : > { %v4152_v30 = vadd.f32 %v4151_v45, %v4072_v7 }
 0x2cb   : > { %v4153_v54 = vpop.f32.mrf.mxu1  ;;  %v4231_v36 = vpop.f32.mrf.mxu0 }
 0x2cc   : > { %v4673_v2 = vrot.slane %v4152_v30, 4  ;;  %v4154_v29 = vadd.f32 %v4153_v54, %v4074_v41 }
 0x2cd   : > { %v5129_v18 = vpop.f32.mrf.mxu0 }
 0x2ce   : > { %v4682_v59 = vsel %vm1366_vm10, %v3085_v0, %v4673_v2  ;;  %v4674_v52 = vrot.slane %v4154_v29, 4  ;;  %v4642_v28 = vmul.f32 %v4154_v29, %v6250_v53  ;;  %v4641_v0 = vmul.f32 %v4152_v30, %v6248_v33 }
 0x2cf   : > { %4688 = vst [vmem:[%s6333_s18 + $0x18] sm:$0xff] %v4682_v59 }
 0x2d0   : > { %v4683_v16 = vsel %vm1366_vm10, %v3087_v5, %v4674_v52  ;;  %v4652_v25 = vmul.f32 %v4642_v28, %v4154_v29  ;;  %v4651_v15 = vmul.f32 %v4641_v0, %v4152_v30  ;;  %v4645_v21 = vsel %vm1366_vm10, %v4642_v28, 0.0 }
 0x2d1   : > { %4689 = vst [vmem:[%s6333_s18 + $0x20] sm:$0xff] %v4683_v16  ;;  %v4644_v12 = vsel %vm1366_vm10, %v4641_v0, 0.0 }
 0x2d2   : > { %v4655_v53 = vsel %vm1366_vm10, %v4652_v25, 0.0  ;;  %v4646_v14 = vadd.f32 %v4645_v21, %v4644_v12  ;;  %v4654_v57 = vsel %vm1366_vm10, %v4651_v15, 0.0 }
 0x2d3   : > { %v4322_v62 = vpop.f32.mrf.mxu1  ;;  %v4656_v50 = vadd.f32 %v4655_v53, %v4654_v57 }
 0x2d4   : > { %v4323_v39 = vadd.f32 %v4322_v62, %v4231_v36 }
 0x2d5   : > { %v5140_v60 = vpop.f32.mrf.mxu1  ;;  %v4402_v51 = vpop.f32.mrf.mxu0 }
 0x2d6   : > { %v4403_v24 = vadd.f32 %v4402_v51, %v4323_v39 }
 0x2d7   : > { %v5151_v8 = vpop.f32.mrf.mxu0 }
 0x2dd   : > { %v4479_v42 = vpop.f32.mrf.mxu1 }
 0x2de   : > { %v4480_v27 = vadd.f32 %v4479_v42, %v4403_v24 }
 0x2df   : > { %v5162_v32 = vpop.f32.mrf.mxu1  ;;  %v4562_v19 = vpop.f32.mrf.mxu0 }
 0x2e0   : > { %v4563_v61 = vadd.f32 %v4562_v19, %v4480_v27 }
 0x2e1   : > { %v5173_v38 = vpop.f32.mrf.mxu0 }
 0x2e5   : > { %v4637_v5 = vpop.f32.mrf.mxu1 }
 0x2e6   : > { %v4638_v1 = vadd.f32 %v4637_v5, %v4563_v61 }
 0x2e7   : > { %v5184_v17 = vpop.f32.mrf.mxu1 }
 0x2e8   : > { %v4675_v23 = vrot.slane %v4638_v1, 4  ;;  %v4643_v4 = vmul.f32 %v4638_v1, %v6288_v35 }
 0x2ea   : > { %v4684_v33 = vsel %vm1366_vm10, %v6355_v6, %v4675_v23  ;;  %v4647_v9 = vsel %vm1366_vm10, %v4643_v4, 0.0  ;;  %v4653_v10 = vmul.f32 %v4643_v4, %v4638_v1 }
 0x2eb   : > { %4690 = vst [vmem:[%s6333_s18 + $0x28] sm:$0xff] %v4684_v33  ;;  %v4648_v46 = vadd.f32 %v4647_v9, %v4646_v14 }
 0x2ec   : > { %v4657_v3 = vsel %vm1366_vm10, %v4653_v10, 0.0 }
 0x2ed   : > { %4649 = vadd.xlane.f32.xlu0 %v4648_v46  ;;  %v4658_v35 = vadd.f32 %v4657_v3, %v4656_v50 }
 0x2ef   : > { %4659 = vadd.xlane.f32.xlu1 %v4658_v35 }
 0x2ff   : > { %v2478_v49 = vpop.xlane.xlu0 %2477 }
 0x300   : > { %v4691_v44 = vadd.f32 %v2478_v49, %v1373_v26 }
 0x301   : > { %v2488_v31 = vpop.xlane.xlu1 %2487 }
 0x302   : > { %v4694_v37 = vadd.f32 %v2488_v31, %v1383_v58 }
 0x33c   : > { %v3583_v34 = vpop.xlane.xlu0 %3582 }
 0x33e   : > { %v3593_v6 = vpop.xlane.xlu1 %3592 }
 0x376   : > { %v4650_v47 = vpop.xlane.xlu0 %4649 }
 0x377   : > { %v4692_v48 = vadd.f32 %v4650_v47, %v3583_v34 }
 0x378   : > { %v4660_v55 = vpop.xlane.xlu1 %4659 }
 0x379   : > { %v4695_v13 = vadd.f32 %v4660_v55, %v3593_v6  ;;  %v4693_v11 = vadd.f32 %v4692_v48, %v4691_v44 }
 0x37b   : > { %v4696_v56 = vadd.f32 %v4695_v13, %v4694_v37 }
 0x37d   : > { %v4697_v40 = vsel %vm229_vm2, %v4693_v11, %v4696_v56 }
 0x37e   : > { %4699 = vst.msk [vmem:[%s208_s22] sm:$0xf] %vm4698_vm11, %v4697_v40 }
 0x37f PF: > { %s15_s15 = sadd.s32 1, %s5210_s15  }
 0x380   : > { %p12_p4 = scmp.ge.s32.totalorder %s15_s15, 4  }
 0x382   :  { %14 = sbr.rel (!%p12_p4) target bundleno = 1 (0x1), region = 77 }

// kernel: dcgan_forward.15
= control target key start
LH: loop header
LB: loop body
LE: loop exit
PB: predicated region body
PF: predicated region fallthrough
CT: control target
= control target key end

     0   :  { %s11162_s9 = smov 0   ;;  %s13335_s0 = inlined_call_operand.vmem [shape: f32[2,4,1408], index: 0, kind: input, shape index: {}]   ;;  %s13336_s1 = inlined_call_operand.vmem [shape: f32[4,3,16], index: 1, kind: input, shape index: {}]   ;;  %s13337_s2 = inlined_call_operand.vmem [shape: f32[2,12,1280], index: 2, kind: output, shape index: {}]  }
   0x1 LB: > { %s11038_s10 = sadd.s32 4294967295, %s11136_s9   ;;  %p11042_p0 = scmp.ge.s32.totalorder %s11136_s9, 1  ;;  %s11136_s9 = sphi %s11162_s9, %s12_s9  }
   0x2   : > { %p112_p1 = scmp.lt.s32.totalorder %s11136_s9, 3 }
   0x4   : > { %p113_p2 = pnand %p11042_p0, %p112_p1 }
   0x6   : > { %116 = sbr.rel (%p113_p2) target bundleno = 940 (0x3ac), region = 28 }
   0xb   : > { %p134_p3 = scmp.lt.s32.totalorder %s11038_s10, 1  ;;  %s11138_s15 = smov 34   ;;  %vm316_vm0 = vcmask 1043456   ;;  %vm295_vm1 = vcmask 285696   ;;  %vm243_vm2 = vcmask 277504   ;;  %vm199_vm3 = vcmask 7168  }
   0xc   : > { %s11139_s16 = smov 35   ;;  %s11140_s17 = smov 1   ;;  %v13340_v34 = vmov 0.0   ;;  %vm2990_vm4 = vcmask 269312   ;;  %vm2946_vm5 = vcmask 1039360   ;;  %vm447_vm6 = vcmask 130048  }
   0xd   : > { %s13538_s10 = smov (!%p134_p3, %s11038_s10), 1  ;;  %s11141_s18 = smov 33   ;;  %519 = vmatprep.mubr.f32.mxu0 %v13340_v34  ;;  %615 = vmatprep.mubr.f32.mxu1 %v13340_v34  ;;  %vm406_vm7 = vcmask 760832   ;;  %vm5639_vm8 = vcmask 769024   ;;  %vm5689_vm9 = vcmask 777216   ;;  %vm10910_vm10 = vcmask 1042432  }
   0xe   : > { %s11050_s11 = smul.u32 44, %s13538_s10  ;;  %s11142_s19 = smov 127   ;;  %vm10921_vm11 = vcmask 1045504   ;;  %vm10932_vm12 = vcmask 1040384  }
   0xf   : > { %s11143_s20 = smov 93   ;;  %s11145_s21 = smov 94  }
  0x10   : > { %s11176_s14 = scalar_lea.vmem %s13335_s0, %s11050_s11  ;;  %s11146_s22 = smov 95  }
  0x11   : > { %v11179_v0 = vld [vmem:[%s11176_s14 + $0x8] sm:$0xff]  ;;  %v11182_v1 = vld [vmem:[%s11176_s14] sm:$0xff]  ;;  %v11221_v6 = vld [vmem:[%s11176_s14 + $0x10] sm:$0xff]  ;;  %s11051_s3 = smul.u32 160, %s13538_s10 }
  0x12   : > { %225 = vrot.lane.b32.xlu1 %v11179_v0, %s11138_s15  ;;  %221 = vrot.lane.b32.xlu0 %v11182_v1, %s11138_s15  ;;  %v11190_v2 = vcombine.low %v11182_v1, %v11182_v1  ;;  %v11198_v3 = vcombine.low %v11179_v0, %v11179_v0  ;;  %v11202_v4 = vcombine.high %v11182_v1, %v11182_v1  ;;  %v11244_v9 = vld [vmem:[%s11176_s14 + $0x18] sm:$0xff]  ;;  %v11267_v12 = vld [vmem:[%s11176_s14 + $0x20] sm:$0xff] }
  0x13   : > { %v11214_v5 = vcombine.high %v11179_v0, %v11179_v0  ;;  %v11229_v7 = vcombine.low %v11221_v6, %v11221_v6  ;;  %v11237_v8 = vcombine.high %v11221_v6, %v11221_v6  ;;  %v11252_v10 = vcombine.low %v11244_v9, %v11244_v9  ;;  %v11290_v15 = vld [vmem:[%s11176_s14 + $0x28] sm:$0xf]  ;;  %s13215_s6 = scalar_lea.vmem %s13337_s2, %s11051_s3 }
  0x14   : > { %v11260_v11 = vcombine.high %v11244_v9, %v11244_v9  ;;  %v11275_v13 = vcombine.low %v11267_v12, %v11267_v12  ;;  %v11283_v14 = vcombine.high %v11267_v12, %v11267_v12  ;;  %v176_v16 = vcombine.low %v11290_v15, %v11290_v15 }
  0x16   : > { %275 = vrot.lane.b32.xlu1 %v11190_v2, %s11139_s16  ;;  %277 = vrot.lane.b32.xlu0 %v11182_v1, %s11139_s16 }
  0x1a   : > { %279 = vrot.lane.b32.xlu1 %v11198_v3, %s11139_s16  ;;  %223 = vrot.lane.b32.xlu0 %v11202_v4, %s11138_s15 }
  0x1e   : > { %179 = vrot.lane.b32.xlu1 %v11182_v1, %s11140_s17  ;;  %177 = vrot.lane.b32.xlu0 %v11190_v2, %s11140_s17 }
  0x22   : > { %227 = vrot.lane.b32.xlu1 %v11214_v5, %s11138_s15  ;;  %181 = vrot.lane.b32.xlu0 %v11198_v3, %s11140_s17 }
  0x26   : > { %281 = vrot.lane.b32.xlu1 %v11179_v0, %s11139_s16  ;;  %229 = vrot.lane.b32.xlu0 %v11221_v6, %s11138_s15 }
  0x2a   : > { %183 = vrot.lane.b32.xlu1 %v11179_v0, %s11140_s17  ;;  %283 = vrot.lane.b32.xlu0 %v11229_v7, %s11139_s16 }
  0x2e   : > { %231 = vrot.lane.b32.xlu1 %v11237_v8, %s11138_s15  ;;  %185 = vrot.lane.b32.xlu0 %v11229_v7, %s11140_s17 }
  0x32   : > { %285 = vrot.lane.b32.xlu1 %v11221_v6, %s11139_s16  ;;  %233 = vrot.lane.b32.xlu0 %v11244_v9, %s11138_s15 }
  0x36   : > { %187 = vrot.lane.b32.xlu1 %v11221_v6, %s11140_s17  ;;  %287 = vrot.lane.b32.xlu0 %v11252_v10, %s11139_s16 }
  0x3a   : > { %235 = vrot.lane.b32.xlu1 %v11260_v11, %s11138_s15  ;;  %189 = vrot.lane.b32.xlu0 %v11252_v10, %s11140_s17 }
  0x3e   : > { %289 = vrot.lane.b32.xlu1 %v11244_v9, %s11139_s16  ;;  %237 = vrot.lane.b32.xlu0 %v11267_v12, %s11138_s15 }
  0x42   : > { %191 = vrot.lane.b32.xlu1 %v11244_v9, %s11140_s17  ;;  %291 = vrot.lane.b32.xlu0 %v11275_v13, %s11139_s16 }
  0x46   : > { %239 = vrot.lane.b32.xlu1 %v11283_v14, %s11138_s15  ;;  %193 = vrot.lane.b32.xlu0 %v11275_v13, %s11140_s17 }
  0x4a   : > { %293 = vrot.lane.b32.xlu1 %v11267_v12, %s11139_s16  ;;  %241 = vrot.lane.b32.xlu0 %v11290_v15, %s11138_s15 }
  0x4e   : > { %197 = vrot.lane.b32.xlu1 %v176_v16, %s11140_s17  ;;  %195 = vrot.lane.b32.xlu0 %v11267_v12, %s11140_s17 }
  0x52   : > { %2970 = vrot.lane.b32.xlu1 %v11182_v1, %s11141_s18  ;;  %2968 = vrot.lane.b32.xlu0 %v11190_v2, %s11141_s18 }
  0x56   : > { %2928 = vrot.lane.b32.xlu1 %v11198_v3, %s11142_s19  ;;  %2972 = vrot.lane.b32.xlu0 %v11198_v3, %s11141_s18 }
  0x5a   : > { %2974 = vrot.lane.b32.xlu1 %v11179_v0, %s11141_s18  ;;  %2926 = vrot.lane.b32.xlu0 %v11182_v1, %s11142_s19 }
  0x5e   : > { %2930 = vrot.lane.b32.xlu0 %v11179_v0, %s11142_s19  ;;  %2932 = vrot.lane.b32.xlu1 %v11229_v7, %s11142_s19 }
  0x62   : > { %2924 = vrot.lane.b32.xlu0 %v11190_v2, %s11142_s19  ;;  %2978 = vrot.lane.b32.xlu1 %v11221_v6, %s11141_s18 }
  0x66   : > { %2976 = vrot.lane.b32.xlu0 %v11229_v7, %s11141_s18  ;;  %2936 = vrot.lane.b32.xlu1 %v11252_v10, %s11142_s19 }
  0x6a   : > { %2934 = vrot.lane.b32.xlu0 %v11221_v6, %s11142_s19  ;;  %2982 = vrot.lane.b32.xlu1 %v11244_v9, %s11141_s18 }
  0x6e   : > { %2980 = vrot.lane.b32.xlu0 %v11252_v10, %s11141_s18 }
  0x72   : > { %2938 = vrot.lane.b32.xlu0 %v11244_v9, %s11142_s19 }
  0x84   : > { %v226_v17 = vpop.permute.xlu1 %225  ;;  %v11333_v18 = vpop.permute.xlu0 %221 }
  0x88   : > { %v276_v19 = vpop.permute.xlu1 %275  ;;  %v278_v20 = vpop.permute.xlu0 %277 }
  0x89   : > { %v328_v21 = vsel %vm316_vm0, %v11333_v18, %v276_v19  ;;  %v296_v24 = vsel %vm295_vm1, %v276_v19, %v278_v20 }
  0x8a   : > { %384 = vrot.lane.b32.xlu1 %v328_v21, %s11143_s20 }
  0x8c   : > { %v280_v22 = vpop.permute.xlu1 %279  ;;  %v224_v23 = vpop.permute.xlu0 %223 }
  0x8d   : > { %v11341_v25 = vsel %vm243_vm2, %v11333_v18, %v224_v23  ;;  %v297_v31 = vsel %vm295_vm1, %v278_v20, %v280_v22  ;;  %v11351_v32 = vsel %vm243_vm2, %v224_v23, %v226_v17 }
  0x8e   : > { %v329_v26 = vsel %vm316_vm0, %v11341_v25, %v296_v24  ;;  %v330_v37 = vsel %vm316_vm0, %v11351_v32, %v297_v31 }
  0x8f   : > { %386 = vrot.lane.b32.xlu0 %v329_v26, %s11143_s20 }
  0x90   : > { %v180_v27 = vpop.permute.xlu1 %179  ;;  %v178_v28 = vpop.permute.xlu0 %177 }
  0x91   : > { %v200_v29 = vsel %vm199_vm3, %v178_v28, %v180_v27  ;;  %v317_v30 = vsel %vm316_vm0, %v11182_v1, %v178_v28 }
  0x92   : > { %362 = vrot.lane.b32.xlu1 %v317_v30, %s11143_s20  ;;  %v318_v33 = vsel %vm316_vm0, %v11202_v4, %v200_v29 }
  0x93   : > { %364 = vrot.lane.b32.xlu0 %v318_v33, %s11143_s20 }
  0x94   : > { %v228_v35 = vpop.permute.xlu1 %227  ;;  %v182_v36 = vpop.permute.xlu0 %181 }
  0x95   : > { %v201_v38 = vsel %vm199_vm3, %v180_v27, %v182_v36  ;;  %v11368_v43 = vsel %vm243_vm2, %v226_v17, %v228_v35 }
  0x96   : > { %388 = vrot.lane.b32.xlu1 %v330_v37, %s11143_s20  ;;  %v319_v41 = vsel %vm316_vm0, %v11179_v0, %v201_v38 }
  0x98   : > { %v282_v39 = vpop.permute.xlu1 %281  ;;  %v230_v40 = vpop.permute.xlu0 %229 }
  0x99   : > { %v298_v42 = vsel %vm295_vm1, %v280_v22, %v282_v39  ;;  %v11371_v46 = vsel %vm243_vm2, %v228_v35, %v230_v40 }
  0x9a   : > { %366 = vrot.lane.b32.xlu1 %v319_v41, %s11143_s20  ;;  %v331_v48 = vsel %vm316_vm0, %v11368_v43, %v298_v42 }
  0x9c   : > { %v184_v44 = vpop.permute.xlu1 %183  ;;  %v284_v45 = vpop.permute.xlu0 %283 }
  0x9d   : > { %v299_v47 = vsel %vm295_vm1, %v282_v39, %v284_v45  ;;  %v202_v49 = vsel %vm199_vm3, %v182_v36, %v184_v44 }
  0x9e   : > { %390 = vrot.lane.b32.xlu1 %v331_v48, %s11143_s20  ;;  %v332_v50 = vsel %vm316_vm0, %v11371_v46, %v299_v47  ;;  %v320_v54 = vsel %vm316_vm0, %v11214_v5, %v202_v49 }
  0x9f   : > { %392 = vrot.lane.b32.xlu0 %v332_v50, %s11143_s20 }
  0xa0   : > { %v232_v51 = vpop.permute.xlu1 %231  ;;  %v186_v52 = vpop.permute.xlu0 %185 }
  0xa1   : > { %v203_v53 = vsel %vm199_vm3, %v184_v44, %v186_v52  ;;  %v11389_v58 = vsel %vm243_vm2, %v230_v40, %v232_v51 }
  0xa2   : > { %368 = vrot.lane.b32.xlu1 %v320_v54, %s11143_s20  ;;  %v321_v55 = vsel %vm316_vm0, %v11221_v6, %v203_v53 }
  0xa3   : > { %370 = vrot.lane.b32.xlu0 %v321_v55, %s11143_s20 }
  0xa4   : > { %v286_v56 = vpop.permute.xlu1 %285  ;;  %v234_v57 = vpop.permute.xlu0 %233 }
  0xa5   : > { %v300_v59 = vsel %vm295_vm1, %v284_v45, %v286_v56  ;;  %v11396_v63 = vsel %vm243_vm2, %v232_v51, %v234_v57 }
  0xa6   : > { %v333_v60 = vsel %vm316_vm0, %v11389_v58, %v300_v59  ;;  %v11080_v59 = vld [vmem:[%s11176_s14 + $0x28] ss:$0 sps:$4 sm:$0xff]  }
  0xa7   : > { %394 = vrot.lane.b32.xlu1 %v333_v60, %s11143_s20 }
  0xa8   : > { %v188_v61 = vpop.permute.xlu1 %187  ;;  %v288_v62 = vpop.permute.xlu0 %287 }
  0xa9   : > { %v204_v16 = vsel %vm199_vm3, %v186_v52, %v188_v61  ;;  %v301_v17 = vsel %vm295_vm1, %v286_v56, %v288_v62 }
  0xaa   : > { %v322_v19 = vsel %vm316_vm0, %v11237_v8, %v204_v16  ;;  %v334_v20 = vsel %vm316_vm0, %v11396_v63, %v301_v17 }
  0xab   : > { %372 = vrot.lane.b32.xlu1 %v322_v19, %s11143_s20  ;;  %396 = vrot.lane.b32.xlu0 %v334_v20, %s11143_s20 }
  0xac   : > { %v236_v21 = vpop.permute.xlu1 %235  ;;  %v190_v22 = vpop.permute.xlu0 %189 }
  0xad   : > { %v205_v23 = vsel %vm199_vm3, %v188_v61, %v190_v22  ;;  %v11411_v28 = vsel %vm243_vm2, %v234_v57, %v236_v21 }
  0xae   : > { %v323_v24 = vsel %vm316_vm0, %v11244_v9, %v205_v23 }
  0xaf   : > { %374 = vrot.lane.b32.xlu0 %v323_v24, %s11143_s20 }
  0xb0   : > { %v290_v26 = vpop.permute.xlu1 %289  ;;  %v238_v27 = vpop.permute.xlu0 %237 }
  0xb1   : > { %v302_v29 = vsel %vm295_vm1, %v288_v62, %v290_v26  ;;  %v11418_v35 = vsel %vm243_vm2, %v236_v21, %v238_v27 }
  0xb2   : > { %v335_v30 = vsel %vm316_vm0, %v11411_v28, %v302_v29 }
  0xb3   : > { %398 = vrot.lane.b32.xlu1 %v335_v30, %s11143_s20 }
  0xb4   : > { %v192_v31 = vpop.permute.xlu1 %191  ;;  %v292_v33 = vpop.permute.xlu0 %291 }
  0xb5   : > { %v206_v36 = vsel %vm199_vm3, %v190_v22, %v192_v31  ;;  %v303_v37 = vsel %vm295_vm1, %v290_v26, %v292_v33 }
  0xb6   : > { %v324_v38 = vsel %vm316_vm0, %v11260_v11, %v206_v36  ;;  %v336_v39 = vsel %vm316_vm0, %v11418_v35, %v303_v37 }
  0xb7   : > { %376 = vrot.lane.b32.xlu1 %v324_v38, %s11143_s20  ;;  %400 = vrot.lane.b32.xlu0 %v336_v39, %s11143_s20 }
  0xb8   : > { %v240_v40 = vpop.permute.xlu1 %239  ;;  %v194_v41 = vpop.permute.xlu0 %193 }
  0xb9   : > { %v207_v42 = vsel %vm199_vm3, %v192_v31, %v194_v41  ;;  %v11436_v48 = vsel %vm243_vm2, %v238_v27, %v240_v40 }
  0xba   : > { %v325_v47 = vsel %vm316_vm0, %v11267_v12, %v207_v42 }
  0xbb   : > { %2940 = vrot.lane.b32.xlu1 %v11275_v13, %s11142_s19  ;;  %2984 = vrot.lane.b32.xlu0 %v11275_v13, %s11141_s18 }
  0xbc   : > { %v294_v44 = vpop.permute.xlu1 %293  ;;  %v242_v45 = vpop.permute.xlu0 %241 }
  0xbd   : > { %v304_v49 = vsel %vm295_vm1, %v292_v33, %v294_v44  ;;  %v11444_v52 = vsel %vm243_vm2, %v240_v40, %v242_v45 }
  0xbe   : > { %v337_v50 = vsel %vm316_vm0, %v11436_v48, %v304_v49  ;;  %v338_v56 = vsel %vm316_vm0, %v11444_v52, %v294_v44  ;;  %v339_v44 = vld [vmem:[%s13336_s1] sm:$0x7] }
  0xbf   : > { %402 = vrot.lane.b32.xlu1 %v337_v50, %s11143_s20  ;;  %378 = vrot.lane.b32.xlu0 %v325_v47, %s11143_s20  ;;  %v449_v47 = vsel %vm447_vm6, %v339_v44, 0 }
  0xc0   : > { %v196_v51 = vpop.permute.xlu0 %195  ;;  %v198_v54 = vpop.permute.xlu1 %197  ;;  %v11542_v50 = vand.u32 4294901760, %v449_v47 }
  0xc1   : > { %v208_v53 = vsel %vm199_vm3, %v194_v41, %v196_v51  ;;  %v209_v61 = vsel %vm199_vm3, %v196_v51, %v198_v54 }
  0xc2   : > { %v326_v57 = vsel %vm316_vm0, %v11283_v14, %v208_v53  ;;  %v327_v17 = vsel %vm316_vm0, %v11290_v15, %v209_v61 }
  0xc3   : > { %2986 = vrot.lane.b32.xlu1 %v11267_v12, %s11141_s18  ;;  %2942 = vrot.lane.b32.xlu0 %v11267_v12, %s11142_s19 }
  0xc4   : > { %v2969_v55 = vpop.permute.xlu0 %2968  ;;  %v2971_v62 = vpop.permute.xlu1 %2970 }
  0xc5   : > { %v2991_v20 = vsel %vm2990_vm4, %v2969_v55, %v2971_v62  ;;  %v3023_v27 = vsel %vm316_vm0, %v11333_v18, %v2969_v55  ;;  %v11551_v55 = vsub.f32 %v449_v47, %v11542_v50 }
  0xc6   : > { %v3024_v22 = vsel %vm316_vm0, %v11341_v25, %v2991_v20 }
  0xc7   : > { %404 = vrot.lane.b32.xlu0 %v338_v56, %s11143_s20  ;;  %380 = vrot.lane.b32.xlu1 %v326_v57, %s11143_s20  ;;  %v11563_v61 = vand.u32 4294901760, %v11551_v55 }
  0xc8   : > { %v2973_v60 = vpop.permute.xlu0 %2972  ;;  %v2929_v25 = vpop.permute.xlu1 %2928 }
  0xc9   : > { %v2992_v16 = vsel %vm2990_vm4, %v2971_v62, %v2973_v60 }
  0xca   : > { %v3025_v19 = vsel %vm316_vm0, %v11351_v32, %v2992_v16 }
  0xcb   : > { %2988 = vrot.lane.b32.xlu0 %v11080_v59, %s11141_s18  ;;  %2944 = vrot.lane.b32.xlu1 %v11080_v59, %s11142_s19 }
  0xcc   : > { %v2927_v21 = vpop.permute.xlu0 %2926  ;;  %v2975_v31 = vpop.permute.xlu1 %2974 }
  0xcd   : > { %v2948_v32 = vsel %vm2946_vm5, %v2927_v21, %v2929_v25  ;;  %v2993_v37 = vsel %vm2990_vm4, %v2973_v60, %v2975_v31 }
  0xce   : > { %v3013_v24 = vsel %vm316_vm0, %v11202_v4, %v2948_v32  ;;  %v3026_v38 = vsel %vm316_vm0, %v11368_v43, %v2993_v37 }
  0xcf   : > { %382 = vrot.lane.b32.xlu0 %v327_v17, %s11143_s20  ;;  %3084 = vrot.lane.b32.xlu1 %v3025_v19, %s11143_s20 }
  0xd0   : > { %v2931_v15 = vpop.permute.xlu0 %2930  ;;  %v2933_v18 = vpop.permute.xlu1 %2932 }
  0xd1   : > { %v2950_v43 = vsel %vm2946_vm5, %v2931_v15, %v2933_v18 }
  0xd2   : > { %v3015_v42 = vsel %vm316_vm0, %v11214_v5, %v2950_v43 }
  0xd3   : > { %3082 = vrot.lane.b32.xlu0 %v3024_v22, %s11143_s20  ;;  %5621 = vrot.lane.b32.xlu1 %v11179_v0, %s11145_s21  ;;  %v523_v22 = vsub.f32 %v11551_v55, %v11563_v61 }
  0xd4   : > { %v2925_v23 = vpop.permute.xlu0 %2924 }
  0xd5   : > { %v2947_v26 = vsel %vm2946_vm5, %v2925_v23, %v2927_v21 }
  0xd6   : > { %v3012_v30 = vsel %vm316_vm0, %v11182_v1, %v2947_v26 }
  0xd7   : > { %5619 = vrot.lane.b32.xlu0 %v11202_v4, %s11145_s21  ;;  %5669 = vrot.lane.b32.xlu1 %v11182_v1, %s11146_s22 }
  0xd8   : > { %v2977_v29 = vpop.permute.xlu0 %2976 }
  0xd9   : > { %v2994_v33 = vsel %vm2990_vm4, %v2975_v31, %v2977_v29 }
  0xda   : > { %v3027_v36 = vsel %vm316_vm0, %v11371_v46, %v2994_v33 }
  0xdb   : > { %5623 = vrot.lane.b32.xlu0 %v11214_v5, %s11145_s21  ;;  %5673 = vrot.lane.b32.xlu1 %v11179_v0, %s11146_s22 }
  0xdf   : > { %5671 = vrot.lane.b32.xlu0 %v11198_v3, %s11146_s22  ;;  %5617 = vrot.lane.b32.xlu1 %v11182_v1, %s11145_s21  ;;  %v2949_v3 = vsel %vm2946_vm5, %v2929_v25, %v2931_v15  ;;  %v2935_v1 = vpop.permute.xlu0 %2934 }
  0xe0   : > { %v3014_v4 = vsel %vm316_vm0, %v11179_v0, %v2949_v3  ;;  %v2979_v0 = vpop.permute.xlu1 %2978 }
  0xe1   : > { %v2995_v45 = vsel %vm2990_vm4, %v2977_v29, %v2979_v0 }
  0xe2   : > { %v3028_v5 = vsel %vm316_vm0, %v11389_v58, %v2995_v45 }
  0xe3   : > { %3080 = vrot.lane.b32.xlu0 %v3023_v27, %s11143_s20  ;;  %3060 = vrot.lane.b32.xlu1 %v3013_v24, %s11143_s20  ;;  %v2981_v46 = vpop.permute.xlu0 %2980  ;;  %v11593_v27 = vand.u32 4294901760, %v523_v22 }
  0xe4   : > { %v2937_v40 = vpop.permute.xlu1 %2936  ;;  %v2996_v41 = vsel %vm2990_vm4, %v2979_v0, %v2981_v46 }
  0xe5   : > { %v2952_v62 = vsel %vm2946_vm5, %v2935_v1, %v2937_v40 }
  0xe6   : > { %v3017_v21 = vsel %vm316_vm0, %v11237_v8, %v2952_v62 }
  0xe7   : > { %5667 = vrot.lane.b32.xlu0 %v11190_v2, %s11146_s22  ;;  %3058 = vrot.lane.b32.xlu1 %v3012_v30, %s11143_s20  ;;  %v2951_v2 = vsel %vm2946_vm5, %v2933_v18, %v2935_v1 }
  0xe8   : > { %v3016_v39 = vsel %vm316_vm0, %v11221_v6, %v2951_v2  ;;  %v11538_v49 = vpop.permute.xlu1 %2982 }
  0xe9   : > { %v2997_v15 = vsel %vm2990_vm4, %v2981_v46, %v11538_v49 }
  0xea   : > { %v3030_v26 = vsel %vm316_vm0, %v11411_v28, %v2997_v15 }
  0xeb   : > { %3062 = vrot.lane.b32.xlu0 %v3014_v4, %s11143_s20  ;;  %3088 = vrot.lane.b32.xlu1 %v3027_v36, %s11143_s20 }
  0xef   : > { %3086 = vrot.lane.b32.xlu0 %v3026_v38, %s11143_s20  ;;  %5627 = vrot.lane.b32.xlu1 %v11237_v8, %s11145_s21 }
  0xf3   : > { %5625 = vrot.lane.b32.xlu0 %v11221_v6, %s11145_s21  ;;  %5677 = vrot.lane.b32.xlu1 %v11221_v6, %s11146_s22  ;;  %v3029_v6 = vsel %vm316_vm0, %v11396_v63, %v2996_v41 }
  0xf7   : > { %5675 = vrot.lane.b32.xlu0 %v11229_v7, %s11146_s22  ;;  %3066 = vrot.lane.b32.xlu1 %v3016_v39, %s11143_s20  ;;  %v11535_v7 = vpop.permute.xlu0 %2938 }
  0xf8   : > { %v2953_v51 = vsel %vm2946_vm5, %v2937_v40, %v11535_v7 }
  0xf9   : > { %v3018_v57 = vsel %vm316_vm0, %v11244_v9, %v2953_v51 }
  0xfb   : > { %3064 = vrot.lane.b32.xlu0 %v3015_v42, %s11143_s20  ;;  %3092 = vrot.lane.b32.xlu1 %v3029_v6, %s11143_s20 }
  0xfc   : > { %v385_v63 = vpop.permute.xlu1 %384 }
  0xff   : > { %3090 = vrot.lane.b32.xlu0 %v3028_v5, %s11143_s20  ;;  %5631 = vrot.lane.b32.xlu1 %v11260_v11, %s11145_s21 }
 0x101   : > { %v387_v53 = vpop.permute.xlu0 %386 }
 0x102   : > { %v417_v54 = vsel %vm406_vm7, %v385_v63, %v387_v53 }
 0x103   : > { %v11553_v56 = vand.u32 4294901760, %v417_v54  ;;  %5629 = vrot.lane.b32.xlu0 %v11244_v9, %s11145_s21  ;;  %5681 = vrot.lane.b32.xlu1 %v11244_v9, %s11146_s22 }
 0x104   : > { %v363_v58 = vpop.permute.xlu1 %362 }
 0x105   : > { %v365_v59 = vpop.permute.xlu0 %364  ;;  %v566_v16 = vsub.f32 %v417_v54, %v11553_v56 }
 0x106   : > { %v407_v60 = vsel %vm406_vm7, %v363_v58, %v365_v59 }
 0x107   : > { %v11567_v17 = vand.u32 4294901760, %v407_v60  ;;  %5679 = vrot.lane.b32.xlu0 %v11252_v10, %s11146_s22  ;;  %3070 = vrot.lane.b32.xlu1 %v3018_v57, %s11143_s20  ;;  %v567_v10 = vand.u32 4294901760, %v566_v16 }
 0x108   : > { %v389_v19 = vpop.permute.xlu1 %388 }
 0x109   : > { %v418_v9 = vsel %vm406_vm7, %v387_v53, %v389_v19  ;;  %v11582_v25 = vsub.f32 %v407_v60, %v11567_v17  ;;  %v568_v30 = vsub.f32 %v566_v16, %v567_v10 }
 0x10a   : > { %v11573_v20 = vand.u32 4294901760, %v418_v9 }
 0x10b   : > { %3068 = vrot.lane.b32.xlu0 %v3017_v21, %s11143_s20  ;;  %v11597_v3 = vand.u32 4294901760, %v11582_v25  ;;  %v569_v1 = vand.u32 4294901760, %v568_v30 }
 0x10c   : > { %v367_v32 = vpop.permute.xlu1 %366  ;;  %480 = vmatprep.subr.mxu0 %v11573_v20  ;;  %v560_v23 = vsub.f32 %v418_v9, %v11573_v20 }
 0x10d   : > { %v408_v24 = vsel %vm406_vm7, %v365_v59, %v367_v32  ;;  %482 = vmatpush1.msra.mxu0 %v11553_v56  ;;  %v580_v38 = vsub.f32 %v11582_v25, %v11597_v3 }
 0x10e   : > { %v11589_v8 = vand.u32 4294901760, %v408_v24  ;;  %v561_v29 = vand.u32 4294901760, %v560_v23 }
 0x10f   : > { %3094 = vrot.lane.b32.xlu0 %v3030_v26, %s11143_s20  ;;  %v11636_v6 = vand.u32 4294901760, %v580_v38 }
 0x110   : > { %v11600_v31 = vsub.f32 %v408_v24, %v11589_v8  ;;  %v391_v33 = vpop.permute.xlu1 %390  ;;  %484 = vmatprep.subr.mxu0 %v11589_v8  ;;  %v562_v4 = vsub.f32 %v560_v23, %v561_v29 }
 0x111   : > { %486 = vmatpush1.msra.mxu0 %v11567_v17  ;;  %v11604_v18 = vpop.permute.xlu0 %392  ;;  %v419_v0 = vsel %vm406_vm7, %v389_v19, %v391_v33 }
 0x112   : > { %v420_v28 = vsel %vm406_vm7, %v391_v33, %v11604_v18  ;;  %653 = vmatprep.subr.mxu0 %v560_v23  ;;  %525 = vmatmul.mubr.f32.vlgmr.msra.gmra.mxu0 %v11593_v27  ;;  %v563_v36 = vand.u32 4294901760, %v562_v4  ;;  %v11610_v37 = vand.u32 4294901760, %v11600_v31  ;;  %v11631_v44 = vand.u32 4294901760, %v419_v0 }
 0x113   : > { %5633 = vrot.lane.b32.xlu0 %v11267_v12, %s11145_s21  ;;  %656 = vmatpush1.msra.mxu0 %v566_v16  ;;  %v11617_v2 = vand.u32 4294901760, %v420_v28 }
 0x114   : > { %v369_v46 = vpop.permute.xlu1 %368  ;;  %564 = vmatprep.subr.mxu1 %v563_v36  ;;  %659 = vmatprep.subr.mxu0 %v11600_v31  ;;  %v574_v39 = vsub.f32 %v11600_v31, %v11610_v37 }
 0x115   : > { %570 = vmatpush1.msra.mxu1 %v569_v1  ;;  %662 = vmatpush1.msra.mxu0 %v11582_v25  ;;  %v11623_v43 = vpop.permute.xlu0 %370  ;;  %v409_v40 = vsel %vm406_vm7, %v367_v32, %v369_v46  ;;  %v1051_v47 = vsub.f32 %v420_v28, %v11617_v2 }
 0x116   : > { %v410_v41 = vsel %vm406_vm7, %v369_v46, %v11623_v43  ;;  %695 = vmatprep.mubr.f32.mxu0 %v13340_v34  ;;  %813 = vmatprep.subr.mxu0 %v561_v29  ;;  %v11629_v42 = vand.u32 4294901760, %v574_v39  ;;  %v11642_v5 = vand.u32 4294901760, %v409_v40 }
 0x117   : > { %5683 = vrot.lane.b32.xlu0 %v11275_v13, %s11146_s22  ;;  %698 = vmatmul.mubr.f32.vlgmr.msra.gmra.mxu0 %v11551_v55  ;;  %v11638_v45 = vand.u32 4294901760, %v410_v41  ;;  %v1057_v13 = vsub.f32 %v419_v0, %v11631_v44  ;;  %v1052_v53 = vand.u32 4294901760, %v1051_v47 }
 0x118   : > { %817 = vmatpush1.msra.mxu0 %v567_v10  ;;  %576 = vmatprep.subr.mxu1 %v11629_v42  ;;  %v11657_v54 = vsub.f32 %v409_v40, %v11642_v5 }
 0x119   : > { %821 = vmatprep.subr.mxu0 %v11610_v37  ;;  %582 = vmatpush1.msra.mxu1 %v11636_v6  ;;  %v395_v63 = vpop.permute.xlu1 %394  ;;  %v11652_v51 = vsub.f32 %v410_v41, %v11638_v45  ;;  %v1058_v57 = vand.u32 4294901760, %v1057_v13  ;;  %v1053_v59 = vsub.f32 %v1051_v47, %v1052_v53 }
 0x11a   : > { %825 = vmatpush1.msra.mxu0 %v11597_v3  ;;  %733 = vmatprep.subr.mxu1 %v11573_v20  ;;  %v11673_v62 = vand.u32 4294901760, %v11657_v54  ;;  %v421_v10 = vsel %vm406_vm7, %v11604_v18, %v395_v63 }
 0x11b   : > { %858 = vmatprep.mubr.f32.mxu0 %v13340_v34  ;;  %971 = vmatprep.subr.mxu0 %v11617_v2  ;;  %v11670_v60 = vand.u32 4294901760, %v11652_v51  ;;  %v1059_v19 = vsub.f32 %v1057_v13, %v1058_v57  ;;  %v1054_v21 = vand.u32 4294901760, %v1053_v59  ;;  %v11705_v29 = vand.u32 4294901760, %v421_v10 }
 0x11c   : > { %617 = vmatmul.mubr.f32.vlgmr.msra.gmra.mxu1 %v11542_v50  ;;  %860 = vmatmul.mubr.f32.vlgmr.msra.gmra.mxu0 %v11542_v50 }
 0x11d   : > { %735 = vmatpush1.msra.mxu1 %v11553_v56  ;;  %973 = vmatpush1.msra.mxu0 %v11631_v44  ;;  %v11663_v58 = vpop.permute.xlu0 %396  ;;  %v373_v16 = vpop.permute.xlu1 %372  ;;  %v1065_v22 = vsub.f32 %v11652_v51, %v11670_v60  ;;  %v1060_v24 = vand.u32 4294901760, %v1059_v19  ;;  %v1548_v38 = vsub.f32 %v421_v10, %v11705_v29 }
 0x11e   : > { %737 = vmatprep.subr.mxu1 %v11589_v8  ;;  %975 = vmatprep.subr.mxu0 %v11638_v45  ;;  %v422_v9 = vsel %vm406_vm7, %v395_v63, %v11663_v58  ;;  %v411_v30 = vsel %vm406_vm7, %v11623_v43, %v373_v16 }
 0x11f   : > { %739 = vmatpush1.msra.mxu1 %v11567_v17  ;;  %977 = vmatpush1.msra.mxu0 %v11642_v5  ;;  %v11695_v32 = vand.u32 4294901760, %v422_v9  ;;  %v11703_v26 = vand.u32 4294901760, %v1065_v22  ;;  %v11722_v1 = vand.u32 4294901760, %v411_v30  ;;  %v1549_v41 = vand.u32 4294901760, %v1548_v38 }
 0x120   : > { %772 = vmatprep.mubr.f32.mxu1 %v13340_v34  ;;  %895 = vmatprep.subr.mxu1 %v11573_v20 }
 0x121   : > { %1010 = vmatprep.mubr.f32.mxu0 %v13340_v34  ;;  %1144 = vmatprep.subr.mxu0 %v1051_v47  ;;  %v11683_v20 = vpop.permute.xlu0 %374  ;;  %v1542_v28 = vsub.f32 %v422_v9, %v11695_v32  ;;  %v11741_v40 = vsub.f32 %v411_v30, %v11722_v1  ;;  %v1550_v59 = vsub.f32 %v1548_v38, %v1549_v41 }
 0x122   : > { %776 = vmatmul.mubr.f32.vlgmr.msra.gmra.mxu1 %v11563_v61  ;;  %1016 = vmatmul.mubr.f32.vlgmr.msra.gmra.mxu0 %v11593_v27  ;;  %v412_v23 = vsel %vm406_vm7, %v373_v16, %v11683_v20 }
 0x123   : > { %897 = vmatpush1.msra.mxu1 %v11553_v56  ;;  %1147 = vmatpush1.msra.mxu0 %v1057_v13  ;;  %v1071_v56 = vsub.f32 %v11657_v54, %v11673_v62  ;;  %v11716_v36 = vand.u32 4294901760, %v412_v23  ;;  %v1543_v43 = vand.u32 4294901760, %v1542_v28  ;;  %v1551_v10 = vand.u32 4294901760, %v1550_v59 }
 0x124   : > { %899 = vmatprep.subr.mxu1 %v11589_v8  ;;  %1150 = vmatprep.subr.mxu0 %v11652_v51 }
 0x125   : > { %901 = vmatpush1.msra.mxu1 %v11567_v17  ;;  %1153 = vmatpush1.msra.mxu0 %v11657_v54  ;;  %v11689_v15 = vpop.permute.xlu1 %398  ;;  %v11709_v33 = vand.u32 4294901760, %v1071_v56  ;;  %v11734_v39 = vsub.f32 %v412_v23, %v11716_v36  ;;  %v1544_v63 = vsub.f32 %v1542_v28, %v1543_v43 }
 0x126   : > { %934 = vmatprep.mubr.f32.mxu1 %v13340_v34  ;;  %1055 = vmatprep.subr.mxu1 %v1054_v21  ;;  %v423_v56 = vsel %vm406_vm7, %v11663_v58, %v11689_v15 }
 0x127   : > { %1186 = vmatprep.mubr.f32.mxu0 %v13340_v34  ;;  %1304 = vmatprep.subr.mxu0 %v1052_v53  ;;  %v11754_v53 = vand.u32 4294901760, %v11734_v39  ;;  %v1545_v9 = vand.u32 4294901760, %v1544_v63 }
 0x128   : > { %936 = vmatmul.mubr.f32.vlgmr.msra.gmra.mxu1 %v11542_v50  ;;  %1189 = vmatmul.mubr.f32.vlgmr.msra.gmra.mxu0 %v11551_v55 }
 0x129   : > { %1061 = vmatpush1.msra.mxu1 %v1060_v24  ;;  %1308 = vmatpush1.msra.mxu0 %v1058_v57  ;;  %v11711_v4 = vpop.permute.xlu1 %376  ;;  %v11713_v18 = vpop.permute.xlu0 %400  ;;  %13410 = vst [vmem:[#allocation2_spill] sm:$0xff] %v11754_v53  ;;  %v11758_v57 = vand.u32 4294901760, %v11741_v40  ;;  %v1556_v21 = vsub.f32 %v11734_v39, %v11754_v53 }
 0x12a   : > { %1067 = vmatprep.subr.mxu1 %v11703_v26  ;;  %1312 = vmatprep.subr.mxu0 %v11670_v60 }
 0x12b   : > { %1073 = vmatpush1.msra.mxu1 %v11709_v33  ;;  %1316 = vmatpush1.msra.mxu0 %v11673_v62  ;;  %13411 = vst [vmem:[#allocation3_spill] sm:$0xff] %v11758_v57 }
 0x12c   : > { %1106 = vmatprep.mubr.f32.mxu1 %v13340_v34  ;;  %1224 = vmatprep.subr.mxu1 %v11617_v2 }
 0x12d   : > { %1349 = vmatprep.mubr.f32.mxu0 %v13340_v34  ;;  %1462 = vmatprep.subr.mxu0 %v11695_v32  ;;  %v11729_v0 = vpop.permute.xlu1 %2940  ;;  %v11731_v46 = vpop.permute.xlu0 %2984 }
 0x12e   : > { %1108 = vmatmul.mubr.f32.vlgmr.msra.gmra.mxu1 %v11542_v50  ;;  %1351 = vmatmul.mubr.f32.vlgmr.msra.gmra.mxu0 %v11542_v50  ;;  %v2954_v19 = vsel %vm2946_vm5, %v11535_v7, %v11729_v0  ;;  %v2998_v22 = vsel %vm2990_vm4, %v11538_v49, %v11731_v46  ;;  %v1562_v7 = vsub.f32 %v11741_v40, %v11758_v57 }
 0x12f   : > { %1226 = vmatpush1.msra.mxu1 %v11631_v44  ;;  %1464 = vmatpush1.msra.mxu0 %v11705_v29  ;;  %v3019_v23 = vsel %vm316_vm0, %v11260_v11, %v2954_v19  ;;  %v3031_v58 = vsel %vm316_vm0, %v11418_v35, %v2998_v22  ;;  %v11806_v11 = vand.u32 4294901760, %v423_v56 }
 0x130   : > { %1228 = vmatprep.subr.mxu1 %v11638_v45  ;;  %1466 = vmatprep.subr.mxu0 %v11716_v36 }
 0x131   : > { %1230 = vmatpush1.msra.mxu1 %v11642_v5  ;;  %1468 = vmatpush1.msra.mxu0 %v11722_v1  ;;  %v11747_v47 = vpop.permute.xlu1 %402  ;;  %v11749_v13 = vpop.permute.xlu0 %378 }
 0x132   : > { %1263 = vmatprep.mubr.f32.mxu1 %v13340_v34  ;;  %1386 = vmatprep.subr.mxu1 %v11617_v2 }
 0x133   : > { %1501 = vmatprep.mubr.f32.mxu0 %v13340_v34  ;;  %1635 = vmatprep.subr.mxu0 %v1542_v28  ;;  %v11799_v28 = vand.u32 4294901760, %v1556_v21 }
 0x134   : > { %1267 = vmatmul.mubr.f32.vlgmr.msra.gmra.mxu1 %v11563_v61  ;;  %1507 = vmatmul.mubr.f32.vlgmr.msra.gmra.mxu0 %v11593_v27 }
 0x135   : > { %1388 = vmatpush1.msra.mxu1 %v11631_v44  ;;  %1638 = vmatpush1.msra.mxu0 %v1548_v38  ;;  %v11763_v16 = vpop.permute.xlu1 %2986  ;;  %v11765_v2 = vpop.permute.xlu0 %2942  ;;  %v424_v44 = vsel %vm406_vm7, %v11689_v15, %v11713_v18  ;;  %v414_v15 = vsel %vm406_vm7, %v11711_v4, %v11749_v13  ;;  %v413_v38 = vsel %vm406_vm7, %v11683_v20, %v11711_v4 }
 0x136   : > { %1390 = vmatprep.subr.mxu1 %v11638_v45  ;;  %1641 = vmatprep.subr.mxu0 %v11734_v39  ;;  %v11795_v30 = vand.u32 4294901760, %v424_v44  ;;  %v11817_v35 = vand.u32 4294901760, %v414_v15  ;;  %v11828_v20 = vand.u32 4294901760, %v413_v38  ;;  %v11833_v4 = vsub.f32 %v423_v56, %v11806_v11 }
 0x137   : > { %1392 = vmatpush1.msra.mxu1 %v11642_v5  ;;  %1644 = vmatpush1.msra.mxu0 %v11741_v40 }
 0x138   : > { %1425 = vmatprep.mubr.f32.mxu1 %v13340_v34  ;;  %1546 = vmatprep.subr.mxu1 %v1545_v9  ;;  %13413 = vst [vmem:[#allocation5_spill] sm:$0xff] %v11817_v35  ;;  %v11824_v59 = vsub.f32 %v424_v44, %v11795_v30  ;;  %13414 = vst [vmem:[#allocation6_spill] sm:$0xff] %v11828_v20  ;;  %v11838_v19 = vsub.f32 %v414_v15, %v11817_v35  ;;  %v2040_v56 = vand.u32 4294901760, %v11833_v4 }
 0x139   : > { %1677 = vmatprep.mubr.f32.mxu0 %v13340_v34  ;;  %1795 = vmatprep.subr.mxu0 %v1543_v43  ;;  %v11791_v24 = vpop.permute.xlu1 %380  ;;  %v11793_v49 = vpop.permute.xlu0 %404  ;;  %v11813_v43 = vand.u32 4294901760, %v1562_v7  ;;  %v11848_v22 = vsub.f32 %v413_v38, %v11828_v20  ;;  %v2999_v7 = vsel %vm2990_vm4, %v11731_v46, %v11763_v16 }
 0x13a   : > { %1427 = vmatmul.mubr.f32.vlgmr.msra.gmra.mxu1 %v11542_v50  ;;  %1680 = vmatmul.mubr.f32.vlgmr.msra.gmra.mxu0 %v11551_v55  ;;  %13415 = vst [vmem:[#allocation7_spill] sm:$0xff] %v11838_v19  ;;  %v2034_v44 = vand.u32 4294901760, %v11824_v59  ;;  %v3032_v46 = vsel %vm316_vm0, %v11436_v48, %v2999_v7 }
 0x13b   : > { %1552 = vmatpush1.msra.mxu1 %v1551_v10  ;;  %1799 = vmatpush1.msra.mxu0 %v1549_v41  ;;  %13412 = vst [vmem:[#allocation4_spill] sm:$0xff] %v11813_v43  ;;  %13416 = vst [vmem:[#allocation8_spill] sm:$0xff] %v11848_v22  ;;  %v11862_v10 = vand.u32 4294901760, %v11838_v19  ;;  %v11874_v38 = vand.u32 4294901760, %v11848_v22 }
 0x13c   : > { %3072 = vrot.lane.b32.xlu0 %v3019_v23, %s11143_s20  ;;  %1558 = vmatprep.subr.mxu1 %v11799_v28  ;;  %v2035_v15 = vsub.f32 %v11824_v59, %v2034_v44 }
 0x13d   : > { %1803 = vmatprep.subr.mxu0 %v11754_v53  ;;  %3096 = vrot.lane.b32.xlu1 %v3031_v58, %s11143_s20  ;;  %v11819_v63 = vpop.permute.xlu1 %2944  ;;  %v11821_v41 = vpop.permute.xlu0 %2988  ;;  %13417 = vst [vmem:[#allocation9_spill] sm:$0xff] %v11862_v10  ;;  %13418 = vst [vmem:[#allocation10_spill] sm:$0xff] %v11874_v38  ;;  %v2047_v48 = vsub.f32 %v11838_v19, %v11862_v10  ;;  %v2955_v53 = vsel %vm2946_vm5, %v11729_v0, %v11765_v2 }
 0x13e   : > { %1564 = vmatpush1.msra.mxu1 %v11813_v43  ;;  %1807 = vmatpush1.msra.mxu0 %v11758_v57  ;;  %v425_v57 = vsel %vm406_vm7, %v11713_v18, %v11747_v47 }
 0x13f   : > { %1597 = vmatprep.mubr.f32.mxu1 %v13340_v34  ;;  %1715 = vmatprep.subr.mxu1 %v11695_v32  ;;  %v11915_v18 = vand.u32 4294901760, %v2047_v48 }
 0x140   : > { %1840 = vmatprep.mubr.f32.mxu0 %v13340_v34  ;;  %1953 = vmatprep.subr.mxu0 %v11795_v30 }
 0x141   : > { %1599 = vmatmul.mubr.f32.vlgmr.msra.gmra.mxu1 %v11542_v50  ;;  %1842 = vmatmul.mubr.f32.vlgmr.msra.gmra.mxu0 %v11542_v50  ;;  %v11842_v9 = vpop.permute.xlu1 %3084  ;;  %v383_v21 = vpop.permute.xlu0 %382  ;;  %13419 = vst [vmem:[#allocation11_spill] sm:$0xff] %v11915_v18 }
 0x142   : > { %1717 = vmatpush1.msra.mxu1 %v11705_v29  ;;  %1955 = vmatpush1.msra.mxu0 %v11806_v11 }
 0x143   : > { %1719 = vmatprep.subr.mxu1 %v11716_v36  ;;  %5635 = vrot.lane.b32.xlu1 %v11283_v14, %s11145_s21 }
 0x144   : > { %1721 = vmatpush1.msra.mxu1 %v11722_v1  ;;  %1957 = vmatprep.subr.mxu0 %v11817_v35 }
 0x145   : > { %1754 = vmatprep.mubr.f32.mxu1 %v13340_v34  ;;  %1877 = vmatprep.subr.mxu1 %v11695_v32  ;;  %v11864_v23 = vpop.permute.xlu1 %5621  ;;  %v11866_v58 = vpop.permute.xlu0 %3082  ;;  %v2041_v32 = vsub.f32 %v11833_v4, %v2040_v56 }
 0x146   : > { %1959 = vmatpush1.msra.mxu0 %v11828_v20  ;;  %1758 = vmatmul.mubr.f32.vlgmr.msra.gmra.mxu1 %v11563_v61 }
 0x147   : > { %1879 = vmatpush1.msra.mxu1 %v11705_v29  ;;  %1992 = vmatprep.mubr.f32.mxu0 %v13340_v34 }
 0x148   : > { %2126 = vmatprep.subr.mxu0 %v11824_v59  ;;  %1881 = vmatprep.subr.mxu1 %v11716_v36  ;;  %v426_v59 = vsel %vm406_vm7, %v11747_v47, %v11793_v49  ;;  %v2042_v49 = vand.u32 4294901760, %v2041_v32  ;;  %v11922_v32 = vand.u32 4294901760, %v425_v57 }
 0x149   : > { %3098 = vrot.lane.b32.xlu0 %v3032_v46, %s11143_s20  ;;  %5685 = vrot.lane.b32.xlu1 %v11267_v12, %s11146_s22  ;;  %v11886_v7 = vpop.permute.xlu1 %5669  ;;  %v11888_v29 = vpop.permute.xlu0 %5619  ;;  %v2036_v46 = vand.u32 4294901760, %v2035_v15  ;;  %v2053_v12 = vsub.f32 %v11848_v22, %v11874_v38  ;;  %v11907_v15 = vld [vmem:[%s11176_s14 + $0x28] sm:$0xf] }
 0x14a   : > { %1998 = vmatmul.mubr.f32.vlgmr.msra.gmra.mxu0 %v11593_v27  ;;  %1883 = vmatpush1.msra.mxu1 %v11722_v1 }
 0x14b   : > { %2129 = vmatpush1.msra.mxu0 %v11833_v4  ;;  %1916 = vmatprep.mubr.f32.mxu1 %v13340_v34  ;;  %v416_v4 = vsel %vm406_vm7, %v11791_v24, %v383_v21  ;;  %v11911_v34 = vand.u32 4294901760, %v426_v59  ;;  %v415_v21 = vsel %vm406_vm7, %v11749_v13, %v11791_v24  ;;  %v2956_v13 = vsel %vm2946_vm5, %v11765_v2, %v11819_v63 }
 0x14c   : > { %2132 = vmatprep.subr.mxu0 %v11838_v19  ;;  %2037 = vmatprep.subr.mxu1 %v2036_v46  ;;  %v13420_v46 = vmov 0.0   ;;  %v11931_v19 = vand.u32 4294901760, %v416_v4 }
 0x14d   : > { %2135 = vmatpush1.msra.mxu0 %v11848_v22  ;;  %1918 = vmatmul.mubr.f32.vlgmr.msra.gmra.mxu1 %v11542_v50  ;;  %v11917_v47 = vpop.permute.xlu1 %5673  ;;  %v11919_v0 = vpop.permute.xlu0 %5623  ;;  %v11128_v22 = vld [vmem:[%s11176_s14 + $0x20] sm:$0xff]  ;;  %v11938_v43 = vsub.f32 %v426_v59, %v11911_v34  ;;  %v3021_v59 = vsel %vm316_vm0, %v11283_v14, %v2956_v13 }
 0x14e   : > { %2043 = vmatpush1.msra.mxu1 %v2042_v49  ;;  %2168 = vmatprep.mubr.f32.mxu0 %v13420_v46  ;;  %v3020_v48 = vsel %vm316_vm0, %v11128_v22, %v2955_v53  ;;  %13421 = vst [vmem:[#allocation12_spill] sm:$0xff] %v11931_v19  ;;  %v11935_v49 = vand.u32 4294901760, %v2053_v12  ;;  %v3000_v22 = vsel %vm2990_vm4, %v11763_v16, %v11821_v41 }
 0x14f   : > { %2286 = vmatprep.subr.mxu0 %v2034_v44  ;;  %5637 = vrot.lane.b32.xlu0 %v11907_v15, %s11145_s21  ;;  %v11948_v44 = vand.u32 4294901760, %v415_v21  ;;  %v11961_v2 = vsub.f32 %v416_v4, %v11931_v19  ;;  %v13345_v16 = vand.u32 4294901760, %v11938_v43 }
 0x150   : > { %2171 = vmatmul.mubr.f32.vlgmr.msra.gmra.mxu0 %v11551_v55  ;;  %3074 = vrot.lane.b32.xlu1 %v3020_v48, %s11143_s20  ;;  %13422 = vst [vmem:[#allocation13_spill] sm:$0xff] %v11935_v49  ;;  %v5666_v48 = vcombine.low %v11907_v15, %v11907_v15 }
 0x151   : > { %2290 = vmatpush1.msra.mxu0 %v2040_v56  ;;  %2049 = vmatprep.subr.mxu1 %v11915_v18  ;;  %v11944_v24 = vpop.permute.xlu1 %5617  ;;  %v11946_v53 = vpop.permute.xlu0 %5671  ;;  %13423 = vst [vmem:[#allocation14_spill] sm:$0xff] %v11948_v44  ;;  %v11956_v56 = vsub.f32 %v425_v57, %v11922_v32  ;;  %13424 = vst [vmem:[#allocation15_spill] sm:$0xff] %v11961_v2  ;;  %v3033_v57 = vsel %vm316_vm0, %v11444_v52, %v3000_v22  ;;  %v11983_v52 = vand.u32 4294901760, %v11961_v2 }
 0x152   : > { %2294 = vmatprep.subr.mxu0 %v11862_v10  ;;  %2055 = vmatpush1.msra.mxu1 %v11935_v49  ;;  %v11975_v4 = vsub.f32 %v415_v21, %v11948_v44  ;;  %v2526_v21 = vsub.f32 %v11938_v43, %v13345_v16 }
 0x153   : > { %2298 = vmatpush1.msra.mxu0 %v11874_v38  ;;  %2088 = vmatprep.mubr.f32.mxu1 %v13420_v46  ;;  %v13346_v14 = vand.u32 4294901760, %v11956_v56  ;;  %13426 = vst [vmem:[#allocation17_spill] sm:$0xff] %v11983_v52  ;;  %v2538_v16 = vsub.f32 %v11961_v2, %v11983_v52 }
 0x154   : > { %2206 = vmatprep.subr.mxu1 %v11795_v30  ;;  %2331 = vmatprep.mubr.f32.mxu0 %v13420_v46  ;;  %13425 = vst [vmem:[#allocation16_spill] sm:$0xff] %v11975_v4  ;;  %v2527_v38 = vand.u32 4294901760, %v2526_v21 }
 0x155   : > { %2444 = vmatprep.subr.mxu0 %v11911_v34  ;;  %2090 = vmatmul.mubr.f32.vlgmr.msra.gmra.mxu1 %v11542_v50  ;;  %v11972_v41 = vpop.permute.xlu1 %3060  ;;  %v3081_v12 = vpop.permute.xlu0 %3080  ;;  %v2532_v15 = vsub.f32 %v11956_v56, %v13346_v14  ;;  %v11129_v14 = vld [vmem:[%s11176_s14 + $0x28] sm:$0xf] }
 0x156   : > { %2208 = vmatpush1.msra.mxu1 %v11806_v11  ;;  %2333 = vmatmul.mubr.f32.vlgmr.msra.gmra.mxu0 %v11542_v50  ;;  %v3112_v49 = vsel %vm406_vm7, %v3081_v12, %v11866_v58 }
 0x157   : > { %3076 = vrot.lane.b32.xlu0 %v3021_v59, %s11143_s20  ;;  %2446 = vmatpush1.msra.mxu0 %v11922_v32  ;;  %v11997_v59 = vand.u32 4294901760, %v11975_v4  ;;  %v12039_v12 = vand.u32 4294901760, %v3112_v49 }
 0x158   : > { %3100 = vrot.lane.b32.xlu1 %v3033_v57, %s11143_s20  ;;  %2210 = vmatprep.subr.mxu1 %v11817_v35  ;;  %v3113_v57 = vsel %vm406_vm7, %v11866_v58, %v11842_v9 }
 0x159   : > { %2212 = vmatpush1.msra.mxu1 %v11828_v20  ;;  %2245 = vmatprep.mubr.f32.mxu1 %v13420_v46  ;;  %v3059_v13 = vpop.permute.xlu1 %3058  ;;  %v11994_v22 = vpop.permute.xlu0 %5667  ;;  %13427 = vst [vmem:[#allocation18_spill] sm:$0xff] %v11997_v59  ;;  %v2544_v18 = vsub.f32 %v11975_v4, %v11997_v59 }
 0x15a   : > { %2368 = vmatprep.subr.mxu1 %v11795_v30  ;;  %2249 = vmatmul.mubr.f32.vlgmr.msra.gmra.mxu1 %v11563_v61  ;;  %v11045_v30 = vld [vmem:[%s13336_s1 + $0x4] sm:$0x7] }
 0x15b   : > { %2370 = vmatpush1.msra.mxu1 %v11806_v11  ;;  %2448 = vmatprep.subr.mxu0 %v11931_v19  ;;  %v3022_v11 = vsel %vm316_vm0, %v11129_v14, %v11819_v63  ;;  %v2533_v63 = vand.u32 4294901760, %v2532_v15  ;;  %v12032_v14 = vand.u32 4294901760, %v2538_v16  ;;  %v3143_v58 = vsel %vm447_vm6, %v11045_v30, 0 }
 0x15c   : > { %5687 = vrot.lane.b32.xlu1 %v5666_v48, %s11146_s22  ;;  %2372 = vmatprep.subr.mxu1 %v11817_v35  ;;  %v12025_v48 = vand.u32 4294901760, %v3113_v57  ;;  %v12052_v30 = vand.u32 4294901760, %v2544_v18  ;;  %v13431_v18 = vand.u32 4294901760, %v11938_v43 }
 0x15d   : > { %2374 = vmatpush1.msra.mxu1 %v11828_v20  ;;  %2450 = vmatpush1.msra.mxu0 %v11948_v44  ;;  %v12023_v10 = vpop.permute.xlu0 %3062  ;;  %13428 = vst [vmem:[#allocation19_spill] sm:$0xff] %v12032_v14  ;;  %v12034_v21 = vpop.permute.xlu1 %3088 }
 0x15e   : > { %2407 = vmatprep.mubr.f32.mxu1 %v13420_v46  ;;  %2483 = vmatprep.mubr.f32.mxu0 %v13420_v46  ;;  %v12048_v15 = vsub.f32 %v3113_v57, %v12025_v48  ;;  %13429 = vst [vmem:[#allocation20_spill] sm:$0xff] %v12052_v30  ;;  %v3102_v57 = vsel %vm406_vm7, %v3059_v13, %v11972_v41  ;;  %v13432_v13 = vand.u32 4294901760, %v11956_v56 }
 0x15f   : > { %2528 = vmatprep.subr.mxu1 %v2527_v38  ;;  %2617 = vmatprep.subr.mxu0 %v11938_v43  ;;  %v3103_v38 = vsel %vm406_vm7, %v11972_v41, %v12023_v10 }
 0x160   : > { %2409 = vmatmul.mubr.f32.vlgmr.msra.gmra.mxu1 %v11542_v50  ;;  %3078 = vrot.lane.b32.xlu1 %v3022_v11, %s11143_s20  ;;  %v12054_v11 = vand.u32 4294901760, %v3143_v58 }
 0x161   : > { %2534 = vmatpush1.msra.mxu1 %v2533_v63  ;;  %2489 = vmatmul.mubr.f32.vlgmr.msra.gmra.mxu0 %v11593_v27  ;;  %v12045_v16 = vpop.permute.xlu0 %3086  ;;  %v12061_v27 = vsub.f32 %v3112_v49, %v12039_v12  ;;  %v12065_v63 = vand.u32 4294901760, %v3103_v38  ;;  %v5692_v49 = vsel %vm5689_vm9, %v11946_v53, %v11917_v47 }
 0x162   : > { %2620 = vmatpush1.msra.mxu0 %v11956_v56  ;;  %2659 = vmatprep.mubr.f32.mxu0 %v13420_v46  ;;  %v12087_v43 = vsub.f32 %v3143_v58, %v12054_v11  ;;  %v5691_v56 = vsel %vm5689_vm9, %v11886_v7, %v11946_v53 }
 0x163   : > { %2623 = vmatprep.subr.mxu0 %v11961_v2  ;;  %2540 = vmatprep.subr.mxu1 %v12032_v14  ;;  %13430 = vst [vmem:[#allocation21_spill] sm:$0xff] %v12065_v63  ;;  %v12073_v14 = vsel %vm5639_vm8, %v11864_v23, %v11919_v0 }
 0x164   : > { %2626 = vmatpush1.msra.mxu0 %v11975_v4  ;;  %2546 = vmatpush1.msra.mxu1 %v12052_v30  ;;  %v12078_v30 = vpop.permute.xlu1 %5627  ;;  %v5713_v58 = vsel %vm316_vm0, %v12073_v14, %v5692_v49  ;;  %v13435_v49 = vand.u32 4294901760, %v12048_v15 }
 0x165   : > { %2777 = vmatprep.subr.mxu0 %v13431_v18  ;;  %2662 = vmatmul.mubr.f32.vlgmr.msra.gmra.mxu0 %v11551_v55  ;;  %v12080_v41 = vpop.permute.xlu0 %5625  ;;  %v12092_v18 = vsel %vm5639_vm8, %v11888_v29, %v11864_v23  ;;  %v8236_v55 = vld [vmem:[%s11176_s14 + $0x8] sm:$0xff] }
 0x166   : > { %2781 = vmatpush1.msra.mxu0 %v13432_v13  ;;  %2579 = vmatprep.mubr.f32.mxu1 %v13420_v46  ;;  %v12099_v13 = vand.u32 4294901760, %v3102_v57  ;;  %v3256_v23 = vsub.f32 %v12048_v15, %v13435_v49  ;;  %v8248_v4 = vcombine.low %v8236_v55, %v8236_v55 }
 0x167   : > { %2785 = vmatprep.subr.mxu0 %v11983_v52  ;;  %2697 = vmatprep.subr.mxu1 %v11911_v34  ;;  %v12108_v52 = vsub.f32 %v3103_v38, %v12065_v63  ;;  %v12122_v38 = vand.u32 4294901760, %v12087_v43 }
 0x168   : > { %13433 = vst [vmem:[#allocation22_spill] sm:$0xff] %v12099_v13  ;;  %2789 = vmatpush1.msra.mxu0 %v11997_v59  ;;  %2581 = vmatmul.mubr.f32.vlgmr.msra.gmra.mxu1 %v11542_v50  ;;  %v5712_v59 = vsel %vm316_vm0, %v12092_v18, %v5691_v56  ;;  %v12127_v2 = vsub.f32 %v3102_v57, %v12099_v13  ;;  %v12129_v20 = vpop.permute.xlu1 %5677  ;;  %v13437_v56 = vand.u32 4294901760, %v12061_v27  ;;  %v8235_v57 = vld [vmem:[%s11176_s14] sm:$0xff] }
 0x169   : > { %13434 = vst [vmem:[#allocation23_spill] sm:$0xff] %v12108_v52  ;;  %3174 = vmatprep.subr.mxu0 %v12025_v48  ;;  %2699 = vmatpush1.msra.mxu1 %v11922_v32  ;;  %v12112_v53 = vpop.permute.xlu0 %5675  ;;  %v12137_v35 = vand.u32 4294901760, %v12108_v52 }
 0x16a   : > { %2701 = vmatprep.subr.mxu1 %v11931_v19  ;;  %2736 = vmatprep.mubr.f32.mxu1 %v13420_v46  ;;  %13436 = vst [vmem:[#allocation24_spill] sm:$0xff] %v12127_v2  ;;  %v3262_v49 = vsub.f32 %v12061_v27, %v13437_v56  ;;  %v3217_v56 = vsub.f32 %v12087_v43, %v12122_v38 }
 0x16b   : > { %2703 = vmatpush1.msra.mxu1 %v11948_v44  ;;  %5739 = vrot.lane.b32.xlu1 %v5713_v58, %s11143_s20  ;;  %13438 = vst [vmem:[#allocation25_spill] sm:$0xff] %v12137_v35  ;;  %v12142_v58 = vsel %vm5639_vm8, %v11944_v24, %v11888_v29  ;;  %v12157_v29 = vand.u32 4294901760, %v12127_v2 }
 0x16c   : > { %2859 = vmatprep.subr.mxu1 %v11911_v34  ;;  %2740 = vmatmul.mubr.f32.vlgmr.msra.gmra.mxu1 %v11563_v61  ;;  %v5690_v34 = vsel %vm5689_vm9, %v11994_v22, %v11886_v7  ;;  %v3257_v61 = vand.u32 4294901760, %v3256_v23  ;;  %v3263_v24 = vand.u32 4294901760, %v3262_v49  ;;  %v3268_v22 = vsub.f32 %v12108_v52, %v12137_v35 }
 0x16d   : > { %2861 = vmatpush1.msra.mxu1 %v11922_v32  ;;  %5737 = vrot.lane.b32.xlu0 %v5712_v59, %s11143_s20  ;;  %13439 = vst [vmem:[#allocation26_spill] sm:$0xff] %v12157_v29  ;;  %v3065_v32 = vpop.permute.xlu0 %3064  ;;  %v5711_v7 = vsel %vm316_vm0, %v12142_v58, %v5690_v34  ;;  %v12166_v59 = vpop.permute.xlu1 %3066  ;;  %v3115_v23 = vsel %vm406_vm7, %v12045_v16, %v12034_v21 }
 0x16e   : > { %2863 = vmatprep.subr.mxu1 %v11931_v19  ;;  %2822 = vmatprep.mubr.f32.mxu0 %v13420_v46  ;;  %v3274_v49 = vsub.f32 %v12127_v2, %v12157_v29  ;;  %v12180_v34 = vand.u32 4294901760, %v3268_v22 }
 0x16f   : > { %2865 = vmatpush1.msra.mxu1 %v11948_v44  ;;  %8257 = vrot.lane.b32.xlu1 %v8248_v4, %s11143_s20  ;;  %v12170_v4 = vand.u32 4294901760, %v3217_v56 }
 0x170   : > { %3258 = vmatprep.subr.mxu1 %v3257_v61  ;;  %2824 = vmatmul.mubr.f32.vlgmr.msra.gmra.mxu0 %v11542_v50  ;;  %13440 = vst [vmem:[#allocation27_spill] sm:$0xff] %v12180_v34  ;;  %v8247_v61 = vcombine.low %v8235_v57, %v8235_v57 }
 0x171   : > { %8255 = vrot.lane.b32.xlu0 %v8235_v57, %s11143_s20  ;;  %3176 = vmatpush1.msra.mxu0 %v12039_v12  ;;  %v12184_v56 = vpop.permute.xlu0 %3090  ;;  %v12199_v57 = vpop.permute.xlu1 %3092 }
 0x172   : > { %2898 = vmatprep.mubr.f32.mxu1 %v13420_v46  ;;  %3178 = vmatprep.subr.mxu0 %v12065_v63  ;;  %v3117_v44 = vsel %vm406_vm7, %v12184_v56, %v12199_v57 }
 0x173   : > { %5735 = vrot.lane.b32.xlu1 %v5711_v7, %s11143_s20  ;;  %2900 = vmatmul.mubr.f32.vlgmr.msra.gmra.mxu1 %v11542_v50  ;;  %v3114_v50 = vsel %vm406_vm7, %v11842_v9, %v12045_v16  ;;  %v12189_v7 = vand.u32 4294901760, %v3115_v23  ;;  %v3104_v9 = vsel %vm406_vm7, %v12023_v10, %v3065_v32  ;;  %v12225_v10 = vsel %vm5639_vm8, %v12080_v41, %v12078_v30 }
 0x174   : > { %3264 = vmatpush1.msra.mxu1 %v3263_v24  ;;  %3180 = vmatpush1.msra.mxu0 %v12099_v13  ;;  %v3105_v24 = vsel %vm406_vm7, %v3065_v32, %v12166_v59  ;;  %v12206_v16 = vand.u32 4294901760, %v3114_v50  ;;  %v13443_v32 = vand.u32 4294901760, %v12061_v27 }
 0x175   : > { %8259 = vrot.lane.b32.xlu0 %v8236_v55, %s11143_s20  ;;  %3213 = vmatprep.mubr.f32.mxu0 %v13420_v46  ;;  %v12197_v55 = vand.u32 4294901760, %v3274_v49  ;;  %v12209_v22 = vand.u32 4294901760, %v3105_v24  ;;  %v12212_v49 = vsub.f32 %v3115_v23, %v12189_v7  ;;  %v5693_v23 = vsel %vm5689_vm9, %v11917_v47, %v12112_v53 }
 0x176   : > { %3347 = vmatprep.subr.mxu0 %v12048_v15  ;;  %3219 = vmatmul.mubr.f32.vlgmr.msra.gmra.mxu0 %v12170_v4 }
 0x177   : > { %3350 = vmatpush1.msra.mxu0 %v12061_v27  ;;  %3389 = vmatprep.mubr.f32.mxu0 %v13420_v46  ;;  %13441 = vst [vmem:[#allocation28_spill] sm:$0xff] %v12197_v55  ;;  %v12243_v27 = vsub.f32 %v3114_v50, %v12206_v16  ;;  %v12248_v47 = vsub.f32 %v3105_v24, %v12209_v22  ;;  %v8237_v24 = vld [vmem:[%s11176_s14 + $0x10] sm:$0xff] }
 0x178   : > { %3353 = vmatprep.subr.mxu0 %v12108_v52  ;;  %3270 = vmatprep.subr.mxu1 %v12180_v34  ;;  %v12217_v52 = vsel %vm5639_vm8, %v11919_v0, %v12080_v41  ;;  %v13442_v34 = vand.u32 4294901760, %v12048_v15  ;;  %v5694_v0 = vsel %vm5689_vm9, %v12112_v53, %v12129_v20  ;;  %v12236_v15 = vand.u32 4294901760, %v3104_v9  ;;  %v12250_v41 = vpop.permute.xlu1 %5631 }
 0x179   : > { %8253 = vrot.lane.b32.xlu0 %v8247_v61, %s11143_s20  ;;  %3356 = vmatpush1.msra.mxu0 %v12127_v2  ;;  %v5715_v53 = vsel %vm316_vm0, %v12225_v10, %v5694_v0  ;;  %v5714_v61 = vsel %vm316_vm0, %v12217_v52, %v5693_v23  ;;  %v12271_v23 = vand.u32 4294901760, %v12248_v47 }
 0x17a   : > { %3507 = vmatprep.subr.mxu0 %v13442_v34  ;;  %3392 = vmatmul.mubr.f32.vlgmr.msra.gmra.mxu0 %v12087_v43  ;;  %v12238_v34 = vpop.permute.xlu0 %5629  ;;  %v12261_v50 = vsub.f32 %v3104_v9, %v12236_v15  ;;  %v8249_v9 = vcombine.low %v8237_v24, %v8237_v24 }
 0x17b   : > { %3511 = vmatpush1.msra.mxu0 %v13443_v32  ;;  %3276 = vmatpush1.msra.mxu1 %v12197_v55  ;;  %v3746_v32 = vand.u32 4294901760, %v12212_v49  ;;  %13445 = vst [vmem:[#allocation30_spill] sm:$0xff] %v12271_v23  ;;  %v3759_v2 = vsub.f32 %v12248_v47, %v12271_v23 }
 0x17c   : > { %3515 = vmatprep.subr.mxu0 %v12137_v35  ;;  %3309 = vmatprep.mubr.f32.mxu1 %v13420_v46  ;;  %13444 = vst [vmem:[#allocation29_spill] sm:$0xff] %v12261_v50  ;;  %v12276_v55 = vand.u32 4294901760, %v12261_v50  ;;  %v12281_v35 = vpop.permute.xlu1 %5681 }
 0x17d   : > { %3519 = vmatpush1.msra.mxu0 %v12157_v29  ;;  %3427 = vmatprep.subr.mxu1 %v12025_v48  ;;  %v3752_v29 = vand.u32 4294901760, %v12243_v27 }
 0x17e   : > { %3552 = vmatprep.mubr.f32.mxu0 %v13420_v46  ;;  %3665 = vmatprep.subr.mxu0 %v12189_v7  ;;  %v5680_v0 = vpop.permute.xlu0 %5679  ;;  %13446 = vst [vmem:[#allocation31_spill] sm:$0xff] %v12276_v55 }
 0x17f   : > { %3311 = vmatmul.mubr.f32.vlgmr.msra.gmra.mxu1 %v12054_v11  ;;  %3554 = vmatmul.mubr.f32.vlgmr.msra.gmra.mxu0 %v12054_v11 }
 0x180   : > { %3429 = vmatpush1.msra.mxu1 %v12039_v12  ;;  %3667 = vmatpush1.msra.mxu0 %v12206_v16  ;;  %v12304_v19 = vpop.permute.xlu1 %3070 }
 0x181   : > { %5743 = vrot.lane.b32.xlu0 %v5715_v53, %s11143_s20  ;;  %5741 = vrot.lane.b32.xlu1 %v5714_v61, %s11143_s20  ;;  %v3747_v53 = vsub.f32 %v12212_v49, %v3746_v32  ;;  %v3753_v61 = vsub.f32 %v12243_v27, %v3752_v29 }
 0x182   : > { %3431 = vmatprep.subr.mxu1 %v12065_v63  ;;  %3466 = vmatprep.mubr.f32.mxu1 %v13420_v46 }
 0x183   : > { %3433 = vmatpush1.msra.mxu1 %v12099_v13  ;;  %3669 = vmatprep.subr.mxu0 %v12209_v22 }
 0x184   : > { %3589 = vmatprep.subr.mxu1 %v12025_v48  ;;  %3470 = vmatmul.mubr.f32.vlgmr.msra.gmra.mxu1 %v12122_v38  ;;  %v3748_v48 = vand.u32 4294901760, %v3747_v53  ;;  %v3116_v53 = vsel %vm406_vm7, %v12034_v21, %v12184_v56 }
 0x185   : > { %3591 = vmatpush1.msra.mxu1 %v12039_v12  ;;  %8263 = vrot.lane.b32.xlu0 %v8237_v24, %s11143_s20  ;;  %v3765_v12 = vsub.f32 %v12261_v50, %v12276_v55  ;;  %v3069_v24 = vpop.permute.xlu0 %3068  ;;  %v12322_v56 = vand.u32 4294901760, %v3116_v53 }
 0x186   : > { %8261 = vrot.lane.b32.xlu1 %v8249_v9, %s11143_s20  ;;  %3593 = vmatprep.subr.mxu1 %v12065_v63  ;;  %v3754_v9 = vand.u32 4294901760, %v3753_v61  ;;  %v12302_v63 = vand.u32 4294901760, %v3759_v2  ;;  %v3106_v21 = vsel %vm406_vm7, %v12166_v59, %v3069_v24  ;;  %v12340_v59 = vsel %vm5639_vm8, %v12238_v34, %v12250_v41 }
 0x187   : > { %3595 = vmatpush1.msra.mxu1 %v12099_v13  ;;  %3671 = vmatpush1.msra.mxu0 %v12236_v15  ;;  %v12309_v13 = vand.u32 4294901760, %v3117_v44  ;;  %v12316_v2 = vand.u32 4294901760, %v3765_v12  ;;  %v5695_v12 = vsel %vm5689_vm9, %v12129_v20, %v5680_v0 }
 0x188   : > { %3628 = vmatprep.mubr.f32.mxu1 %v13420_v46  ;;  %3704 = vmatprep.mubr.f32.mxu0 %v13420_v46  ;;  %13447 = vst [vmem:[#allocation32_spill] sm:$0xff] %v12302_v63 }
 0x189   : > { %3749 = vmatprep.subr.mxu1 %v3748_v48  ;;  %3838 = vmatprep.subr.mxu0 %v12212_v49  ;;  %v3107_v48 = vsel %vm406_vm7, %v3069_v24, %v12304_v19  ;;  %13448 = vst [vmem:[#allocation33_spill] sm:$0xff] %v12316_v2  ;;  %v12329_v61 = vsub.f32 %v3117_v44, %v12309_v13 }
 0x18a   : > { %3630 = vmatmul.mubr.f32.vlgmr.msra.gmra.mxu1 %v12054_v11  ;;  %3710 = vmatmul.mubr.f32.vlgmr.msra.gmra.mxu0 %v12170_v4  ;;  %v12326_v49 = vand.u32 4294901760, %v3107_v48  ;;  %v5696_v44 = vsel %vm5689_vm9, %v5680_v0, %v12281_v35 }
 0x18b   : > { %3755 = vmatpush1.msra.mxu1 %v3754_v9  ;;  %3841 = vmatpush1.msra.mxu0 %v12243_v27  ;;  %v12334_v27 = vsel %vm5639_vm8, %v12078_v30, %v12238_v34  ;;  %v12347_v30 = vand.u32 4294901760, %v3106_v21  ;;  %v5717_v34 = vsel %vm316_vm0, %v12340_v59, %v5696_v44  ;;  %v8238_v9 = vld [vmem:[%s11176_s14 + $0x18] sm:$0xff] }
 0x18c   : > { %3844 = vmatprep.subr.mxu0 %v12248_v47  ;;  %3880 = vmatprep.mubr.f32.mxu0 %v13420_v46  ;;  %13449 = vst [vmem:[#allocation34_spill] sm:$0xff] %v12326_v49  ;;  %v12355_v20 = vsub.f32 %v3107_v48, %v12326_v49  ;;  %v5716_v0 = vsel %vm316_vm0, %v12334_v27, %v5695_v12 }
 0x18d   : > { %3847 = vmatpush1.msra.mxu0 %v12261_v50  ;;  %3761 = vmatprep.subr.mxu1 %v12302_v63  ;;  %13450 = vst [vmem:[#allocation35_spill] sm:$0xff] %v12347_v30  ;;  %v12368_v24 = vsub.f32 %v3106_v21, %v12347_v30  ;;  %v8250_v21 = vcombine.low %v8238_v9, %v8238_v9 }
 0x18e   : > { %3998 = vmatprep.subr.mxu0 %v3746_v32  ;;  %3883 = vmatmul.mubr.f32.vlgmr.msra.gmra.mxu0 %v12087_v43  ;;  %v4242_v32 = vsub.f32 %v3116_v53, %v12322_v56  ;;  %13451 = vst [vmem:[#allocation36_spill] sm:$0xff] %v12355_v20  ;;  %v4237_v53 = vand.u32 4294901760, %v12329_v61  ;;  %v12377_v12 = vand.u32 4294901760, %v12355_v20 }
 0x18f   : > { %4002 = vmatpush1.msra.mxu0 %v3752_v29  ;;  %3767 = vmatpush1.msra.mxu1 %v12316_v2  ;;  %v12357_v29 = vpop.permute.xlu0 %3094  ;;  %13452 = vst [vmem:[#allocation37_spill] sm:$0xff] %v12368_v24  ;;  %v12382_v44 = vand.u32 4294901760, %v12368_v24 }
 0x190   : > { %4006 = vmatprep.subr.mxu0 %v12271_v23  ;;  %3800 = vmatprep.mubr.f32.mxu1 %v13420_v46  ;;  %v4243_v48 = vand.u32 4294901760, %v4242_v32  ;;  %13453 = vst [vmem:[#allocation38_spill] sm:$0xff] %v12377_v12  ;;  %v4250_v2 = vsub.f32 %v12355_v20, %v12377_v12 }
 0x191   : > { %4010 = vmatpush1.msra.mxu0 %v12276_v55  ;;  %3918 = vmatprep.subr.mxu1 %v12189_v7  ;;  %13454 = vst [vmem:[#allocation39_spill] sm:$0xff] %v12382_v44  ;;  %v4238_v55 = vsub.f32 %v12329_v61, %v4237_v53 }
 0x192   : > { %4043 = vmatprep.mubr.f32.mxu0 %v13420_v46  ;;  %4156 = vmatprep.subr.mxu0 %v12309_v13 }
 0x193   : > { %3802 = vmatmul.mubr.f32.vlgmr.msra.gmra.mxu1 %v12054_v11  ;;  %4045 = vmatmul.mubr.f32.vlgmr.msra.gmra.mxu0 %v12054_v11  ;;  %v4239_v23 = vand.u32 4294901760, %v4238_v55 }
 0x194   : > { %3920 = vmatpush1.msra.mxu1 %v12206_v16  ;;  %4158 = vmatpush1.msra.mxu0 %v12322_v56 }
 0x195   : > { %5747 = vrot.lane.b32.xlu0 %v5717_v34, %s11143_s20  ;;  %5745 = vrot.lane.b32.xlu1 %v5716_v0, %s11143_s20  ;;  %v12387_v34 = vpop.permute.xlu0 %5633  ;;  %v4244_v0 = vsub.f32 %v4242_v32, %v4243_v48 }
 0x196   : > { %3922 = vmatprep.subr.mxu1 %v12209_v22  ;;  %3957 = vmatprep.mubr.f32.mxu1 %v13420_v46 }
 0x197   : > { %3924 = vmatpush1.msra.mxu1 %v12236_v15  ;;  %4160 = vmatprep.subr.mxu0 %v12326_v49 }
 0x198   : > { %4080 = vmatprep.subr.mxu1 %v12189_v7  ;;  %3961 = vmatmul.mubr.f32.vlgmr.msra.gmra.mxu1 %v12122_v38  ;;  %v4256_v7 = vsub.f32 %v12368_v24, %v12382_v44 }
 0x199   : > { %4082 = vmatpush1.msra.mxu1 %v12206_v16  ;;  %8267 = vrot.lane.b32.xlu0 %v8238_v9, %s11143_s20  ;;  %v4245_v16 = vand.u32 4294901760, %v4244_v0  ;;  %v12404_v9 = vand.u32 4294901760, %v4250_v2 }
 0x19a   : > { %8265 = vrot.lane.b32.xlu1 %v8250_v21, %s11143_s20  ;;  %4084 = vmatprep.subr.mxu1 %v12209_v22  ;;  %v12406_v21 = vpop.permute.xlu0 %5683  ;;  %v12410_v55 = vand.u32 4294901760, %v4256_v7 }
 0x19b   : > { %4086 = vmatpush1.msra.mxu1 %v12236_v15  ;;  %4162 = vmatpush1.msra.mxu0 %v12347_v30  ;;  %13455 = vst [vmem:[#allocation40_spill] sm:$0xff] %v12404_v9  ;;  %v5697_v2 = vsel %vm5689_vm9, %v12281_v35, %v12406_v21  ;;  %v3118_v35 = vsel %vm406_vm7, %v12199_v57, %v12357_v29 }
 0x19c   : > { %4119 = vmatprep.mubr.f32.mxu1 %v13420_v46  ;;  %4195 = vmatprep.mubr.f32.mxu0 %v13420_v46  ;;  %13456 = vst [vmem:[#allocation41_spill] sm:$0xff] %v12410_v55 }
 0x19d   : > { %4240 = vmatprep.subr.mxu1 %v4239_v23  ;;  %4329 = vmatprep.subr.mxu0 %v12329_v61  ;;  %v12416_v23 = vsel %vm5639_vm8, %v12250_v41, %v12387_v34  ;;  %v8239_v61 = vld [vmem:[%s11176_s14 + $0x20] sm:$0xff] }
 0x19e   : > { %4121 = vmatmul.mubr.f32.vlgmr.msra.gmra.mxu1 %v12054_v11  ;;  %4201 = vmatmul.mubr.f32.vlgmr.msra.gmra.mxu0 %v12170_v4  ;;  %v5718_v41 = vsel %vm316_vm0, %v12416_v23, %v5697_v2 }
 0x19f   : > { %4246 = vmatpush1.msra.mxu1 %v4245_v16  ;;  %4332 = vmatpush1.msra.mxu0 %v4242_v32  ;;  %v8251_v32 = vcombine.low %v8239_v61, %v8239_v61 }
 0x1a0   : > { %4335 = vmatprep.subr.mxu0 %v12355_v20  ;;  %4371 = vmatprep.mubr.f32.mxu0 %v13420_v46 }
 0x1a1   : > { %4338 = vmatpush1.msra.mxu0 %v12368_v24  ;;  %4252 = vmatprep.subr.mxu1 %v12404_v9 }
 0x1a2   : > { %4489 = vmatprep.subr.mxu0 %v4237_v53  ;;  %4374 = vmatmul.mubr.f32.vlgmr.msra.gmra.mxu0 %v12087_v43  ;;  %v12444_v53 = vand.u32 4294901760, %v3118_v35 }
 0x1a3   : > { %4493 = vmatpush1.msra.mxu0 %v4243_v48  ;;  %4258 = vmatpush1.msra.mxu1 %v12410_v55 }
 0x1a4   : > { %4497 = vmatprep.subr.mxu0 %v12377_v12  ;;  %4291 = vmatprep.mubr.f32.mxu1 %v13420_v46  ;;  %v4733_v57 = vsub.f32 %v3118_v35, %v12444_v53 }
 0x1a5   : > { %4501 = vmatpush1.msra.mxu0 %v12382_v44  ;;  %4409 = vmatprep.subr.mxu1 %v12309_v13 }
 0x1a6   : > { %4293 = vmatmul.mubr.f32.vlgmr.msra.gmra.mxu1 %v12054_v11  ;;  %5749 = vrot.lane.b32.xlu1 %v5718_v41, %s11143_s20  ;;  %v4734_v0 = vand.u32 4294901760, %v4733_v57 }
 0x1a7   : > { %4411 = vmatpush1.msra.mxu1 %v12322_v56  ;;  %4448 = vmatprep.mubr.f32.mxu1 %v13420_v46 }
 0x1a8   : > { %4413 = vmatprep.subr.mxu1 %v12326_v49  ;;  %4534 = vmatprep.mubr.f32.mxu0 %v13420_v46  ;;  %v4735_v41 = vsub.f32 %v4733_v57, %v4734_v0 }
 0x1a9   : > { %4415 = vmatpush1.msra.mxu1 %v12347_v30  ;;  %4536 = vmatmul.mubr.f32.vlgmr.msra.gmra.mxu0 %v12054_v11 }
 0x1aa   : > { %4571 = vmatprep.subr.mxu1 %v12309_v13  ;;  %4452 = vmatmul.mubr.f32.vlgmr.msra.gmra.mxu1 %v12122_v38  ;;  %v4736_v12 = vand.u32 4294901760, %v4735_v41 }
 0x1ab   : > { %4573 = vmatpush1.msra.mxu1 %v12322_v56  ;;  %8269 = vrot.lane.b32.xlu1 %v8251_v32, %s11143_s20 }
 0x1ac   : > { %4575 = vmatprep.subr.mxu1 %v12326_v49  ;;  %4610 = vmatprep.mubr.f32.mxu1 %v13420_v46 }
 0x1ad   : > { %4577 = vmatpush1.msra.mxu1 %v12347_v30  ;;  %4686 = vmatprep.mubr.f32.mxu0 %v13420_v46 }
 0x1ae   : > { %4612 = vmatmul.mubr.f32.vlgmr.msra.gmra.mxu1 %v12054_v11  ;;  %v3073_v35 = vpop.permute.xlu0 %3072 }
 0x1af   : > { %v3097_v48 = vpop.permute.xlu1 %3096  ;;  %4782 = vmatprep.mubr.f32.mxu1 %v13420_v46  ;;  %v3108_v55 = vsel %vm406_vm7, %v12304_v19, %v3073_v35 }
 0x1b0   : > { %v3119_v13 = vsel %vm406_vm7, %v12357_v29, %v3097_v48  ;;  %v12472_v24 = vand.u32 4294901760, %v3108_v55 }
 0x1b1   : > { %v12459_v56 = vand.u32 4294901760, %v3119_v13 }
 0x1b2   : > { %13457 = vst [vmem:[#allocation42_spill] sm:$0xff] %v12472_v24  ;;  %v12478_v19 = vsub.f32 %v3108_v55, %v12472_v24 }
 0x1b3   : > { %v4727_v7 = vsub.f32 %v3119_v13, %v12459_v56  ;;  %4647 = vmatprep.subr.mxu0 %v12459_v56 }
 0x1b4   : > { %4649 = vmatpush1.msra.mxu0 %v12444_v53  ;;  %13458 = vst [vmem:[#allocation43_spill] sm:$0xff] %v12478_v19 }
 0x1b5   : > { %v5636_v16 = vpop.permute.xlu1 %5635  ;;  %v4728_v2 = vand.u32 4294901760, %v4727_v7 }
 0x1b6   : > { %v12468_v9 = vsel %vm5639_vm8, %v12387_v34, %v5636_v16 }
 0x1b7   : > { %v4729_v32 = vsub.f32 %v4727_v7, %v4728_v2 }
 0x1b9   : > { %v4730_v44 = vand.u32 4294901760, %v4729_v32 }
 0x1bb   : > { %v5686_v29 = vpop.permute.xlu1 %5685  ;;  %4731 = vmatprep.subr.mxu1 %v4730_v44  ;;  %v3099_v20 = vpop.permute.xlu0 %3098 }
 0x1bc   : > { %v5698_v13 = vsel %vm5689_vm9, %v12406_v21, %v5686_v29  ;;  %4737 = vmatpush1.msra.mxu1 %v4736_v12  ;;  %v12487_v12 = vand.u32 4294901760, %v12478_v19 }
 0x1bd   : > { %v5719_v32 = vsel %vm316_vm0, %v12468_v9, %v5698_v13  ;;  %v3120_v13 = vsel %vm406_vm7, %v3097_v48, %v3099_v20 }
 0x1be   : > { %5751 = vrot.lane.b32.xlu0 %v5719_v32, %s11143_s20  ;;  %13460 = vst [vmem:[#allocation45_spill] sm:$0xff] %v12487_v12  ;;  %v12513_v48 = vand.u32 4294901760, %v3120_v13 }
 0x1c1   : > { %v12482_v41 = vpop.permute.xlu0 %5637 }
 0x1c2   : > { %v3075_v44 = vpop.permute.xlu1 %3074  ;;  %8271 = vrot.lane.b32.xlu0 %v8239_v61, %s11143_s20 }
 0x1c3   : > { %v3109_v34 = vsel %vm406_vm7, %v3073_v35, %v3075_v44  ;;  %v4747_v35 = vsub.f32 %v12478_v19, %v12487_v12 }
 0x1c4   : > { %v12484_v21 = vand.u32 4294901760, %v3109_v34 }
 0x1c5   : > { %v12515_v50 = vand.u32 4294901760, %v4747_v35 }
 0x1c6   : > { %13459 = vst [vmem:[#allocation44_spill] sm:$0xff] %v12484_v21  ;;  %v12490_v30 = vsub.f32 %v3109_v34, %v12484_v21  ;;  %4651 = vmatprep.subr.mxu0 %v12484_v21 }
 0x1c7   : > { %4653 = vmatpush1.msra.mxu0 %v12472_v24  ;;  %13464 = vst [vmem:[#allocation49_spill] sm:$0xff] %v12515_v50 }
 0x1c8   : > { %13461 = vst [vmem:[#allocation46_spill] sm:$0xff] %v12490_v30  ;;  %4820 = vmatprep.subr.mxu0 %v4727_v7  ;;  %4692 = vmatmul.mubr.f32.vlgmr.msra.gmra.mxu0 %v12170_v4  ;;  %v12496_v55 = vand.u32 4294901760, %v12490_v30 }
 0x1c9   : > { %v3077_v61 = vpop.permute.xlu0 %3076  ;;  %4823 = vmatpush1.msra.mxu0 %v4733_v57  ;;  %4862 = vmatprep.mubr.f32.mxu0 %v13420_v46 }
 0x1ca   : > { %13462 = vst [vmem:[#allocation47_spill] sm:$0xff] %v12496_v55  ;;  %v3101_v32 = vpop.permute.xlu1 %3100  ;;  %4826 = vmatprep.subr.mxu0 %v12490_v30  ;;  %v4741_v7 = vsub.f32 %v12490_v30, %v12496_v55  ;;  %v3110_v57 = vsel %vm406_vm7, %v3075_v44, %v3077_v61 }
 0x1cb   : > { %v3121_v34 = vsel %vm406_vm7, %v3099_v20, %v3101_v32  ;;  %4829 = vmatpush1.msra.mxu0 %v12478_v19  ;;  %v12520_v20 = vsel %vm5639_vm8, %v5636_v16, %v12482_v41  ;;  %v12527_v44 = vand.u32 4294901760, %v3110_v57 }
 0x1cc   : > { %v12507_v49 = vand.u32 4294901760, %v3121_v34  ;;  %4980 = vmatprep.subr.mxu0 %v4728_v2  ;;  %4865 = vmatmul.mubr.f32.vlgmr.msra.gmra.mxu0 %v12087_v43  ;;  %v12511_v63 = vand.u32 4294901760, %v4741_v7  ;;  %v12539_v7 = vsub.f32 %v3120_v13, %v12513_v48 }
 0x1cd   : > { %4984 = vmatpush1.msra.mxu0 %v4734_v0  ;;  %5025 = vmatprep.mubr.f32.mxu0 %v13420_v46  ;;  %13465 = vst [vmem:[#allocation50_spill] sm:$0xff] %v12527_v44 }
 0x1ce   : > { %13463 = vst [vmem:[#allocation48_spill] sm:$0xff] %v12511_v63  ;;  %v5688_v32 = vpop.permute.xlu1 %5687  ;;  %4743 = vmatprep.subr.mxu1 %v12511_v63  ;;  %4988 = vmatprep.subr.mxu0 %v12496_v55  ;;  %v12525_v2 = vsub.f32 %v3121_v34, %v12507_v49 }
 0x1cf   : > { %v5699_v0 = vsel %vm5689_vm9, %v5686_v29, %v5688_v32  ;;  %v5721_v35 = vsel %vm316_vm0, %v12482_v41, %v5688_v32  ;;  %4749 = vmatpush1.msra.mxu1 %v12515_v50  ;;  %4992 = vmatpush1.msra.mxu0 %v12487_v12  ;;  %v11087_v29 = vld [vmem:[%s11176_s14 + $0x28] ss:$0 sps:$4 sm:$0xff]   ;;  %v5225_v50 = vand.u32 4294901760, %v12539_v7 }
 0x1d0   : > { %5755 = vrot.lane.b32.xlu0 %v5721_v35, %s11143_s20  ;;  %v5720_v16 = vsel %vm316_vm0, %v12520_v20, %v5699_v0  ;;  %4900 = vmatprep.subr.mxu1 %v12459_v56  ;;  %v12547_v35 = vsub.f32 %v3110_v57, %v12527_v44  ;;  %v5219_v13 = vand.u32 4294901760, %v12525_v2 }
 0x1d1   : > { %5753 = vrot.lane.b32.xlu1 %v5720_v16, %s11143_s20  ;;  %5138 = vmatprep.subr.mxu0 %v12507_v49 }
 0x1d2   : > { %v3079_v34 = vpop.permute.xlu1 %3078  ;;  %4784 = vmatmul.mubr.f32.vlgmr.msra.gmra.mxu1 %v12054_v11  ;;  %5027 = vmatmul.mubr.f32.vlgmr.msra.gmra.mxu0 %v12054_v11  ;;  %v526_v32 = vpop.f32.mrf.mxu0  ;;  %13466 = vst [vmem:[#allocation51_spill] sm:$0xff] %v12547_v35 }
 0x1d3   : > { %v3111_v0 = vsel %vm406_vm7, %v3077_v61, %v3079_v34  ;;  %4902 = vmatpush1.msra.mxu1 %v12444_v53  ;;  %5140 = vmatpush1.msra.mxu0 %v12513_v48  ;;  %v11046_v61 = vld [vmem:[%s13336_s1 + $0x8] sm:$0x7]  ;;  %v12571_v34 = vand.u32 4294901760, %v12547_v35 }
 0x1d4   : > { %v12553_v16 = vand.u32 4294901760, %v3111_v0  ;;  %4904 = vmatprep.subr.mxu1 %v12484_v21  ;;  %4939 = vmatprep.mubr.f32.mxu1 %v13420_v46  ;;  %v12557_v12 = vpop.f32.mrf.mxu0  ;;  %v5778_v63 = vsel %vm447_vm6, %v11046_v61, 0 }
 0x1d5   : > { %13468 = vst [vmem:[#allocation53_spill] sm:$0xff] %v12557_v12  ;;  %8273 = vrot.lane.b32.xlu1 %v11087_v29, %s11143_s20  ;;  %4906 = vmatpush1.msra.mxu1 %v12472_v24  ;;  %13470 = vst [vmem:[#allocation55_spill] sm:$0xff] %v12571_v34  ;;  %v5220_v29 = vsub.f32 %v12525_v2, %v5219_v13  ;;  %v5238_v30 = vsub.f32 %v12547_v35, %v12571_v34 }
 0x1d6   : > { %13467 = vst [vmem:[#allocation52_spill] sm:$0xff] %v12553_v16  ;;  %v12566_v57 = vsub.f32 %v3111_v0, %v12553_v16  ;;  %5142 = vmatprep.subr.mxu0 %v12553_v16  ;;  %5062 = vmatprep.subr.mxu1 %v12459_v56  ;;  %v5226_v56 = vsub.f32 %v12539_v7, %v5225_v50 }
 0x1d7   : > { %5144 = vmatpush1.msra.mxu0 %v12527_v44  ;;  %5177 = vmatprep.mubr.f32.mxu0 %v13420_v46  ;;  %v699_v55 = vpop.f32.mrf.mxu0  ;;  %v5221_v61 = vand.u32 4294901760, %v5220_v29 }
 0x1d8   : > { %13469 = vst [vmem:[#allocation54_spill] sm:$0xff] %v12566_v57  ;;  %5311 = vmatprep.subr.mxu0 %v12525_v2  ;;  %4943 = vmatmul.mubr.f32.vlgmr.msra.gmra.mxu1 %v12122_v38  ;;  %v12579_v0 = vand.u32 4294901760, %v12566_v57 }
 0x1d9   : > { %5064 = vmatpush1.msra.mxu1 %v12444_v53  ;;  %5183 = vmatmul.mubr.f32.vlgmr.msra.gmra.mxu0 %v12170_v4  ;;  %v12585_v19 = vpop.f32.mrf.mxu0  ;;  %v12595_v53 = vand.u32 4294901760, %v5778_v63 }
 0x1da   : > { %13471 = vst [vmem:[#allocation56_spill] sm:$0xff] %v12579_v0  ;;  %13472 = vst [vmem:[#allocation57_spill] sm:$0xff] %v12585_v19  ;;  %5314 = vmatpush1.msra.mxu0 %v12539_v7  ;;  %5066 = vmatprep.subr.mxu1 %v12484_v21  ;;  %v5232_v2 = vsub.f32 %v12566_v57, %v12579_v0 }
 0x1db   : > { %5317 = vmatprep.subr.mxu0 %v12566_v57  ;;  %5068 = vmatpush1.msra.mxu1 %v12472_v24  ;;  %v5227_v57 = vand.u32 4294901760, %v5226_v56 }
 0x1dc   : > { %5320 = vmatpush1.msra.mxu0 %v12547_v35  ;;  %5101 = vmatprep.mubr.f32.mxu1 %v13420_v46  ;;  %v12599_v4 = vand.u32 4294901760, %v5232_v2  ;;  %v618_v7 = vpop.f32.mrf.mxu1  ;;  %v861_v19 = vpop.f32.mrf.mxu0  ;;  %v12610_v35 = vand.u32 4294901760, %v5238_v30 }
 0x1dd   : > { %5222 = vmatprep.subr.mxu1 %v5221_v61  ;;  %5353 = vmatprep.mubr.f32.mxu0 %v13420_v46  ;;  %v12602_v21 = vpop.permute.xlu1 %5739  ;;  %v619_v29 = vadd.f32 %v618_v7, %v526_v32  ;;  %v12613_v61 = vsub.f32 %v5778_v63, %v12595_v53 }
 0x1de   : > { %13473 = vst [vmem:[#allocation58_spill] sm:$0xff] %v12599_v4  ;;  %5471 = vmatprep.subr.mxu0 %v5219_v13  ;;  %5103 = vmatmul.mubr.f32.vlgmr.msra.gmra.mxu1 %v12054_v11  ;;  %v12605_v24 = vpop.f32.mrf.mxu1  ;;  %v12607_v12 = vpop.f32.mrf.mxu0  ;;  %13475 = vst [vmem:[#allocation60_spill] sm:$0xff] %v12610_v35 }
 0x1df   : > { %13474 = vst [vmem:[#allocation59_spill] sm:$0xff] %v12607_v12  ;;  %5228 = vmatpush1.msra.mxu1 %v5227_v57  ;;  %5356 = vmatmul.mubr.f32.vlgmr.msra.gmra.mxu0 %v12087_v43  ;;  %v5738_v2 = vpop.permute.xlu0 %5737  ;;  %v700_v56 = vadd.f32 %v699_v55, %v619_v29  ;;  %v12630_v57 = vand.u32 4294901760, %v12613_v61 }
 0x1e0   : > { %5475 = vmatpush1.msra.mxu0 %v5225_v50  ;;  %5234 = vmatprep.subr.mxu1 %v12599_v4  ;;  %v5758_v32 = vsel %vm406_vm7, %v5738_v2, %v12602_v21 }
 0x1e1   : > { %5479 = vmatprep.subr.mxu0 %v12579_v0  ;;  %v12619_v13 = vand.u32 4294901760, %v5758_v32  ;;  %5240 = vmatpush1.msra.mxu1 %v12610_v35  ;;  %v8258_v43 = vpop.permute.xlu1 %8257 }
 0x1e2   : > { %5483 = vmatpush1.msra.mxu0 %v12571_v34  ;;  %5273 = vmatprep.mubr.f32.mxu1 %v13420_v46  ;;  %v777_v63 = vpop.f32.mrf.mxu1  ;;  %v1017_v30 = vpop.f32.mrf.mxu0 }
 0x1e3   : > { %v12625_v50 = vsub.f32 %v5758_v32, %v12619_v13  ;;  %5391 = vmatprep.subr.mxu1 %v12507_v49  ;;  %5275 = vmatmul.mubr.f32.vlgmr.msra.gmra.mxu1 %v12054_v11  ;;  %v8256_v55 = vpop.permute.xlu0 %8255  ;;  %v778_v7 = vadd.f32 %v777_v63, %v700_v56 }
 0x1e4   : > { %5393 = vmatpush1.msra.mxu1 %v12513_v48  ;;  %v8276_v29 = vsel %vm406_vm7, %v8256_v55, %v8258_v43  ;;  %5430 = vmatprep.mubr.f32.mxu1 %v13420_v46  ;;  %v12635_v34 = vpop.f32.mrf.mxu1  ;;  %v1019_v35 = vpop.f32.mrf.mxu0 }
 0x1e5   : > { %13476 = vst [vmem:[#allocation61_spill] sm:$0xff] %v12635_v34  ;;  %5395 = vmatprep.subr.mxu1 %v12553_v16  ;;  %v8297_v32 = vsel %vm316_vm0, %v12092_v18, %v8276_v29  ;;  %v5736_v0 = vpop.permute.xlu1 %5735  ;;  %5516 = vmatprep.mubr.f32.mxu0 %v13420_v46  ;;  %v5890_v4 = vand.u32 4294901760, %v12625_v50  ;;  %v862_v56 = vadd.f32 %v861_v19, %v778_v7 }
 0x1e6   : > { %5397 = vmatpush1.msra.mxu1 %v12527_v44  ;;  %8322 = vrot.lane.b32.xlu0 %v8297_v32, %s11143_s20  ;;  %v5757_v63 = vsel %vm406_vm7, %v5736_v0, %v5738_v2  ;;  %v5852_v18 = vsub.f32 %v12613_v61, %v12630_v57 }
 0x1e7   : > { %5553 = vmatprep.subr.mxu1 %v12507_v49  ;;  %5434 = vmatmul.mubr.f32.vlgmr.msra.gmra.mxu1 %v12122_v38  ;;  %v12647_v12 = vand.u32 4294901760, %v5757_v63  ;;  %v12649_v34 = vpop.permute.xlu0 %8259  ;;  %v5891_v29 = vsub.f32 %v12625_v50, %v5890_v4 }
 0x1e8   : > { %5555 = vmatpush1.msra.mxu1 %v12513_v48  ;;  %v8277_v19 = vsel %vm406_vm7, %v8258_v43, %v12649_v34  ;;  %5809 = vmatprep.subr.mxu0 %v12619_v13  ;;  %v937_v0 = vpop.f32.mrf.mxu1  ;;  %v1190_v49 = vpop.f32.mrf.mxu0 }
 0x1e9   : > { %v5895_v38 = vsub.f32 %v5757_v63, %v12647_v12  ;;  %5557 = vmatprep.subr.mxu1 %v12553_v16  ;;  %v8298_v2 = vsel %vm316_vm0, %v12073_v14, %v8277_v19  ;;  %5518 = vmatmul.mubr.f32.vlgmr.msra.gmra.mxu0 %v12054_v11  ;;  %v12663_v7 = vadd.f32 %v937_v0, %v862_v56  ;;  %v12671_v16 = vand.u32 4294901760, %v5852_v18 }
 0x1ea   : > { %5559 = vmatpush1.msra.mxu1 %v12527_v44  ;;  %8324 = vrot.lane.b32.xlu1 %v8298_v2, %s11143_s20  ;;  %v12667_v48 = vpop.f32.mrf.mxu1  ;;  %v1192_v43 = vpop.f32.mrf.mxu0  ;;  %v5892_v14 = vand.u32 4294901760, %v5891_v29 }
 0x1eb   : > { %v5896_v32 = vand.u32 4294901760, %v5895_v38  ;;  %5811 = vmatpush1.msra.mxu0 %v12647_v12  ;;  %v8254_v63 = vpop.permute.xlu0 %8253  ;;  %5848 = vmatprep.mubr.f32.mxu0 %v13420_v46 }
 0x1ec   : > { %v8275_v19 = vsel %vm406_vm7, %v8254_v63, %v8256_v55  ;;  %5813 = vmatprep.subr.mxu0 %v11589_v8  ;;  %5592 = vmatprep.mubr.f32.mxu1 %v13420_v46 }
 0x1ed   : > { %v5897_v56 = vsub.f32 %v5895_v38, %v5896_v32  ;;  %5815 = vmatpush1.msra.mxu0 %v11567_v17  ;;  %v8296_v0 = vsel %vm316_vm0, %v12142_v58, %v8275_v19  ;;  %5594 = vmatmul.mubr.f32.vlgmr.msra.gmra.mxu1 %v12054_v11 }
 0x1ee   : > { %5982 = vmatprep.subr.mxu0 %v12625_v50  ;;  %8320 = vrot.lane.b32.xlu0 %v8296_v0, %s11143_s20  ;;  %v1109_v18 = vpop.f32.mrf.mxu1  ;;  %v1352_v29 = vpop.f32.mrf.mxu0 }
 0x1ef   : > { %5854 = vmatmul.mubr.f32.vlgmr.msra.gmra.mxu0 %v12671_v16  ;;  %5893 = vmatprep.subr.mxu1 %v5892_v14  ;;  %v5898_v55 = vand.u32 4294901760, %v5897_v56  ;;  %v1110_v2 = vadd.f32 %v1109_v18, %v1017_v30 }
 0x1f0   : > { %5985 = vmatpush1.msra.mxu0 %v5895_v38  ;;  %6024 = vmatprep.mubr.f32.mxu0 %v13420_v46  ;;  %v1111_v63 = vpop.f32.mrf.mxu1  ;;  %v1354_v44 = vpop.f32.mrf.mxu0 }
 0x1f1   : > { %5988 = vmatprep.subr.mxu0 %v11600_v31  ;;  %5899 = vmatpush1.msra.mxu1 %v5898_v55  ;;  %v1112_v11 = vadd.f32 %v1111_v63, %v1019_v35  ;;  %v1191_v58 = vadd.f32 %v1190_v49, %v1110_v2 }
 0x1f2   : > { %5991 = vmatpush1.msra.mxu0 %v11582_v25  ;;  %5905 = vmatprep.subr.mxu1 %v11629_v42 }
 0x1f3   : > { %6142 = vmatprep.subr.mxu0 %v5890_v4  ;;  %6027 = vmatmul.mubr.f32.vlgmr.msra.gmra.mxu0 %v12613_v61  ;;  %v5742_v50 = vpop.permute.xlu1 %5741  ;;  %v12688_v14 = vpop.permute.xlu0 %5743  ;;  %v1193_v30 = vadd.f32 %v1192_v43, %v1112_v11 }
 0x1f4   : > { %6146 = vmatpush1.msra.mxu0 %v5896_v32  ;;  %5911 = vmatpush1.msra.mxu1 %v11636_v6  ;;  %v5759_v31 = vsel %vm406_vm7, %v12602_v21, %v5742_v50  ;;  %v5760_v35 = vsel %vm406_vm7, %v5742_v50, %v12688_v14  ;;  %v1268_v49 = vpop.f32.mrf.mxu1  ;;  %v1508_v25 = vpop.f32.mrf.mxu0 }
 0x1f5   : > { %6150 = vmatprep.subr.mxu0 %v11610_v37  ;;  %5944 = vmatprep.mubr.f32.mxu1 %v13420_v46  ;;  %v12697_v42 = vand.u32 4294901760, %v5759_v31  ;;  %v12699_v4 = vand.u32 4294901760, %v5760_v35  ;;  %v1269_v38 = vadd.f32 %v1268_v49, %v1191_v58 }
 0x1f6   : > { %6154 = vmatpush1.msra.mxu0 %v11597_v3  ;;  %5946 = vmatmul.mubr.f32.vlgmr.msra.gmra.mxu1 %v12595_v53  ;;  %v1270_v6 = vpop.f32.mrf.mxu1  ;;  %v1510_v21 = vpop.f32.mrf.mxu0 }
 0x1f7   : > { %6062 = vmatprep.subr.mxu1 %v12619_v13  ;;  %v12705_v43 = vsub.f32 %v5759_v31, %v12697_v42  ;;  %v6380_v37 = vsub.f32 %v5760_v35, %v12699_v4  ;;  %6101 = vmatprep.mubr.f32.mxu1 %v13420_v46  ;;  %v12709_v32 = vpop.permute.xlu0 %8263  ;;  %v1271_v19 = vadd.f32 %v1270_v6, %v1193_v30 }
 0x1f8   : > { %6064 = vmatpush1.msra.mxu1 %v12647_v12  ;;  %v8262_v56 = vpop.permute.xlu1 %8261  ;;  %6187 = vmatprep.mubr.f32.mxu0 %v13420_v46  ;;  %v1353_v3 = vadd.f32 %v1352_v29, %v1269_v38 }
 0x1f9   : > { %v6387_v0 = vand.u32 4294901760, %v12705_v43  ;;  %6066 = vmatprep.subr.mxu1 %v11589_v8  ;;  %v8278_v18 = vsel %vm406_vm7, %v12649_v34, %v8262_v56  ;;  %6300 = vmatprep.subr.mxu0 %v12699_v4  ;;  %v6381_v55 = vand.u32 4294901760, %v6380_v37  ;;  %v8279_v2 = vsel %vm406_vm7, %v8262_v56, %v12709_v32 }
 0x1fa   : > { %6068 = vmatpush1.msra.mxu1 %v11567_v17  ;;  %6189 = vmatmul.mubr.f32.vlgmr.msra.gmra.mxu0 %v12595_v53  ;;  %v1355_v63 = vadd.f32 %v1354_v44, %v1271_v19  ;;  %v1428_v11 = vpop.f32.mrf.mxu1  ;;  %v1681_v29 = vpop.f32.mrf.mxu0  ;;  %v8299_v30 = vsel %vm316_vm0, %v12217_v52, %v8278_v18  ;;  %v8300_v44 = vsel %vm316_vm0, %v12225_v10, %v8279_v2 }
 0x1fb   : > { %6105 = vmatmul.mubr.f32.vlgmr.msra.gmra.mxu1 %v12630_v57  ;;  %6224 = vmatprep.subr.mxu1 %v12619_v13  ;;  %v6382_v58 = vsub.f32 %v6380_v37, %v6381_v55  ;;  %v12724_v50 = vadd.f32 %v1428_v11, %v1353_v3  ;;  %v6388_v34 = vsub.f32 %v12705_v43, %v6387_v0 }
 0x1fc   : > { %6226 = vmatpush1.msra.mxu1 %v12647_v12  ;;  %6302 = vmatpush1.msra.mxu0 %v12697_v42  ;;  %v1430_v31 = vpop.f32.mrf.mxu1  ;;  %v1683_v35 = vpop.f32.mrf.mxu0 }
 0x1fd   : > { %6228 = vmatprep.subr.mxu1 %v11589_v8  ;;  %6263 = vmatprep.mubr.f32.mxu1 %v13420_v46  ;;  %v12735_v13 = vadd.f32 %v1430_v31, %v1355_v63  ;;  %v6383_v12 = vand.u32 4294901760, %v6382_v58  ;;  %v6389_v8 = vand.u32 4294901760, %v6388_v34 }
 0x1fe   : > { %6230 = vmatpush1.msra.mxu1 %v11567_v17  ;;  %6304 = vmatprep.subr.mxu0 %v11638_v45 }
 0x1ff   : > { %6265 = vmatmul.mubr.f32.vlgmr.msra.gmra.mxu1 %v12595_v53  ;;  %8326 = vrot.lane.b32.xlu1 %v8299_v30, %s11143_s20 }
 0x200   : > { %6306 = vmatpush1.msra.mxu0 %v11642_v5  ;;  %8328 = vrot.lane.b32.xlu0 %v8300_v44, %s11143_s20 }
 0x201   : > { %6339 = vmatprep.mubr.f32.mxu0 %v13420_v46  ;;  %6473 = vmatprep.subr.mxu0 %v6380_v37  ;;  %v1600_v52 = vpop.f32.mrf.mxu1  ;;  %v1843_v10 = vpop.f32.mrf.mxu0 }
 0x202   : > { %6345 = vmatmul.mubr.f32.vlgmr.msra.gmra.mxu0 %v12671_v16  ;;  %6384 = vmatprep.subr.mxu1 %v6383_v12  ;;  %v1601_v17 = vadd.f32 %v1600_v52, %v1508_v25 }
 0x203   : > { %6476 = vmatpush1.msra.mxu0 %v12705_v43  ;;  %6515 = vmatprep.mubr.f32.mxu0 %v13420_v46  ;;  %v1602_v49 = vpop.f32.mrf.mxu1  ;;  %v1845_v19 = vpop.f32.mrf.mxu0 }
 0x204   : > { %6479 = vmatprep.subr.mxu0 %v11652_v51  ;;  %6390 = vmatpush1.msra.mxu1 %v6389_v8  ;;  %v1603_v38 = vadd.f32 %v1602_v49, %v1510_v21  ;;  %v1682_v6 = vadd.f32 %v1681_v29, %v1601_v17 }
 0x205   : > { %6482 = vmatpush1.msra.mxu0 %v11657_v54  ;;  %6396 = vmatprep.subr.mxu1 %v11703_v26 }
 0x206   : > { %6633 = vmatprep.subr.mxu0 %v6381_v55  ;;  %6518 = vmatmul.mubr.f32.vlgmr.msra.gmra.mxu0 %v12613_v61  ;;  %v1684_v37 = vadd.f32 %v1683_v35, %v1603_v38  ;;  %v1759_v25 = vpop.f32.mrf.mxu1 }
 0x207   : > { %6637 = vmatpush1.msra.mxu0 %v6387_v0  ;;  %6402 = vmatpush1.msra.mxu1 %v11709_v33  ;;  %v5746_v43 = vpop.permute.xlu1 %5745  ;;  %v12752_v56 = vpop.permute.xlu0 %5747  ;;  %v1760_v51 = vadd.f32 %v1759_v25, %v1682_v6  ;;  %v13477_v25 = vld [vmem:[#allocation4_spill] sm:$0xff] }
 0x208   : > { %6641 = vmatprep.subr.mxu0 %v11670_v60  ;;  %6435 = vmatprep.mubr.f32.mxu1 %v13420_v46  ;;  %v5761_v54 = vsel %vm406_vm7, %v12688_v14, %v5746_v43  ;;  %v5762_v26 = vsel %vm406_vm7, %v5746_v43, %v12752_v56  ;;  %v1761_v21 = vpop.f32.mrf.mxu1 }
 0x209   : > { %6645 = vmatpush1.msra.mxu0 %v11673_v62  ;;  %v12761_v3 = vand.u32 4294901760, %v5761_v54  ;;  %6437 = vmatmul.mubr.f32.vlgmr.msra.gmra.mxu1 %v12595_v53  ;;  %v12764_v33 = vand.u32 4294901760, %v5762_v26  ;;  %v1762_v0 = vadd.f32 %v1761_v21, %v1684_v37  ;;  %v1844_v18 = vadd.f32 %v1843_v10, %v1760_v51  ;;  %v13479_v51 = vld [vmem:[#allocation3_spill] sm:$0xff] }
 0x20a   : > { %6553 = vmatprep.subr.mxu1 %v12699_v4  ;;  %6592 = vmatprep.mubr.f32.mxu1 %v13420_v46  ;;  %v1999_v60 = vpop.f32.mrf.mxu0 }
 0x20b   : > { %v6877_v14 = vsub.f32 %v5761_v54, %v12761_v3  ;;  %v6871_v55 = vsub.f32 %v5762_v26, %v12764_v33  ;;  %6555 = vmatpush1.msra.mxu1 %v12697_v42  ;;  %6678 = vmatprep.mubr.f32.mxu0 %v13420_v46  ;;  %v12772_v62 = vpop.permute.xlu0 %8267  ;;  %v1846_v2 = vadd.f32 %v1845_v19, %v1762_v0 }
 0x20c   : > { %6557 = vmatprep.subr.mxu1 %v11638_v45  ;;  %v8266_v63 = vpop.permute.xlu1 %8265  ;;  %6791 = vmatprep.subr.mxu0 %v12764_v33  ;;  %v2001_v31 = vpop.f32.mrf.mxu0 }
 0x20d   : > { %v6878_v11 = vand.u32 4294901760, %v6877_v14  ;;  %6559 = vmatpush1.msra.mxu1 %v11642_v5  ;;  %v8280_v29 = vsel %vm406_vm7, %v12709_v32, %v8266_v63  ;;  %v8281_v58 = vsel %vm406_vm7, %v8266_v63, %v12772_v62  ;;  %6680 = vmatmul.mubr.f32.vlgmr.msra.gmra.mxu0 %v12595_v53  ;;  %v6872_v34 = vand.u32 4294901760, %v6871_v55  ;;  %v1919_v30 = vpop.f32.mrf.mxu1 }
 0x20e   : > { %6596 = vmatmul.mubr.f32.vlgmr.msra.gmra.mxu1 %v12630_v57  ;;  %6715 = vmatprep.subr.mxu1 %v12699_v4  ;;  %v12784_v44 = vadd.f32 %v1919_v30, %v1844_v18  ;;  %v8301_v32 = vsel %vm316_vm0, %v12334_v27, %v8280_v29  ;;  %v8302_v52 = vsel %vm316_vm0, %v12340_v59, %v8281_v58 }
 0x20f   : > { %v6879_v12 = vsub.f32 %v6877_v14, %v6878_v11  ;;  %6717 = vmatpush1.msra.mxu1 %v12697_v42  ;;  %6793 = vmatpush1.msra.mxu0 %v12761_v3  ;;  %v6873_v35 = vsub.f32 %v6871_v55, %v6872_v34  ;;  %v1921_v8 = vpop.f32.mrf.mxu1 }
 0x210   : > { %6719 = vmatprep.subr.mxu1 %v11638_v45  ;;  %6795 = vmatprep.subr.mxu0 %v11716_v36  ;;  %v12794_v4 = vadd.f32 %v1921_v8, %v1846_v2  ;;  %v2172_v17 = vpop.f32.mrf.mxu0 }
 0x211   : > { %6721 = vmatpush1.msra.mxu1 %v11642_v5  ;;  %6754 = vmatprep.mubr.f32.mxu1 %v13420_v46  ;;  %v6874_v42 = vand.u32 4294901760, %v6873_v35  ;;  %v6880_v45 = vand.u32 4294901760, %v6879_v12 }
 0x212   : > { %8330 = vrot.lane.b32.xlu1 %v8301_v32, %s11143_s20  ;;  %6797 = vmatpush1.msra.mxu0 %v11722_v1  ;;  %v2174_v27 = vpop.f32.mrf.mxu0 }
 0x213   : > { %8332 = vrot.lane.b32.xlu0 %v8302_v52, %s11143_s20  ;;  %6756 = vmatmul.mubr.f32.vlgmr.msra.gmra.mxu1 %v12595_v53 }
 0x214   : > { %6830 = vmatprep.mubr.f32.mxu0 %v13420_v46  ;;  %6964 = vmatprep.subr.mxu0 %v6871_v55 }
 0x215   : > { %6836 = vmatmul.mubr.f32.vlgmr.msra.gmra.mxu0 %v12671_v16  ;;  %6875 = vmatprep.subr.mxu1 %v6874_v42  ;;  %v2091_v5 = vpop.f32.mrf.mxu1 }
 0x216   : > { %6967 = vmatpush1.msra.mxu0 %v6877_v14  ;;  %7006 = vmatprep.mubr.f32.mxu0 %v13420_v46  ;;  %v2092_v59 = vadd.f32 %v2091_v5, %v1999_v60  ;;  %v2334_v37 = vpop.f32.mrf.mxu0 }
 0x217   : > { %6970 = vmatprep.subr.mxu0 %v11734_v39  ;;  %6881 = vmatpush1.msra.mxu1 %v6880_v45  ;;  %v2093_v10 = vpop.f32.mrf.mxu1  ;;  %v13478_v39 = vld [vmem:[#allocation2_spill] sm:$0xff] }
 0x218   : > { %6973 = vmatpush1.msra.mxu0 %v11741_v40  ;;  %6887 = vmatprep.subr.mxu1 %v11799_v28  ;;  %v12808_v49 = vpop.permute.xlu1 %5749  ;;  %v2094_v38 = vadd.f32 %v2093_v10, %v2001_v31  ;;  %v2173_v6 = vadd.f32 %v2172_v17, %v2092_v59  ;;  %v2336_v0 = vpop.f32.mrf.mxu0 }
 0x219   : > { %7124 = vmatprep.subr.mxu0 %v6872_v34  ;;  %7009 = vmatmul.mubr.f32.vlgmr.msra.gmra.mxu0 %v12613_v61 }
 0x21a   : > { %7128 = vmatpush1.msra.mxu0 %v6878_v11  ;;  %6893 = vmatpush1.msra.mxu1 %v13477_v25  ;;  %v2175_v19 = vadd.f32 %v2174_v27, %v2094_v38  ;;  %v2250_v43 = vpop.f32.mrf.mxu1 }
 0x21b   : > { %7132 = vmatprep.subr.mxu0 %v13478_v39  ;;  %6926 = vmatprep.mubr.f32.mxu1 %v13420_v46  ;;  %v2251_v40 = vadd.f32 %v2250_v43, %v2173_v6 }
 0x21c   : > { %7136 = vmatpush1.msra.mxu0 %v13479_v51  ;;  %6928 = vmatmul.mubr.f32.vlgmr.msra.gmra.mxu1 %v12595_v53  ;;  %v2252_v28 = vpop.f32.mrf.mxu1 }
 0x21d   : > { %7044 = vmatprep.subr.mxu1 %v12764_v33  ;;  %7083 = vmatprep.mubr.f32.mxu1 %v13420_v46  ;;  %v8270_v54 = vpop.permute.xlu1 %8269  ;;  %v2253_v26 = vadd.f32 %v2252_v28, %v2175_v19  ;;  %v2335_v21 = vadd.f32 %v2334_v37, %v2251_v40  ;;  %v13480_v40 = vld [vmem:[#allocation5_spill] sm:$0xff] }
 0x21e   : > { %7046 = vmatpush1.msra.mxu1 %v12761_v3  ;;  %v8282_v18 = vsel %vm406_vm7, %v12772_v62, %v8270_v54  ;;  %7169 = vmatprep.mubr.f32.mxu0 %v13420_v46 }
 0x21f   : > { %7048 = vmatprep.subr.mxu1 %v11716_v36  ;;  %7171 = vmatmul.mubr.f32.vlgmr.msra.gmra.mxu0 %v12595_v53  ;;  %v8303_v60 = vsel %vm316_vm0, %v12416_v23, %v8282_v18  ;;  %v2337_v14 = vadd.f32 %v2336_v0, %v2253_v26  ;;  %v13481_v0 = vld [vmem:[#allocation6_spill] sm:$0xff] }
 0x220   : > { %7050 = vmatpush1.msra.mxu1 %v11722_v1  ;;  %8334 = vrot.lane.b32.xlu1 %v8303_v60, %s11143_s20  ;;  %v2410_v55 = vpop.f32.mrf.mxu1 }
 0x221   : > { %7087 = vmatmul.mubr.f32.vlgmr.msra.gmra.mxu1 %v12630_v57  ;;  %7206 = vmatprep.subr.mxu1 %v12764_v33  ;;  %v12830_v62 = vadd.f32 %v2410_v55, %v2335_v21  ;;  %v2490_v2 = vpop.f32.mrf.mxu0  ;;  %v13483_v55 = vld [vmem:[#allocation8_spill] sm:$0xff] }
 0x222   : > { %7208 = vmatpush1.msra.mxu1 %v12761_v3  ;;  %7245 = vmatprep.mubr.f32.mxu1 %v13420_v46  ;;  %v2412_v63 = vpop.f32.mrf.mxu1  ;;  %v5763_v3 = vsel %vm406_vm7, %v12752_v56, %v12808_v49 }
 0x223   : > { %7210 = vmatprep.subr.mxu1 %v11716_v36  ;;  %7321 = vmatprep.mubr.f32.mxu0 %v13420_v46  ;;  %v12836_v23 = vadd.f32 %v2412_v63, %v2337_v14  ;;  %v2492_v11 = vpop.f32.mrf.mxu0  ;;  %v12844_v36 = vand.u32 4294901760, %v5763_v3  ;;  %v13484_v63 = vld [vmem:[#allocation11_spill] sm:$0xff] }
 0x224   : > { %7212 = vmatpush1.msra.mxu1 %v11722_v1 }
 0x225   : > { %7247 = vmatmul.mubr.f32.vlgmr.msra.gmra.mxu1 %v12595_v53  ;;  %v2663_v29 = vpop.f32.mrf.mxu0  ;;  %v7368_v52 = vsub.f32 %v5763_v3, %v12844_v36  ;;  %v13485_v3 = vld [vmem:[#allocation9_spill] sm:$0xff] }
 0x226   : > { %7417 = vmatprep.mubr.f32.mxu1 %v13420_v46 }
 0x227   : > { %v2665_v12 = vpop.f32.mrf.mxu0  ;;  %v7369_v10 = vand.u32 4294901760, %v7368_v52 }
 0x228   : > { %v2582_v33 = vpop.f32.mrf.mxu1 }
 0x229   : > { %v2583_v58 = vadd.f32 %v2582_v33, %v2490_v2  ;;  %v7370_v21 = vsub.f32 %v7368_v52, %v7369_v10  ;;  %v13486_v33 = vld [vmem:[#allocation13_spill] sm:$0xff] }
 0x22a   : > { %v2584_v34 = vpop.f32.mrf.mxu1 }
 0x22b   : > { %v2585_v30 = vadd.f32 %v2584_v34, %v2492_v11  ;;  %v2664_v31 = vadd.f32 %v2663_v29, %v2583_v58  ;;  %v7371_v2 = vand.u32 4294901760, %v7370_v21  ;;  %v13487_v58 = vld [vmem:[#allocation10_spill] sm:$0xff]  ;;  %v11047_v21 = vld [vmem:[%s13336_s1 + $0xc] sm:$0x7] }
 0x22c   : > { %v2741_v32 = vpop.f32.mrf.mxu1 }
 0x22d   : > { %v2666_v1 = vadd.f32 %v2665_v12, %v2585_v30  ;;  %v2742_v35 = vadd.f32 %v2741_v32, %v2664_v31 }
 0x22e   : > { %v2743_v8 = vpop.f32.mrf.mxu1 }
 0x22f   : > { %v2744_v42 = vadd.f32 %v2743_v8, %v2666_v1 }
 0x230   : > { %v5752_v17 = vpop.permute.xlu0 %5751  ;;  %v2825_v45 = vpop.f32.mrf.mxu0 }
 0x231   : > { %v5764_v56 = vsel %vm406_vm7, %v12808_v49, %v5752_v17  ;;  %v2826_v5 = vadd.f32 %v2825_v45, %v2742_v35 }
 0x232   : > { %v7281_v27 = vand.u32 4294901760, %v5764_v56  ;;  %v2827_v59 = vpop.f32.mrf.mxu0 }
 0x233   : > { %v2828_v38 = vadd.f32 %v2827_v59, %v2744_v42  ;;  %v2901_v6 = vpop.f32.mrf.mxu1 }
 0x234   : > { %v7362_v37 = vsub.f32 %v5764_v56, %v7281_v27  ;;  %7282 = vmatprep.subr.mxu0 %v7281_v27  ;;  %v12849_v25 = vpop.permute.xlu0 %8271  ;;  %v12851_v19 = vadd.f32 %v2901_v6, %v2826_v5 }
 0x235   : > { %v8283_v43 = vsel %vm406_vm7, %v8270_v54, %v12849_v25  ;;  %7284 = vmatpush1.msra.mxu0 %v12844_v36  ;;  %v2903_v39 = vpop.f32.mrf.mxu1 }
 0x236   : > { %7286 = vmatprep.subr.mxu0 %v13480_v40  ;;  %v8304_v49 = vsel %vm316_vm0, %v12468_v9, %v8283_v43  ;;  %v7363_v51 = vand.u32 4294901760, %v7362_v37  ;;  %v12859_v28 = vadd.f32 %v2903_v39, %v2828_v38  ;;  %v12861_v26 = vpop.f32.mrf.mxu0  ;;  %v13482_v9 = vld [vmem:[#allocation7_spill] sm:$0xff] }
 0x237   : > { %7288 = vmatpush1.msra.mxu0 %v13481_v0  ;;  %8336 = vrot.lane.b32.xlu0 %v8304_v49, %s11143_s20  ;;  %v13490_v49 = vld [vmem:[#allocation15_spill] sm:$0xff] }
 0x238   : > { %7455 = vmatprep.subr.mxu0 %v7362_v37  ;;  %7327 = vmatmul.mubr.f32.vlgmr.msra.gmra.mxu0 %v12671_v16  ;;  %v7364_v54 = vsub.f32 %v7362_v37, %v7363_v51  ;;  %v12866_v18 = vpop.f32.mrf.mxu0  ;;  %v13489_v37 = vld [vmem:[#allocation14_spill] sm:$0xff] }
 0x239   : > { %7458 = vmatpush1.msra.mxu0 %v7368_v52  ;;  %7497 = vmatprep.mubr.f32.mxu0 %v13420_v46 }
 0x23a   : > { %7461 = vmatprep.subr.mxu0 %v13482_v9  ;;  %v7365_v60 = vand.u32 4294901760, %v7364_v54  ;;  %v12870_v14 = vpop.f32.mrf.mxu0  ;;  %v8363_v9 = vsel %vm447_vm6, %v11047_v21, 0 }
 0x23b   : > { %7464 = vmatpush1.msra.mxu0 %v13483_v55  ;;  %v13493_v55 = vld [vmem:[#allocation17_spill] sm:$0xff] }
 0x23c   : > { %7366 = vmatprep.subr.mxu1 %v7365_v60  ;;  %7615 = vmatprep.subr.mxu0 %v7363_v51  ;;  %v12875_v11 = vpop.f32.mrf.mxu0  ;;  %v13492_v60 = vld [vmem:[#allocation19_spill] sm:$0xff] }
 0x23d   : > { %7372 = vmatpush1.msra.mxu1 %v7371_v2  ;;  %7500 = vmatmul.mubr.f32.vlgmr.msra.gmra.mxu0 %v12613_v61  ;;  %v13494_v2 = vld [vmem:[#allocation20_spill] sm:$0xff] }
 0x23e   : > { %7619 = vmatpush1.msra.mxu0 %v7369_v10  ;;  %7378 = vmatprep.subr.mxu1 %v13484_v63  ;;  %v13488_v10 = vld [vmem:[#allocation12_spill] sm:$0xff] }
 0x23f   : > { %7623 = vmatprep.subr.mxu0 %v13485_v3  ;;  %7384 = vmatpush1.msra.mxu1 %v13486_v33  ;;  %v12879_v29 = vpop.f32.mrf.mxu1  ;;  %v12888_v31 = vpop.f32.mrf.mxu0  ;;  %v13495_v3 = vld [vmem:[#allocation18_spill] sm:$0xff]  ;;  %v12945_v33 = vand.u32 4294901760, %v8363_v9 }
 0x240   : > { %7627 = vmatpush1.msra.mxu0 %v13487_v58  ;;  %7419 = vmatmul.mubr.f32.vlgmr.msra.gmra.mxu1 %v12595_v53 }
 0x241   : > { %7535 = vmatprep.subr.mxu1 %v7281_v27  ;;  %7660 = vmatprep.mubr.f32.mxu0 %v13420_v46  ;;  %v12884_v34 = vpop.f32.mrf.mxu1  ;;  %v12905_v42 = vpop.f32.mrf.mxu0 }
 0x242   : > { %v5756_v30 = vpop.permute.xlu0 %5755  ;;  %7537 = vmatpush1.msra.mxu1 %v12844_v36  ;;  %7662 = vmatmul.mubr.f32.vlgmr.msra.gmra.mxu0 %v12595_v53 }
 0x243   : > { %v5754_v12 = vpop.permute.xlu1 %5753  ;;  %7539 = vmatprep.subr.mxu1 %v13480_v40  ;;  %7574 = vmatprep.mubr.f32.mxu1 %v13420_v46 }
 0x244   : > { %v5765_v32 = vsel %vm406_vm7, %v5752_v17, %v5754_v12  ;;  %v5766_v1 = vsel %vm406_vm7, %v5754_v12, %v5756_v30  ;;  %7541 = vmatpush1.msra.mxu1 %v13481_v0  ;;  %7812 = vmatprep.mubr.f32.mxu0 %v13420_v46  ;;  %v12896_v35 = vpop.f32.mrf.mxu1 }
 0x245   : > { %v12898_v8 = vand.u32 4294901760, %v5766_v1  ;;  %v12900_v52 = vand.u32 4294901760, %v5765_v32  ;;  %7578 = vmatmul.mubr.f32.vlgmr.msra.gmra.mxu1 %v12630_v57  ;;  %7697 = vmatprep.subr.mxu1 %v7281_v27 }
 0x246   : > { %7699 = vmatpush1.msra.mxu1 %v12844_v36  ;;  %7736 = vmatprep.mubr.f32.mxu1 %v13420_v46  ;;  %v12911_v5 = vpop.f32.mrf.mxu1 }
 0x247   : > { %v7853_v17 = vsub.f32 %v5766_v1, %v12898_v8  ;;  %v7859_v45 = vsub.f32 %v5765_v32, %v12900_v52  ;;  %v8274_v56 = vpop.permute.xlu1 %8273  ;;  %7773 = vmatprep.subr.mxu0 %v12898_v8  ;;  %7701 = vmatprep.subr.mxu1 %v13480_v40 }
 0x248   : > { %v8284_v27 = vsel %vm406_vm7, %v12849_v25, %v8274_v56  ;;  %v8306_v36 = vsel %vm316_vm0, %v12482_v41, %v8274_v56  ;;  %7775 = vmatpush1.msra.mxu0 %v12900_v52  ;;  %7703 = vmatpush1.msra.mxu1 %v13481_v0  ;;  %v13491_v0 = vld [vmem:[#allocation16_spill] sm:$0xff] }
 0x249   : > { %v7860_v59 = vand.u32 4294901760, %v7859_v45  ;;  %8340 = vrot.lane.b32.xlu0 %v8306_v36, %s11143_s20  ;;  %7777 = vmatprep.subr.mxu0 %v13488_v10  ;;  %v8305_v38 = vsel %vm316_vm0, %v12520_v20, %v8284_v27  ;;  %v7854_v6 = vand.u32 4294901760, %v7853_v17 }
 0x24a   : > { %8338 = vrot.lane.b32.xlu1 %v8305_v38, %s11143_s20  ;;  %7779 = vmatpush1.msra.mxu0 %v13489_v37  ;;  %v3711_v25 = vpop.f32.mrf.mxu0  ;;  %v12926_v39 = vpop.f32.mrf.mxu1 }
 0x24b   : > { %v7861_v43 = vsub.f32 %v7859_v45, %v7860_v59  ;;  %7946 = vmatprep.subr.mxu0 %v7853_v17  ;;  %7818 = vmatmul.mubr.f32.vlgmr.msra.gmra.mxu0 %v12671_v16  ;;  %v7855_v41 = vsub.f32 %v7853_v17, %v7854_v6  ;;  %v12956_v17 = vsub.f32 %v8363_v9, %v12945_v33 }
 0x24c   : > { %7949 = vmatpush1.msra.mxu0 %v7859_v45  ;;  %7738 = vmatmul.mubr.f32.vlgmr.msra.gmra.mxu1 %v12595_v53  ;;  %v3713_v40 = vpop.f32.mrf.mxu0  ;;  %v12936_v54 = vpop.f32.mrf.mxu1 }
 0x24d   : > { %7952 = vmatprep.subr.mxu0 %v13490_v49  ;;  %v7856_v20 = vand.u32 4294901760, %v7855_v41  ;;  %7988 = vmatprep.mubr.f32.mxu0 %v13420_v46  ;;  %v7862_v51 = vand.u32 4294901760, %v7861_v43  ;;  %v12965_v38 = vand.u32 4294901760, %v12956_v17 }
 0x24e   : > { %7955 = vmatpush1.msra.mxu0 %v13491_v0  ;;  %7908 = vmatprep.mubr.f32.mxu1 %v13420_v46  ;;  %v3884_v16 = vpop.f32.mrf.mxu0 }
 0x24f   : > { %7857 = vmatprep.subr.mxu1 %v7856_v20  ;;  %8106 = vmatprep.subr.mxu0 %v7854_v6 }
 0x250   : > { %7863 = vmatpush1.msra.mxu1 %v7862_v51  ;;  %7991 = vmatmul.mubr.f32.vlgmr.msra.gmra.mxu0 %v12613_v61  ;;  %v3886_v63 = vpop.f32.mrf.mxu0 }
 0x251   : > { %8110 = vmatpush1.msra.mxu0 %v7860_v59  ;;  %7869 = vmatprep.subr.mxu1 %v13492_v60 }
 0x252   : > { %8114 = vmatprep.subr.mxu0 %v13493_v55  ;;  %7875 = vmatpush1.msra.mxu1 %v13494_v2 }
 0x253   : > { %8118 = vmatpush1.msra.mxu0 %v13495_v3  ;;  %7910 = vmatmul.mubr.f32.vlgmr.msra.gmra.mxu1 %v12595_v53  ;;  %v3803_v58 = vpop.f32.mrf.mxu1  ;;  %v4046_v1 = vpop.f32.mrf.mxu0 }
 0x254   : > { %8026 = vmatprep.subr.mxu1 %v12898_v8  ;;  %8065 = vmatprep.mubr.f32.mxu1 %v13420_v46  ;;  %v3804_v61 = vadd.f32 %v3803_v58, %v3711_v25 }
 0x255   : > { %8028 = vmatpush1.msra.mxu1 %v12900_v52  ;;  %8151 = vmatprep.mubr.f32.mxu0 %v13420_v46  ;;  %v3805_v30 = vpop.f32.mrf.mxu1  ;;  %v4048_v59 = vpop.f32.mrf.mxu0 }
 0x256   : > { %8030 = vmatprep.subr.mxu1 %v13488_v10  ;;  %8153 = vmatmul.mubr.f32.vlgmr.msra.gmra.mxu0 %v12595_v53  ;;  %v3806_v12 = vadd.f32 %v3805_v30, %v3713_v40  ;;  %v3885_v32 = vadd.f32 %v3884_v16, %v3804_v61  ;;  %v8437_v40 = vsub.f32 %v12956_v17, %v12965_v38 }
 0x257   : > { %8032 = vmatpush1.msra.mxu1 %v13489_v37  ;;  %8433 = vmatprep.mubr.f32.mxu0 %v13420_v46 }
 0x258   : > { %8069 = vmatmul.mubr.f32.vlgmr.msra.gmra.mxu1 %v12630_v57  ;;  %8188 = vmatprep.subr.mxu1 %v12898_v8  ;;  %v3887_v45 = vadd.f32 %v3886_v63, %v3806_v12  ;;  %v3962_v56 = vpop.f32.mrf.mxu1  ;;  %v8323_v25 = vpop.permute.xlu0 %8322  ;;  %v12982_v2 = vand.u32 4294901760, %v8437_v40  ;;  %v13496_v12 = vld [vmem:[#allocation21_spill] sm:$0xff] }
 0x259   : > { %8190 = vmatpush1.msra.mxu1 %v12900_v52  ;;  %8227 = vmatprep.mubr.f32.mxu1 %v13420_v46  ;;  %v3963_v27 = vadd.f32 %v3962_v56, %v3885_v32 }
 0x25a   : > { %8192 = vmatprep.subr.mxu1 %v13488_v10  ;;  %v3964_v36 = vpop.f32.mrf.mxu1 }
 0x25b   : > { %8194 = vmatpush1.msra.mxu1 %v13489_v37  ;;  %v3965_v6 = vadd.f32 %v3964_v36, %v3887_v45  ;;  %v4047_v57 = vadd.f32 %v4046_v1, %v3963_v27  ;;  %v13497_v45 = vld [vmem:[#allocation22_spill] sm:$0xff] }
 0x25c   : > { %v12967_v8 = vpop.permute.xlu1 %8324  ;;  %8229 = vmatmul.mubr.f32.vlgmr.msra.gmra.mxu1 %v12595_v53 }
 0x25d   : > { %v8343_v52 = vsel %vm406_vm7, %v8323_v25, %v12967_v8  ;;  %8529 = vmatprep.mubr.f32.mxu1 %v13420_v46  ;;  %v4049_v10 = vadd.f32 %v4048_v59, %v3965_v6 }
 0x25e   : > { %v12973_v43 = vand.u32 4294901760, %v8343_v52  ;;  %v4122_v41 = vpop.f32.mrf.mxu1  ;;  %v4202_v37 = vpop.f32.mrf.mxu0 }
 0x25f   : > { %v4123_v49 = vadd.f32 %v4122_v41, %v4047_v57  ;;  %v13498_v57 = vld [vmem:[#allocation23_spill] sm:$0xff] }
 0x260   : > { %v8474_v20 = vsub.f32 %v8343_v52, %v12973_v43  ;;  %8394 = vmatprep.subr.mxu0 %v12973_v43  ;;  %v8321_v51 = vpop.permute.xlu0 %8320  ;;  %v4124_v53 = vpop.f32.mrf.mxu1  ;;  %v13499_v52 = vld [vmem:[#allocation24_spill] sm:$0xff] }
 0x261   : > { %v8342_v21 = vsel %vm406_vm7, %v8321_v51, %v8323_v25  ;;  %v10832_v0 = vrot.slane %v4123_v49, 5  ;;  %v4125_v16 = vadd.f32 %v4124_v53, %v4049_v10  ;;  %v4204_v9 = vpop.f32.mrf.mxu0  ;;  %v13500_v51 = vld [vmem:[#allocation27_spill] sm:$0xff]  ;;  %v13501_v53 = vld [vmem:[#allocation25_spill] sm:$0xff] }
 0x262   : > { %v12980_v60 = vand.u32 4294901760, %v8342_v21  ;;  %v8475_v55 = vand.u32 4294901760, %v8474_v20 }
 0x263   : > { %v12986_v63 = vsel %vm10910_vm10, %v12724_v50, %v10832_v0  ;;  %v10833_v3 = vrot.slane %v4125_v16, 5  ;;  %v4375_v58 = vpop.f32.mrf.mxu0  ;;  %v13502_v16 = vld [vmem:[#allocation28_spill] sm:$0xff] }
 0x264   : > { %v8480_v61 = vsub.f32 %v8342_v21, %v12980_v60  ;;  %8396 = vmatpush1.msra.mxu0 %v12980_v60  ;;  %v8476_v30 = vsub.f32 %v8474_v20, %v8475_v55 }
 0x265   : > { %8398 = vmatprep.subr.mxu0 %v13496_v12  ;;  %v12993_v32 = vsel %vm10910_vm10, %v12735_v13, %v10833_v3  ;;  %v4377_v50 = vpop.f32.mrf.mxu0 }
 0x266   : > { %v8481_v1 = vand.u32 4294901760, %v8480_v61  ;;  %8400 = vmatpush1.msra.mxu0 %v13497_v45  ;;  %v8477_v56 = vand.u32 4294901760, %v8476_v30  ;;  %v4294_v27 = vpop.f32.mrf.mxu1 }
 0x267   : > { %8567 = vmatprep.subr.mxu0 %v8474_v20  ;;  %8439 = vmatmul.mubr.f32.vlgmr.msra.gmra.mxu0 %v12982_v2  ;;  %v4295_v36 = vadd.f32 %v4294_v27, %v4202_v37 }
 0x268   : > { %v8482_v59 = vsub.f32 %v8480_v61, %v8481_v1  ;;  %8478 = vmatprep.subr.mxu1 %v8477_v56  ;;  %8570 = vmatpush1.msra.mxu0 %v8480_v61  ;;  %v4296_v6 = vpop.f32.mrf.mxu1 }
 0x269   : > { %8573 = vmatprep.subr.mxu0 %v13498_v57  ;;  %8609 = vmatprep.mubr.f32.mxu0 %v13420_v46  ;;  %v4297_v13 = vadd.f32 %v4296_v6, %v4204_v9  ;;  %v4376_v25 = vadd.f32 %v4375_v58, %v4295_v36  ;;  %v4537_v40 = vpop.f32.mrf.mxu0  ;;  %v13503_v9 = vld [vmem:[#allocation26_spill] sm:$0xff] }
 0x26a   : > { %8576 = vmatpush1.msra.mxu0 %v13499_v52  ;;  %v8483_v10 = vand.u32 4294901760, %v8482_v59  ;;  %v4453_v41 = vpop.f32.mrf.mxu1 }
 0x26b   : > { %8727 = vmatprep.subr.mxu0 %v8475_v55  ;;  %8612 = vmatmul.mubr.f32.vlgmr.msra.gmra.mxu0 %v12956_v17  ;;  %v4378_v49 = vadd.f32 %v4377_v50, %v4297_v13  ;;  %v4454_v37 = vadd.f32 %v4453_v41, %v4376_v25  ;;  %v4539_v3 = vpop.f32.mrf.mxu0  ;;  %v13504_v41 = vld [vmem:[#allocation29_spill] sm:$0xff] }
 0x26c   : > { %8484 = vmatpush1.msra.mxu1 %v8483_v10  ;;  %8731 = vmatpush1.msra.mxu0 %v8481_v1  ;;  %v4455_v20 = vpop.f32.mrf.mxu1 }
 0x26d   : > { %8490 = vmatprep.subr.mxu1 %v13500_v51  ;;  %8735 = vmatprep.subr.mxu0 %v13501_v53  ;;  %v4456_v21 = vadd.f32 %v4455_v20, %v4378_v49  ;;  %v4538_v0 = vadd.f32 %v4537_v40, %v4454_v37  ;;  %v13505_v40 = vld [vmem:[#allocation32_spill] sm:$0xff]  ;;  %v13506_v49 = vld [vmem:[#allocation30_spill] sm:$0xff]  ;;  %v13507_v37 = vld [vmem:[#allocation33_spill] sm:$0xff] }
 0x26e   : > { %8496 = vmatpush1.msra.mxu1 %v13502_v16  ;;  %8739 = vmatpush1.msra.mxu0 %v13503_v9  ;;  %v4613_v58 = vpop.f32.mrf.mxu1  ;;  %v13508_v20 = vld [vmem:[#allocation31_spill] sm:$0xff] }
 0x26f   : > { %8531 = vmatmul.mubr.f32.vlgmr.msra.gmra.mxu1 %v12945_v33  ;;  %8647 = vmatprep.subr.mxu1 %v12973_v43  ;;  %v4540_v55 = vadd.f32 %v4539_v3, %v4456_v21  ;;  %v4614_v61 = vadd.f32 %v4613_v58, %v4538_v0 }
 0x270   : > { %8649 = vmatpush1.msra.mxu1 %v12980_v60  ;;  %8686 = vmatprep.mubr.f32.mxu1 %v13420_v46  ;;  %v4615_v30 = vpop.f32.mrf.mxu1 }
 0x271   : > { %v8327_v1 = vpop.permute.xlu1 %8326  ;;  %8651 = vmatprep.subr.mxu1 %v13496_v12  ;;  %8772 = vmatprep.mubr.f32.mxu0 %v13420_v46  ;;  %v10834_v56 = vrot.slane %v4614_v61, 5  ;;  %v4616_v27 = vadd.f32 %v4615_v30, %v4540_v55  ;;  %v13509_v30 = vld [vmem:[#allocation34_spill] sm:$0xff] }
 0x272   : > { %v8344_v50 = vsel %vm406_vm7, %v12967_v8, %v8327_v1  ;;  %v8329_v36 = vpop.permute.xlu0 %8328  ;;  %8653 = vmatpush1.msra.mxu1 %v13497_v45  ;;  %8774 = vmatmul.mubr.f32.vlgmr.msra.gmra.mxu0 %v12945_v33 }
 0x273   : > { %v8886_v59 = vand.u32 4294901760, %v8344_v50  ;;  %v8345_v6 = vsel %vm406_vm7, %v8327_v1, %v8329_v36  ;;  %8690 = vmatmul.mubr.f32.vlgmr.msra.gmra.mxu1 %v12965_v38  ;;  %8809 = vmatprep.subr.mxu1 %v12973_v43  ;;  %v13020_v57 = vsel %vm10910_vm10, %v12784_v44, %v10834_v56  ;;  %v10835_v13 = vrot.slane %v4616_v27, 5  ;;  %v13510_v27 = vld [vmem:[#allocation35_spill] sm:$0xff] }
 0x274   : > { %v8884_v25 = vand.u32 4294901760, %v8345_v6  ;;  %8811 = vmatpush1.msra.mxu1 %v12980_v60  ;;  %8848 = vmatprep.mubr.f32.mxu1 %v13420_v46 }
 0x275   : > { %v8971_v8 = vsub.f32 %v8344_v50, %v8886_v59  ;;  %8813 = vmatprep.subr.mxu1 %v13496_v12  ;;  %8924 = vmatprep.mubr.f32.mxu0 %v13420_v46  ;;  %v13028_v52 = vsel %vm10910_vm10, %v12794_v4, %v10835_v13  ;;  %v13512_v13 = vld [vmem:[#allocation37_spill] sm:$0xff] }
 0x276   : > { %v8965_v43 = vsub.f32 %v8345_v6, %v8884_v25  ;;  %8885 = vmatprep.subr.mxu0 %v8884_v25  ;;  %8815 = vmatpush1.msra.mxu1 %v13497_v45 }
 0x277   : > { %v8972_v44 = vand.u32 4294901760, %v8971_v8  ;;  %8887 = vmatpush1.msra.mxu0 %v8886_v59  ;;  %8850 = vmatmul.mubr.f32.vlgmr.msra.gmra.mxu1 %v12945_v33 }
 0x278   : > { %8889 = vmatprep.subr.mxu0 %v12209_v22  ;;  %v8966_v60 = vand.u32 4294901760, %v8965_v43  ;;  %9020 = vmatprep.mubr.f32.mxu1 %v13420_v46 }
 0x279   : > { %v8973_v12 = vsub.f32 %v8971_v8, %v8972_v44  ;;  %8891 = vmatpush1.msra.mxu0 %v12236_v15 }
 0x27a   : > { %9058 = vmatprep.subr.mxu0 %v8965_v43  ;;  %8930 = vmatmul.mubr.f32.vlgmr.msra.gmra.mxu0 %v12982_v2  ;;  %v8967_v4 = vsub.f32 %v8965_v43, %v8966_v60 }
 0x27b   : > { %9061 = vmatpush1.msra.mxu0 %v8971_v8  ;;  %9100 = vmatprep.mubr.f32.mxu0 %v13420_v46  ;;  %v8974_v45 = vand.u32 4294901760, %v8973_v12  ;;  %v13513_v8 = vld [vmem:[#allocation40_spill] sm:$0xff]  ;;  %v13515_v12 = vld [vmem:[#allocation41_spill] sm:$0xff] }
 0x27c   : > { %9064 = vmatprep.subr.mxu0 %v12248_v47  ;;  %v8968_v10 = vand.u32 4294901760, %v8967_v4 }
 0x27d   : > { %9067 = vmatpush1.msra.mxu0 %v13504_v41 }
 0x27e   : > { %8969 = vmatprep.subr.mxu1 %v8968_v10  ;;  %9218 = vmatprep.subr.mxu0 %v8966_v60  ;;  %v13514_v60 = vld [vmem:[#allocation38_spill] sm:$0xff] }
 0x27f   : > { %8975 = vmatpush1.msra.mxu1 %v8974_v45  ;;  %9103 = vmatmul.mubr.f32.vlgmr.msra.gmra.mxu0 %v12956_v17  ;;  %v13516_v45 = vld [vmem:[#allocation39_spill] sm:$0xff] }
 0x280   : > { %9222 = vmatpush1.msra.mxu0 %v8972_v44  ;;  %8981 = vmatprep.subr.mxu1 %v13505_v40 }
 0x281   : > { %9226 = vmatprep.subr.mxu0 %v13506_v49  ;;  %8987 = vmatpush1.msra.mxu1 %v13507_v37 }
 0x282   : > { %9230 = vmatpush1.msra.mxu0 %v13508_v20  ;;  %9022 = vmatmul.mubr.f32.vlgmr.msra.gmra.mxu1 %v12945_v33 }
 0x283   : > { %9138 = vmatprep.subr.mxu1 %v8884_v25  ;;  %9177 = vmatprep.mubr.f32.mxu1 %v13420_v46 }
 0x284   : > { %v8331_v47 = vpop.permute.xlu1 %8330  ;;  %9140 = vmatpush1.msra.mxu1 %v8886_v59  ;;  %9263 = vmatprep.mubr.f32.mxu0 %v13420_v46 }
 0x285   : > { %v8346_v51 = vsel %vm406_vm7, %v8329_v36, %v8331_v47  ;;  %v13048_v53 = vpop.permute.xlu0 %8332  ;;  %9142 = vmatprep.subr.mxu1 %v12209_v22  ;;  %9265 = vmatmul.mubr.f32.vlgmr.msra.gmra.mxu0 %v12945_v33  ;;  %v13511_v36 = vld [vmem:[#allocation36_spill] sm:$0xff] }
 0x286   : > { %v13052_v21 = vand.u32 4294901760, %v8346_v51  ;;  %v8347_v0 = vsel %vm406_vm7, %v8331_v47, %v13048_v53  ;;  %9144 = vmatpush1.msra.mxu1 %v12236_v15  ;;  %9415 = vmatprep.mubr.f32.mxu0 %v13420_v46 }
 0x287   : > { %v9375_v16 = vand.u32 4294901760, %v8347_v0  ;;  %9181 = vmatmul.mubr.f32.vlgmr.msra.gmra.mxu1 %v12965_v38  ;;  %9300 = vmatprep.subr.mxu1 %v8884_v25 }
 0x288   : > { %v9462_v9 = vsub.f32 %v8346_v51, %v13052_v21  ;;  %9302 = vmatpush1.msra.mxu1 %v8886_v59  ;;  %9339 = vmatprep.mubr.f32.mxu1 %v13420_v46  ;;  %v4693_v3 = vpop.f32.mrf.mxu0 }
 0x289   : > { %v9456_v58 = vsub.f32 %v8347_v0, %v9375_v16  ;;  %9376 = vmatprep.subr.mxu0 %v9375_v16  ;;  %9304 = vmatprep.subr.mxu1 %v12209_v22 }
 0x28a   : > { %v9463_v55 = vand.u32 4294901760, %v9462_v9  ;;  %9378 = vmatpush1.msra.mxu0 %v13052_v21  ;;  %9306 = vmatpush1.msra.mxu1 %v12236_v15  ;;  %v4695_v61 = vpop.f32.mrf.mxu0 }
 0x28b   : > { %9380 = vmatprep.subr.mxu0 %v13509_v30  ;;  %9341 = vmatmul.mubr.f32.vlgmr.msra.gmra.mxu1 %v12945_v33  ;;  %v9457_v1 = vand.u32 4294901760, %v9456_v58 }
 0x28c   : > { %v9464_v56 = vsub.f32 %v9462_v9, %v9463_v55  ;;  %9382 = vmatpush1.msra.mxu0 %v13510_v27  ;;  %9511 = vmatprep.mubr.f32.mxu1 %v13420_v46  ;;  %v4866_v50 = vpop.f32.mrf.mxu0 }
 0x28d   : > { %9549 = vmatprep.subr.mxu0 %v9456_v58  ;;  %9421 = vmatmul.mubr.f32.vlgmr.msra.gmra.mxu0 %v12982_v2  ;;  %v9458_v22 = vsub.f32 %v9456_v58, %v9457_v1 }
 0x28e   : > { %9552 = vmatpush1.msra.mxu0 %v9462_v9  ;;  %9591 = vmatprep.mubr.f32.mxu0 %v13420_v46  ;;  %v9465_v15 = vand.u32 4294901760, %v9464_v56  ;;  %v4868_v6 = vpop.f32.mrf.mxu0 }
 0x28f   : > { %9555 = vmatprep.subr.mxu0 %v13511_v36  ;;  %v9459_v59 = vand.u32 4294901760, %v9458_v22 }
 0x290   : > { %9558 = vmatpush1.msra.mxu0 %v13512_v13 }
 0x291   : > { %9460 = vmatprep.subr.mxu1 %v9459_v59  ;;  %9709 = vmatprep.subr.mxu0 %v9457_v1 }
 0x292   : > { %9466 = vmatpush1.msra.mxu1 %v9465_v15  ;;  %9594 = vmatmul.mubr.f32.vlgmr.msra.gmra.mxu0 %v12956_v17  ;;  %v4785_v25 = vpop.f32.mrf.mxu1  ;;  %v5028_v44 = vpop.f32.mrf.mxu0 }
 0x293   : > { %9713 = vmatpush1.msra.mxu0 %v9463_v55  ;;  %9472 = vmatprep.subr.mxu1 %v13513_v8  ;;  %v4786_v43 = vadd.f32 %v4785_v25, %v4693_v3 }
 0x294   : > { %9717 = vmatprep.subr.mxu0 %v13514_v60  ;;  %9478 = vmatpush1.msra.mxu1 %v13515_v12  ;;  %v4787_v4 = vpop.f32.mrf.mxu1  ;;  %v5030_v40 = vpop.f32.mrf.mxu0 }
 0x295   : > { %9721 = vmatpush1.msra.mxu0 %v13516_v45  ;;  %9513 = vmatmul.mubr.f32.vlgmr.msra.gmra.mxu1 %v12945_v33  ;;  %v4788_v10 = vadd.f32 %v4787_v4, %v4695_v61  ;;  %v4867_v41 = vadd.f32 %v4866_v50, %v4786_v43  ;;  %v8335_v61 = vpop.permute.xlu1 %8334 }
 0x296   : > { %9629 = vmatprep.subr.mxu1 %v9375_v16  ;;  %9668 = vmatprep.mubr.f32.mxu1 %v13420_v46  ;;  %v8348_v22 = vsel %vm406_vm7, %v13048_v53, %v8335_v61 }
 0x297   : > { %9631 = vmatpush1.msra.mxu1 %v13052_v21  ;;  %9754 = vmatprep.mubr.f32.mxu0 %v13420_v46  ;;  %v4869_v49 = vadd.f32 %v4868_v6, %v4788_v10  ;;  %v13098_v59 = vand.u32 4294901760, %v8348_v22 }
 0x298   : > { %9633 = vmatprep.subr.mxu1 %v13509_v30  ;;  %9756 = vmatmul.mubr.f32.vlgmr.msra.gmra.mxu0 %v12945_v33  ;;  %v4944_v37 = vpop.f32.mrf.mxu1 }
 0x299   : > { %9635 = vmatpush1.msra.mxu1 %v13510_v27  ;;  %v4945_v20 = vadd.f32 %v4944_v37, %v4867_v41  ;;  %v5184_v47 = vpop.f32.mrf.mxu0  ;;  %9906 = vmatprep.mubr.f32.mxu0 %v13420_v46  ;;  %v9953_v12 = vsub.f32 %v8348_v22, %v13098_v59  ;;  %v13519_v22 = vld [vmem:[#allocation42_spill] sm:$0xff] }
 0x29a   : > { %9672 = vmatmul.mubr.f32.vlgmr.msra.gmra.mxu1 %v12965_v38  ;;  %9791 = vmatprep.subr.mxu1 %v9375_v16  ;;  %v4946_v51 = vpop.f32.mrf.mxu1 }
 0x29b   : > { %9793 = vmatpush1.msra.mxu1 %v13052_v21  ;;  %9830 = vmatprep.mubr.f32.mxu1 %v13420_v46  ;;  %v4947_v0 = vadd.f32 %v4946_v51, %v4869_v49  ;;  %v5029_v9 = vadd.f32 %v5028_v44, %v4945_v20  ;;  %v5186_v58 = vpop.f32.mrf.mxu0  ;;  %v9954_v51 = vand.u32 4294901760, %v9953_v12 }
 0x29c   : > { %9795 = vmatprep.subr.mxu1 %v13509_v30 }
 0x29d   : > { %9797 = vmatpush1.msra.mxu1 %v13510_v27  ;;  %v5031_v3 = vadd.f32 %v5030_v40, %v4947_v0  ;;  %v3313_v40 = vadd.f32 %v12879_v29, %v12861_v26 }
 0x29e   : > { %9832 = vmatmul.mubr.f32.vlgmr.msra.gmra.mxu1 %v12945_v33  ;;  %v5104_v55 = vpop.f32.mrf.mxu1 }
 0x29f   : > { %v5105_v1 = vadd.f32 %v5104_v55, %v5029_v9  ;;  %10002 = vmatprep.mubr.f32.mxu1 %v13420_v46  ;;  %v5357_v50 = vpop.f32.mrf.mxu0  ;;  %v13517_v55 = vld [vmem:[#allocation53_spill] sm:$0xff] }
 0x2a0   : > { %v5106_v16 = vpop.f32.mrf.mxu1 }
 0x2a1   : > { %v10836_v56 = vrot.slane %v5105_v1, 5  ;;  %v5107_v21 = vadd.f32 %v5106_v16, %v5031_v3  ;;  %v5359_v25 = vpop.f32.mrf.mxu0 }
 0x2a3   : > { %v13096_v30 = vsel %vm10910_vm10, %v12830_v62, %v10836_v56  ;;  %v10837_v27 = vrot.slane %v5107_v21, 5  ;;  %v5276_v15 = vpop.f32.mrf.mxu1  ;;  %v13518_v56 = vld [vmem:[#allocation44_spill] sm:$0xff]  ;;  %v9955_v21 = vsub.f32 %v9953_v12, %v9954_v51 }
 0x2a4   : > { %v5277_v36 = vadd.f32 %v5276_v15, %v5184_v47  ;;  %v3315_v47 = vadd.f32 %v12884_v34, %v12866_v18 }
 0x2a5   : > { %v13102_v6 = vsel %vm10910_vm10, %v12836_v23, %v10837_v27  ;;  %v5278_v13 = vpop.f32.mrf.mxu1 }
 0x2a6   : > { %v5279_v8 = vadd.f32 %v5278_v13, %v5186_v58  ;;  %v5358_v43 = vadd.f32 %v5357_v50, %v5277_v36  ;;  %v3394_v58 = vadd.f32 %v12870_v14, %v3313_v40  ;;  %v3396_v34 = vadd.f32 %v12875_v11, %v3315_v47  ;;  %v13520_v11 = vld [vmem:[#allocation57_spill] sm:$0xff] }
 0x2a7   : > { %v5435_v44 = vpop.f32.mrf.mxu1 }
 0x2a8   : > { %v5360_v60 = vadd.f32 %v5359_v25, %v5279_v8  ;;  %v5436_v53 = vadd.f32 %v5435_v44, %v5358_v43  ;;  %v3472_v15 = vadd.f32 %v12896_v35, %v3394_v58  ;;  %v13521_v8 = vld [vmem:[#allocation46_spill] sm:$0xff]  ;;  %v3474_v43 = vadd.f32 %v12911_v5, %v3396_v34  ;;  %v13522_v44 = vld [vmem:[#allocation43_spill] sm:$0xff] }
 0x2a9   : > { %v5437_v62 = vpop.f32.mrf.mxu1  ;;  %v5519_v4 = vpop.f32.mrf.mxu0 }
 0x2aa   : > { %v5438_v45 = vadd.f32 %v5437_v62, %v5360_v60  ;;  %v5520_v10 = vadd.f32 %v5519_v4, %v5436_v53  ;;  %v13105_v41 = vpop.permute.xlu0 %8336  ;;  %v9956_v60 = vand.u32 4294901760, %v9955_v21  ;;  %v3558_v5 = vadd.f32 %v12905_v42, %v3474_v43  ;;  %v13528_v42 = vld [vmem:[#allocation59_spill] sm:$0xff] }
 0x2ab   : > { %v8349_v23 = vsel %vm406_vm7, %v8335_v61, %v13105_v41  ;;  %v5521_v49 = vpop.f32.mrf.mxu0  ;;  %v621_v61 = vadd.f32 %v12605_v24, %v13517_v55 }
 0x2ac   : > { %v13111_v37 = vand.u32 4294901760, %v8349_v23  ;;  %v5522_v20 = vadd.f32 %v5521_v49, %v5438_v45  ;;  %v13525_v49 = vld [vmem:[#allocation47_spill] sm:$0xff]  ;;  %v3634_v55 = vadd.f32 %v12936_v54, %v3558_v5 }
 0x2ad   : > { %v5595_v0 = vpop.f32.mrf.mxu1  ;;  %v702_v13 = vadd.f32 %v13520_v11, %v621_v61 }
 0x2ae   : > { %v9947_v9 = vsub.f32 %v8349_v23, %v13111_v37  ;;  %v5596_v3 = vadd.f32 %v5595_v0, %v5520_v10  ;;  %9867 = vmatprep.subr.mxu0 %v13111_v37  ;;  %v13524_v10 = vld [vmem:[#allocation48_spill] sm:$0xff] }
 0x2af   : > { %v5597_v26 = vpop.f32.mrf.mxu1  ;;  %v5855_v29 = vpop.f32.mrf.mxu0  ;;  %9869 = vmatpush1.msra.mxu0 %v13098_v59 }
 0x2b0   : > { %v10838_v1 = vrot.slane %v5596_v3, 5  ;;  %v5598_v16 = vadd.f32 %v5597_v26, %v5522_v20  ;;  %9871 = vmatprep.subr.mxu0 %v13518_v56  ;;  %v9948_v18 = vand.u32 4294901760, %v9947_v9  ;;  %v13526_v20 = vld [vmem:[#allocation49_spill] sm:$0xff] }
 0x2b1   : > { %v5857_v50 = vpop.f32.mrf.mxu0  ;;  %9873 = vmatpush1.msra.mxu0 %v13519_v22 }
 0x2b2   : > { %v13126_v14 = vsel %vm10910_vm10, %v12851_v19, %v10838_v1  ;;  %v10839_v27 = vrot.slane %v5598_v16, 5  ;;  %10040 = vmatprep.subr.mxu0 %v9947_v9  ;;  %9912 = vmatmul.mubr.f32.vlgmr.msra.gmra.mxu0 %v12982_v2  ;;  %v9949_v24 = vsub.f32 %v9947_v9, %v9948_v18 }
 0x2b3   : > { %v6028_v36 = vpop.f32.mrf.mxu0  ;;  %10043 = vmatpush1.msra.mxu0 %v9953_v12  ;;  %10082 = vmatprep.mubr.f32.mxu0 %v13420_v46  ;;  %v3556_v12 = vadd.f32 %v12888_v31, %v3472_v15  ;;  %v13527_v31 = vld [vmem:[#allocation45_spill] sm:$0xff] }
 0x2b4   : > { %v13134_v25 = vsel %vm10910_vm10, %v12859_v28, %v10839_v27  ;;  %10046 = vmatprep.subr.mxu0 %v13521_v8  ;;  %v9950_v19 = vand.u32 4294901760, %v9949_v24  ;;  %v13523_v28 = vld [vmem:[#allocation61_spill] sm:$0xff] }
 0x2b5   : > { %10049 = vmatpush1.msra.mxu0 %v13522_v44  ;;  %v6030_v35 = vpop.f32.mrf.mxu0  ;;  %v780_v4 = vadd.f32 %v13523_v28, %v702_v13  ;;  %v3632_v0 = vadd.f32 %v12926_v39, %v3556_v12  ;;  %v10831_v13 = vrot.slane %v3634_v55, 5  ;;  %v13529_v44 = vld [vmem:[#allocation52_spill] sm:$0xff] }
 0x2b6   : > { %v5947_v53 = vpop.f32.mrf.mxu1  ;;  %9951 = vmatprep.subr.mxu1 %v9950_v19  ;;  %10200 = vmatprep.subr.mxu0 %v9948_v18 }
 0x2b7   : > { %v5948_v62 = vadd.f32 %v5947_v53, %v5855_v29  ;;  %9957 = vmatpush1.msra.mxu1 %v9956_v60  ;;  %10085 = vmatmul.mubr.f32.vlgmr.msra.gmra.mxu0 %v12956_v17  ;;  %v864_v58 = vadd.f32 %v13528_v42, %v780_v4  ;;  %v10830_v54 = vrot.slane %v3632_v0, 5  ;;  %v13535_v0 = vld [vmem:[#allocation60_spill] sm:$0xff] }
 0x2b8   : > { %v5949_v45 = vpop.f32.mrf.mxu1  ;;  %10204 = vmatpush1.msra.mxu0 %v9954_v51  ;;  %9963 = vmatprep.subr.mxu1 %v13524_v10 }
 0x2b9   : > { %v5950_v40 = vadd.f32 %v5949_v45, %v5857_v50  ;;  %v6029_v23 = vadd.f32 %v6028_v36, %v5948_v62  ;;  %10208 = vmatprep.subr.mxu0 %v13525_v49  ;;  %9969 = vmatpush1.msra.mxu1 %v13526_v20  ;;  %v940_v11 = vadd.f32 %v12667_v48, %v864_v58  ;;  %v13533_v20 = vld [vmem:[#allocation58_spill] sm:$0xff] }
 0x2ba   : > { %v6190_v47 = vpop.f32.mrf.mxu0  ;;  %10212 = vmatpush1.msra.mxu0 %v13527_v31  ;;  %10004 = vmatmul.mubr.f32.vlgmr.msra.gmra.mxu1 %v12945_v33  ;;  %v10911_v48 = vsel %vm10910_vm10, %v12663_v7, %v10830_v54  ;;  %v13534_v31 = vld [vmem:[#allocation56_spill] sm:$0xff] }
 0x2bb   : > { %v6031_v9 = vadd.f32 %v6030_v35, %v5950_v40  ;;  %v6106_v3 = vpop.f32.mrf.mxu1  ;;  %v8341_v51 = vpop.permute.xlu0 %8340  ;;  %10120 = vmatprep.subr.mxu1 %v13111_v37  ;;  %10245 = vmatprep.mubr.f32.mxu0 %v13420_v46  ;;  %v13530_v35 = vld [vmem:[#allocation50_spill] sm:$0xff]  ;;  %v10912_v4 = vsel %vm10910_vm10, %v940_v11, %v10831_v13 }
 0x2bc   : > { %v6107_v26 = vadd.f32 %v6106_v3, %v6029_v23  ;;  %v8339_v29 = vpop.permute.xlu1 %8338  ;;  %10122 = vmatpush1.msra.mxu1 %v13098_v59  ;;  %10247 = vmatmul.mubr.f32.vlgmr.msra.gmra.mxu0 %v12945_v33  ;;  %v6192_v16 = vpop.f32.mrf.mxu0 }
 0x2bd   : > { %v6108_v61 = vpop.f32.mrf.mxu1  ;;  %v8350_v39 = vsel %vm406_vm7, %v13105_v41, %v8339_v29  ;;  %v8351_v1 = vsel %vm406_vm7, %v8339_v29, %v8341_v51  ;;  %10124 = vmatprep.subr.mxu1 %v13518_v56  ;;  %10159 = vmatprep.mubr.f32.mxu1 %v13420_v46  ;;  %v13536_v51 = vld [vmem:[#allocation55_spill] sm:$0xff] }
 0x2be   : > { %v6109_v18 = vadd.f32 %v6108_v61, %v6031_v9  ;;  %v6191_v34 = vadd.f32 %v6190_v47, %v6107_v26  ;;  %v13160_v21 = vand.u32 4294901760, %v8351_v1  ;;  %v13162_v50 = vand.u32 4294901760, %v8350_v39  ;;  %10126 = vmatpush1.msra.mxu1 %v13519_v22  ;;  %10397 = vmatprep.mubr.f32.mxu0 %v13420_v46 }
 0x2bf   : > { %v6266_v27 = vpop.f32.mrf.mxu1  ;;  %10163 = vmatmul.mubr.f32.vlgmr.msra.gmra.mxu1 %v12965_v38  ;;  %10282 = vmatprep.subr.mxu1 %v13111_v37 }
 0x2c0   : > { %v10438_v41 = vsub.f32 %v8351_v1, %v13160_v21  ;;  %v10444_v24 = vsub.f32 %v8350_v39, %v13162_v50  ;;  %v6193_v15 = vadd.f32 %v6192_v16, %v6109_v18  ;;  %v13170_v36 = vadd.f32 %v6266_v27, %v6191_v34  ;;  %10358 = vmatprep.subr.mxu0 %v13160_v21 }
 0x2c1   : > { %v6268_v8 = vpop.f32.mrf.mxu1  ;;  %10360 = vmatpush1.msra.mxu0 %v13162_v50  ;;  %10284 = vmatpush1.msra.mxu1 %v13098_v59 }
 0x2c2   : > { %v10445_v19 = vand.u32 4294901760, %v10444_v24  ;;  %v10860_v37 = vrot.slane %v13170_v36, 2  ;;  %v13177_v43 = vadd.f32 %v6268_v8, %v6193_v15  ;;  %10362 = vmatprep.subr.mxu0 %v13529_v44  ;;  %v6346_v60 = vpop.f32.mrf.mxu0  ;;  %10286 = vmatprep.subr.mxu1 %v13518_v56  ;;  %v10439_v53 = vand.u32 4294901760, %v10438_v41 }
 0x2c3   : > { %10364 = vmatpush1.msra.mxu0 %v13530_v35  ;;  %10288 = vmatpush1.msra.mxu1 %v13519_v22  ;;  %v13531_v22 = vld [vmem:[#allocation54_spill] sm:$0xff] }
 0x2c4   : > { %v10446_v12 = vsub.f32 %v10444_v24, %v10445_v19  ;;  %v10922_v59 = vsel %vm10921_vm11, %v10911_v48, %v10860_v37  ;;  %v10861_v62 = vrot.slane %v13177_v43, 2  ;;  %10531 = vmatprep.subr.mxu0 %v10438_v41  ;;  %10403 = vmatmul.mubr.f32.vlgmr.msra.gmra.mxu0 %v12982_v2  ;;  %v6348_v28 = vpop.f32.mrf.mxu0  ;;  %v10440_v56 = vsub.f32 %v10438_v41, %v10439_v53  ;;  %v13532_v2 = vld [vmem:[#allocation51_spill] sm:$0xff] }
 0x2c5   : > { %11088 = vtanh.f32 %v10922_v59  ;;  %10534 = vmatpush1.msra.mxu0 %v10444_v24  ;;  %10321 = vmatprep.mubr.f32.mxu1 %v13420_v46 }
 0x2c6   : > { %v10923_v7 = vsel %vm10921_vm11, %v10912_v4, %v10861_v62  ;;  %10537 = vmatprep.subr.mxu0 %v13531_v22  ;;  %v6519_v45 = vpop.f32.mrf.mxu0  ;;  %10323 = vmatmul.mubr.f32.vlgmr.msra.gmra.mxu1 %v12945_v33  ;;  %v10441_v10 = vand.u32 4294901760, %v10440_v56  ;;  %v10447_v5 = vand.u32 4294901760, %v10446_v12 }
 0x2c7   : > { %11090 = vtanh.f32 %v10923_v7  ;;  %10540 = vmatpush1.msra.mxu0 %v13532_v2  ;;  %10573 = vmatprep.mubr.f32.mxu0 %v13420_v46 }
 0x2c8   : > { %10442 = vmatprep.subr.mxu1 %v10441_v10  ;;  %10691 = vmatprep.subr.mxu0 %v10439_v53  ;;  %v6521_v23 = vpop.f32.mrf.mxu0 }
 0x2c9   : > { %v6438_v40 = vpop.f32.mrf.mxu1  ;;  %10448 = vmatpush1.msra.mxu1 %v10447_v5  ;;  %10576 = vmatmul.mubr.f32.vlgmr.msra.gmra.mxu0 %v12956_v17 }
 0x2ca   : > { %v6439_v49 = vadd.f32 %v6438_v40, %v6346_v60  ;;  %10695 = vmatpush1.msra.mxu0 %v10445_v19  ;;  %10454 = vmatprep.subr.mxu1 %v13533_v20 }
 0x2cb   : > { %v6440_v47 = vpop.f32.mrf.mxu1  ;;  %10699 = vmatprep.subr.mxu0 %v13534_v31  ;;  %10460 = vmatpush1.msra.mxu1 %v13535_v0 }
 0x2cc   : > { %v6441_v9 = vadd.f32 %v6440_v47, %v6348_v28  ;;  %v6520_v3 = vadd.f32 %v6519_v45, %v6439_v49  ;;  %10493 = vmatprep.mubr.f32.mxu1 %v13420_v46  ;;  %10703 = vmatpush1.msra.mxu0 %v13536_v51 }
 0x2cd   : > { %v6681_v42 = vpop.f32.mrf.mxu0  ;;  %10495 = vmatmul.mubr.f32.vlgmr.msra.gmra.mxu1 %v12945_v33  ;;  %10611 = vmatprep.subr.mxu1 %v13160_v21 }
 0x2ce   : > { %v6522_v17 = vadd.f32 %v6521_v23, %v6441_v9  ;;  %v6597_v58 = vpop.f32.mrf.mxu1  ;;  %10613 = vmatpush1.msra.mxu1 %v13162_v50  ;;  %10650 = vmatprep.mubr.f32.mxu1 %v13420_v46 }
 0x2cf   : > { %v6598_v26 = vadd.f32 %v6597_v58, %v6520_v3  ;;  %10615 = vmatprep.subr.mxu1 %v13529_v44  ;;  %10736 = vmatprep.mubr.f32.mxu0 %v13420_v46  ;;  %v6683_v55 = vpop.f32.mrf.mxu0 }
 0x2d0   : > { %v6599_v29 = vpop.f32.mrf.mxu1  ;;  %10617 = vmatpush1.msra.mxu1 %v13530_v35  ;;  %10738 = vmatmul.mubr.f32.vlgmr.msra.gmra.mxu0 %v12945_v33 }
 0x2d1   : > { %v6600_v61 = vadd.f32 %v6599_v29, %v6522_v17  ;;  %v6682_v39 = vadd.f32 %v6681_v42, %v6598_v26  ;;  %10654 = vmatmul.mubr.f32.vlgmr.msra.gmra.mxu1 %v12965_v38  ;;  %10773 = vmatprep.subr.mxu1 %v13160_v21 }
 0x2d2   : > { %v11089_v1 = vpop.eup %11088  ;;  %10775 = vmatpush1.msra.mxu1 %v13162_v50  ;;  %10812 = vmatprep.mubr.f32.mxu1 %v13420_v46 }
 0x2d3   : > { %10963 = vst [vmem:[%s13215_s6] sm:$0xff] %v11089_v1  ;;  %v6684_v16 = vadd.f32 %v6683_v55, %v6600_v61  ;;  %v6757_v18 = vpop.f32.mrf.mxu1  ;;  %10777 = vmatprep.subr.mxu1 %v13529_v44 }
 0x2d4   : > { %v11091_v34 = vpop.eup %11090  ;;  %v13225_v54 = vadd.f32 %v6757_v18, %v6682_v39  ;;  %10779 = vmatpush1.msra.mxu1 %v13530_v35 }
 0x2d5   : > { %10964 = vst [vmem:[%s13215_s6 + $0x8] sm:$0xff] %v11091_v34  ;;  %v6759_v27 = vpop.f32.mrf.mxu1  ;;  %v6837_v38 = vpop.f32.mrf.mxu0  ;;  %10814 = vmatmul.mubr.f32.vlgmr.msra.gmra.mxu1 %v12945_v33 }
 0x2d6   : > { %v10862_v21 = vrot.slane %v13225_v54, 2  ;;  %v13231_v50 = vadd.f32 %v6759_v27, %v6684_v16 }
 0x2d7   : > { %v6839_v46 = vpop.f32.mrf.mxu0 }
 0x2d8   : > { %v10924_v41 = vsel %vm10921_vm11, %v12986_v63, %v10862_v21  ;;  %v10863_v24 = vrot.slane %v13231_v50, 2 }
 0x2d9   : > { %11092 = vtanh.f32 %v10924_v41  ;;  %v7010_v15 = vpop.f32.mrf.mxu0 }
 0x2da   : > { %v10925_v11 = vsel %vm10921_vm11, %v12993_v32, %v10863_v24 }
 0x2db   : > { %11094 = vtanh.f32 %v10925_v11  ;;  %v7012_v33 = vpop.f32.mrf.mxu0 }
 0x2dc   : > { %v6929_v13 = vpop.f32.mrf.mxu1 }
 0x2dd   : > { %v6930_v8 = vadd.f32 %v6929_v13, %v6837_v38 }
 0x2de   : > { %v6931_v19 = vpop.f32.mrf.mxu1 }
 0x2df   : > { %v6932_v44 = vadd.f32 %v6931_v19, %v6839_v46  ;;  %v7011_v60 = vadd.f32 %v7010_v15, %v6930_v8  ;;  %v7172_v53 = vpop.f32.mrf.mxu0 }
 0x2e1   : > { %v7013_v48 = vadd.f32 %v7012_v33, %v6932_v44  ;;  %v7088_v63 = vpop.f32.mrf.mxu1  ;;  %v7174_v59 = vpop.f32.mrf.mxu0 }
 0x2e2   : > { %v7089_v35 = vadd.f32 %v7088_v63, %v7011_v60 }
 0x2e3   : > { %v7090_v12 = vpop.f32.mrf.mxu1 }
 0x2e4   : > { %v7091_v28 = vadd.f32 %v7090_v12, %v7013_v48  ;;  %v7173_v56 = vadd.f32 %v7172_v53, %v7089_v35 }
 0x2e5   : > { %v7248_v4 = vpop.f32.mrf.mxu1 }
 0x2e6   : > { %v11093_v7 = vpop.eup %11092  ;;  %v7175_v32 = vadd.f32 %v7174_v59, %v7091_v28  ;;  %v13242_v22 = vadd.f32 %v7248_v4, %v7173_v56 }
 0x2e7   : > { %10965 = vst [vmem:[%s13215_s6 + $0x10] sm:$0xff] %v11093_v7  ;;  %v7250_v45 = vpop.f32.mrf.mxu1 }
 0x2e8   : > { %v11095_v10 = vpop.eup %11094  ;;  %v10864_v5 = vrot.slane %v13242_v22, 2  ;;  %v13246_v2 = vadd.f32 %v7250_v45, %v7175_v32 }
 0x2e9   : > { %10966 = vst [vmem:[%s13215_s6 + $0x18] sm:$0xff] %v11095_v10 }
 0x2ea   : > { %v10926_v40 = vsel %vm10921_vm11, %v13020_v57, %v10864_v5  ;;  %v10865_v23 = vrot.slane %v13246_v2, 2 }
 0x2eb   : > { %11096 = vtanh.f32 %v10926_v40 }
 0x2ec   : > { %v10927_v49 = vsel %vm10921_vm11, %v13028_v52, %v10865_v23 }
 0x2ed   : > { %11098 = vtanh.f32 %v10927_v49 }
 0x2f8   : > { %v11097_v20 = vpop.eup %11096  ;;  %v7328_v47 = vpop.f32.mrf.mxu0 }
 0x2f9   : > { %10967 = vst [vmem:[%s13215_s6 + $0x20] sm:$0xff] %v11097_v20 }
 0x2fa   : > { %v11099_v31 = vpop.eup %11098  ;;  %v7330_v0 = vpop.f32.mrf.mxu0 }
 0x2fb   : > { %10968 = vst [vmem:[%s13215_s6 + $0x28] sm:$0xff] %v11099_v31 }
 0x2fd   : > { %v7501_v9 = vpop.f32.mrf.mxu0 }
 0x2ff   : > { %v7503_v3 = vpop.f32.mrf.mxu0 }
 0x300   : > { %v7420_v51 = vpop.f32.mrf.mxu1 }
 0x301   : > { %v7421_v42 = vadd.f32 %v7420_v51, %v7328_v47 }
 0x302   : > { %v7422_v57 = vpop.f32.mrf.mxu1  ;;  %v7663_v26 = vpop.f32.mrf.mxu0 }
 0x303   : > { %v7423_v17 = vadd.f32 %v7422_v57, %v7330_v0  ;;  %v7502_v58 = vadd.f32 %v7501_v9, %v7421_v42 }
 0x304   : > { %v7665_v52 = vpop.f32.mrf.mxu0 }
 0x305   : > { %v7504_v29 = vadd.f32 %v7503_v3, %v7423_v17  ;;  %v7579_v55 = vpop.f32.mrf.mxu1 }
 0x306   : > { %v7580_v61 = vadd.f32 %v7579_v55, %v7502_v58 }
 0x307   : > { %v7581_v39 = vpop.f32.mrf.mxu1 }
 0x308   : > { %v7582_v1 = vadd.f32 %v7581_v39, %v7504_v29  ;;  %v7664_v16 = vadd.f32 %v7663_v26, %v7580_v61 }
 0x30a   : > { %v7666_v18 = vadd.f32 %v7665_v52, %v7582_v1 }
 0x30b   : > { %v7819_v34 = vpop.f32.mrf.mxu0 }
 0x30c   : > { %v7739_v27 = vpop.f32.mrf.mxu1 }
 0x30d   : > { %v13260_v38 = vadd.f32 %v7739_v27, %v7664_v16  ;;  %v7821_v46 = vpop.f32.mrf.mxu0 }
 0x30e   : > { %v7741_v41 = vpop.f32.mrf.mxu1 }
 0x30f   : > { %v10866_v15 = vrot.slane %v13260_v38, 2  ;;  %v13263_v11 = vadd.f32 %v7741_v41, %v7666_v18 }
 0x310   : > { %v7992_v33 = vpop.f32.mrf.mxu0 }
 0x311   : > { %v10928_v13 = vsel %vm10921_vm11, %v13096_v30, %v10866_v15  ;;  %v10867_v8 = vrot.slane %v13263_v11, 2 }
 0x312   : > { %11100 = vtanh.f32 %v10928_v13  ;;  %v7994_v19 = vpop.f32.mrf.mxu0 }
 0x313   : > { %v10929_v44 = vsel %vm10921_vm11, %v13102_v6, %v10867_v8  ;;  %v7911_v60 = vpop.f32.mrf.mxu1 }
 0x314   : > { %11102 = vtanh.f32 %v10929_v44  ;;  %v7912_v53 = vadd.f32 %v7911_v60, %v7819_v34 }
 0x315   : > { %v7913_v48 = vpop.f32.mrf.mxu1 }
 0x316   : > { %v7914_v63 = vadd.f32 %v7913_v48, %v7821_v46  ;;  %v7993_v35 = vadd.f32 %v7992_v33, %v7912_v53  ;;  %v8154_v12 = vpop.f32.mrf.mxu0 }
 0x318   : > { %v7995_v59 = vadd.f32 %v7994_v19, %v7914_v63  ;;  %v8070_v28 = vpop.f32.mrf.mxu1  ;;  %v8156_v4 = vpop.f32.mrf.mxu0 }
 0x319   : > { %v8071_v30 = vadd.f32 %v8070_v28, %v7993_v35 }
 0x31a   : > { %v8072_v56 = vpop.f32.mrf.mxu1 }
 0x31b   : > { %v8073_v7 = vadd.f32 %v8072_v56, %v7995_v59  ;;  %v8155_v32 = vadd.f32 %v8154_v12, %v8071_v30 }
 0x31c   : > { %v8230_v45 = vpop.f32.mrf.mxu1 }
 0x31d   : > { %v8157_v10 = vadd.f32 %v8156_v4, %v8073_v7  ;;  %v13274_v40 = vadd.f32 %v8230_v45, %v8155_v32 }
 0x31e   : > { %v8232_v6 = vpop.f32.mrf.mxu1 }
 0x31f   : > { %v11101_v49 = vpop.eup %11100  ;;  %v10868_v20 = vrot.slane %v13274_v40, 2  ;;  %v13277_v47 = vadd.f32 %v8232_v6, %v8157_v10 }
 0x320   : > { %10969 = vst [vmem:[%s13215_s6 + $0x30] sm:$0xff] %v11101_v49 }
 0x321   : > { %v11103_v31 = vpop.eup %11102  ;;  %v10930_v0 = vsel %vm10921_vm11, %v13126_v14, %v10868_v20  ;;  %v10869_v9 = vrot.slane %v13277_v47, 2 }
 0x322   : > { %10970 = vst [vmem:[%s13215_s6 + $0x38] sm:$0xff] %v11103_v31  ;;  %11104 = vtanh.f32 %v10930_v0 }
 0x323   : > { %v10931_v3 = vsel %vm10921_vm11, %v13134_v25, %v10869_v9 }
 0x324   : > { %11106 = vtanh.f32 %v10931_v3 }
 0x327   : > { %v8440_v51 = vpop.f32.mrf.mxu0 }
 0x329   : > { %v8442_v42 = vpop.f32.mrf.mxu0 }
 0x32b   : > { %v8613_v57 = vpop.f32.mrf.mxu0 }
 0x32d   : > { %v8615_v17 = vpop.f32.mrf.mxu0 }
 0x32f   : > { %v11105_v58 = vpop.eup %11104  ;;  %v8532_v26 = vpop.f32.mrf.mxu1 }
 0x330   : > { %10971 = vst [vmem:[%s13215_s6 + $0x40] sm:$0xff] %v11105_v58  ;;  %v8533_v29 = vadd.f32 %v8532_v26, %v8440_v51 }
 0x331   : > { %v11107_v14 = vpop.eup %11106  ;;  %v8534_v55 = vpop.f32.mrf.mxu1 }
 0x332   : > { %10972 = vst [vmem:[%s13215_s6 + $0x48] sm:$0xff] %v11107_v14  ;;  %v8535_v61 = vadd.f32 %v8534_v55, %v8442_v42  ;;  %v8614_v39 = vadd.f32 %v8613_v57, %v8533_v29  ;;  %v8775_v52 = vpop.f32.mrf.mxu0 }
 0x333   : > { %v8691_v1 = vpop.f32.mrf.mxu1 }
 0x334   : > { %v8616_v16 = vadd.f32 %v8615_v17, %v8535_v61  ;;  %v8692_v18 = vadd.f32 %v8691_v1, %v8614_v39  ;;  %v8777_v25 = vpop.f32.mrf.mxu0 }
 0x335   : > { %v8693_v34 = vpop.f32.mrf.mxu1 }
 0x336   : > { %v8694_v27 = vadd.f32 %v8693_v34, %v8616_v16  ;;  %v8776_v46 = vadd.f32 %v8775_v52, %v8692_v18 }
 0x337   : > { %v8851_v41 = vpop.f32.mrf.mxu1 }
 0x338   : > { %v8778_v33 = vadd.f32 %v8777_v25, %v8694_v27  ;;  %v8852_v13 = vadd.f32 %v8851_v41, %v8776_v46 }
 0x339   : > { %v8853_v19 = vpop.f32.mrf.mxu1 }
 0x33a   : > { %v10890_v44 = vrot.slane %v8852_v13, 7  ;;  %v8854_v60 = vadd.f32 %v8853_v19, %v8778_v33  ;;  %v8931_v53 = vpop.f32.mrf.mxu0 }
 0x33c   : > { %v10933_v48 = vsel %vm10932_vm12, %v10860_v37, %v10890_v44  ;;  %v10891_v63 = vrot.slane %v8854_v60, 7  ;;  %v8933_v35 = vpop.f32.mrf.mxu0 }
 0x33d   : > { %11108 = vtanh.f32 %v10933_v48 }
 0x33e   : > { %v10934_v12 = vsel %vm10932_vm12, %v10861_v62, %v10891_v63 }
 0x33f   : > { %11110 = vtanh.f32 %v10934_v12  ;;  %v9104_v59 = vpop.f32.mrf.mxu0 }
 0x341   : > { %v9106_v28 = vpop.f32.mrf.mxu0 }
 0x342   : > { %v9023_v30 = vpop.f32.mrf.mxu1 }
 0x343   : > { %v9024_v56 = vadd.f32 %v9023_v30, %v8931_v53 }
 0x344   : > { %v9025_v4 = vpop.f32.mrf.mxu1 }
 0x345   : > { %v9026_v7 = vadd.f32 %v9025_v4, %v8933_v35  ;;  %v9105_v32 = vadd.f32 %v9104_v59, %v9024_v56  ;;  %v9266_v36 = vpop.f32.mrf.mxu0 }
 0x347   : > { %v9107_v45 = vadd.f32 %v9106_v28, %v9026_v7  ;;  %v9182_v37 = vpop.f32.mrf.mxu1  ;;  %v9268_v49 = vpop.f32.mrf.mxu0 }
 0x348   : > { %v9183_v10 = vadd.f32 %v9182_v37, %v9105_v32 }
 0x349   : > { %v9184_v6 = vpop.f32.mrf.mxu1 }
 0x34a   : > { %v11109_v31 = vpop.eup %11108  ;;  %v9185_v43 = vadd.f32 %v9184_v6, %v9107_v45  ;;  %v9267_v0 = vadd.f32 %v9266_v36, %v9183_v10 }
 0x34b   : > { %10973 = vst [vmem:[%s13215_s6 + $0x50] sm:$0xf] %v11109_v31  ;;  %v9342_v62 = vpop.f32.mrf.mxu1 }
 0x34c   : > { %v11111_v3 = vpop.eup %11110  ;;  %v9269_v51 = vadd.f32 %v9268_v49, %v9185_v43  ;;  %v9343_v42 = vadd.f32 %v9342_v62, %v9267_v0 }
 0x34d   : > { %10974 = vst [vmem:[%s13215_s6 + $0x58] sm:$0xf] %v11111_v3  ;;  %v9344_v57 = vpop.f32.mrf.mxu1  ;;  %v9422_v17 = vpop.f32.mrf.mxu0 }
 0x34e   : > { %v10892_v58 = vrot.slane %v9343_v42, 7  ;;  %v9345_v26 = vadd.f32 %v9344_v57, %v9269_v51 }
 0x34f   : > { %v9424_v29 = vpop.f32.mrf.mxu0 }
 0x350   : > { %v10935_v14 = vsel %vm10932_vm12, %v10862_v21, %v10892_v58  ;;  %v10893_v55 = vrot.slane %v9345_v26, 7 }
 0x351   : > { %11112 = vtanh.f32 %v10935_v14 }
 0x352   : > { %v10936_v61 = vsel %vm10932_vm12, %v10863_v24, %v10893_v55  ;;  %v9595_v39 = vpop.f32.mrf.mxu0 }
 0x353   : > { %11114 = vtanh.f32 %v10936_v61 }
 0x354   : > { %v9597_v52 = vpop.f32.mrf.mxu0 }
 0x355   : > { %v9514_v1 = vpop.f32.mrf.mxu1 }
 0x356   : > { %v9515_v16 = vadd.f32 %v9514_v1, %v9422_v17 }
 0x357   : > { %v9516_v18 = vpop.f32.mrf.mxu1 }
 0x358   : > { %v9517_v34 = vadd.f32 %v9516_v18, %v9424_v29  ;;  %v9596_v25 = vadd.f32 %v9595_v39, %v9515_v16  ;;  %v9757_v27 = vpop.f32.mrf.mxu0 }
 0x35a   : > { %v9598_v54 = vadd.f32 %v9597_v52, %v9517_v34  ;;  %v9673_v46 = vpop.f32.mrf.mxu1  ;;  %v9759_v33 = vpop.f32.mrf.mxu0 }
 0x35b   : > { %v9674_v21 = vadd.f32 %v9673_v46, %v9596_v25 }
 0x35c   : > { %v9675_v41 = vpop.f32.mrf.mxu1 }
 0x35d   : > { %v9676_v13 = vadd.f32 %v9675_v41, %v9598_v54  ;;  %v9758_v50 = vadd.f32 %v9757_v27, %v9674_v21 }
 0x35e   : > { %v11113_v19 = vpop.eup %11112  ;;  %v9833_v24 = vpop.f32.mrf.mxu1 }
 0x35f   : > { %10975 = vst [vmem:[%s13215_s6 + $0x60] sm:$0xf] %v11113_v19  ;;  %v9760_v44 = vadd.f32 %v9759_v33, %v9676_v13  ;;  %v9834_v60 = vadd.f32 %v9833_v24, %v9758_v50 }
 0x360   : > { %v11115_v53 = vpop.eup %11114  ;;  %v9835_v48 = vpop.f32.mrf.mxu1 }
 0x361   : > { %10976 = vst [vmem:[%s13215_s6 + $0x68] sm:$0xf] %v11115_v53  ;;  %v10894_v63 = vrot.slane %v9834_v60, 7  ;;  %v9836_v35 = vadd.f32 %v9835_v48, %v9760_v44 }
 0x363   : > { %v10937_v12 = vsel %vm10932_vm12, %v10864_v5, %v10894_v63  ;;  %v10895_v59 = vrot.slane %v9836_v35, 7 }
 0x364   : > { %11116 = vtanh.f32 %v10937_v12 }
 0x365   : > { %v10938_v28 = vsel %vm10932_vm12, %v10865_v23, %v10895_v59 }
 0x366   : > { %11118 = vtanh.f32 %v10938_v28 }
 0x371   : > { %v11117_v30 = vpop.eup %11116 }
 0x372   : > { %10977 = vst [vmem:[%s13215_s6 + $0x70] sm:$0xf] %v11117_v30  ;;  %v9913_v56 = vpop.f32.mrf.mxu0 }
 0x373   : > { %v11119_v4 = vpop.eup %11118 }
 0x374   : > { %10978 = vst [vmem:[%s13215_s6 + $0x78] sm:$0xf] %v11119_v4  ;;  %v9915_v7 = vpop.f32.mrf.mxu0 }
 0x377   : > { %v10086_v32 = vpop.f32.mrf.mxu0 }
 0x379   : > { %v10088_v36 = vpop.f32.mrf.mxu0 }
 0x37a   : > { %v10005_v45 = vpop.f32.mrf.mxu1 }
 0x37b   : > { %v10006_v37 = vadd.f32 %v10005_v45, %v9913_v56 }
 0x37c   : > { %v10007_v22 = vpop.f32.mrf.mxu1  ;;  %v10248_v10 = vpop.f32.mrf.mxu0 }
 0x37d   : > { %v10087_v5 = vadd.f32 %v10086_v32, %v10006_v37  ;;  %v10008_v6 = vadd.f32 %v10007_v22, %v9915_v7 }
 0x37e   : > { %v10250_v43 = vpop.f32.mrf.mxu0 }
 0x37f   : > { %v10089_v49 = vadd.f32 %v10088_v36, %v10008_v6  ;;  %v10164_v31 = vpop.f32.mrf.mxu1 }
 0x380   : > { %v10165_v2 = vadd.f32 %v10164_v31, %v10087_v5 }
 0x381   : > { %v10166_v23 = vpop.f32.mrf.mxu1 }
 0x382   : > { %v10167_v0 = vadd.f32 %v10166_v23, %v10089_v49  ;;  %v10249_v62 = vadd.f32 %v10248_v10, %v10165_v2 }
 0x384   : > { %v10404_v3 = vpop.f32.mrf.mxu0  ;;  %v10251_v51 = vadd.f32 %v10250_v43, %v10167_v0 }
 0x386   : > { %v10324_v42 = vpop.f32.mrf.mxu1  ;;  %v10406_v57 = vpop.f32.mrf.mxu0 }
 0x387   : > { %v10325_v17 = vadd.f32 %v10324_v42, %v10249_v62 }
 0x388   : > { %v10326_v58 = vpop.f32.mrf.mxu1 }
 0x389   : > { %v10896_v26 = vrot.slane %v10325_v17, 7  ;;  %v10327_v29 = vadd.f32 %v10326_v58, %v10251_v51  ;;  %v10577_v14 = vpop.f32.mrf.mxu0 }
 0x38b   : > { %v10939_v55 = vsel %vm10932_vm12, %v10866_v15, %v10896_v26  ;;  %v10897_v61 = vrot.slane %v10327_v29, 7  ;;  %v10579_v1 = vpop.f32.mrf.mxu0 }
 0x38c   : > { %11120 = vtanh.f32 %v10939_v55 }
 0x38d   : > { %v10940_v39 = vsel %vm10932_vm12, %v10867_v8, %v10897_v61  ;;  %v10496_v52 = vpop.f32.mrf.mxu1 }
 0x38e   : > { %11122 = vtanh.f32 %v10940_v39  ;;  %v10497_v16 = vadd.f32 %v10496_v52, %v10404_v3 }
 0x38f   : > { %v10498_v18 = vpop.f32.mrf.mxu1 }
 0x390   : > { %v10578_v34 = vadd.f32 %v10577_v14, %v10497_v16  ;;  %v10499_v25 = vadd.f32 %v10498_v18, %v10406_v57  ;;  %v10739_v54 = vpop.f32.mrf.mxu0 }
 0x391   : > { %v10655_v27 = vpop.f32.mrf.mxu1 }
 0x392   : > { %v10580_v46 = vadd.f32 %v10579_v1, %v10499_v25  ;;  %v10656_v38 = vadd.f32 %v10655_v27, %v10578_v34  ;;  %v10741_v33 = vpop.f32.mrf.mxu0 }
 0x393   : > { %v10657_v21 = vpop.f32.mrf.mxu1 }
 0x394   : > { %v10740_v15 = vadd.f32 %v10739_v54, %v10656_v38  ;;  %v10658_v41 = vadd.f32 %v10657_v21, %v10580_v46 }
 0x395   : > { %v10815_v11 = vpop.f32.mrf.mxu1 }
 0x396   : > { %v10742_v8 = vadd.f32 %v10741_v33, %v10658_v41  ;;  %v10816_v13 = vadd.f32 %v10815_v11, %v10740_v15 }
 0x397   : > { %v10817_v50 = vpop.f32.mrf.mxu1 }
 0x398   : > { %v10898_v19 = vrot.slane %v10816_v13, 7  ;;  %v10818_v24 = vadd.f32 %v10817_v50, %v10742_v8 }
 0x399   : > { %v11121_v44 = vpop.eup %11120 }
 0x39a   : > { %10979 = vst [vmem:[%s13215_s6 + $0x80] sm:$0xf] %v11121_v44  ;;  %v10941_v60 = vsel %vm10932_vm12, %v10868_v20, %v10898_v19  ;;  %v10899_v53 = vrot.slane %v10818_v24, 7 }
 0x39b   : > { %v11123_v48 = vpop.eup %11122  ;;  %11124 = vtanh.f32 %v10941_v60 }
 0x39c   : > { %10980 = vst [vmem:[%s13215_s6 + $0x88] sm:$0xf] %v11123_v48  ;;  %v10942_v63 = vsel %vm10932_vm12, %v10869_v9, %v10899_v53 }
 0x39d   : > { %11126 = vtanh.f32 %v10942_v63 }
 0x3a8   : > { %v11125_v35 = vpop.eup %11124 }
 0x3a9   : > { %10981 = vst [vmem:[%s13215_s6 + $0x90] sm:$0xf] %v11125_v35 }
 0x3aa   : > { %v11127_v12 = vpop.eup %11126 }
 0x3ab   : > { %10982 = vst [vmem:[%s13215_s6 + $0x98] sm:$0xf] %v11127_v12 }
 0x3ac PF: > { %s12_s9 = sadd.s32 1, %s11136_s9  }
 0x3ad   : > { %p9_p4 = scmp.ge.s32.totalorder %s12_s9, 4  }
 0x3af   :  { %11 = sbr.rel (!%p9_p4) target bundleno = 1 (0x1), region = 61 }

</bundles_post_ra>
